<compile_context>
chip_gen: v7x
topology: tpu7x:2x2x1
jax: 0.10.0
libtpu: 0.0.40
codegen_flags: <defaults>
</compile_context>

<pallas_src>
import functools

import numpy as np
import jax
import jax.numpy as jnp
from jax.experimental import pallas as pl
from jax.experimental.pallas import tpu as pltpu

VMEM = pl.BlockSpec(memory_space=pltpu.MemorySpace.VMEM)

_CPARAMS = pltpu.CompilerParams(
    dimension_semantics=("parallel",),
    vmem_limit_bytes=32 * 1024 * 1024,
)

# kernel-tap index (0,1,2) -> (parity plane index, +row/col offset) for stride-2
_TAPMAP = ((1, 0), (0, 1), (1, 1))


# ----------------------------------------------------------------------------
# BlockSpec helpers
# ----------------------------------------------------------------------------
def _per_image_spec(shape):
    """One (1, R, C) image slab per grid step (grid is over the batch)."""
    return pl.BlockSpec((1,) + tuple(shape[1:]), lambda n: (n, 0, 0))


def _shared_spec(shape):
    """Grid-invariant operand (weights / masks): stays resident in VMEM."""
    nd = len(shape)
    return pl.BlockSpec(tuple(shape), lambda n, _nd=nd: (0,) * _nd)


def _interior_mask(hp, wp, r0, nrows, c0, ncols, total_rows):
    """(total_rows, 1) f32 mask: 1 on real pixels of the padded grid, 0 on halo."""
    m = np.zeros((hp, wp), np.float32)
    m[r0:r0 + nrows, c0:c0 + ncols] = 1.0
    flat = np.zeros((total_rows, 1), np.float32)
    flat[:hp * wp, 0] = m.reshape(-1)
    return jnp.asarray(flat)


def _parity_plane_slabs(x, pad_value):
    """Space-to-depth split for stride-2 3x3 windows.

    Returns 4 slabs of shape (N, Hq*Wq + Wq + 1, C): each parity plane padded
    by one row/col at the top-left (the conv padding) plus slack rows so the
    4 tap offsets {0, 1, Wq, Wq+1} are in-bounds contiguous slices.
    """
    N, H, W, C = x.shape
    assert H % 2 == 0 and W % 2 == 0, "stride-2 stage needs even spatial dims"
    # TODO(synk): odd spatial sizes (ceil_mode-style maxpool) are not handled.
    Ho, Wo = H // 2, W // 2
    Hq, Wq = Ho + 1, Wo + 1
    r_out = Hq * Wq
    slack = Wq + 1
    slabs = []
    for p in (0, 1):
        for q in (0, 1):
            plane = jnp.pad(x[:, p::2, q::2, :],
                            ((0, 0), (1, 0), (1, 0), (0, 0)),
                            constant_values=pad_value)
            plane = plane.reshape(N, r_out, C)
            plane = jnp.pad(plane, ((0, 0), (0, slack), (0, 0)),
                            constant_values=pad_value)
            slabs.append(plane)
    return slabs, Ho, Wo, Hq, Wq, r_out


# ----------------------------------------------------------------------------
# Pallas kernels
# ----------------------------------------------------------------------------
def _conv1_kernel(p00_ref, p01_ref, p10_ref, p11_ref, w_ref, s_ref, b_ref,
                  o_ref, *, Wq, R_out):
    """Dense 3x3 stride-2 conv (Cin=3) + folded BN + ReLU."""
    planes = (p00_ref[0], p01_ref[0], p10_ref[0], p11_ref[0])
    w = w_ref[...]                                    # (9, Cin, Cout)
    acc = None
    for ky in range(3):
        p, a = _TAPMAP[ky]
        for kx in range(3):
            q, b = _TAPMAP[kx]
            off = a * Wq + b
            tap = planes[2 * p + q][off:off + R_out, :]
            term = jnp.dot(tap, w[ky * 3 + kx], preferred_element_type=jnp.float32)
            acc = term if acc is None else acc + term
    acc = jnp.maximum(acc * s_ref[...] + b_ref[...], 0.0)
    o_ref[0] = acc.astype(o_ref.dtype)


def _maxpool_kernel(p00_ref, p01_ref, p10_ref, p11_ref, o_ref, *, Wq, R_out):
    """3x3 stride-2 maxpool (padding contributes -inf, i.e. is ignored)."""
    planes = (p00_ref[0], p01_ref[0], p10_ref[0], p11_ref[0])
    acc = None
    for ky in range(3):
        p, a = _TAPMAP[ky]
        for kx in range(3):
            q, b = _TAPMAP[kx]
            off = a * Wq + b
            tap = planes[2 * p + q][off:off + R_out, :]
            acc = tap if acc is None else jnp.maximum(acc, tap)
    o_ref[0] = acc.astype(o_ref.dtype)


def _block_s1_kernel(x1_ref, x2_ref, mask_ref, w1_ref, s1_ref, b1_ref,
                     wdw_ref, sdw_ref, bdw_ref, w2_ref, s2_ref, b2_ref,
                     ptop_ref, o_ref, *, Wp, R_out):
    """Fused stride-1 InvertedResidual block (whole branch2 chain in VMEM)."""
    # branch2 / pw1 + BN + ReLU on the padded flat grid (bf16 MXU, f32 acc).
    t = jnp.dot(x2_ref[0], w1_ref[...], preferred_element_type=jnp.float32)
    t = jnp.maximum(t * s1_ref[...] + b1_ref[...], 0.0)
    t = t * mask_ref[...]            # zero the halo so 3x3 taps see true zeros
    # depthwise 3x3 stride-1: 9 shifted contiguous row-slices of the flat grid.
    wdw = wdw_ref[...]
    acc = None
    for ky in range(3):
        for kx in range(3):
            k = ky * 3 + kx
            off = ky * Wp + kx
            term = t[off:off + R_out, :] * wdw[k:k + 1, :]
            acc = term if acc is None else acc + term
    acc = acc * sdw_ref[...] + bdw_ref[...]
    # pw2 + BN + ReLU; concat + channel_shuffle folded into the scattered weights.
    z = jnp.dot(acc.astype(jnp.bfloat16), w2_ref[...],
                preferred_element_type=jnp.float32)
    z = jnp.maximum(z * s2_ref[...] + b2_ref[...], 0.0)
    # identity half scattered onto the even output channels (shuffle permutation).
    y = jnp.dot(x1_ref[0], ptop_ref[...], preferred_element_type=jnp.float32)
    o_ref[0] = (y + z).astype(o_ref.dtype)


def _block_s2_kernel(p00_ref, p01_ref, p10_ref, p11_ref, mask_ref,
                     wdw1_ref, sdw1_ref, bdw1_ref, wpw1_ref, spw1_ref, bpw1_ref,
                     w1_ref, s1_ref, b1_ref, wdw2_ref, sdw2_ref, bdw2_ref,
                     w2_ref, s2_ref, b2_ref, o_ref, *, Wq, R_out):
    """Fused stride-2 InvertedResidual block (branch1 + branch2 + shuffle)."""
    planes_bf = (p00_ref[0], p01_ref[0], p10_ref[0], p11_ref[0])
    planes_f32 = tuple(pl_.astype(jnp.float32) for pl_ in planes_bf)

    def dw_accumulate(planes, w9):
        acc = None
        for ky in range(3):
            p, a = _TAPMAP[ky]
            for kx in range(3):
                q, b = _TAPMAP[kx]
                k = ky * 3 + kx
                off = a * Wq + b
                term = planes[2 * p + q][off:off + R_out, :] * w9[k:k + 1, :]
                acc = term if acc is None else acc + term
        return acc

    # --- branch1: dw3x3(s2) + BN on the raw input planes, then pw + BN + ReLU.
    acc1 = dw_accumulate(planes_f32, wdw1_ref[...])
    acc1 = acc1 * sdw1_ref[...] + bdw1_ref[...]
    y1 = jnp.dot(acc1.astype(jnp.bfloat16), wpw1_ref[...],
                 preferred_element_type=jnp.float32)
    y1 = jnp.maximum(y1 * spw1_ref[...] + bpw1_ref[...], 0.0)

    # --- branch2: pw1 + BN + ReLU per parity plane, dw3x3(s2) + BN, pw2 + BN + ReLU.
    mask = mask_ref[...]
    tplanes = []
    for plane in planes_bf:
        t = jnp.dot(plane, w1_ref[...], preferred_element_type=jnp.float32)
        t = jnp.maximum(t * s1_ref[...] + b1_ref[...], 0.0) * mask
        tplanes.append(t)
    acc2 = dw_accumulate(tuple(tplanes), wdw2_ref[...])
    acc2 = acc2 * sdw2_ref[...] + bdw2_ref[...]
    y2 = jnp.dot(acc2.astype(jnp.bfloat16), w2_ref[...],
                 preferred_element_type=jnp.float32)
    y2 = jnp.maximum(y2 * s2_ref[...] + b2_ref[...], 0.0)

    # concat + channel_shuffle already folded into the scattered pw weights.
    o_ref[0] = (y1 + y2).astype(o_ref.dtype)


def _head_kernel(x_ref, w5_ref, s5_ref, b5_ref, wfc_ref, bfc_ref, o_ref, *, batch):
    """conv5 (1x1 + BN + ReLU) + global average pool + FC, fused."""
    for n in range(batch):                       # tiny static batch loop
        z = jnp.dot(x_ref[n], w5_ref[...], preferred_element_type=jnp.float32)
        z = jnp.maximum(z * s5_ref[...] + b5_ref[...], 0.0)
        feat = jnp.mean(z, axis=0, keepdims=True)            # (1, C5)
        logits = jnp.dot(feat.astype(jnp.bfloat16), wfc_ref[...],
                         preferred_element_type=jnp.float32) + bfc_ref[...]
        o_ref[pl.ds(n, 1), :] = logits.astype(o_ref.dtype)


# ----------------------------------------------------------------------------
# Layer wrappers (pallas_call setup + cheap XLA layout prep)
# ----------------------------------------------------------------------------
def conv1_forward(x, p):
    N = x.shape[0]
    c0 = p['w'].shape[-1]
    slabs, Ho, Wo, Hq, Wq, r_out = _parity_plane_slabs(x, 0.0)
    args = tuple(slabs) + (p['w'], p['scale'], p['bias'])
    in_specs = [_per_image_spec(s.shape) for s in slabs] + \
               [_shared_spec(a.shape) for a in args[4:]]
    out = pl.pallas_call(
        functools.partial(_conv1_kernel, Wq=Wq, R_out=r_out),
        grid=(N,),
        in_specs=in_specs,
        out_specs=_per_image_spec((N, r_out, c0)),
        out_shape=jax.ShapeDtypeStruct((N, r_out, c0), jnp.float32),
        compiler_params=_CPARAMS,
    )(*args)
    return out.reshape(N, Hq, Wq, c0)[:, :Ho, :Wo, :]


def maxpool_forward(x):
    N, _, _, C = x.shape
    slabs, Ho, Wo, Hq, Wq, r_out = _parity_plane_slabs(x, float("-inf"))
    in_specs = [_per_image_spec(s.shape) for s in slabs]
    out = pl.pallas_call(
        functools.partial(_maxpool_kernel, Wq=Wq, R_out=r_out),
        grid=(N,),
        in_specs=in_specs,
        out_specs=_per_image_spec((N, r_out, C)),
        out_shape=jax.ShapeDtypeStruct((N, r_out, C), jnp.bfloat16),
        compiler_params=_CPARAMS,
    )(*slabs)
    return out.reshape(N, Hq, Wq, C)[:, :Ho, :Wo, :]


def block_forward_s1(x, blk):
    N, H, W, C = x.shape
    cpg = C // 2
    Hp, Wp = H + 2, W + 2
    r_out = Hp * Wp
    slack = 2 * Wp + 2
    x1 = x[..., :cpg]
    x2 = x[..., cpg:]
    # identity half aligned to the (corner-indexed) output grid
    x1tl = jnp.pad(x1, ((0, 0), (0, 2), (0, 2), (0, 0))).reshape(N, r_out, cpg)
    # branch2 input on the zero-padded grid + slack rows for the tap slices
    x2p = jnp.pad(x2, ((0, 0), (1, 1), (1, 1), (0, 0))).reshape(N, r_out, cpg)
    x2p = jnp.pad(x2p, ((0, 0), (0, slack), (0, 0)))
    mask = _interior_mask(Hp, Wp, 1, H, 1, W, r_out + slack)
    b2 = blk['b2']
    args = (x1tl, x2p, mask, b2['w1'], b2['s1'], b2['b1'],
            b2['wdw'], b2['sdw'], b2['bdw'], b2['w2'], b2['s2'], b2['b2'],
            blk['ptop'])
    in_specs = [_per_image_spec(x1tl.shape), _per_image_spec(x2p.shape)] + \
               [_shared_spec(a.shape) for a in args[2:]]
    out = pl.pallas_call(
        functools.partial(_block_s1_kernel, Wp=Wp, R_out=r_out),
        grid=(N,),
        in_specs=in_specs,
        out_specs=_per_image_spec((N, r_out, C)),
        out_shape=jax.ShapeDtypeStruct((N, r_out, C), jnp.bfloat16),
        compiler_params=_CPARAMS,
    )(*args)
    return out.reshape(N, Hp, Wp, C)[:, :H, :W, :]


def block_forward_s2(x, blk):
    N = x.shape[0]
    C = blk['out_channels']
    slabs, Ho, Wo, Hq, Wq, r_out = _parity_plane_slabs(x, 0.0)
    mask = _interior_mask(Hq, Wq, 1, Ho, 1, Wo, r_out + Wq + 1)
    b1, b2 = blk['b1'], blk['b2']
    args = tuple(slabs) + (mask,
        b1['wdw'], b1['sdw'], b1['bdw'], b1['wpw'], b1['spw'], b1['bpw'],
        b2['w1'], b2['s1'], b2['b1'], b2['wdw'], b2['sdw'], b2['bdw'],
        b2['w2'], b2['s2'], b2['b2'])
    in_specs = [_per_image_spec(s.shape) for s in slabs] + \
               [_shared_spec(a.shape) for a in args[4:]]
    out = pl.pallas_call(
        functools.partial(_block_s2_kernel, Wq=Wq, R_out=r_out),
        grid=(N,),
        in_specs=in_specs,
        out_specs=_per_image_spec((N, r_out, C)),
        out_shape=jax.ShapeDtypeStruct((N, r_out, C), jnp.bfloat16),
        compiler_params=_CPARAMS,
    )(*args)
    return out.reshape(N, Hq, Wq, C)[:, :Ho, :Wo, :]


def head_forward(c4, p):
    N, H, W, C = c4.shape
    x = c4.reshape(N, H * W, C)
    num_classes = p['wfc'].shape[1]
    return pl.pallas_call(
        functools.partial(_head_kernel, batch=N),
        in_specs=[VMEM] * 6,
        out_specs=VMEM,
        out_shape=jax.ShapeDtypeStruct((N, num_classes), jnp.float32),
    )(x, p['w5'], p['s5'], p['b5'], p['wfc'], p['bfc'])


def run_stage(x, blocks):
    for blk in blocks:
        if blk['stride'] == 1:
            x = block_forward_s1(x, blk)
        else:
            x = block_forward_s2(x, blk)
    return x


def shufflenet_v2_forward(x_nchw, params):
    x = jnp.transpose(x_nchw, (0, 2, 3, 1)).astype(jnp.float32)   # -> NHWC
    x = conv1_forward(x, params['conv1'])            # conv1 + BN + ReLU
    c1 = maxpool_forward(x)                          # maxpool 3x3 s2 p1
    c2 = run_stage(c1, params['stage2'])
    c3 = run_stage(c2, params['stage3'])
    c4 = run_stage(c3, params['stage4'])
    return head_forward(c4, params['head'])          # conv5 + GAP + FC


# ----------------------------------------------------------------------------
# Deterministic parameter initialization (weights pre-folded for the kernels)
# ----------------------------------------------------------------------------
class KeyGen:
    def __init__(self, seed):
        self.key = jax.random.PRNGKey(seed)

    def __call__(self):
        self.key, sub = jax.random.split(self.key)
        return sub


def init_bn_folded(kg, C):
    gamma = 1.0 + 0.1 * jax.random.normal(kg(), (C,), jnp.float32)
    beta = 0.1 * jax.random.normal(kg(), (C,), jnp.float32)
    mean = 0.1 * jax.random.normal(kg(), (C,), jnp.float32)
    var = 1.0 + 0.1 * jax.random.uniform(kg(), (C,), jnp.float32)
    scale = gamma / jnp.sqrt(var + 1e-5)
    bias = beta - mean * scale
    return scale, bias


def init_conv_w(kg, fan_in, cout):
    return jax.random.normal(kg(), (fan_in, cout), jnp.float32) * np.sqrt(2.0 / fan_in)


def init_dw_w(kg, C):
    return jax.random.normal(kg(), (9, C), jnp.float32) * np.sqrt(2.0 / 9.0)


def scatter_pw(w, s, b, parity, C):
    """Fold concat + channel_shuffle(groups=2) into the pointwise weights:
    scatter this branch's channels onto even (parity=0) / odd (parity=1) slots."""
    K = w.shape[0]
    w_sc = jnp.zeros((K, C), jnp.float32).at[:, parity::2].set(w)
    s_sc = jnp.ones((C,), jnp.float32).at[parity::2].set(s)
    b_sc = jnp.zeros((C,), jnp.float32).at[parity::2].set(b)
    return w_sc, s_sc, b_sc


def _even_scatter_eye(cpg, C):
    return jnp.zeros((cpg, C), jnp.float32).at[:, 0::2].set(jnp.eye(cpg, dtype=jnp.float32))


def init_block(kg, inp, oup, stride):
    bf = oup // 2
    blk = {'stride': stride, 'out_channels': oup}
    if stride > 1:
        sdw, bdw = init_bn_folded(kg, inp)
        wpw = init_conv_w(kg, inp, bf)
        spw, bpw = init_bn_folded(kg, bf)
        w_sc, s_sc, b_sc = scatter_pw(wpw, spw, bpw, 0, oup)      # -> even channels
        blk['b1'] = dict(wdw=init_dw_w(kg, inp),
                         sdw=sdw.reshape(1, -1), bdw=bdw.reshape(1, -1),
                         wpw=w_sc.astype(jnp.bfloat16),
                         spw=s_sc.reshape(1, -1), bpw=b_sc.reshape(1, -1))
    else:
        assert inp == oup
        blk['ptop'] = _even_scatter_eye(bf, oup).astype(jnp.bfloat16)
    in2 = inp if stride > 1 else bf
    w1 = init_conv_w(kg, in2, bf)
    s1, b1 = init_bn_folded(kg, bf)
    wdw2 = init_dw_w(kg, bf)
    sdw2, bdw2 = init_bn_folded(kg, bf)
    w2 = init_conv_w(kg, bf, bf)
    s2, b2 = init_bn_folded(kg, bf)
    w2_sc, s2_sc, b2_sc = scatter_pw(w2, s2, b2, 1, oup)          # -> odd channels
    blk['b2'] = dict(w1=w1.astype(jnp.bfloat16),
                     s1=s1.reshape(1, -1), b1=b1.reshape(1, -1),
                     wdw=wdw2, sdw=sdw2.reshape(1, -1), bdw=bdw2.reshape(1, -1),
                     w2=w2_sc.astype(jnp.bfloat16),
                     s2=s2_sc.reshape(1, -1), b2=b2_sc.reshape(1, -1))
    return blk


def init_params(stages_repeats, stages_out_channels, num_classes, seed=0):
    kg = KeyGen(seed)
    params = {}
    c0 = stages_out_channels[0]
    s, b = init_bn_folded(kg, c0)
    params['conv1'] = dict(
        w=jax.random.normal(kg(), (9, 3, c0), jnp.float32) * np.sqrt(2.0 / 27.0),
        scale=s.reshape(1, -1), bias=b.reshape(1, -1))
    in_ch = c0
    for name, repeats, out_ch in zip(['stage2', 'stage3', 'stage4'],
                                     stages_repeats, stages_out_channels[1:]):
        blocks = [init_block(kg, in_ch, out_ch, 2)]
        for _ in range(repeats - 1):
            blocks.append(init_block(kg, out_ch, out_ch, 1))
        params[name] = blocks
        in_ch = out_ch
    c_last = stages_out_channels[-1]
    s5, b5 = init_bn_folded(kg, c_last)
    params['head'] = dict(
        w5=init_conv_w(kg, in_ch, c_last).astype(jnp.bfloat16),
        s5=s5.reshape(1, -1), b5=b5.reshape(1, -1),
        wfc=init_conv_w(kg, c_last, num_classes).astype(jnp.bfloat16),
        bfc=0.01 * jax.random.normal(kg(), (1, num_classes), jnp.float32))
    return params


# ----------------------------------------------------------------------------
if __name__ == "__main__":
    stages_repeats = [2, 2, 2]
    stages_out_channels = [8, 16, 32, 64, 128]
    num_classes = 10

    params = init_params(stages_repeats, stages_out_channels, num_classes, seed=0)

    key = jax.random.PRNGKey(0)
    x = jax.random.normal(key, (2, 3, 32, 32), jnp.float32)   # NCHW input

    fwd = jax.jit(lambda inp: shufflenet_v2_forward(inp, params))
    logits = jax.block_until_ready(fwd(x))

    assert logits.shape == (2, num_classes)
    assert bool(jnp.all(jnp.isfinite(logits)))
    print("KERNEL_OK")
</pallas_src>

<mosaic_0001>
module attributes {stable_mosaic.version = 11 : i64} {
  func.func @_conv1_kernel(%arg0: i32, %arg1: memref<1x307x3xf32, #tpu.memory_space<vmem>>, %arg2: memref<1x307x3xf32, #tpu.memory_space<vmem>>, %arg3: memref<1x307x3xf32, #tpu.memory_space<vmem>>, %arg4: memref<1x307x3xf32, #tpu.memory_space<vmem>>, %arg5: memref<9x3x8xf32, #tpu.memory_space<vmem>>, %arg6: memref<1x8xf32, #tpu.memory_space<vmem>>, %arg7: memref<1x8xf32, #tpu.memory_space<vmem>>, %arg8: memref<1x289x8xf32, #tpu.memory_space<vmem>>) attributes {dimension_semantics = [#tpu.dimension_semantics<parallel>], iteration_bounds = array<i64: 2>, scalar_prefetch = 0 : i64, scratch_operands = 0 : i64, tpu.core_type = #tpu.core_type<tc>, window_params = [{transform_indices = @transform_0, window_bounds = array<i64: 1, 307, 3>}, {transform_indices = @transform_1, window_bounds = array<i64: 1, 307, 3>}, {transform_indices = @transform_2, window_bounds = array<i64: 1, 307, 3>}, {transform_indices = @transform_3, window_bounds = array<i64: 1, 307, 3>}, {pipeline_mode = #tpu.pipeline_mode<synchronous>, transform_indices = @transform_4, window_bounds = array<i64: 9, 3, 8>}, {pipeline_mode = #tpu.pipeline_mode<synchronous>, transform_indices = @transform_5, window_bounds = array<i64: 1, 8>}, {pipeline_mode = #tpu.pipeline_mode<synchronous>, transform_indices = @transform_6, window_bounds = array<i64: 1, 8>}, {transform_indices = @transform_7, window_bounds = array<i64: 1, 289, 8>}]} {
    %c0 = arith.constant 0 : index
    %c0_0 = arith.constant 0 : index
    %c0_1 = arith.constant 0 : index
    %0 = vector.load %arg1[%c0, %c0_0, %c0_1] : memref<1x307x3xf32, #tpu.memory_space<vmem>>, vector<1x307x3xf32>
    %1 = vector.shape_cast %0 : vector<1x307x3xf32> to vector<307x3xf32>
    %c0_2 = arith.constant 0 : index
    %c0_3 = arith.constant 0 : index
    %c0_4 = arith.constant 0 : index
    %2 = vector.load %arg2[%c0_2, %c0_3, %c0_4] : memref<1x307x3xf32, #tpu.memory_space<vmem>>, vector<1x307x3xf32>
    %3 = vector.shape_cast %2 : vector<1x307x3xf32> to vector<307x3xf32>
    %c0_5 = arith.constant 0 : index
    %c0_6 = arith.constant 0 : index
    %c0_7 = arith.constant 0 : index
    %4 = vector.load %arg3[%c0_5, %c0_6, %c0_7] : memref<1x307x3xf32, #tpu.memory_space<vmem>>, vector<1x307x3xf32>
    %5 = vector.shape_cast %4 : vector<1x307x3xf32> to vector<307x3xf32>
    %c0_8 = arith.constant 0 : index
    %c0_9 = arith.constant 0 : index
    %c0_10 = arith.constant 0 : index
    %6 = vector.load %arg4[%c0_8, %c0_9, %c0_10] : memref<1x307x3xf32, #tpu.memory_space<vmem>>, vector<1x307x3xf32>
    %7 = vector.shape_cast %6 : vector<1x307x3xf32> to vector<307x3xf32>
    %c0_11 = arith.constant 0 : index
    %c0_12 = arith.constant 0 : index
    %c0_13 = arith.constant 0 : index
    %8 = vector.load %arg5[%c0_11, %c0_12, %c0_13] : memref<9x3x8xf32, #tpu.memory_space<vmem>>, vector<9x3x8xf32>
    %9 = vector.extract_strided_slice %7 {offsets = [0, 0], sizes = [289, 3], strides = [1, 1]} : vector<307x3xf32> to vector<289x3xf32>
    %10 = vector.extract_strided_slice %8 {offsets = [0, 0, 0], sizes = [1, 3, 8], strides = [1, 1, 1]} : vector<9x3x8xf32> to vector<1x3x8xf32>
    %11 = vector.shape_cast %10 : vector<1x3x8xf32> to vector<3x8xf32>
    %cst = arith.constant dense<0.000000e+00> : vector<289x8xf32>
    %12 = tpu.matmul %9, %11, %cst {dimension_numbers = #tpu.dot_dimension_numbers<[1], [0], [0], [1], [0, 0, 1, 1], [], []>} : vector<289x3xf32>, vector<3x8xf32>, vector<289x8xf32> -> vector<289x8xf32>
    %13 = vector.extract_strided_slice %5 {offsets = [1, 0], sizes = [289, 3], strides = [1, 1]} : vector<307x3xf32> to vector<289x3xf32>
    %14 = vector.extract_strided_slice %8 {offsets = [1, 0, 0], sizes = [1, 3, 8], strides = [1, 1, 1]} : vector<9x3x8xf32> to vector<1x3x8xf32>
    %15 = vector.shape_cast %14 : vector<1x3x8xf32> to vector<3x8xf32>
    %cst_14 = arith.constant dense<0.000000e+00> : vector<289x8xf32>
    %16 = tpu.matmul %13, %15, %cst_14 {dimension_numbers = #tpu.dot_dimension_numbers<[1], [0], [0], [1], [0, 0, 1, 1], [], []>} : vector<289x3xf32>, vector<3x8xf32>, vector<289x8xf32> -> vector<289x8xf32>
    %17 = arith.addf %12, %16 : vector<289x8xf32>
    %18 = vector.extract_strided_slice %7 {offsets = [1, 0], sizes = [289, 3], strides = [1, 1]} : vector<307x3xf32> to vector<289x3xf32>
    %19 = vector.extract_strided_slice %8 {offsets = [2, 0, 0], sizes = [1, 3, 8], strides = [1, 1, 1]} : vector<9x3x8xf32> to vector<1x3x8xf32>
    %20 = vector.shape_cast %19 : vector<1x3x8xf32> to vector<3x8xf32>
    %cst_15 = arith.constant dense<0.000000e+00> : vector<289x8xf32>
    %21 = tpu.matmul %18, %20, %cst_15 {dimension_numbers = #tpu.dot_dimension_numbers<[1], [0], [0], [1], [0, 0, 1, 1], [], []>} : vector<289x3xf32>, vector<3x8xf32>, vector<289x8xf32> -> vector<289x8xf32>
    %22 = arith.addf %17, %21 : vector<289x8xf32>
    %23 = vector.extract_strided_slice %3 {offsets = [17, 0], sizes = [289, 3], strides = [1, 1]} : vector<307x3xf32> to vector<289x3xf32>
    %24 = vector.extract_strided_slice %8 {offsets = [3, 0, 0], sizes = [1, 3, 8], strides = [1, 1, 1]} : vector<9x3x8xf32> to vector<1x3x8xf32>
    %25 = vector.shape_cast %24 : vector<1x3x8xf32> to vector<3x8xf32>
    %cst_16 = arith.constant dense<0.000000e+00> : vector<289x8xf32>
    %26 = tpu.matmul %23, %25, %cst_16 {dimension_numbers = #tpu.dot_dimension_numbers<[1], [0], [0], [1], [0, 0, 1, 1], [], []>} : vector<289x3xf32>, vector<3x8xf32>, vector<289x8xf32> -> vector<289x8xf32>
    %27 = arith.addf %22, %26 : vector<289x8xf32>
    %28 = vector.extract_strided_slice %1 {offsets = [18, 0], sizes = [289, 3], strides = [1, 1]} : vector<307x3xf32> to vector<289x3xf32>
    %29 = vector.extract_strided_slice %8 {offsets = [4, 0, 0], sizes = [1, 3, 8], strides = [1, 1, 1]} : vector<9x3x8xf32> to vector<1x3x8xf32>
    %30 = vector.shape_cast %29 : vector<1x3x8xf32> to vector<3x8xf32>
    %cst_17 = arith.constant dense<0.000000e+00> : vector<289x8xf32>
    %31 = tpu.matmul %28, %30, %cst_17 {dimension_numbers = #tpu.dot_dimension_numbers<[1], [0], [0], [1], [0, 0, 1, 1], [], []>} : vector<289x3xf32>, vector<3x8xf32>, vector<289x8xf32> -> vector<289x8xf32>
    %32 = arith.addf %27, %31 : vector<289x8xf32>
    %33 = vector.extract_strided_slice %3 {offsets = [18, 0], sizes = [289, 3], strides = [1, 1]} : vector<307x3xf32> to vector<289x3xf32>
    %34 = vector.extract_strided_slice %8 {offsets = [5, 0, 0], sizes = [1, 3, 8], strides = [1, 1, 1]} : vector<9x3x8xf32> to vector<1x3x8xf32>
    %35 = vector.shape_cast %34 : vector<1x3x8xf32> to vector<3x8xf32>
    %cst_18 = arith.constant dense<0.000000e+00> : vector<289x8xf32>
    %36 = tpu.matmul %33, %35, %cst_18 {dimension_numbers = #tpu.dot_dimension_numbers<[1], [0], [0], [1], [0, 0, 1, 1], [], []>} : vector<289x3xf32>, vector<3x8xf32>, vector<289x8xf32> -> vector<289x8xf32>
    %37 = arith.addf %32, %36 : vector<289x8xf32>
    %38 = vector.extract_strided_slice %7 {offsets = [17, 0], sizes = [289, 3], strides = [1, 1]} : vector<307x3xf32> to vector<289x3xf32>
    %39 = vector.extract_strided_slice %8 {offsets = [6, 0, 0], sizes = [1, 3, 8], strides = [1, 1, 1]} : vector<9x3x8xf32> to vector<1x3x8xf32>
    %40 = vector.shape_cast %39 : vector<1x3x8xf32> to vector<3x8xf32>
    %cst_19 = arith.constant dense<0.000000e+00> : vector<289x8xf32>
    %41 = tpu.matmul %38, %40, %cst_19 {dimension_numbers = #tpu.dot_dimension_numbers<[1], [0], [0], [1], [0, 0, 1, 1], [], []>} : vector<289x3xf32>, vector<3x8xf32>, vector<289x8xf32> -> vector<289x8xf32>
    %42 = arith.addf %37, %41 : vector<289x8xf32>
    %43 = vector.extract_strided_slice %5 {offsets = [18, 0], sizes = [289, 3], strides = [1, 1]} : vector<307x3xf32> to vector<289x3xf32>
    %44 = vector.extract_strided_slice %8 {offsets = [7, 0, 0], sizes = [1, 3, 8], strides = [1, 1, 1]} : vector<9x3x8xf32> to vector<1x3x8xf32>
    %45 = vector.shape_cast %44 : vector<1x3x8xf32> to vector<3x8xf32>
    %cst_20 = arith.constant dense<0.000000e+00> : vector<289x8xf32>
    %46 = tpu.matmul %43, %45, %cst_20 {dimension_numbers = #tpu.dot_dimension_numbers<[1], [0], [0], [1], [0, 0, 1, 1], [], []>} : vector<289x3xf32>, vector<3x8xf32>, vector<289x8xf32> -> vector<289x8xf32>
    %47 = arith.addf %42, %46 : vector<289x8xf32>
    %48 = vector.extract_strided_slice %7 {offsets = [18, 0], sizes = [289, 3], strides = [1, 1]} : vector<307x3xf32> to vector<289x3xf32>
    %49 = vector.extract_strided_slice %8 {offsets = [8, 0, 0], sizes = [1, 3, 8], strides = [1, 1, 1]} : vector<9x3x8xf32> to vector<1x3x8xf32>
    %50 = vector.shape_cast %49 : vector<1x3x8xf32> to vector<3x8xf32>
    %cst_21 = arith.constant dense<0.000000e+00> : vector<289x8xf32>
    %51 = tpu.matmul %48, %50, %cst_21 {dimension_numbers = #tpu.dot_dimension_numbers<[1], [0], [0], [1], [0, 0, 1, 1], [], []>} : vector<289x3xf32>, vector<3x8xf32>, vector<289x8xf32> -> vector<289x8xf32>
    %52 = arith.addf %47, %51 : vector<289x8xf32>
    %c0_22 = arith.constant 0 : index
    %c0_23 = arith.constant 0 : index
    %53 = vector.load %arg6[%c0_22, %c0_23] : memref<1x8xf32, #tpu.memory_space<vmem>>, vector<1x8xf32>
    %54 = vector.broadcast %53 : vector<1x8xf32> to vector<289x8xf32>
    %55 = arith.mulf %52, %54 : vector<289x8xf32>
    %c0_24 = arith.constant 0 : index
    %c0_25 = arith.constant 0 : index
    %56 = vector.load %arg7[%c0_24, %c0_25] : memref<1x8xf32, #tpu.memory_space<vmem>>, vector<1x8xf32>
    %57 = vector.broadcast %56 : vector<1x8xf32> to vector<289x8xf32>
    %58 = arith.addf %55, %57 : vector<289x8xf32>
    %cst_26 = arith.constant 0.000000e+00 : f32
    %59 = vector.broadcast %cst_26 : f32 to vector<289x8xf32>
    %60 = arith.maximumf %58, %59 : vector<289x8xf32>
    %c0_27 = arith.constant 0 : index
    %c0_28 = arith.constant 0 : index
    %c0_29 = arith.constant 0 : index
    %61 = vector.load %arg8[%c0_27, %c0_28, %c0_29] : memref<1x289x8xf32, #tpu.memory_space<vmem>>, vector<1x289x8xf32>
    %62 = vector.shape_cast %61 : vector<1x289x8xf32> to vector<289x8xf32>
    %63 = vector.shape_cast %60 : vector<289x8xf32> to vector<1x289x8xf32>
    tpu.vector_store %arg8[%c0_27, %c0_28, %c0_29], %63 {strides = array<i32>} : memref<1x289x8xf32, #tpu.memory_space<vmem>>, vector<1x289x8xf32>,
    return
  }
  func.func @transform_0(%arg0: i32) -> (i32, i32, i32) {
    %c0_i32 = arith.constant 0 : i32
    %c0_i32_0 = arith.constant 0 : i32
    %c0_i32_1 = arith.constant 0 : i32
    return %arg0, %c0_i32, %c0_i32_0 : i32, i32, i32
  }
  func.func @transform_1(%arg0: i32) -> (i32, i32, i32) {
    %c0_i32 = arith.constant 0 : i32
    %c0_i32_0 = arith.constant 0 : i32
    %c0_i32_1 = arith.constant 0 : i32
    return %arg0, %c0_i32, %c0_i32_0 : i32, i32, i32
  }
  func.func @transform_2(%arg0: i32) -> (i32, i32, i32) {
    %c0_i32 = arith.constant 0 : i32
    %c0_i32_0 = arith.constant 0 : i32
    %c0_i32_1 = arith.constant 0 : i32
    return %arg0, %c0_i32, %c0_i32_0 : i32, i32, i32
  }
  func.func @transform_3(%arg0: i32) -> (i32, i32, i32) {
    %c0_i32 = arith.constant 0 : i32
    %c0_i32_0 = arith.constant 0 : i32
    %c0_i32_1 = arith.constant 0 : i32
    return %arg0, %c0_i32, %c0_i32_0 : i32, i32, i32
  }
  func.func @transform_4(%arg0: i32) -> (i32, i32, i32) {
    %c0_i32 = arith.constant 0 : i32
    %c0_i32_0 = arith.constant 0 : i32
    %c0_i32_1 = arith.constant 0 : i32
    %c0_i32_2 = arith.constant 0 : i32
    return %c0_i32, %c0_i32_0, %c0_i32_1 : i32, i32, i32
  }
  func.func @transform_5(%arg0: i32) -> (i32, i32) {
    %c0_i32 = arith.constant 0 : i32
    %c0_i32_0 = arith.constant 0 : i32
    %c0_i32_1 = arith.constant 0 : i32
    return %c0_i32, %c0_i32_0 : i32, i32
  }
  func.func @transform_6(%arg0: i32) -> (i32, i32) {
    %c0_i32 = arith.constant 0 : i32
    %c0_i32_0 = arith.constant 0 : i32
    %c0_i32_1 = arith.constant 0 : i32
    return %c0_i32, %c0_i32_0 : i32, i32
  }
  func.func @transform_7(%arg0: i32) -> (i32, i32, i32) {
    %c0_i32 = arith.constant 0 : i32
    %c0_i32_0 = arith.constant 0 : i32
    %c0_i32_1 = arith.constant 0 : i32
    return %arg0, %c0_i32, %c0_i32_0 : i32, i32, i32
  }
}

module attributes {stable_mosaic.version = 11 : i64} {
  func.func @_maxpool_kernel(%arg0: i32, %arg1: memref<1x91x8xf32, #tpu.memory_space<vmem>>, %arg2: memref<1x91x8xf32, #tpu.memory_space<vmem>>, %arg3: memref<1x91x8xf32, #tpu.memory_space<vmem>>, %arg4: memref<1x91x8xf32, #tpu.memory_space<vmem>>, %arg5: memref<1x81x8xbf16, #tpu.memory_space<vmem>>) attributes {dimension_semantics = [#tpu.dimension_semantics<parallel>], iteration_bounds = array<i64: 2>, scalar_prefetch = 0 : i64, scratch_operands = 0 : i64, tpu.core_type = #tpu.core_type<tc>, window_params = [{transform_indices = @transform_0, window_bounds = array<i64: 1, 91, 8>}, {transform_indices = @transform_1, window_bounds = array<i64: 1, 91, 8>}, {transform_indices = @transform_2, window_bounds = array<i64: 1, 91, 8>}, {transform_indices = @transform_3, window_bounds = array<i64: 1, 91, 8>}, {transform_indices = @transform_4, window_bounds = array<i64: 1, 81, 8>}]} {
    %c0 = arith.constant 0 : index
    %c0_0 = arith.constant 0 : index
    %c0_1 = arith.constant 0 : index
    %0 = vector.load %arg1[%c0, %c0_0, %c0_1] : memref<1x91x8xf32, #tpu.memory_space<vmem>>, vector<1x91x8xf32>
    %1 = vector.shape_cast %0 : vector<1x91x8xf32> to vector<91x8xf32>
    %c0_2 = arith.constant 0 : index
    %c0_3 = arith.constant 0 : index
    %c0_4 = arith.constant 0 : index
    %2 = vector.load %arg2[%c0_2, %c0_3, %c0_4] : memref<1x91x8xf32, #tpu.memory_space<vmem>>, vector<1x91x8xf32>
    %3 = vector.shape_cast %2 : vector<1x91x8xf32> to vector<91x8xf32>
    %c0_5 = arith.constant 0 : index
    %c0_6 = arith.constant 0 : index
    %c0_7 = arith.constant 0 : index
    %4 = vector.load %arg3[%c0_5, %c0_6, %c0_7] : memref<1x91x8xf32, #tpu.memory_space<vmem>>, vector<1x91x8xf32>
    %5 = vector.shape_cast %4 : vector<1x91x8xf32> to vector<91x8xf32>
    %c0_8 = arith.constant 0 : index
    %c0_9 = arith.constant 0 : index
    %c0_10 = arith.constant 0 : index
    %6 = vector.load %arg4[%c0_8, %c0_9, %c0_10] : memref<1x91x8xf32, #tpu.memory_space<vmem>>, vector<1x91x8xf32>
    %7 = vector.shape_cast %6 : vector<1x91x8xf32> to vector<91x8xf32>
    %8 = vector.extract_strided_slice %7 {offsets = [0, 0], sizes = [81, 8], strides = [1, 1]} : vector<91x8xf32> to vector<81x8xf32>
    %9 = vector.extract_strided_slice %5 {offsets = [1, 0], sizes = [81, 8], strides = [1, 1]} : vector<91x8xf32> to vector<81x8xf32>
    %10 = arith.maximumf %8, %9 : vector<81x8xf32>
    %11 = vector.extract_strided_slice %7 {offsets = [1, 0], sizes = [81, 8], strides = [1, 1]} : vector<91x8xf32> to vector<81x8xf32>
    %12 = arith.maximumf %10, %11 : vector<81x8xf32>
    %13 = vector.extract_strided_slice %3 {offsets = [9, 0], sizes = [81, 8], strides = [1, 1]} : vector<91x8xf32> to vector<81x8xf32>
    %14 = arith.maximumf %12, %13 : vector<81x8xf32>
    %15 = vector.extract_strided_slice %1 {offsets = [10, 0], sizes = [81, 8], strides = [1, 1]} : vector<91x8xf32> to vector<81x8xf32>
    %16 = arith.maximumf %14, %15 : vector<81x8xf32>
    %17 = vector.extract_strided_slice %3 {offsets = [10, 0], sizes = [81, 8], strides = [1, 1]} : vector<91x8xf32> to vector<81x8xf32>
    %18 = arith.maximumf %16, %17 : vector<81x8xf32>
    %19 = vector.extract_strided_slice %7 {offsets = [9, 0], sizes = [81, 8], strides = [1, 1]} : vector<91x8xf32> to vector<81x8xf32>
    %20 = arith.maximumf %18, %19 : vector<81x8xf32>
    %21 = vector.extract_strided_slice %5 {offsets = [10, 0], sizes = [81, 8], strides = [1, 1]} : vector<91x8xf32> to vector<81x8xf32>
    %22 = arith.maximumf %20, %21 : vector<81x8xf32>
    %23 = vector.extract_strided_slice %7 {offsets = [10, 0], sizes = [81, 8], strides = [1, 1]} : vector<91x8xf32> to vector<81x8xf32>
    %24 = arith.maximumf %22, %23 : vector<81x8xf32>
    %25 = arith.truncf %24 : vector<81x8xf32> to vector<81x8xbf16>
    %c0_11 = arith.constant 0 : index
    %c0_12 = arith.constant 0 : index
    %c0_13 = arith.constant 0 : index
    %26 = vector.load %arg5[%c0_11, %c0_12, %c0_13] : memref<1x81x8xbf16, #tpu.memory_space<vmem>>, vector<1x81x8xbf16>
    %27 = vector.shape_cast %26 : vector<1x81x8xbf16> to vector<81x8xbf16>
    %28 = vector.shape_cast %25 : vector<81x8xbf16> to vector<1x81x8xbf16>
    tpu.vector_store %arg5[%c0_11, %c0_12, %c0_13], %28 {strides = array<i32>} : memref<1x81x8xbf16, #tpu.memory_space<vmem>>, vector<1x81x8xbf16>,
    return
  }
  func.func @transform_0(%arg0: i32) -> (i32, i32, i32) {
    %c0_i32 = arith.constant 0 : i32
    %c0_i32_0 = arith.constant 0 : i32
    %c0_i32_1 = arith.constant 0 : i32
    return %arg0, %c0_i32, %c0_i32_0 : i32, i32, i32
  }
  func.func @transform_1(%arg0: i32) -> (i32, i32, i32) {
    %c0_i32 = arith.constant 0 : i32
    %c0_i32_0 = arith.constant 0 : i32
    %c0_i32_1 = arith.constant 0 : i32
    return %arg0, %c0_i32, %c0_i32_0 : i32, i32, i32
  }
  func.func @transform_2(%arg0: i32) -> (i32, i32, i32) {
    %c0_i32 = arith.constant 0 : i32
    %c0_i32_0 = arith.constant 0 : i32
    %c0_i32_1 = arith.constant 0 : i32
    return %arg0, %c0_i32, %c0_i32_0 : i32, i32, i32
  }
  func.func @transform_3(%arg0: i32) -> (i32, i32, i32) {
    %c0_i32 = arith.constant 0 : i32
    %c0_i32_0 = arith.constant 0 : i32
    %c0_i32_1 = arith.constant 0 : i32
    return %arg0, %c0_i32, %c0_i32_0 : i32, i32, i32
  }
  func.func @transform_4(%arg0: i32) -> (i32, i32, i32) {
    %c0_i32 = arith.constant 0 : i32
    %c0_i32_0 = arith.constant 0 : i32
    %c0_i32_1 = arith.constant 0 : i32
    return %arg0, %c0_i32, %c0_i32_0 : i32, i32, i32
  }
}

module attributes {stable_mosaic.version = 11 : i64} {
  func.func @_block_s2_kernel(%arg0: i32, %arg1: memref<1x31x8xbf16, #tpu.memory_space<vmem>>, %arg2: memref<1x31x8xbf16, #tpu.memory_space<vmem>>, %arg3: memref<1x31x8xbf16, #tpu.memory_space<vmem>>, %arg4: memref<1x31x8xbf16, #tpu.memory_space<vmem>>, %arg5: memref<31x1xf32, #tpu.memory_space<vmem>>, %arg6: memref<9x8xf32, #tpu.memory_space<vmem>>, %arg7: memref<1x8xf32, #tpu.memory_space<vmem>>, %arg8: memref<1x8xf32, #tpu.memory_space<vmem>>, %arg9: memref<8x16xbf16, #tpu.memory_space<vmem>>, %arg10: memref<1x16xf32, #tpu.memory_space<vmem>>, %arg11: memref<1x16xf32, #tpu.memory_space<vmem>>, %arg12: memref<8x8xbf16, #tpu.memory_space<vmem>>, %arg13: memref<1x8xf32, #tpu.memory_space<vmem>>, %arg14: memref<1x8xf32, #tpu.memory_space<vmem>>, %arg15: memref<9x8xf32, #tpu.memory_space<vmem>>, %arg16: memref<1x8xf32, #tpu.memory_space<vmem>>, %arg17: memref<1x8xf32, #tpu.memory_space<vmem>>, %arg18: memref<8x16xbf16, #tpu.memory_space<vmem>>, %arg19: memref<1x16xf32, #tpu.memory_space<vmem>>, %arg20: memref<1x16xf32, #tpu.memory_space<vmem>>, %arg21: memref<1x25x16xbf16, #tpu.memory_space<vmem>>) attributes {dimension_semantics = [#tpu.dimension_semantics<parallel>], iteration_bounds = array<i64: 2>, scalar_prefetch = 0 : i64, scratch_operands = 0 : i64, tpu.core_type = #tpu.core_type<tc>, window_params = [{transform_indices = @transform_0, window_bounds = array<i64: 1, 31, 8>}, {transform_indices = @transform_1, window_bounds = array<i64: 1, 31, 8>}, {transform_indices = @transform_2, window_bounds = array<i64: 1, 31, 8>}, {transform_indices = @transform_3, window_bounds = array<i64: 1, 31, 8>}, {pipeline_mode = #tpu.pipeline_mode<synchronous>, transform_indices = @transform_4, window_bounds = array<i64: 31, 1>}, {pipeline_mode = #tpu.pipeline_mode<synchronous>, transform_indices = @transform_5, window_bounds = array<i64: 9, 8>}, {pipeline_mode = #tpu.pipeline_mode<synchronous>, transform_indices = @transform_6, window_bounds = array<i64: 1, 8>}, {pipeline_mode = #tpu.pipeline_mode<synchronous>, transform_indices = @transform_7, window_bounds = array<i64: 1, 8>}, {pipeline_mode = #tpu.pipeline_mode<synchronous>, transform_indices = @transform_8, window_bounds = array<i64: 8, 16>}, {pipeline_mode = #tpu.pipeline_mode<synchronous>, transform_indices = @transform_9, window_bounds = array<i64: 1, 16>}, {pipeline_mode = #tpu.pipeline_mode<synchronous>, transform_indices = @transform_10, window_bounds = array<i64: 1, 16>}, {pipeline_mode = #tpu.pipeline_mode<synchronous>, transform_indices = @transform_11, window_bounds = array<i64: 8, 8>}, {pipeline_mode = #tpu.pipeline_mode<synchronous>, transform_indices = @transform_12, window_bounds = array<i64: 1, 8>}, {pipeline_mode = #tpu.pipeline_mode<synchronous>, transform_indices = @transform_13, window_bounds = array<i64: 1, 8>}, {pipeline_mode = #tpu.pipeline_mode<synchronous>, transform_indices = @transform_14, window_bounds = array<i64: 9, 8>}, {pipeline_mode = #tpu.pipeline_mode<synchronous>, transform_indices = @transform_15, window_bounds = array<i64: 1, 8>}, {pipeline_mode = #tpu.pipeline_mode<synchronous>, transform_indices = @transform_16, window_bounds = array<i64: 1, 8>}, {pipeline_mode = #tpu.pipeline_mode<synchronous>, transform_indices = @transform_17, window_bounds = array<i64: 8, 16>}, {pipeline_mode = #tpu.pipeline_mode<synchronous>, transform_indices = @transform_18, window_bounds = array<i64: 1, 16>}, {pipeline_mode = #tpu.pipeline_mode<synchronous>, transform_indices = @transform_19, window_bounds = array<i64: 1, 16>}, {transform_indices = @transform_20, window_bounds = array<i64: 1, 25, 16>}]} {
    %c0 = arith.constant 0 : index
    %c0_0 = arith.constant 0 : index
    %c0_1 = arith.constant 0 : index
    %0 = vector.load %arg1[%c0, %c0_0, %c0_1] : memref<1x31x8xbf16, #tpu.memory_space<vmem>>, vector<1x31x8xbf16>
    %1 = vector.shape_cast %0 : vector<1x31x8xbf16> to vector<31x8xbf16>
    %c0_2 = arith.constant 0 : index
    %c0_3 = arith.constant 0 : index
    %c0_4 = arith.constant 0 : index
    %2 = vector.load %arg2[%c0_2, %c0_3, %c0_4] : memref<1x31x8xbf16, #tpu.memory_space<vmem>>, vector<1x31x8xbf16>
    %3 = vector.shape_cast %2 : vector<1x31x8xbf16> to vector<31x8xbf16>
    %c0_5 = arith.constant 0 : index
    %c0_6 = arith.constant 0 : index
    %c0_7 = arith.constant 0 : index
    %4 = vector.load %arg3[%c0_5, %c0_6, %c0_7] : memref<1x31x8xbf16, #tpu.memory_space<vmem>>, vector<1x31x8xbf16>
    %5 = vector.shape_cast %4 : vector<1x31x8xbf16> to vector<31x8xbf16>
    %c0_8 = arith.constant 0 : index
    %c0_9 = arith.constant 0 : index
    %c0_10 = arith.constant 0 : index
    %6 = vector.load %arg4[%c0_8, %c0_9, %c0_10] : memref<1x31x8xbf16, #tpu.memory_space<vmem>>, vector<1x31x8xbf16>
    %7 = vector.shape_cast %6 : vector<1x31x8xbf16> to vector<31x8xbf16>
    %8 = arith.extf %1 : vector<31x8xbf16> to vector<31x8xf32>
    %9 = arith.extf %3 : vector<31x8xbf16> to vector<31x8xf32>
    %10 = arith.extf %5 : vector<31x8xbf16> to vector<31x8xf32>
    %11 = arith.extf %7 : vector<31x8xbf16> to vector<31x8xf32>
    %c0_11 = arith.constant 0 : index
    %c0_12 = arith.constant 0 : index
    %12 = vector.load %arg6[%c0_11, %c0_12] : memref<9x8xf32, #tpu.memory_space<vmem>>, vector<9x8xf32>
    %13 = vector.extract_strided_slice %11 {offsets = [0, 0], sizes = [25, 8], strides = [1, 1]} : vector<31x8xf32> to vector<25x8xf32>
    %14 = vector.extract_strided_slice %12 {offsets = [0, 0], sizes = [1, 8], strides = [1, 1]} : vector<9x8xf32> to vector<1x8xf32>
    %15 = vector.broadcast %14 : vector<1x8xf32> to vector<25x8xf32>
    %16 = arith.mulf %13, %15 : vector<25x8xf32>
    %17 = vector.extract_strided_slice %10 {offsets = [1, 0], sizes = [25, 8], strides = [1, 1]} : vector<31x8xf32> to vector<25x8xf32>
    %18 = vector.extract_strided_slice %12 {offsets = [1, 0], sizes = [1, 8], strides = [1, 1]} : vector<9x8xf32> to vector<1x8xf32>
    %19 = vector.broadcast %18 : vector<1x8xf32> to vector<25x8xf32>
    %20 = arith.mulf %17, %19 : vector<25x8xf32>
    %21 = arith.addf %16, %20 : vector<25x8xf32>
    %22 = vector.extract_strided_slice %11 {offsets = [1, 0], sizes = [25, 8], strides = [1, 1]} : vector<31x8xf32> to vector<25x8xf32>
    %23 = vector.extract_strided_slice %12 {offsets = [2, 0], sizes = [1, 8], strides = [1, 1]} : vector<9x8xf32> to vector<1x8xf32>
    %24 = vector.broadcast %23 : vector<1x8xf32> to vector<25x8xf32>
    %25 = arith.mulf %22, %24 : vector<25x8xf32>
    %26 = arith.addf %21, %25 : vector<25x8xf32>
    %27 = vector.extract_strided_slice %9 {offsets = [5, 0], sizes = [25, 8], strides = [1, 1]} : vector<31x8xf32> to vector<25x8xf32>
    %28 = vector.extract_strided_slice %12 {offsets = [3, 0], sizes = [1, 8], strides = [1, 1]} : vector<9x8xf32> to vector<1x8xf32>
    %29 = vector.broadcast %28 : vector<1x8xf32> to vector<25x8xf32>
    %30 = arith.mulf %27, %29 : vector<25x8xf32>
    %31 = arith.addf %26, %30 : vector<25x8xf32>
    %32 = vector.extract_strided_slice %8 {offsets = [6, 0], sizes = [25, 8], strides = [1, 1]} : vector<31x8xf32> to vector<25x8xf32>
    %33 = vector.extract_strided_slice %12 {offsets = [4, 0], sizes = [1, 8], strides = [1, 1]} : vector<9x8xf32> to vector<1x8xf32>
    %34 = vector.broadcast %33 : vector<1x8xf32> to vector<25x8xf32>
    %35 = arith.mulf %32, %34 : vector<25x8xf32>
    %36 = arith.addf %31, %35 : vector<25x8xf32>
    %37 = vector.extract_strided_slice %9 {offsets = [6, 0], sizes = [25, 8], strides = [1, 1]} : vector<31x8xf32> to vector<25x8xf32>
    %38 = vector.extract_strided_slice %12 {offsets = [5, 0], sizes = [1, 8], strides = [1, 1]} : vector<9x8xf32> to vector<1x8xf32>
    %39 = vector.broadcast %38 : vector<1x8xf32> to vector<25x8xf32>
    %40 = arith.mulf %37, %39 : vector<25x8xf32>
    %41 = arith.addf %36, %40 : vector<25x8xf32>
    %42 = vector.extract_strided_slice %11 {offsets = [5, 0], sizes = [25, 8], strides = [1, 1]} : vector<31x8xf32> to vector<25x8xf32>
    %43 = vector.extract_strided_slice %12 {offsets = [6, 0], sizes = [1, 8], strides = [1, 1]} : vector<9x8xf32> to vector<1x8xf32>
    %44 = vector.broadcast %43 : vector<1x8xf32> to vector<25x8xf32>
    %45 = arith.mulf %42, %44 : vector<25x8xf32>
    %46 = arith.addf %41, %45 : vector<25x8xf32>
    %47 = vector.extract_strided_slice %10 {offsets = [6, 0], sizes = [25, 8], strides = [1, 1]} : vector<31x8xf32> to vector<25x8xf32>
    %48 = vector.extract_strided_slice %12 {offsets = [7, 0], sizes = [1, 8], strides = [1, 1]} : vector<9x8xf32> to vector<1x8xf32>
    %49 = vector.broadcast %48 : vector<1x8xf32> to vector<25x8xf32>
    %50 = arith.mulf %47, %49 : vector<25x8xf32>
    %51 = arith.addf %46, %50 : vector<25x8xf32>
    %52 = vector.extract_strided_slice %11 {offsets = [6, 0], sizes = [25, 8], strides = [1, 1]} : vector<31x8xf32> to vector<25x8xf32>
    %53 = vector.extract_strided_slice %12 {offsets = [8, 0], sizes = [1, 8], strides = [1, 1]} : vector<9x8xf32> to vector<1x8xf32>
    %54 = vector.broadcast %53 : vector<1x8xf32> to vector<25x8xf32>
    %55 = arith.mulf %52, %54 : vector<25x8xf32>
    %56 = arith.addf %51, %55 : vector<25x8xf32>
    %c0_13 = arith.constant 0 : index
    %c0_14 = arith.constant 0 : index
    %57 = vector.load %arg7[%c0_13, %c0_14] : memref<1x8xf32, #tpu.memory_space<vmem>>, vector<1x8xf32>
    %58 = vector.broadcast %57 : vector<1x8xf32> to vector<25x8xf32>
    %59 = arith.mulf %56, %58 : vector<25x8xf32>
    %c0_15 = arith.constant 0 : index
    %c0_16 = arith.constant 0 : index
    %60 = vector.load %arg8[%c0_15, %c0_16] : memref<1x8xf32, #tpu.memory_space<vmem>>, vector<1x8xf32>
    %61 = vector.broadcast %60 : vector<1x8xf32> to vector<25x8xf32>
    %62 = arith.addf %59, %61 : vector<25x8xf32>
    %63 = arith.truncf %62 : vector<25x8xf32> to vector<25x8xbf16>
    %c0_17 = arith.constant 0 : index
    %c0_18 = arith.constant 0 : index
    %64 = vector.load %arg9[%c0_17, %c0_18] : memref<8x16xbf16, #tpu.memory_space<vmem>>, vector<8x16xbf16>
    %cst = arith.constant dense<0.000000e+00> : vector<25x16xf32>
    %65 = tpu.matmul %63, %64, %cst {dimension_numbers = #tpu.dot_dimension_numbers<[1], [0], [0], [1], [0, 0, 1, 1], [], []>} : vector<25x8xbf16>, vector<8x16xbf16>, vector<25x16xf32> -> vector<25x16xf32>
    %c0_19 = arith.constant 0 : index
    %c0_20 = arith.constant 0 : index
    %66 = vector.load %arg10[%c0_19, %c0_20] : memref<1x16xf32, #tpu.memory_space<vmem>>, vector<1x16xf32>
    %67 = vector.broadcast %66 : vector<1x16xf32> to vector<25x16xf32>
    %68 = arith.mulf %65, %67 : vector<25x16xf32>
    %c0_21 = arith.constant 0 : index
    %c0_22 = arith.constant 0 : index
    %69 = vector.load %arg11[%c0_21, %c0_22] : memref<1x16xf32, #tpu.memory_space<vmem>>, vector<1x16xf32>
    %70 = vector.broadcast %69 : vector<1x16xf32> to vector<25x16xf32>
    %71 = arith.addf %68, %70 : vector<25x16xf32>
    %cst_23 = arith.constant 0.000000e+00 : f32
    %72 = vector.broadcast %cst_23 : f32 to vector<25x16xf32>
    %73 = arith.maximumf %71, %72 : vector<25x16xf32>
    %c0_24 = arith.constant 0 : index
    %c0_25 = arith.constant 0 : index
    %74 = vector.load %arg5[%c0_24, %c0_25] : memref<31x1xf32, #tpu.memory_space<vmem>>, vector<31x1xf32>
    %c0_26 = arith.constant 0 : index
    %c0_27 = arith.constant 0 : index
    %75 = vector.load %arg12[%c0_26, %c0_27] : memref<8x8xbf16, #tpu.memory_space<vmem>>, vector<8x8xbf16>
    %cst_28 = arith.constant dense<0.000000e+00> : vector<31x8xf32>
    %76 = tpu.matmul %1, %75, %cst_28 {dimension_numbers = #tpu.dot_dimension_numbers<[1], [0], [0], [1], [0, 0, 1, 1], [], []>} : vector<31x8xbf16>, vector<8x8xbf16>, vector<31x8xf32> -> vector<31x8xf32>
    %c0_29 = arith.constant 0 : index
    %c0_30 = arith.constant 0 : index
    %77 = vector.load %arg13[%c0_29, %c0_30] : memref<1x8xf32, #tpu.memory_space<vmem>>, vector<1x8xf32>
    %78 = vector.broadcast %77 : vector<1x8xf32> to vector<31x8xf32>
    %79 = arith.mulf %76, %78 : vector<31x8xf32>
    %c0_31 = arith.constant 0 : index
    %c0_32 = arith.constant 0 : index
    %80 = vector.load %arg14[%c0_31, %c0_32] : memref<1x8xf32, #tpu.memory_space<vmem>>, vector<1x8xf32>
    %81 = vector.broadcast %80 : vector<1x8xf32> to vector<31x8xf32>
    %82 = arith.addf %79, %81 : vector<31x8xf32>
    %cst_33 = arith.constant 0.000000e+00 : f32
    %83 = vector.broadcast %cst_33 : f32 to vector<31x8xf32>
    %84 = arith.maximumf %82, %83 : vector<31x8xf32>
    %85 = vector.broadcast %74 : vector<31x1xf32> to vector<31x8xf32>
    %86 = arith.mulf %84, %85 : vector<31x8xf32>
    %c0_34 = arith.constant 0 : index
    %c0_35 = arith.constant 0 : index
    %87 = vector.load %arg12[%c0_34, %c0_35] : memref<8x8xbf16, #tpu.memory_space<vmem>>, vector<8x8xbf16>
    %cst_36 = arith.constant dense<0.000000e+00> : vector<31x8xf32>
    %88 = tpu.matmul %3, %87, %cst_36 {dimension_numbers = #tpu.dot_dimension_numbers<[1], [0], [0], [1], [0, 0, 1, 1], [], []>} : vector<31x8xbf16>, vector<8x8xbf16>, vector<31x8xf32> -> vector<31x8xf32>
    %c0_37 = arith.constant 0 : index
    %c0_38 = arith.constant 0 : index
    %89 = vector.load %arg13[%c0_37, %c0_38] : memref<1x8xf32, #tpu.memory_space<vmem>>, vector<1x8xf32>
    %90 = vector.broadcast %89 : vector<1x8xf32> to vector<31x8xf32>
    %91 = arith.mulf %88, %90 : vector<31x8xf32>
    %c0_39 = arith.constant 0 : index
    %c0_40 = arith.constant 0 : index
    %92 = vector.load %arg14[%c0_39, %c0_40] : memref<1x8xf32, #tpu.memory_space<vmem>>, vector<1x8xf32>
    %93 = vector.broadcast %92 : vector<1x8xf32> to vector<31x8xf32>
    %94 = arith.addf %91, %93 : vector<31x8xf32>
    %cst_41 = arith.constant 0.000000e+00 : f32
    %95 = vector.broadcast %cst_41 : f32 to vector<31x8xf32>
    %96 = arith.maximumf %94, %95 : vector<31x8xf32>
    %97 = vector.broadcast %74 : vector<31x1xf32> to vector<31x8xf32>
    %98 = arith.mulf %96, %97 : vector<31x8xf32>
    %c0_42 = arith.constant 0 : index
    %c0_43 = arith.constant 0 : index
    %99 = vector.load %arg12[%c0_42, %c0_43] : memref<8x8xbf16, #tpu.memory_space<vmem>>, vector<8x8xbf16>
    %cst_44 = arith.constant dense<0.000000e+00> : vector<31x8xf32>
    %100 = tpu.matmul %5, %99, %cst_44 {dimension_numbers = #tpu.dot_dimension_numbers<[1], [0], [0], [1], [0, 0, 1, 1], [], []>} : vector<31x8xbf16>, vector<8x8xbf16>, vector<31x8xf32> -> vector<31x8xf32>
    %c0_45 = arith.constant 0 : index
    %c0_46 = arith.constant 0 : index
    %101 = vector.load %arg13[%c0_45, %c0_46] : memref<1x8xf32, #tpu.memory_space<vmem>>, vector<1x8xf32>
    %102 = vector.broadcast %101 : vector<1x8xf32> to vector<31x8xf32>
    %103 = arith.mulf %100, %102 : vector<31x8xf32>
    %c0_47 = arith.constant 0 : index
    %c0_48 = arith.constant 0 : index
    %104 = vector.load %arg14[%c0_47, %c0_48] : memref<1x8xf32, #tpu.memory_space<vmem>>, vector<1x8xf32>
    %105 = vector.broadcast %104 : vector<1x8xf32> to vector<31x8xf32>
    %106 = arith.addf %103, %105 : vector<31x8xf32>
    %cst_49 = arith.constant 0.000000e+00 : f32
    %107 = vector.broadcast %cst_49 : f32 to vector<31x8xf32>
    %108 = arith.maximumf %106, %107 : vector<31x8xf32>
    %109 = vector.broadcast %74 : vector<31x1xf32> to vector<31x8xf32>
    %110 = arith.mulf %108, %109 : vector<31x8xf32>
    %c0_50 = arith.constant 0 : index
    %c0_51 = arith.constant 0 : index
    %111 = vector.load %arg12[%c0_50, %c0_51] : memref<8x8xbf16, #tpu.memory_space<vmem>>, vector<8x8xbf16>
    %cst_52 = arith.constant dense<0.000000e+00> : vector<31x8xf32>
    %112 = tpu.matmul %7, %111, %cst_52 {dimension_numbers = #tpu.dot_dimension_numbers<[1], [0], [0], [1], [0, 0, 1, 1], [], []>} : vector<31x8xbf16>, vector<8x8xbf16>, vector<31x8xf32> -> vector<31x8xf32>
    %c0_53 = arith.constant 0 : index
    %c0_54 = arith.constant 0 : index
    %113 = vector.load %arg13[%c0_53, %c0_54] : memref<1x8xf32, #tpu.memory_space<vmem>>, vector<1x8xf32>
    %114 = vector.broadcast %113 : vector<1x8xf32> to vector<31x8xf32>
    %115 = arith.mulf %112, %114 : vector<31x8xf32>
    %c0_55 = arith.constant 0 : index
    %c0_56 = arith.constant 0 : index
    %116 = vector.load %arg14[%c0_55, %c0_56] : memref<1x8xf32, #tpu.memory_space<vmem>>, vector<1x8xf32>
    %117 = vector.broadcast %116 : vector<1x8xf32> to vector<31x8xf32>
    %118 = arith.addf %115, %117 : vector<31x8xf32>
    %cst_57 = arith.constant 0.000000e+00 : f32
    %119 = vector.broadcast %cst_57 : f32 to vector<31x8xf32>
    %120 = arith.maximumf %118, %119 : vector<31x8xf32>
    %121 = vector.broadcast %74 : vector<31x1xf32> to vector<31x8xf32>
    %122 = arith.mulf %120, %121 : vector<31x8xf32>
    %c0_58 = arith.constant 0 : index
    %c0_59 = arith.constant 0 : index
    %123 = vector.load %arg15[%c0_58, %c0_59] : memref<9x8xf32, #tpu.memory_space<vmem>>, vector<9x8xf32>
    %124 = vector.extract_strided_slice %122 {offsets = [0, 0], sizes = [25, 8], strides = [1, 1]} : vector<31x8xf32> to vector<25x8xf32>
    %125 = vector.extract_strided_slice %123 {offsets = [0, 0], sizes = [1, 8], strides = [1, 1]} : vector<9x8xf32> to vector<1x8xf32>
    %126 = vector.broadcast %125 : vector<1x8xf32> to vector<25x8xf32>
    %127 = arith.mulf %124, %126 : vector<25x8xf32>
    %128 = vector.extract_strided_slice %110 {offsets = [1, 0], sizes = [25, 8], strides = [1, 1]} : vector<31x8xf32> to vector<25x8xf32>
    %129 = vector.extract_strided_slice %123 {offsets = [1, 0], sizes = [1, 8], strides = [1, 1]} : vector<9x8xf32> to vector<1x8xf32>
    %130 = vector.broadcast %129 : vector<1x8xf32> to vector<25x8xf32>
    %131 = arith.mulf %128, %130 : vector<25x8xf32>
    %132 = arith.addf %127, %131 : vector<25x8xf32>
    %133 = vector.extract_strided_slice %122 {offsets = [1, 0], sizes = [25, 8], strides = [1, 1]} : vector<31x8xf32> to vector<25x8xf32>
    %134 = vector.extract_strided_slice %123 {offsets = [2, 0], sizes = [1, 8], strides = [1, 1]} : vector<9x8xf32> to vector<1x8xf32>
    %135 = vector.broadcast %134 : vector<1x8xf32> to vector<25x8xf32>
    %136 = arith.mulf %133, %135 : vector<25x8xf32>
    %137 = arith.addf %132, %136 : vector<25x8xf32>
    %138 = vector.extract_strided_slice %98 {offsets = [5, 0], sizes = [25, 8], strides = [1, 1]} : vector<31x8xf32> to vector<25x8xf32>
    %139 = vector.extract_strided_slice %123 {offsets = [3, 0], sizes = [1, 8], strides = [1, 1]} : vector<9x8xf32> to vector<1x8xf32>
    %140 = vector.broadcast %139 : vector<1x8xf32> to vector<25x8xf32>
    %141 = arith.mulf %138, %140 : vector<25x8xf32>
    %142 = arith.addf %137, %141 : vector<25x8xf32>
    %143 = vector.extract_strided_slice %86 {offsets = [6, 0], sizes = [25, 8], strides = [1, 1]} : vector<31x8xf32> to vector<25x8xf32>
    %144 = vector.extract_strided_slice %123 {offsets = [4, 0], sizes = [1, 8], strides = [1, 1]} : vector<9x8xf32> to vector<1x8xf32>
    %145 = vector.broadcast %144 : vector<1x8xf32> to vector<25x8xf32>
    %146 = arith.mulf %143, %145 : vector<25x8xf32>
    %147 = arith.addf %142, %146 : vector<25x8xf32>
    %148 = vector.extract_strided_slice %98 {offsets = [6, 0], sizes = [25, 8], strides = [1, 1]} : vector<31x8xf32> to vector<25x8xf32>
    %149 = vector.extract_strided_slice %123 {offsets = [5, 0], sizes = [1, 8], strides = [1, 1]} : vector<9x8xf32> to vector<1x8xf32>
    %150 = vector.broadcast %149 : vector<1x8xf32> to vector<25x8xf32>
    %151 = arith.mulf %148, %150 : vector<25x8xf32>
    %152 = arith.addf %147, %151 : vector<25x8xf32>
    %153 = vector.extract_strided_slice %122 {offsets = [5, 0], sizes = [25, 8], strides = [1, 1]} : vector<31x8xf32> to vector<25x8xf32>
    %154 = vector.extract_strided_slice %123 {offsets = [6, 0], sizes = [1, 8], strides = [1, 1]} : vector<9x8xf32> to vector<1x8xf32>
    %155 = vector.broadcast %154 : vector<1x8xf32> to vector<25x8xf32>
    %156 = arith.mulf %153, %155 : vector<25x8xf32>
    %157 = arith.addf %152, %156 : vector<25x8xf32>
    %158 = vector.extract_strided_slice %110 {offsets = [6, 0], sizes = [25, 8], strides = [1, 1]} : vector<31x8xf32> to vector<25x8xf32>
    %159 = vector.extract_strided_slice %123 {offsets = [7, 0], sizes = [1, 8], strides = [1, 1]} : vector<9x8xf32> to vector<1x8xf32>
    %160 = vector.broadcast %159 : vector<1x8xf32> to vector<25x8xf32>
    %161 = arith.mulf %158, %160 : vector<25x8xf32>
    %162 = arith.addf %157, %161 : vector<25x8xf32>
    %163 = vector.extract_strided_slice %122 {offsets = [6, 0], sizes = [25, 8], strides = [1, 1]} : vector<31x8xf32> to vector<25x8xf32>
    %164 = vector.extract_strided_slice %123 {offsets = [8, 0], sizes = [1, 8], strides = [1, 1]} : vector<9x8xf32> to vector<1x8xf32>
    %165 = vector.broadcast %164 : vector<1x8xf32> to vector<25x8xf32>
    %166 = arith.mulf %163, %165 : vector<25x8xf32>
    %167 = arith.addf %162, %166 : vector<25x8xf32>
    %c0_60 = arith.constant 0 : index
    %c0_61 = arith.constant 0 : index
    %168 = vector.load %arg16[%c0_60, %c0_61] : memref<1x8xf32, #tpu.memory_space<vmem>>, vector<1x8xf32>
    %169 = vector.broadcast %168 : vector<1x8xf32> to vector<25x8xf32>
    %170 = arith.mulf %167, %169 : vector<25x8xf32>
    %c0_62 = arith.constant 0 : index
    %c0_63 = arith.constant 0 : index
    %171 = vector.load %arg17[%c0_62, %c0_63] : memref<1x8xf32, #tpu.memory_space<vmem>>, vector<1x8xf32>
    %172 = vector.broadcast %171 : vector<1x8xf32> to vector<25x8xf32>
    %173 = arith.addf %170, %172 : vector<25x8xf32>
    %174 = arith.truncf %173 : vector<25x8xf32> to vector<25x8xbf16>
    %c0_64 = arith.constant 0 : index
    %c0_65 = arith.constant 0 : index
    %175 = vector.load %arg18[%c0_64, %c0_65] : memref<8x16xbf16, #tpu.memory_space<vmem>>, vector<8x16xbf16>
    %cst_66 = arith.constant dense<0.000000e+00> : vector<25x16xf32>
    %176 = tpu.matmul %174, %175, %cst_66 {dimension_numbers = #tpu.dot_dimension_numbers<[1], [0], [0], [1], [0, 0, 1, 1], [], []>} : vector<25x8xbf16>, vector<8x16xbf16>, vector<25x16xf32> -> vector<25x16xf32>
    %c0_67 = arith.constant 0 : index
    %c0_68 = arith.constant 0 : index
    %177 = vector.load %arg19[%c0_67, %c0_68] : memref<1x16xf32, #tpu.memory_space<vmem>>, vector<1x16xf32>
    %178 = vector.broadcast %177 : vector<1x16xf32> to vector<25x16xf32>
    %179 = arith.mulf %176, %178 : vector<25x16xf32>
    %c0_69 = arith.constant 0 : index
    %c0_70 = arith.constant 0 : index
    %180 = vector.load %arg20[%c0_69, %c0_70] : memref<1x16xf32, #tpu.memory_space<vmem>>, vector<1x16xf32>
    %181 = vector.broadcast %180 : vector<1x16xf32> to vector<25x16xf32>
    %182 = arith.addf %179, %181 : vector<25x16xf32>
    %cst_71 = arith.constant 0.000000e+00 : f32
    %183 = vector.broadcast %cst_71 : f32 to vector<25x16xf32>
    %184 = arith.maximumf %182, %183 : vector<25x16xf32>
    %185 = arith.addf %73, %184 : vector<25x16xf32>
    %186 = arith.truncf %185 : vector<25x16xf32> to vector<25x16xbf16>
    %c0_72 = arith.constant 0 : index
    %c0_73 = arith.constant 0 : index
    %c0_74 = arith.constant 0 : index
    %187 = vector.load %arg21[%c0_72, %c0_73, %c0_74] : memref<1x25x16xbf16, #tpu.memory_space<vmem>>, vector<1x25x16xbf16>
    %188 = vector.shape_cast %187 : vector<1x25x16xbf16> to vector<25x16xbf16>
    %189 = vector.shape_cast %186 : vector<25x16xbf16> to vector<1x25x16xbf16>
    tpu.vector_store %arg21[%c0_72, %c0_73, %c0_74], %189 {strides = array<i32>} : memref<1x25x16xbf16, #tpu.memory_space<vmem>>, vector<1x25x16xbf16>,
    return
  }
  func.func @transform_0(%arg0: i32) -> (i32, i32, i32) {
    %c0_i32 = arith.constant 0 : i32
    %c0_i32_0 = arith.constant 0 : i32
    %c0_i32_1 = arith.constant 0 : i32
    return %arg0, %c0_i32, %c0_i32_0 : i32, i32, i32
  }
  func.func @transform_1(%arg0: i32) -> (i32, i32, i32) {
    %c0_i32 = arith.constant 0 : i32
    %c0_i32_0 = arith.constant 0 : i32
    %c0_i32_1 = arith.constant 0 : i32
    return %arg0, %c0_i32, %c0_i32_0 : i32, i32, i32
  }
  func.func @transform_2(%arg0: i32) -> (i32, i32, i32) {
    %c0_i32 = arith.constant 0 : i32
    %c0_i32_0 = arith.constant 0 : i32
    %c0_i32_1 = arith.constant 0 : i32
    return %arg0, %c0_i32, %c0_i32_0 : i32, i32, i32
  }
  func.func @transform_3(%arg0: i32) -> (i32, i32, i32) {
    %c0_i32 = arith.constant 0 : i32
    %c0_i32_0 = arith.constant 0 : i32
    %c0_i32_1 = arith.constant 0 : i32
    return %arg0, %c0_i32, %c0_i32_0 : i32, i32, i32
  }
  func.func @transform_4(%arg0: i32) -> (i32, i32) {
    %c0_i32 = arith.constant 0 : i32
    %c0_i32_0 = arith.constant 0 : i32
    %c0_i32_1 = arith.constant 0 : i32
    return %c0_i32, %c0_i32_0 : i32, i32
  }
  func.func @transform_5(%arg0: i32) -> (i32, i32) {
    %c0_i32 = arith.constant 0 : i32
    %c0_i32_0 = arith.constant 0 : i32
    %c0_i32_1 = arith.constant 0 : i32
    return %c0_i32, %c0_i32_0 : i32, i32
  }
  func.func @transform_6(%arg0: i32) -> (i32, i32) {
    %c0_i32 = arith.constant 0 : i32
    %c0_i32_0 = arith.constant 0 : i32
    %c0_i32_1 = arith.constant 0 : i32
    return %c0_i32, %c0_i32_0 : i32, i32
  }
  func.func @transform_7(%arg0: i32) -> (i32, i32) {
    %c0_i32 = arith.constant 0 : i32
    %c0_i32_0 = arith.constant 0 : i32
    %c0_i32_1 = arith.constant 0 : i32
    return %c0_i32, %c0_i32_0 : i32, i32
  }
  func.func @transform_8(%arg0: i32) -> (i32, i32) {
    %c0_i32 = arith.constant 0 : i32
    %c0_i32_0 = arith.constant 0 : i32
    %c0_i32_1 = arith.constant 0 : i32
    return %c0_i32, %c0_i32_0 : i32, i32
  }
  func.func @transform_9(%arg0: i32) -> (i32, i32) {
    %c0_i32 = arith.constant 0 : i32
    %c0_i32_0 = arith.constant 0 : i32
    %c0_i32_1 = arith.constant 0 : i32
    return %c0_i32, %c0_i32_0 : i32, i32
  }
  func.func @transform_10(%arg0: i32) -> (i32, i32) {
    %c0_i32 = arith.constant 0 : i32
    %c0_i32_0 = arith.constant 0 : i32
    %c0_i32_1 = arith.constant 0 : i32
    return %c0_i32, %c0_i32_0 : i32, i32
  }
  func.func @transform_11(%arg0: i32) -> (i32, i32) {
    %c0_i32 = arith.constant 0 : i32
    %c0_i32_0 = arith.constant 0 : i32
    %c0_i32_1 = arith.constant 0 : i32
    return %c0_i32, %c0_i32_0 : i32, i32
  }
  func.func @transform_12(%arg0: i32) -> (i32, i32) {
    %c0_i32 = arith.constant 0 : i32
    %c0_i32_0 = arith.constant 0 : i32
    %c0_i32_1 = arith.constant 0 : i32
    return %c0_i32, %c0_i32_0 : i32, i32
  }
  func.func @transform_13(%arg0: i32) -> (i32, i32) {
    %c0_i32 = arith.constant 0 : i32
    %c0_i32_0 = arith.constant 0 : i32
    %c0_i32_1 = arith.constant 0 : i32
    return %c0_i32, %c0_i32_0 : i32, i32
  }
  func.func @transform_14(%arg0: i32) -> (i32, i32) {
    %c0_i32 = arith.constant 0 : i32
    %c0_i32_0 = arith.constant 0 : i32
    %c0_i32_1 = arith.constant 0 : i32
    return %c0_i32, %c0_i32_0 : i32, i32
  }
  func.func @transform_15(%arg0: i32) -> (i32, i32) {
    %c0_i32 = arith.constant 0 : i32
    %c0_i32_0 = arith.constant 0 : i32
    %c0_i32_1 = arith.constant 0 : i32
    return %c0_i32, %c0_i32_0 : i32, i32
  }
  func.func @transform_16(%arg0: i32) -> (i32, i32) {
    %c0_i32 = arith.constant 0 : i32
    %c0_i32_0 = arith.constant 0 : i32
    %c0_i32_1 = arith.constant 0 : i32
    return %c0_i32, %c0_i32_0 : i32, i32
  }
  func.func @transform_17(%arg0: i32) -> (i32, i32) {
    %c0_i32 = arith.constant 0 : i32
    %c0_i32_0 = arith.constant 0 : i32
    %c0_i32_1 = arith.constant 0 : i32
    return %c0_i32, %c0_i32_0 : i32, i32
  }
  func.func @transform_18(%arg0: i32) -> (i32, i32) {
    %c0_i32 = arith.constant 0 : i32
    %c0_i32_0 = arith.constant 0 : i32
    %c0_i32_1 = arith.constant 0 : i32
    return %c0_i32, %c0_i32_0 : i32, i32
  }
  func.func @transform_19(%arg0: i32) -> (i32, i32) {
    %c0_i32 = arith.constant 0 : i32
    %c0_i32_0 = arith.constant 0 : i32
    %c0_i32_1 = arith.constant 0 : i32
    return %c0_i32, %c0_i32_0 : i32, i32
  }
  func.func @transform_20(%arg0: i32) -> (i32, i32, i32) {
    %c0_i32 = arith.constant 0 : i32
    %c0_i32_0 = arith.constant 0 : i32
    %c0_i32_1 = arith.constant 0 : i32
    return %arg0, %c0_i32, %c0_i32_0 : i32, i32, i32
  }
}

module attributes {stable_mosaic.version = 11 : i64} {
  func.func @_block_s1_kernel(%arg0: i32, %arg1: memref<1x36x8xbf16, #tpu.memory_space<vmem>>, %arg2: memref<1x50x8xbf16, #tpu.memory_space<vmem>>, %arg3: memref<50x1xf32, #tpu.memory_space<vmem>>, %arg4: memref<8x8xbf16, #tpu.memory_space<vmem>>, %arg5: memref<1x8xf32, #tpu.memory_space<vmem>>, %arg6: memref<1x8xf32, #tpu.memory_space<vmem>>, %arg7: memref<9x8xf32, #tpu.memory_space<vmem>>, %arg8: memref<1x8xf32, #tpu.memory_space<vmem>>, %arg9: memref<1x8xf32, #tpu.memory_space<vmem>>, %arg10: memref<8x16xbf16, #tpu.memory_space<vmem>>, %arg11: memref<1x16xf32, #tpu.memory_space<vmem>>, %arg12: memref<1x16xf32, #tpu.memory_space<vmem>>, %arg13: memref<8x16xbf16, #tpu.memory_space<vmem>>, %arg14: memref<1x36x16xbf16, #tpu.memory_space<vmem>>) attributes {dimension_semantics = [#tpu.dimension_semantics<parallel>], iteration_bounds = array<i64: 2>, scalar_prefetch = 0 : i64, scratch_operands = 0 : i64, tpu.core_type = #tpu.core_type<tc>, window_params = [{transform_indices = @transform_0, window_bounds = array<i64: 1, 36, 8>}, {transform_indices = @transform_1, window_bounds = array<i64: 1, 50, 8>}, {pipeline_mode = #tpu.pipeline_mode<synchronous>, transform_indices = @transform_2, window_bounds = array<i64: 50, 1>}, {pipeline_mode = #tpu.pipeline_mode<synchronous>, transform_indices = @transform_3, window_bounds = array<i64: 8, 8>}, {pipeline_mode = #tpu.pipeline_mode<synchronous>, transform_indices = @transform_4, window_bounds = array<i64: 1, 8>}, {pipeline_mode = #tpu.pipeline_mode<synchronous>, transform_indices = @transform_5, window_bounds = array<i64: 1, 8>}, {pipeline_mode = #tpu.pipeline_mode<synchronous>, transform_indices = @transform_6, window_bounds = array<i64: 9, 8>}, {pipeline_mode = #tpu.pipeline_mode<synchronous>, transform_indices = @transform_7, window_bounds = array<i64: 1, 8>}, {pipeline_mode = #tpu.pipeline_mode<synchronous>, transform_indices = @transform_8, window_bounds = array<i64: 1, 8>}, {pipeline_mode = #tpu.pipeline_mode<synchronous>, transform_indices = @transform_9, window_bounds = array<i64: 8, 16>}, {pipeline_mode = #tpu.pipeline_mode<synchronous>, transform_indices = @transform_10, window_bounds = array<i64: 1, 16>}, {pipeline_mode = #tpu.pipeline_mode<synchronous>, transform_indices = @transform_11, window_bounds = array<i64: 1, 16>}, {pipeline_mode = #tpu.pipeline_mode<synchronous>, transform_indices = @transform_12, window_bounds = array<i64: 8, 16>}, {transform_indices = @transform_13, window_bounds = array<i64: 1, 36, 16>}]} {
    %c0 = arith.constant 0 : index
    %c0_0 = arith.constant 0 : index
    %c0_1 = arith.constant 0 : index
    %0 = vector.load %arg2[%c0, %c0_0, %c0_1] : memref<1x50x8xbf16, #tpu.memory_space<vmem>>, vector<1x50x8xbf16>
    %1 = vector.shape_cast %0 : vector<1x50x8xbf16> to vector<50x8xbf16>
    %c0_2 = arith.constant 0 : index
    %c0_3 = arith.constant 0 : index
    %2 = vector.load %arg4[%c0_2, %c0_3] : memref<8x8xbf16, #tpu.memory_space<vmem>>, vector<8x8xbf16>
    %cst = arith.constant dense<0.000000e+00> : vector<50x8xf32>
    %3 = tpu.matmul %1, %2, %cst {dimension_numbers = #tpu.dot_dimension_numbers<[1], [0], [0], [1], [0, 0, 1, 1], [], []>} : vector<50x8xbf16>, vector<8x8xbf16>, vector<50x8xf32> -> vector<50x8xf32>
    %c0_4 = arith.constant 0 : index
    %c0_5 = arith.constant 0 : index
    %4 = vector.load %arg5[%c0_4, %c0_5] : memref<1x8xf32, #tpu.memory_space<vmem>>, vector<1x8xf32>
    %5 = vector.broadcast %4 : vector<1x8xf32> to vector<50x8xf32>
    %6 = arith.mulf %3, %5 : vector<50x8xf32>
    %c0_6 = arith.constant 0 : index
    %c0_7 = arith.constant 0 : index
    %7 = vector.load %arg6[%c0_6, %c0_7] : memref<1x8xf32, #tpu.memory_space<vmem>>, vector<1x8xf32>
    %8 = vector.broadcast %7 : vector<1x8xf32> to vector<50x8xf32>
    %9 = arith.addf %6, %8 : vector<50x8xf32>
    %cst_8 = arith.constant 0.000000e+00 : f32
    %10 = vector.broadcast %cst_8 : f32 to vector<50x8xf32>
    %11 = arith.maximumf %9, %10 : vector<50x8xf32>
    %c0_9 = arith.constant 0 : index
    %c0_10 = arith.constant 0 : index
    %12 = vector.load %arg3[%c0_9, %c0_10] : memref<50x1xf32, #tpu.memory_space<vmem>>, vector<50x1xf32>
    %13 = vector.broadcast %12 : vector<50x1xf32> to vector<50x8xf32>
    %14 = arith.mulf %11, %13 : vector<50x8xf32>
    %c0_11 = arith.constant 0 : index
    %c0_12 = arith.constant 0 : index
    %15 = vector.load %arg7[%c0_11, %c0_12] : memref<9x8xf32, #tpu.memory_space<vmem>>, vector<9x8xf32>
    %16 = vector.extract_strided_slice %14 {offsets = [0, 0], sizes = [36, 8], strides = [1, 1]} : vector<50x8xf32> to vector<36x8xf32>
    %17 = vector.extract_strided_slice %15 {offsets = [0, 0], sizes = [1, 8], strides = [1, 1]} : vector<9x8xf32> to vector<1x8xf32>
    %18 = vector.broadcast %17 : vector<1x8xf32> to vector<36x8xf32>
    %19 = arith.mulf %16, %18 : vector<36x8xf32>
    %20 = vector.extract_strided_slice %14 {offsets = [1, 0], sizes = [36, 8], strides = [1, 1]} : vector<50x8xf32> to vector<36x8xf32>
    %21 = vector.extract_strided_slice %15 {offsets = [1, 0], sizes = [1, 8], strides = [1, 1]} : vector<9x8xf32> to vector<1x8xf32>
    %22 = vector.broadcast %21 : vector<1x8xf32> to vector<36x8xf32>
    %23 = arith.mulf %20, %22 : vector<36x8xf32>
    %24 = arith.addf %19, %23 : vector<36x8xf32>
    %25 = vector.extract_strided_slice %14 {offsets = [2, 0], sizes = [36, 8], strides = [1, 1]} : vector<50x8xf32> to vector<36x8xf32>
    %26 = vector.extract_strided_slice %15 {offsets = [2, 0], sizes = [1, 8], strides = [1, 1]} : vector<9x8xf32> to vector<1x8xf32>
    %27 = vector.broadcast %26 : vector<1x8xf32> to vector<36x8xf32>
    %28 = arith.mulf %25, %27 : vector<36x8xf32>
    %29 = arith.addf %24, %28 : vector<36x8xf32>
    %30 = vector.extract_strided_slice %14 {offsets = [6, 0], sizes = [36, 8], strides = [1, 1]} : vector<50x8xf32> to vector<36x8xf32>
    %31 = vector.extract_strided_slice %15 {offsets = [3, 0], sizes = [1, 8], strides = [1, 1]} : vector<9x8xf32> to vector<1x8xf32>
    %32 = vector.broadcast %31 : vector<1x8xf32> to vector<36x8xf32>
    %33 = arith.mulf %30, %32 : vector<36x8xf32>
    %34 = arith.addf %29, %33 : vector<36x8xf32>
    %35 = vector.extract_strided_slice %14 {offsets = [7, 0], sizes = [36, 8], strides = [1, 1]} : vector<50x8xf32> to vector<36x8xf32>
    %36 = vector.extract_strided_slice %15 {offsets = [4, 0], sizes = [1, 8], strides = [1, 1]} : vector<9x8xf32> to vector<1x8xf32>
    %37 = vector.broadcast %36 : vector<1x8xf32> to vector<36x8xf32>
    %38 = arith.mulf %35, %37 : vector<36x8xf32>
    %39 = arith.addf %34, %38 : vector<36x8xf32>
    %40 = vector.extract_strided_slice %14 {offsets = [8, 0], sizes = [36, 8], strides = [1, 1]} : vector<50x8xf32> to vector<36x8xf32>
    %41 = vector.extract_strided_slice %15 {offsets = [5, 0], sizes = [1, 8], strides = [1, 1]} : vector<9x8xf32> to vector<1x8xf32>
    %42 = vector.broadcast %41 : vector<1x8xf32> to vector<36x8xf32>
    %43 = arith.mulf %40, %42 : vector<36x8xf32>
    %44 = arith.addf %39, %43 : vector<36x8xf32>
    %45 = vector.extract_strided_slice %14 {offsets = [12, 0], sizes = [36, 8], strides = [1, 1]} : vector<50x8xf32> to vector<36x8xf32>
    %46 = vector.extract_strided_slice %15 {offsets = [6, 0], sizes = [1, 8], strides = [1, 1]} : vector<9x8xf32> to vector<1x8xf32>
    %47 = vector.broadcast %46 : vector<1x8xf32> to vector<36x8xf32>
    %48 = arith.mulf %45, %47 : vector<36x8xf32>
    %49 = arith.addf %44, %48 : vector<36x8xf32>
    %50 = vector.extract_strided_slice %14 {offsets = [13, 0], sizes = [36, 8], strides = [1, 1]} : vector<50x8xf32> to vector<36x8xf32>
    %51 = vector.extract_strided_slice %15 {offsets = [7, 0], sizes = [1, 8], strides = [1, 1]} : vector<9x8xf32> to vector<1x8xf32>
    %52 = vector.broadcast %51 : vector<1x8xf32> to vector<36x8xf32>
    %53 = arith.mulf %50, %52 : vector<36x8xf32>
    %54 = arith.addf %49, %53 : vector<36x8xf32>
    %55 = vector.extract_strided_slice %14 {offsets = [14, 0], sizes = [36, 8], strides = [1, 1]} : vector<50x8xf32> to vector<36x8xf32>
    %56 = vector.extract_strided_slice %15 {offsets = [8, 0], sizes = [1, 8], strides = [1, 1]} : vector<9x8xf32> to vector<1x8xf32>
    %57 = vector.broadcast %56 : vector<1x8xf32> to vector<36x8xf32>
    %58 = arith.mulf %55, %57 : vector<36x8xf32>
    %59 = arith.addf %54, %58 : vector<36x8xf32>
    %c0_13 = arith.constant 0 : index
    %c0_14 = arith.constant 0 : index
    %60 = vector.load %arg8[%c0_13, %c0_14] : memref<1x8xf32, #tpu.memory_space<vmem>>, vector<1x8xf32>
    %61 = vector.broadcast %60 : vector<1x8xf32> to vector<36x8xf32>
    %62 = arith.mulf %59, %61 : vector<36x8xf32>
    %c0_15 = arith.constant 0 : index
    %c0_16 = arith.constant 0 : index
    %63 = vector.load %arg9[%c0_15, %c0_16] : memref<1x8xf32, #tpu.memory_space<vmem>>, vector<1x8xf32>
    %64 = vector.broadcast %63 : vector<1x8xf32> to vector<36x8xf32>
    %65 = arith.addf %62, %64 : vector<36x8xf32>
    %66 = arith.truncf %65 : vector<36x8xf32> to vector<36x8xbf16>
    %c0_17 = arith.constant 0 : index
    %c0_18 = arith.constant 0 : index
    %67 = vector.load %arg10[%c0_17, %c0_18] : memref<8x16xbf16, #tpu.memory_space<vmem>>, vector<8x16xbf16>
    %cst_19 = arith.constant dense<0.000000e+00> : vector<36x16xf32>
    %68 = tpu.matmul %66, %67, %cst_19 {dimension_numbers = #tpu.dot_dimension_numbers<[1], [0], [0], [1], [0, 0, 1, 1], [], []>} : vector<36x8xbf16>, vector<8x16xbf16>, vector<36x16xf32> -> vector<36x16xf32>
    %c0_20 = arith.constant 0 : index
    %c0_21 = arith.constant 0 : index
    %69 = vector.load %arg11[%c0_20, %c0_21] : memref<1x16xf32, #tpu.memory_space<vmem>>, vector<1x16xf32>
    %70 = vector.broadcast %69 : vector<1x16xf32> to vector<36x16xf32>
    %71 = arith.mulf %68, %70 : vector<36x16xf32>
    %c0_22 = arith.constant 0 : index
    %c0_23 = arith.constant 0 : index
    %72 = vector.load %arg12[%c0_22, %c0_23] : memref<1x16xf32, #tpu.memory_space<vmem>>, vector<1x16xf32>
    %73 = vector.broadcast %72 : vector<1x16xf32> to vector<36x16xf32>
    %74 = arith.addf %71, %73 : vector<36x16xf32>
    %cst_24 = arith.constant 0.000000e+00 : f32
    %75 = vector.broadcast %cst_24 : f32 to vector<36x16xf32>
    %76 = arith.maximumf %74, %75 : vector<36x16xf32>
    %c0_25 = arith.constant 0 : index
    %c0_26 = arith.constant 0 : index
    %c0_27 = arith.constant 0 : index
    %77 = vector.load %arg1[%c0_25, %c0_26, %c0_27] : memref<1x36x8xbf16, #tpu.memory_space<vmem>>, vector<1x36x8xbf16>
    %78 = vector.shape_cast %77 : vector<1x36x8xbf16> to vector<36x8xbf16>
    %c0_28 = arith.constant 0 : index
    %c0_29 = arith.constant 0 : index
    %79 = vector.load %arg13[%c0_28, %c0_29] : memref<8x16xbf16, #tpu.memory_space<vmem>>, vector<8x16xbf16>
    %cst_30 = arith.constant dense<0.000000e+00> : vector<36x16xf32>
    %80 = tpu.matmul %78, %79, %cst_30 {dimension_numbers = #tpu.dot_dimension_numbers<[1], [0], [0], [1], [0, 0, 1, 1], [], []>} : vector<36x8xbf16>, vector<8x16xbf16>, vector<36x16xf32> -> vector<36x16xf32>
    %81 = arith.addf %80, %76 : vector<36x16xf32>
    %82 = arith.truncf %81 : vector<36x16xf32> to vector<36x16xbf16>
    %c0_31 = arith.constant 0 : index
    %c0_32 = arith.constant 0 : index
    %c0_33 = arith.constant 0 : index
    %83 = vector.load %arg14[%c0_31, %c0_32, %c0_33] : memref<1x36x16xbf16, #tpu.memory_space<vmem>>, vector<1x36x16xbf16>
    %84 = vector.shape_cast %83 : vector<1x36x16xbf16> to vector<36x16xbf16>
    %85 = vector.shape_cast %82 : vector<36x16xbf16> to vector<1x36x16xbf16>
    tpu.vector_store %arg14[%c0_31, %c0_32, %c0_33], %85 {strides = array<i32>} : memref<1x36x16xbf16, #tpu.memory_space<vmem>>, vector<1x36x16xbf16>,
    return
  }
  func.func @transform_0(%arg0: i32) -> (i32, i32, i32) {
    %c0_i32 = arith.constant 0 : i32
    %c0_i32_0 = arith.constant 0 : i32
    %c0_i32_1 = arith.constant 0 : i32
    return %arg0, %c0_i32, %c0_i32_0 : i32, i32, i32
  }
  func.func @transform_1(%arg0: i32) -> (i32, i32, i32) {
    %c0_i32 = arith.constant 0 : i32
    %c0_i32_0 = arith.constant 0 : i32
    %c0_i32_1 = arith.constant 0 : i32
    return %arg0, %c0_i32, %c0_i32_0 : i32, i32, i32
  }
  func.func @transform_2(%arg0: i32) -> (i32, i32) {
    %c0_i32 = arith.constant 0 : i32
    %c0_i32_0 = arith.constant 0 : i32
    %c0_i32_1 = arith.constant 0 : i32
    return %c0_i32, %c0_i32_0 : i32, i32
  }
  func.func @transform_3(%arg0: i32) -> (i32, i32) {
    %c0_i32 = arith.constant 0 : i32
    %c0_i32_0 = arith.constant 0 : i32
    %c0_i32_1 = arith.constant 0 : i32
    return %c0_i32, %c0_i32_0 : i32, i32
  }
  func.func @transform_4(%arg0: i32) -> (i32, i32) {
    %c0_i32 = arith.constant 0 : i32
    %c0_i32_0 = arith.constant 0 : i32
    %c0_i32_1 = arith.constant 0 : i32
    return %c0_i32, %c0_i32_0 : i32, i32
  }
  func.func @transform_5(%arg0: i32) -> (i32, i32) {
    %c0_i32 = arith.constant 0 : i32
    %c0_i32_0 = arith.constant 0 : i32
    %c0_i32_1 = arith.constant 0 : i32
    return %c0_i32, %c0_i32_0 : i32, i32
  }
  func.func @transform_6(%arg0: i32) -> (i32, i32) {
    %c0_i32 = arith.constant 0 : i32
    %c0_i32_0 = arith.constant 0 : i32
    %c0_i32_1 = arith.constant 0 : i32
    return %c0_i32, %c0_i32_0 : i32, i32
  }
  func.func @transform_7(%arg0: i32) -> (i32, i32) {
    %c0_i32 = arith.constant 0 : i32
    %c0_i32_0 = arith.constant 0 : i32
    %c0_i32_1 = arith.constant 0 : i32
    return %c0_i32, %c0_i32_0 : i32, i32
  }
  func.func @transform_8(%arg0: i32) -> (i32, i32) {
    %c0_i32 = arith.constant 0 : i32
    %c0_i32_0 = arith.constant 0 : i32
    %c0_i32_1 = arith.constant 0 : i32
    return %c0_i32, %c0_i32_0 : i32, i32
  }
  func.func @transform_9(%arg0: i32) -> (i32, i32) {
    %c0_i32 = arith.constant 0 : i32
    %c0_i32_0 = arith.constant 0 : i32
    %c0_i32_1 = arith.constant 0 : i32
    return %c0_i32, %c0_i32_0 : i32, i32
  }
  func.func @transform_10(%arg0: i32) -> (i32, i32) {
    %c0_i32 = arith.constant 0 : i32
    %c0_i32_0 = arith.constant 0 : i32
    %c0_i32_1 = arith.constant 0 : i32
    return %c0_i32, %c0_i32_0 : i32, i32
  }
  func.func @transform_11(%arg0: i32) -> (i32, i32) {
    %c0_i32 = arith.constant 0 : i32
    %c0_i32_0 = arith.constant 0 : i32
    %c0_i32_1 = arith.constant 0 : i32
    return %c0_i32, %c0_i32_0 : i32, i32
  }
  func.func @transform_12(%arg0: i32) -> (i32, i32) {
    %c0_i32 = arith.constant 0 : i32
    %c0_i32_0 = arith.constant 0 : i32
    %c0_i32_1 = arith.constant 0 : i32
    return %c0_i32, %c0_i32_0 : i32, i32
  }
  func.func @transform_13(%arg0: i32) -> (i32, i32, i32) {
    %c0_i32 = arith.constant 0 : i32
    %c0_i32_0 = arith.constant 0 : i32
    %c0_i32_1 = arith.constant 0 : i32
    return %arg0, %c0_i32, %c0_i32_0 : i32, i32, i32
  }
}

module attributes {stable_mosaic.version = 11 : i64} {
  func.func @_block_s2_kernel(%arg0: i32, %arg1: memref<1x13x16xbf16, #tpu.memory_space<vmem>>, %arg2: memref<1x13x16xbf16, #tpu.memory_space<vmem>>, %arg3: memref<1x13x16xbf16, #tpu.memory_space<vmem>>, %arg4: memref<1x13x16xbf16, #tpu.memory_space<vmem>>, %arg5: memref<13x1xf32, #tpu.memory_space<vmem>>, %arg6: memref<9x16xf32, #tpu.memory_space<vmem>>, %arg7: memref<1x16xf32, #tpu.memory_space<vmem>>, %arg8: memref<1x16xf32, #tpu.memory_space<vmem>>, %arg9: memref<16x32xbf16, #tpu.memory_space<vmem>>, %arg10: memref<1x32xf32, #tpu.memory_space<vmem>>, %arg11: memref<1x32xf32, #tpu.memory_space<vmem>>, %arg12: memref<16x16xbf16, #tpu.memory_space<vmem>>, %arg13: memref<1x16xf32, #tpu.memory_space<vmem>>, %arg14: memref<1x16xf32, #tpu.memory_space<vmem>>, %arg15: memref<9x16xf32, #tpu.memory_space<vmem>>, %arg16: memref<1x16xf32, #tpu.memory_space<vmem>>, %arg17: memref<1x16xf32, #tpu.memory_space<vmem>>, %arg18: memref<16x32xbf16, #tpu.memory_space<vmem>>, %arg19: memref<1x32xf32, #tpu.memory_space<vmem>>, %arg20: memref<1x32xf32, #tpu.memory_space<vmem>>, %arg21: memref<1x9x32xbf16, #tpu.memory_space<vmem>>) attributes {dimension_semantics = [#tpu.dimension_semantics<parallel>], iteration_bounds = array<i64: 2>, scalar_prefetch = 0 : i64, scratch_operands = 0 : i64, tpu.core_type = #tpu.core_type<tc>, window_params = [{transform_indices = @transform_0, window_bounds = array<i64: 1, 13, 16>}, {transform_indices = @transform_1, window_bounds = array<i64: 1, 13, 16>}, {transform_indices = @transform_2, window_bounds = array<i64: 1, 13, 16>}, {transform_indices = @transform_3, window_bounds = array<i64: 1, 13, 16>}, {pipeline_mode = #tpu.pipeline_mode<synchronous>, transform_indices = @transform_4, window_bounds = array<i64: 13, 1>}, {pipeline_mode = #tpu.pipeline_mode<synchronous>, transform_indices = @transform_5, window_bounds = array<i64: 9, 16>}, {pipeline_mode = #tpu.pipeline_mode<synchronous>, transform_indices = @transform_6, window_bounds = array<i64: 1, 16>}, {pipeline_mode = #tpu.pipeline_mode<synchronous>, transform_indices = @transform_7, window_bounds = array<i64: 1, 16>}, {pipeline_mode = #tpu.pipeline_mode<synchronous>, transform_indices = @transform_8, window_bounds = array<i64: 16, 32>}, {pipeline_mode = #tpu.pipeline_mode<synchronous>, transform_indices = @transform_9, window_bounds = array<i64: 1, 32>}, {pipeline_mode = #tpu.pipeline_mode<synchronous>, transform_indices = @transform_10, window_bounds = array<i64: 1, 32>}, {pipeline_mode = #tpu.pipeline_mode<synchronous>, transform_indices = @transform_11, window_bounds = array<i64: 16, 16>}, {pipeline_mode = #tpu.pipeline_mode<synchronous>, transform_indices = @transform_12, window_bounds = array<i64: 1, 16>}, {pipeline_mode = #tpu.pipeline_mode<synchronous>, transform_indices = @transform_13, window_bounds = array<i64: 1, 16>}, {pipeline_mode = #tpu.pipeline_mode<synchronous>, transform_indices = @transform_14, window_bounds = array<i64: 9, 16>}, {pipeline_mode = #tpu.pipeline_mode<synchronous>, transform_indices = @transform_15, window_bounds = array<i64: 1, 16>}, {pipeline_mode = #tpu.pipeline_mode<synchronous>, transform_indices = @transform_16, window_bounds = array<i64: 1, 16>}, {pipeline_mode = #tpu.pipeline_mode<synchronous>, transform_indices = @transform_17, window_bounds = array<i64: 16, 32>}, {pipeline_mode = #tpu.pipeline_mode<synchronous>, transform_indices = @transform_18, window_bounds = array<i64: 1, 32>}, {pipeline_mode = #tpu.pipeline_mode<synchronous>, transform_indices = @transform_19, window_bounds = array<i64: 1, 32>}, {transform_indices = @transform_20, window_bounds = array<i64: 1, 9, 32>}]} {
    %c0 = arith.constant 0 : index
    %c0_0 = arith.constant 0 : index
    %c0_1 = arith.constant 0 : index
    %0 = vector.load %arg1[%c0, %c0_0, %c0_1] : memref<1x13x16xbf16, #tpu.memory_space<vmem>>, vector<1x13x16xbf16>
    %1 = vector.shape_cast %0 : vector<1x13x16xbf16> to vector<13x16xbf16>
    %c0_2 = arith.constant 0 : index
    %c0_3 = arith.constant 0 : index
    %c0_4 = arith.constant 0 : index
    %2 = vector.load %arg2[%c0_2, %c0_3, %c0_4] : memref<1x13x16xbf16, #tpu.memory_space<vmem>>, vector<1x13x16xbf16>
    %3 = vector.shape_cast %2 : vector<1x13x16xbf16> to vector<13x16xbf16>
    %c0_5 = arith.constant 0 : index
    %c0_6 = arith.constant 0 : index
    %c0_7 = arith.constant 0 : index
    %4 = vector.load %arg3[%c0_5, %c0_6, %c0_7] : memref<1x13x16xbf16, #tpu.memory_space<vmem>>, vector<1x13x16xbf16>
    %5 = vector.shape_cast %4 : vector<1x13x16xbf16> to vector<13x16xbf16>
    %c0_8 = arith.constant 0 : index
    %c0_9 = arith.constant 0 : index
    %c0_10 = arith.constant 0 : index
    %6 = vector.load %arg4[%c0_8, %c0_9, %c0_10] : memref<1x13x16xbf16, #tpu.memory_space<vmem>>, vector<1x13x16xbf16>
    %7 = vector.shape_cast %6 : vector<1x13x16xbf16> to vector<13x16xbf16>
    %8 = arith.extf %1 : vector<13x16xbf16> to vector<13x16xf32>
    %9 = arith.extf %3 : vector<13x16xbf16> to vector<13x16xf32>
    %10 = arith.extf %5 : vector<13x16xbf16> to vector<13x16xf32>
    %11 = arith.extf %7 : vector<13x16xbf16> to vector<13x16xf32>
    %c0_11 = arith.constant 0 : index
    %c0_12 = arith.constant 0 : index
    %12 = vector.load %arg6[%c0_11, %c0_12] : memref<9x16xf32, #tpu.memory_space<vmem>>, vector<9x16xf32>
    %13 = vector.extract_strided_slice %11 {offsets = [0, 0], sizes = [9, 16], strides = [1, 1]} : vector<13x16xf32> to vector<9x16xf32>
    %14 = vector.extract_strided_slice %12 {offsets = [0, 0], sizes = [1, 16], strides = [1, 1]} : vector<9x16xf32> to vector<1x16xf32>
    %15 = vector.broadcast %14 : vector<1x16xf32> to vector<9x16xf32>
    %16 = arith.mulf %13, %15 : vector<9x16xf32>
    %17 = vector.extract_strided_slice %10 {offsets = [1, 0], sizes = [9, 16], strides = [1, 1]} : vector<13x16xf32> to vector<9x16xf32>
    %18 = vector.extract_strided_slice %12 {offsets = [1, 0], sizes = [1, 16], strides = [1, 1]} : vector<9x16xf32> to vector<1x16xf32>
    %19 = vector.broadcast %18 : vector<1x16xf32> to vector<9x16xf32>
    %20 = arith.mulf %17, %19 : vector<9x16xf32>
    %21 = arith.addf %16, %20 : vector<9x16xf32>
    %22 = vector.extract_strided_slice %11 {offsets = [1, 0], sizes = [9, 16], strides = [1, 1]} : vector<13x16xf32> to vector<9x16xf32>
    %23 = vector.extract_strided_slice %12 {offsets = [2, 0], sizes = [1, 16], strides = [1, 1]} : vector<9x16xf32> to vector<1x16xf32>
    %24 = vector.broadcast %23 : vector<1x16xf32> to vector<9x16xf32>
    %25 = arith.mulf %22, %24 : vector<9x16xf32>
    %26 = arith.addf %21, %25 : vector<9x16xf32>
    %27 = vector.extract_strided_slice %9 {offsets = [3, 0], sizes = [9, 16], strides = [1, 1]} : vector<13x16xf32> to vector<9x16xf32>
    %28 = vector.extract_strided_slice %12 {offsets = [3, 0], sizes = [1, 16], strides = [1, 1]} : vector<9x16xf32> to vector<1x16xf32>
    %29 = vector.broadcast %28 : vector<1x16xf32> to vector<9x16xf32>
    %30 = arith.mulf %27, %29 : vector<9x16xf32>
    %31 = arith.addf %26, %30 : vector<9x16xf32>
    %32 = vector.extract_strided_slice %8 {offsets = [4, 0], sizes = [9, 16], strides = [1, 1]} : vector<13x16xf32> to vector<9x16xf32>
    %33 = vector.extract_strided_slice %12 {offsets = [4, 0], sizes = [1, 16], strides = [1, 1]} : vector<9x16xf32> to vector<1x16xf32>
    %34 = vector.broadcast %33 : vector<1x16xf32> to vector<9x16xf32>
    %35 = arith.mulf %32, %34 : vector<9x16xf32>
    %36 = arith.addf %31, %35 : vector<9x16xf32>
    %37 = vector.extract_strided_slice %9 {offsets = [4, 0], sizes = [9, 16], strides = [1, 1]} : vector<13x16xf32> to vector<9x16xf32>
    %38 = vector.extract_strided_slice %12 {offsets = [5, 0], sizes = [1, 16], strides = [1, 1]} : vector<9x16xf32> to vector<1x16xf32>
    %39 = vector.broadcast %38 : vector<1x16xf32> to vector<9x16xf32>
    %40 = arith.mulf %37, %39 : vector<9x16xf32>
    %41 = arith.addf %36, %40 : vector<9x16xf32>
    %42 = vector.extract_strided_slice %11 {offsets = [3, 0], sizes = [9, 16], strides = [1, 1]} : vector<13x16xf32> to vector<9x16xf32>
    %43 = vector.extract_strided_slice %12 {offsets = [6, 0], sizes = [1, 16], strides = [1, 1]} : vector<9x16xf32> to vector<1x16xf32>
    %44 = vector.broadcast %43 : vector<1x16xf32> to vector<9x16xf32>
    %45 = arith.mulf %42, %44 : vector<9x16xf32>
    %46 = arith.addf %41, %45 : vector<9x16xf32>
    %47 = vector.extract_strided_slice %10 {offsets = [4, 0], sizes = [9, 16], strides = [1, 1]} : vector<13x16xf32> to vector<9x16xf32>
    %48 = vector.extract_strided_slice %12 {offsets = [7, 0], sizes = [1, 16], strides = [1, 1]} : vector<9x16xf32> to vector<1x16xf32>
    %49 = vector.broadcast %48 : vector<1x16xf32> to vector<9x16xf32>
    %50 = arith.mulf %47, %49 : vector<9x16xf32>
    %51 = arith.addf %46, %50 : vector<9x16xf32>
    %52 = vector.extract_strided_slice %11 {offsets = [4, 0], sizes = [9, 16], strides = [1, 1]} : vector<13x16xf32> to vector<9x16xf32>
    %53 = vector.extract_strided_slice %12 {offsets = [8, 0], sizes = [1, 16], strides = [1, 1]} : vector<9x16xf32> to vector<1x16xf32>
    %54 = vector.broadcast %53 : vector<1x16xf32> to vector<9x16xf32>
    %55 = arith.mulf %52, %54 : vector<9x16xf32>
    %56 = arith.addf %51, %55 : vector<9x16xf32>
    %c0_13 = arith.constant 0 : index
    %c0_14 = arith.constant 0 : index
    %57 = vector.load %arg7[%c0_13, %c0_14] : memref<1x16xf32, #tpu.memory_space<vmem>>, vector<1x16xf32>
    %58 = vector.broadcast %57 : vector<1x16xf32> to vector<9x16xf32>
    %59 = arith.mulf %56, %58 : vector<9x16xf32>
    %c0_15 = arith.constant 0 : index
    %c0_16 = arith.constant 0 : index
    %60 = vector.load %arg8[%c0_15, %c0_16] : memref<1x16xf32, #tpu.memory_space<vmem>>, vector<1x16xf32>
    %61 = vector.broadcast %60 : vector<1x16xf32> to vector<9x16xf32>
    %62 = arith.addf %59, %61 : vector<9x16xf32>
    %63 = arith.truncf %62 : vector<9x16xf32> to vector<9x16xbf16>
    %c0_17 = arith.constant 0 : index
    %c0_18 = arith.constant 0 : index
    %64 = vector.load %arg9[%c0_17, %c0_18] : memref<16x32xbf16, #tpu.memory_space<vmem>>, vector<16x32xbf16>
    %cst = arith.constant dense<0.000000e+00> : vector<9x32xf32>
    %65 = tpu.matmul %63, %64, %cst {dimension_numbers = #tpu.dot_dimension_numbers<[1], [0], [0], [1], [0, 0, 1, 1], [], []>} : vector<9x16xbf16>, vector<16x32xbf16>, vector<9x32xf32> -> vector<9x32xf32>
    %c0_19 = arith.constant 0 : index
    %c0_20 = arith.constant 0 : index
    %66 = vector.load %arg10[%c0_19, %c0_20] : memref<1x32xf32, #tpu.memory_space<vmem>>, vector<1x32xf32>
    %67 = vector.broadcast %66 : vector<1x32xf32> to vector<9x32xf32>
    %68 = arith.mulf %65, %67 : vector<9x32xf32>
    %c0_21 = arith.constant 0 : index
    %c0_22 = arith.constant 0 : index
    %69 = vector.load %arg11[%c0_21, %c0_22] : memref<1x32xf32, #tpu.memory_space<vmem>>, vector<1x32xf32>
    %70 = vector.broadcast %69 : vector<1x32xf32> to vector<9x32xf32>
    %71 = arith.addf %68, %70 : vector<9x32xf32>
    %cst_23 = arith.constant 0.000000e+00 : f32
    %72 = vector.broadcast %cst_23 : f32 to vector<9x32xf32>
    %73 = arith.maximumf %71, %72 : vector<9x32xf32>
    %c0_24 = arith.constant 0 : index
    %c0_25 = arith.constant 0 : index
    %74 = vector.load %arg5[%c0_24, %c0_25] : memref<13x1xf32, #tpu.memory_space<vmem>>, vector<13x1xf32>
    %c0_26 = arith.constant 0 : index
    %c0_27 = arith.constant 0 : index
    %75 = vector.load %arg12[%c0_26, %c0_27] : memref<16x16xbf16, #tpu.memory_space<vmem>>, vector<16x16xbf16>
    %cst_28 = arith.constant dense<0.000000e+00> : vector<13x16xf32>
    %76 = tpu.matmul %1, %75, %cst_28 {dimension_numbers = #tpu.dot_dimension_numbers<[1], [0], [0], [1], [0, 0, 1, 1], [], []>} : vector<13x16xbf16>, vector<16x16xbf16>, vector<13x16xf32> -> vector<13x16xf32>
    %c0_29 = arith.constant 0 : index
    %c0_30 = arith.constant 0 : index
    %77 = vector.load %arg13[%c0_29, %c0_30] : memref<1x16xf32, #tpu.memory_space<vmem>>, vector<1x16xf32>
    %78 = vector.broadcast %77 : vector<1x16xf32> to vector<13x16xf32>
    %79 = arith.mulf %76, %78 : vector<13x16xf32>
    %c0_31 = arith.constant 0 : index
    %c0_32 = arith.constant 0 : index
    %80 = vector.load %arg14[%c0_31, %c0_32] : memref<1x16xf32, #tpu.memory_space<vmem>>, vector<1x16xf32>
    %81 = vector.broadcast %80 : vector<1x16xf32> to vector<13x16xf32>
    %82 = arith.addf %79, %81 : vector<13x16xf32>
    %cst_33 = arith.constant 0.000000e+00 : f32
    %83 = vector.broadcast %cst_33 : f32 to vector<13x16xf32>
    %84 = arith.maximumf %82, %83 : vector<13x16xf32>
    %85 = vector.broadcast %74 : vector<13x1xf32> to vector<13x16xf32>
    %86 = arith.mulf %84, %85 : vector<13x16xf32>
    %c0_34 = arith.constant 0 : index
    %c0_35 = arith.constant 0 : index
    %87 = vector.load %arg12[%c0_34, %c0_35] : memref<16x16xbf16, #tpu.memory_space<vmem>>, vector<16x16xbf16>
    %cst_36 = arith.constant dense<0.000000e+00> : vector<13x16xf32>
    %88 = tpu.matmul %3, %87, %cst_36 {dimension_numbers = #tpu.dot_dimension_numbers<[1], [0], [0], [1], [0, 0, 1, 1], [], []>} : vector<13x16xbf16>, vector<16x16xbf16>, vector<13x16xf32> -> vector<13x16xf32>
    %c0_37 = arith.constant 0 : index
    %c0_38 = arith.constant 0 : index
    %89 = vector.load %arg13[%c0_37, %c0_38] : memref<1x16xf32, #tpu.memory_space<vmem>>, vector<1x16xf32>
    %90 = vector.broadcast %89 : vector<1x16xf32> to vector<13x16xf32>
    %91 = arith.mulf %88, %90 : vector<13x16xf32>
    %c0_39 = arith.constant 0 : index
    %c0_40 = arith.constant 0 : index
    %92 = vector.load %arg14[%c0_39, %c0_40] : memref<1x16xf32, #tpu.memory_space<vmem>>, vector<1x16xf32>
    %93 = vector.broadcast %92 : vector<1x16xf32> to vector<13x16xf32>
    %94 = arith.addf %91, %93 : vector<13x16xf32>
    %cst_41 = arith.constant 0.000000e+00 : f32
    %95 = vector.broadcast %cst_41 : f32 to vector<13x16xf32>
    %96 = arith.maximumf %94, %95 : vector<13x16xf32>
    %97 = vector.broadcast %74 : vector<13x1xf32> to vector<13x16xf32>
    %98 = arith.mulf %96, %97 : vector<13x16xf32>
    %c0_42 = arith.constant 0 : index
    %c0_43 = arith.constant 0 : index
    %99 = vector.load %arg12[%c0_42, %c0_43] : memref<16x16xbf16, #tpu.memory_space<vmem>>, vector<16x16xbf16>
    %cst_44 = arith.constant dense<0.000000e+00> : vector<13x16xf32>
    %100 = tpu.matmul %5, %99, %cst_44 {dimension_numbers = #tpu.dot_dimension_numbers<[1], [0], [0], [1], [0, 0, 1, 1], [], []>} : vector<13x16xbf16>, vector<16x16xbf16>, vector<13x16xf32> -> vector<13x16xf32>
    %c0_45 = arith.constant 0 : index
    %c0_46 = arith.constant 0 : index
    %101 = vector.load %arg13[%c0_45, %c0_46] : memref<1x16xf32, #tpu.memory_space<vmem>>, vector<1x16xf32>
    %102 = vector.broadcast %101 : vector<1x16xf32> to vector<13x16xf32>
    %103 = arith.mulf %100, %102 : vector<13x16xf32>
    %c0_47 = arith.constant 0 : index
    %c0_48 = arith.constant 0 : index
    %104 = vector.load %arg14[%c0_47, %c0_48] : memref<1x16xf32, #tpu.memory_space<vmem>>, vector<1x16xf32>
    %105 = vector.broadcast %104 : vector<1x16xf32> to vector<13x16xf32>
    %106 = arith.addf %103, %105 : vector<13x16xf32>
    %cst_49 = arith.constant 0.000000e+00 : f32
    %107 = vector.broadcast %cst_49 : f32 to vector<13x16xf32>
    %108 = arith.maximumf %106, %107 : vector<13x16xf32>
    %109 = vector.broadcast %74 : vector<13x1xf32> to vector<13x16xf32>
    %110 = arith.mulf %108, %109 : vector<13x16xf32>
    %c0_50 = arith.constant 0 : index
    %c0_51 = arith.constant 0 : index
    %111 = vector.load %arg12[%c0_50, %c0_51] : memref<16x16xbf16, #tpu.memory_space<vmem>>, vector<16x16xbf16>
    %cst_52 = arith.constant dense<0.000000e+00> : vector<13x16xf32>
    %112 = tpu.matmul %7, %111, %cst_52 {dimension_numbers = #tpu.dot_dimension_numbers<[1], [0], [0], [1], [0, 0, 1, 1], [], []>} : vector<13x16xbf16>, vector<16x16xbf16>, vector<13x16xf32> -> vector<13x16xf32>
    %c0_53 = arith.constant 0 : index
    %c0_54 = arith.constant 0 : index
    %113 = vector.load %arg13[%c0_53, %c0_54] : memref<1x16xf32, #tpu.memory_space<vmem>>, vector<1x16xf32>
    %114 = vector.broadcast %113 : vector<1x16xf32> to vector<13x16xf32>
    %115 = arith.mulf %112, %114 : vector<13x16xf32>
    %c0_55 = arith.constant 0 : index
    %c0_56 = arith.constant 0 : index
    %116 = vector.load %arg14[%c0_55, %c0_56] : memref<1x16xf32, #tpu.memory_space<vmem>>, vector<1x16xf32>
    %117 = vector.broadcast %116 : vector<1x16xf32> to vector<13x16xf32>
    %118 = arith.addf %115, %117 : vector<13x16xf32>
    %cst_57 = arith.constant 0.000000e+00 : f32
    %119 = vector.broadcast %cst_57 : f32 to vector<13x16xf32>
    %120 = arith.maximumf %118, %119 : vector<13x16xf32>
    %121 = vector.broadcast %74 : vector<13x1xf32> to vector<13x16xf32>
    %122 = arith.mulf %120, %121 : vector<13x16xf32>
    %c0_58 = arith.constant 0 : index
    %c0_59 = arith.constant 0 : index
    %123 = vector.load %arg15[%c0_58, %c0_59] : memref<9x16xf32, #tpu.memory_space<vmem>>, vector<9x16xf32>
    %124 = vector.extract_strided_slice %122 {offsets = [0, 0], sizes = [9, 16], strides = [1, 1]} : vector<13x16xf32> to vector<9x16xf32>
    %125 = vector.extract_strided_slice %123 {offsets = [0, 0], sizes = [1, 16], strides = [1, 1]} : vector<9x16xf32> to vector<1x16xf32>
    %126 = vector.broadcast %125 : vector<1x16xf32> to vector<9x16xf32>
    %127 = arith.mulf %124, %126 : vector<9x16xf32>
    %128 = vector.extract_strided_slice %110 {offsets = [1, 0], sizes = [9, 16], strides = [1, 1]} : vector<13x16xf32> to vector<9x16xf32>
    %129 = vector.extract_strided_slice %123 {offsets = [1, 0], sizes = [1, 16], strides = [1, 1]} : vector<9x16xf32> to vector<1x16xf32>
    %130 = vector.broadcast %129 : vector<1x16xf32> to vector<9x16xf32>
    %131 = arith.mulf %128, %130 : vector<9x16xf32>
    %132 = arith.addf %127, %131 : vector<9x16xf32>
    %133 = vector.extract_strided_slice %122 {offsets = [1, 0], sizes = [9, 16], strides = [1, 1]} : vector<13x16xf32> to vector<9x16xf32>
    %134 = vector.extract_strided_slice %123 {offsets = [2, 0], sizes = [1, 16], strides = [1, 1]} : vector<9x16xf32> to vector<1x16xf32>
    %135 = vector.broadcast %134 : vector<1x16xf32> to vector<9x16xf32>
    %136 = arith.mulf %133, %135 : vector<9x16xf32>
    %137 = arith.addf %132, %136 : vector<9x16xf32>
    %138 = vector.extract_strided_slice %98 {offsets = [3, 0], sizes = [9, 16], strides = [1, 1]} : vector<13x16xf32> to vector<9x16xf32>
    %139 = vector.extract_strided_slice %123 {offsets = [3, 0], sizes = [1, 16], strides = [1, 1]} : vector<9x16xf32> to vector<1x16xf32>
    %140 = vector.broadcast %139 : vector<1x16xf32> to vector<9x16xf32>
    %141 = arith.mulf %138, %140 : vector<9x16xf32>
    %142 = arith.addf %137, %141 : vector<9x16xf32>
    %143 = vector.extract_strided_slice %86 {offsets = [4, 0], sizes = [9, 16], strides = [1, 1]} : vector<13x16xf32> to vector<9x16xf32>
    %144 = vector.extract_strided_slice %123 {offsets = [4, 0], sizes = [1, 16], strides = [1, 1]} : vector<9x16xf32> to vector<1x16xf32>
    %145 = vector.broadcast %144 : vector<1x16xf32> to vector<9x16xf32>
    %146 = arith.mulf %143, %145 : vector<9x16xf32>
    %147 = arith.addf %142, %146 : vector<9x16xf32>
    %148 = vector.extract_strided_slice %98 {offsets = [4, 0], sizes = [9, 16], strides = [1, 1]} : vector<13x16xf32> to vector<9x16xf32>
    %149 = vector.extract_strided_slice %123 {offsets = [5, 0], sizes = [1, 16], strides = [1, 1]} : vector<9x16xf32> to vector<1x16xf32>
    %150 = vector.broadcast %149 : vector<1x16xf32> to vector<9x16xf32>
    %151 = arith.mulf %148, %150 : vector<9x16xf32>
    %152 = arith.addf %147, %151 : vector<9x16xf32>
    %153 = vector.extract_strided_slice %122 {offsets = [3, 0], sizes = [9, 16], strides = [1, 1]} : vector<13x16xf32> to vector<9x16xf32>
    %154 = vector.extract_strided_slice %123 {offsets = [6, 0], sizes = [1, 16], strides = [1, 1]} : vector<9x16xf32> to vector<1x16xf32>
    %155 = vector.broadcast %154 : vector<1x16xf32> to vector<9x16xf32>
    %156 = arith.mulf %153, %155 : vector<9x16xf32>
    %157 = arith.addf %152, %156 : vector<9x16xf32>
    %158 = vector.extract_strided_slice %110 {offsets = [4, 0], sizes = [9, 16], strides = [1, 1]} : vector<13x16xf32> to vector<9x16xf32>
    %159 = vector.extract_strided_slice %123 {offsets = [7, 0], sizes = [1, 16], strides = [1, 1]} : vector<9x16xf32> to vector<1x16xf32>
    %160 = vector.broadcast %159 : vector<1x16xf32> to vector<9x16xf32>
    %161 = arith.mulf %158, %160 : vector<9x16xf32>
    %162 = arith.addf %157, %161 : vector<9x16xf32>
    %163 = vector.extract_strided_slice %122 {offsets = [4, 0], sizes = [9, 16], strides = [1, 1]} : vector<13x16xf32> to vector<9x16xf32>
    %164 = vector.extract_strided_slice %123 {offsets = [8, 0], sizes = [1, 16], strides = [1, 1]} : vector<9x16xf32> to vector<1x16xf32>
    %165 = vector.broadcast %164 : vector<1x16xf32> to vector<9x16xf32>
    %166 = arith.mulf %163, %165 : vector<9x16xf32>
    %167 = arith.addf %162, %166 : vector<9x16xf32>
    %c0_60 = arith.constant 0 : index
    %c0_61 = arith.constant 0 : index
    %168 = vector.load %arg16[%c0_60, %c0_61] : memref<1x16xf32, #tpu.memory_space<vmem>>, vector<1x16xf32>
    %169 = vector.broadcast %168 : vector<1x16xf32> to vector<9x16xf32>
    %170 = arith.mulf %167, %169 : vector<9x16xf32>
    %c0_62 = arith.constant 0 : index
    %c0_63 = arith.constant 0 : index
    %171 = vector.load %arg17[%c0_62, %c0_63] : memref<1x16xf32, #tpu.memory_space<vmem>>, vector<1x16xf32>
    %172 = vector.broadcast %171 : vector<1x16xf32> to vector<9x16xf32>
    %173 = arith.addf %170, %172 : vector<9x16xf32>
    %174 = arith.truncf %173 : vector<9x16xf32> to vector<9x16xbf16>
    %c0_64 = arith.constant 0 : index
    %c0_65 = arith.constant 0 : index
    %175 = vector.load %arg18[%c0_64, %c0_65] : memref<16x32xbf16, #tpu.memory_space<vmem>>, vector<16x32xbf16>
    %cst_66 = arith.constant dense<0.000000e+00> : vector<9x32xf32>
    %176 = tpu.matmul %174, %175, %cst_66 {dimension_numbers = #tpu.dot_dimension_numbers<[1], [0], [0], [1], [0, 0, 1, 1], [], []>} : vector<9x16xbf16>, vector<16x32xbf16>, vector<9x32xf32> -> vector<9x32xf32>
    %c0_67 = arith.constant 0 : index
    %c0_68 = arith.constant 0 : index
    %177 = vector.load %arg19[%c0_67, %c0_68] : memref<1x32xf32, #tpu.memory_space<vmem>>, vector<1x32xf32>
    %178 = vector.broadcast %177 : vector<1x32xf32> to vector<9x32xf32>
    %179 = arith.mulf %176, %178 : vector<9x32xf32>
    %c0_69 = arith.constant 0 : index
    %c0_70 = arith.constant 0 : index
    %180 = vector.load %arg20[%c0_69, %c0_70] : memref<1x32xf32, #tpu.memory_space<vmem>>, vector<1x32xf32>
    %181 = vector.broadcast %180 : vector<1x32xf32> to vector<9x32xf32>
    %182 = arith.addf %179, %181 : vector<9x32xf32>
    %cst_71 = arith.constant 0.000000e+00 : f32
    %183 = vector.broadcast %cst_71 : f32 to vector<9x32xf32>
    %184 = arith.maximumf %182, %183 : vector<9x32xf32>
    %185 = arith.addf %73, %184 : vector<9x32xf32>
    %186 = arith.truncf %185 : vector<9x32xf32> to vector<9x32xbf16>
    %c0_72 = arith.constant 0 : index
    %c0_73 = arith.constant 0 : index
    %c0_74 = arith.constant 0 : index
    %187 = vector.load %arg21[%c0_72, %c0_73, %c0_74] : memref<1x9x32xbf16, #tpu.memory_space<vmem>>, vector<1x9x32xbf16>
    %188 = vector.shape_cast %187 : vector<1x9x32xbf16> to vector<9x32xbf16>
    %189 = vector.shape_cast %186 : vector<9x32xbf16> to vector<1x9x32xbf16>
    tpu.vector_store %arg21[%c0_72, %c0_73, %c0_74], %189 {strides = array<i32>} : memref<1x9x32xbf16, #tpu.memory_space<vmem>>, vector<1x9x32xbf16>,
    return
  }
  func.func @transform_0(%arg0: i32) -> (i32, i32, i32) {
    %c0_i32 = arith.constant 0 : i32
    %c0_i32_0 = arith.constant 0 : i32
    %c0_i32_1 = arith.constant 0 : i32
    return %arg0, %c0_i32, %c0_i32_0 : i32, i32, i32
  }
  func.func @transform_1(%arg0: i32) -> (i32, i32, i32) {
    %c0_i32 = arith.constant 0 : i32
    %c0_i32_0 = arith.constant 0 : i32
    %c0_i32_1 = arith.constant 0 : i32
    return %arg0, %c0_i32, %c0_i32_0 : i32, i32, i32
  }
  func.func @transform_2(%arg0: i32) -> (i32, i32, i32) {
    %c0_i32 = arith.constant 0 : i32
    %c0_i32_0 = arith.constant 0 : i32
    %c0_i32_1 = arith.constant 0 : i32
    return %arg0, %c0_i32, %c0_i32_0 : i32, i32, i32
  }
  func.func @transform_3(%arg0: i32) -> (i32, i32, i32) {
    %c0_i32 = arith.constant 0 : i32
    %c0_i32_0 = arith.constant 0 : i32
    %c0_i32_1 = arith.constant 0 : i32
    return %arg0, %c0_i32, %c0_i32_0 : i32, i32, i32
  }
  func.func @transform_4(%arg0: i32) -> (i32, i32) {
    %c0_i32 = arith.constant 0 : i32
    %c0_i32_0 = arith.constant 0 : i32
    %c0_i32_1 = arith.constant 0 : i32
    return %c0_i32, %c0_i32_0 : i32, i32
  }
  func.func @transform_5(%arg0: i32) -> (i32, i32) {
    %c0_i32 = arith.constant 0 : i32
    %c0_i32_0 = arith.constant 0 : i32
    %c0_i32_1 = arith.constant 0 : i32
    return %c0_i32, %c0_i32_0 : i32, i32
  }
  func.func @transform_6(%arg0: i32) -> (i32, i32) {
    %c0_i32 = arith.constant 0 : i32
    %c0_i32_0 = arith.constant 0 : i32
    %c0_i32_1 = arith.constant 0 : i32
    return %c0_i32, %c0_i32_0 : i32, i32
  }
  func.func @transform_7(%arg0: i32) -> (i32, i32) {
    %c0_i32 = arith.constant 0 : i32
    %c0_i32_0 = arith.constant 0 : i32
    %c0_i32_1 = arith.constant 0 : i32
    return %c0_i32, %c0_i32_0 : i32, i32
  }
  func.func @transform_8(%arg0: i32) -> (i32, i32) {
    %c0_i32 = arith.constant 0 : i32
    %c0_i32_0 = arith.constant 0 : i32
    %c0_i32_1 = arith.constant 0 : i32
    return %c0_i32, %c0_i32_0 : i32, i32
  }
  func.func @transform_9(%arg0: i32) -> (i32, i32) {
    %c0_i32 = arith.constant 0 : i32
    %c0_i32_0 = arith.constant 0 : i32
    %c0_i32_1 = arith.constant 0 : i32
    return %c0_i32, %c0_i32_0 : i32, i32
  }
  func.func @transform_10(%arg0: i32) -> (i32, i32) {
    %c0_i32 = arith.constant 0 : i32
    %c0_i32_0 = arith.constant 0 : i32
    %c0_i32_1 = arith.constant 0 : i32
    return %c0_i32, %c0_i32_0 : i32, i32
  }
  func.func @transform_11(%arg0: i32) -> (i32, i32) {
    %c0_i32 = arith.constant 0 : i32
    %c0_i32_0 = arith.constant 0 : i32
    %c0_i32_1 = arith.constant 0 : i32
    return %c0_i32, %c0_i32_0 : i32, i32
  }
  func.func @transform_12(%arg0: i32) -> (i32, i32) {
    %c0_i32 = arith.constant 0 : i32
    %c0_i32_0 = arith.constant 0 : i32
    %c0_i32_1 = arith.constant 0 : i32
    return %c0_i32, %c0_i32_0 : i32, i32
  }
  func.func @transform_13(%arg0: i32) -> (i32, i32) {
    %c0_i32 = arith.constant 0 : i32
    %c0_i32_0 = arith.constant 0 : i32
    %c0_i32_1 = arith.constant 0 : i32
    return %c0_i32, %c0_i32_0 : i32, i32
  }
  func.func @transform_14(%arg0: i32) -> (i32, i32) {
    %c0_i32 = arith.constant 0 : i32
    %c0_i32_0 = arith.constant 0 : i32
    %c0_i32_1 = arith.constant 0 : i32
    return %c0_i32, %c0_i32_0 : i32, i32
  }
  func.func @transform_15(%arg0: i32) -> (i32, i32) {
    %c0_i32 = arith.constant 0 : i32
    %c0_i32_0 = arith.constant 0 : i32
    %c0_i32_1 = arith.constant 0 : i32
    return %c0_i32, %c0_i32_0 : i32, i32
  }
  func.func @transform_16(%arg0: i32) -> (i32, i32) {
    %c0_i32 = arith.constant 0 : i32
    %c0_i32_0 = arith.constant 0 : i32
    %c0_i32_1 = arith.constant 0 : i32
    return %c0_i32, %c0_i32_0 : i32, i32
  }
  func.func @transform_17(%arg0: i32) -> (i32, i32) {
    %c0_i32 = arith.constant 0 : i32
    %c0_i32_0 = arith.constant 0 : i32
    %c0_i32_1 = arith.constant 0 : i32
    return %c0_i32, %c0_i32_0 : i32, i32
  }
  func.func @transform_18(%arg0: i32) -> (i32, i32) {
    %c0_i32 = arith.constant 0 : i32
    %c0_i32_0 = arith.constant 0 : i32
    %c0_i32_1 = arith.constant 0 : i32
    return %c0_i32, %c0_i32_0 : i32, i32
  }
  func.func @transform_19(%arg0: i32) -> (i32, i32) {
    %c0_i32 = arith.constant 0 : i32
    %c0_i32_0 = arith.constant 0 : i32
    %c0_i32_1 = arith.constant 0 : i32
    return %c0_i32, %c0_i32_0 : i32, i32
  }
  func.func @transform_20(%arg0: i32) -> (i32, i32, i32) {
    %c0_i32 = arith.constant 0 : i32
    %c0_i32_0 = arith.constant 0 : i32
    %c0_i32_1 = arith.constant 0 : i32
    return %arg0, %c0_i32, %c0_i32_0 : i32, i32, i32
  }
}

module attributes {stable_mosaic.version = 11 : i64} {
  func.func @_block_s2_kernel(%arg0: i32, %arg1: memref<1x7x32xbf16, #tpu.memory_space<vmem>>, %arg2: memref<1x7x32xbf16, #tpu.memory_space<vmem>>, %arg3: memref<1x7x32xbf16, #tpu.memory_space<vmem>>, %arg4: memref<1x7x32xbf16, #tpu.memory_space<vmem>>, %arg5: memref<7x1xf32, #tpu.memory_space<vmem>>, %arg6: memref<9x32xf32, #tpu.memory_space<vmem>>, %arg7: memref<1x32xf32, #tpu.memory_space<vmem>>, %arg8: memref<1x32xf32, #tpu.memory_space<vmem>>, %arg9: memref<32x64xbf16, #tpu.memory_space<vmem>>, %arg10: memref<1x64xf32, #tpu.memory_space<vmem>>, %arg11: memref<1x64xf32, #tpu.memory_space<vmem>>, %arg12: memref<32x32xbf16, #tpu.memory_space<vmem>>, %arg13: memref<1x32xf32, #tpu.memory_space<vmem>>, %arg14: memref<1x32xf32, #tpu.memory_space<vmem>>, %arg15: memref<9x32xf32, #tpu.memory_space<vmem>>, %arg16: memref<1x32xf32, #tpu.memory_space<vmem>>, %arg17: memref<1x32xf32, #tpu.memory_space<vmem>>, %arg18: memref<32x64xbf16, #tpu.memory_space<vmem>>, %arg19: memref<1x64xf32, #tpu.memory_space<vmem>>, %arg20: memref<1x64xf32, #tpu.memory_space<vmem>>, %arg21: memref<1x4x64xbf16, #tpu.memory_space<vmem>>) attributes {dimension_semantics = [#tpu.dimension_semantics<parallel>], iteration_bounds = array<i64: 2>, scalar_prefetch = 0 : i64, scratch_operands = 0 : i64, tpu.core_type = #tpu.core_type<tc>, window_params = [{transform_indices = @transform_0, window_bounds = array<i64: 1, 7, 32>}, {transform_indices = @transform_1, window_bounds = array<i64: 1, 7, 32>}, {transform_indices = @transform_2, window_bounds = array<i64: 1, 7, 32>}, {transform_indices = @transform_3, window_bounds = array<i64: 1, 7, 32>}, {pipeline_mode = #tpu.pipeline_mode<synchronous>, transform_indices = @transform_4, window_bounds = array<i64: 7, 1>}, {pipeline_mode = #tpu.pipeline_mode<synchronous>, transform_indices = @transform_5, window_bounds = array<i64: 9, 32>}, {pipeline_mode = #tpu.pipeline_mode<synchronous>, transform_indices = @transform_6, window_bounds = array<i64: 1, 32>}, {pipeline_mode = #tpu.pipeline_mode<synchronous>, transform_indices = @transform_7, window_bounds = array<i64: 1, 32>}, {pipeline_mode = #tpu.pipeline_mode<synchronous>, transform_indices = @transform_8, window_bounds = array<i64: 32, 64>}, {pipeline_mode = #tpu.pipeline_mode<synchronous>, transform_indices = @transform_9, window_bounds = array<i64: 1, 64>}, {pipeline_mode = #tpu.pipeline_mode<synchronous>, transform_indices = @transform_10, window_bounds = array<i64: 1, 64>}, {pipeline_mode = #tpu.pipeline_mode<synchronous>, transform_indices = @transform_11, window_bounds = array<i64: 32, 32>}, {pipeline_mode = #tpu.pipeline_mode<synchronous>, transform_indices = @transform_12, window_bounds = array<i64: 1, 32>}, {pipeline_mode = #tpu.pipeline_mode<synchronous>, transform_indices = @transform_13, window_bounds = array<i64: 1, 32>}, {pipeline_mode = #tpu.pipeline_mode<synchronous>, transform_indices = @transform_14, window_bounds = array<i64: 9, 32>}, {pipeline_mode = #tpu.pipeline_mode<synchronous>, transform_indices = @transform_15, window_bounds = array<i64: 1, 32>}, {pipeline_mode = #tpu.pipeline_mode<synchronous>, transform_indices = @transform_16, window_bounds = array<i64: 1, 32>}, {pipeline_mode = #tpu.pipeline_mode<synchronous>, transform_indices = @transform_17, window_bounds = array<i64: 32, 64>}, {pipeline_mode = #tpu.pipeline_mode<synchronous>, transform_indices = @transform_18, window_bounds = array<i64: 1, 64>}, {pipeline_mode = #tpu.pipeline_mode<synchronous>, transform_indices = @transform_19, window_bounds = array<i64: 1, 64>}, {transform_indices = @transform_20, window_bounds = array<i64: 1, 4, 64>}]} {
    %c0 = arith.constant 0 : index
    %c0_0 = arith.constant 0 : index
    %c0_1 = arith.constant 0 : index
    %0 = vector.load %arg1[%c0, %c0_0, %c0_1] : memref<1x7x32xbf16, #tpu.memory_space<vmem>>, vector<1x7x32xbf16>
    %1 = vector.shape_cast %0 : vector<1x7x32xbf16> to vector<7x32xbf16>
    %c0_2 = arith.constant 0 : index
    %c0_3 = arith.constant 0 : index
    %c0_4 = arith.constant 0 : index
    %2 = vector.load %arg2[%c0_2, %c0_3, %c0_4] : memref<1x7x32xbf16, #tpu.memory_space<vmem>>, vector<1x7x32xbf16>
    %3 = vector.shape_cast %2 : vector<1x7x32xbf16> to vector<7x32xbf16>
    %c0_5 = arith.constant 0 : index
    %c0_6 = arith.constant 0 : index
    %c0_7 = arith.constant 0 : index
    %4 = vector.load %arg3[%c0_5, %c0_6, %c0_7] : memref<1x7x32xbf16, #tpu.memory_space<vmem>>, vector<1x7x32xbf16>
    %5 = vector.shape_cast %4 : vector<1x7x32xbf16> to vector<7x32xbf16>
    %c0_8 = arith.constant 0 : index
    %c0_9 = arith.constant 0 : index
    %c0_10 = arith.constant 0 : index
    %6 = vector.load %arg4[%c0_8, %c0_9, %c0_10] : memref<1x7x32xbf16, #tpu.memory_space<vmem>>, vector<1x7x32xbf16>
    %7 = vector.shape_cast %6 : vector<1x7x32xbf16> to vector<7x32xbf16>
    %8 = arith.extf %1 : vector<7x32xbf16> to vector<7x32xf32>
    %9 = arith.extf %3 : vector<7x32xbf16> to vector<7x32xf32>
    %10 = arith.extf %5 : vector<7x32xbf16> to vector<7x32xf32>
    %11 = arith.extf %7 : vector<7x32xbf16> to vector<7x32xf32>
    %c0_11 = arith.constant 0 : index
    %c0_12 = arith.constant 0 : index
    %12 = vector.load %arg6[%c0_11, %c0_12] : memref<9x32xf32, #tpu.memory_space<vmem>>, vector<9x32xf32>
    %13 = vector.extract_strided_slice %11 {offsets = [0, 0], sizes = [4, 32], strides = [1, 1]} : vector<7x32xf32> to vector<4x32xf32>
    %14 = vector.extract_strided_slice %12 {offsets = [0, 0], sizes = [1, 32], strides = [1, 1]} : vector<9x32xf32> to vector<1x32xf32>
    %15 = vector.broadcast %14 : vector<1x32xf32> to vector<4x32xf32>
    %16 = arith.mulf %13, %15 : vector<4x32xf32>
    %17 = vector.extract_strided_slice %10 {offsets = [1, 0], sizes = [4, 32], strides = [1, 1]} : vector<7x32xf32> to vector<4x32xf32>
    %18 = vector.extract_strided_slice %12 {offsets = [1, 0], sizes = [1, 32], strides = [1, 1]} : vector<9x32xf32> to vector<1x32xf32>
    %19 = vector.broadcast %18 : vector<1x32xf32> to vector<4x32xf32>
    %20 = arith.mulf %17, %19 : vector<4x32xf32>
    %21 = arith.addf %16, %20 : vector<4x32xf32>
    %22 = vector.extract_strided_slice %11 {offsets = [1, 0], sizes = [4, 32], strides = [1, 1]} : vector<7x32xf32> to vector<4x32xf32>
    %23 = vector.extract_strided_slice %12 {offsets = [2, 0], sizes = [1, 32], strides = [1, 1]} : vector<9x32xf32> to vector<1x32xf32>
    %24 = vector.broadcast %23 : vector<1x32xf32> to vector<4x32xf32>
    %25 = arith.mulf %22, %24 : vector<4x32xf32>
    %26 = arith.addf %21, %25 : vector<4x32xf32>
    %27 = vector.extract_strided_slice %9 {offsets = [2, 0], sizes = [4, 32], strides = [1, 1]} : vector<7x32xf32> to vector<4x32xf32>
    %28 = vector.extract_strided_slice %12 {offsets = [3, 0], sizes = [1, 32], strides = [1, 1]} : vector<9x32xf32> to vector<1x32xf32>
    %29 = vector.broadcast %28 : vector<1x32xf32> to vector<4x32xf32>
    %30 = arith.mulf %27, %29 : vector<4x32xf32>
    %31 = arith.addf %26, %30 : vector<4x32xf32>
    %32 = vector.extract_strided_slice %8 {offsets = [3, 0], sizes = [4, 32], strides = [1, 1]} : vector<7x32xf32> to vector<4x32xf32>
    %33 = vector.extract_strided_slice %12 {offsets = [4, 0], sizes = [1, 32], strides = [1, 1]} : vector<9x32xf32> to vector<1x32xf32>
    %34 = vector.broadcast %33 : vector<1x32xf32> to vector<4x32xf32>
    %35 = arith.mulf %32, %34 : vector<4x32xf32>
    %36 = arith.addf %31, %35 : vector<4x32xf32>
    %37 = vector.extract_strided_slice %9 {offsets = [3, 0], sizes = [4, 32], strides = [1, 1]} : vector<7x32xf32> to vector<4x32xf32>
    %38 = vector.extract_strided_slice %12 {offsets = [5, 0], sizes = [1, 32], strides = [1, 1]} : vector<9x32xf32> to vector<1x32xf32>
    %39 = vector.broadcast %38 : vector<1x32xf32> to vector<4x32xf32>
    %40 = arith.mulf %37, %39 : vector<4x32xf32>
    %41 = arith.addf %36, %40 : vector<4x32xf32>
    %42 = vector.extract_strided_slice %11 {offsets = [2, 0], sizes = [4, 32], strides = [1, 1]} : vector<7x32xf32> to vector<4x32xf32>
    %43 = vector.extract_strided_slice %12 {offsets = [6, 0], sizes = [1, 32], strides = [1, 1]} : vector<9x32xf32> to vector<1x32xf32>
    %44 = vector.broadcast %43 : vector<1x32xf32> to vector<4x32xf32>
    %45 = arith.mulf %42, %44 : vector<4x32xf32>
    %46 = arith.addf %41, %45 : vector<4x32xf32>
    %47 = vector.extract_strided_slice %10 {offsets = [3, 0], sizes = [4, 32], strides = [1, 1]} : vector<7x32xf32> to vector<4x32xf32>
    %48 = vector.extract_strided_slice %12 {offsets = [7, 0], sizes = [1, 32], strides = [1, 1]} : vector<9x32xf32> to vector<1x32xf32>
    %49 = vector.broadcast %48 : vector<1x32xf32> to vector<4x32xf32>
    %50 = arith.mulf %47, %49 : vector<4x32xf32>
    %51 = arith.addf %46, %50 : vector<4x32xf32>
    %52 = vector.extract_strided_slice %11 {offsets = [3, 0], sizes = [4, 32], strides = [1, 1]} : vector<7x32xf32> to vector<4x32xf32>
    %53 = vector.extract_strided_slice %12 {offsets = [8, 0], sizes = [1, 32], strides = [1, 1]} : vector<9x32xf32> to vector<1x32xf32>
    %54 = vector.broadcast %53 : vector<1x32xf32> to vector<4x32xf32>
    %55 = arith.mulf %52, %54 : vector<4x32xf32>
    %56 = arith.addf %51, %55 : vector<4x32xf32>
    %c0_13 = arith.constant 0 : index
    %c0_14 = arith.constant 0 : index
    %57 = vector.load %arg7[%c0_13, %c0_14] : memref<1x32xf32, #tpu.memory_space<vmem>>, vector<1x32xf32>
    %58 = vector.broadcast %57 : vector<1x32xf32> to vector<4x32xf32>
    %59 = arith.mulf %56, %58 : vector<4x32xf32>
    %c0_15 = arith.constant 0 : index
    %c0_16 = arith.constant 0 : index
    %60 = vector.load %arg8[%c0_15, %c0_16] : memref<1x32xf32, #tpu.memory_space<vmem>>, vector<1x32xf32>
    %61 = vector.broadcast %60 : vector<1x32xf32> to vector<4x32xf32>
    %62 = arith.addf %59, %61 : vector<4x32xf32>
    %63 = arith.truncf %62 : vector<4x32xf32> to vector<4x32xbf16>
    %c0_17 = arith.constant 0 : index
    %c0_18 = arith.constant 0 : index
    %64 = vector.load %arg9[%c0_17, %c0_18] : memref<32x64xbf16, #tpu.memory_space<vmem>>, vector<32x64xbf16>
    %cst = arith.constant dense<0.000000e+00> : vector<4x64xf32>
    %65 = tpu.matmul %63, %64, %cst {dimension_numbers = #tpu.dot_dimension_numbers<[1], [0], [0], [1], [0, 0, 1, 1], [], []>} : vector<4x32xbf16>, vector<32x64xbf16>, vector<4x64xf32> -> vector<4x64xf32>
    %c0_19 = arith.constant 0 : index
    %c0_20 = arith.constant 0 : index
    %66 = vector.load %arg10[%c0_19, %c0_20] : memref<1x64xf32, #tpu.memory_space<vmem>>, vector<1x64xf32>
    %67 = vector.broadcast %66 : vector<1x64xf32> to vector<4x64xf32>
    %68 = arith.mulf %65, %67 : vector<4x64xf32>
    %c0_21 = arith.constant 0 : index
    %c0_22 = arith.constant 0 : index
    %69 = vector.load %arg11[%c0_21, %c0_22] : memref<1x64xf32, #tpu.memory_space<vmem>>, vector<1x64xf32>
    %70 = vector.broadcast %69 : vector<1x64xf32> to vector<4x64xf32>
    %71 = arith.addf %68, %70 : vector<4x64xf32>
    %cst_23 = arith.constant 0.000000e+00 : f32
    %72 = vector.broadcast %cst_23 : f32 to vector<4x64xf32>
    %73 = arith.maximumf %71, %72 : vector<4x64xf32>
    %c0_24 = arith.constant 0 : index
    %c0_25 = arith.constant 0 : index
    %74 = vector.load %arg5[%c0_24, %c0_25] : memref<7x1xf32, #tpu.memory_space<vmem>>, vector<7x1xf32>
    %c0_26 = arith.constant 0 : index
    %c0_27 = arith.constant 0 : index
    %75 = vector.load %arg12[%c0_26, %c0_27] : memref<32x32xbf16, #tpu.memory_space<vmem>>, vector<32x32xbf16>
    %cst_28 = arith.constant dense<0.000000e+00> : vector<7x32xf32>
    %76 = tpu.matmul %1, %75, %cst_28 {dimension_numbers = #tpu.dot_dimension_numbers<[1], [0], [0], [1], [0, 0, 1, 1], [], []>} : vector<7x32xbf16>, vector<32x32xbf16>, vector<7x32xf32> -> vector<7x32xf32>
    %c0_29 = arith.constant 0 : index
    %c0_30 = arith.constant 0 : index
    %77 = vector.load %arg13[%c0_29, %c0_30] : memref<1x32xf32, #tpu.memory_space<vmem>>, vector<1x32xf32>
    %78 = vector.broadcast %77 : vector<1x32xf32> to vector<7x32xf32>
    %79 = arith.mulf %76, %78 : vector<7x32xf32>
    %c0_31 = arith.constant 0 : index
    %c0_32 = arith.constant 0 : index
    %80 = vector.load %arg14[%c0_31, %c0_32] : memref<1x32xf32, #tpu.memory_space<vmem>>, vector<1x32xf32>
    %81 = vector.broadcast %80 : vector<1x32xf32> to vector<7x32xf32>
    %82 = arith.addf %79, %81 : vector<7x32xf32>
    %cst_33 = arith.constant 0.000000e+00 : f32
    %83 = vector.broadcast %cst_33 : f32 to vector<7x32xf32>
    %84 = arith.maximumf %82, %83 : vector<7x32xf32>
    %85 = vector.broadcast %74 : vector<7x1xf32> to vector<7x32xf32>
    %86 = arith.mulf %84, %85 : vector<7x32xf32>
    %c0_34 = arith.constant 0 : index
    %c0_35 = arith.constant 0 : index
    %87 = vector.load %arg12[%c0_34, %c0_35] : memref<32x32xbf16, #tpu.memory_space<vmem>>, vector<32x32xbf16>
    %cst_36 = arith.constant dense<0.000000e+00> : vector<7x32xf32>
    %88 = tpu.matmul %3, %87, %cst_36 {dimension_numbers = #tpu.dot_dimension_numbers<[1], [0], [0], [1], [0, 0, 1, 1], [], []>} : vector<7x32xbf16>, vector<32x32xbf16>, vector<7x32xf32> -> vector<7x32xf32>
    %c0_37 = arith.constant 0 : index
    %c0_38 = arith.constant 0 : index
    %89 = vector.load %arg13[%c0_37, %c0_38] : memref<1x32xf32, #tpu.memory_space<vmem>>, vector<1x32xf32>
    %90 = vector.broadcast %89 : vector<1x32xf32> to vector<7x32xf32>
    %91 = arith.mulf %88, %90 : vector<7x32xf32>
    %c0_39 = arith.constant 0 : index
    %c0_40 = arith.constant 0 : index
    %92 = vector.load %arg14[%c0_39, %c0_40] : memref<1x32xf32, #tpu.memory_space<vmem>>, vector<1x32xf32>
    %93 = vector.broadcast %92 : vector<1x32xf32> to vector<7x32xf32>
    %94 = arith.addf %91, %93 : vector<7x32xf32>
    %cst_41 = arith.constant 0.000000e+00 : f32
    %95 = vector.broadcast %cst_41 : f32 to vector<7x32xf32>
    %96 = arith.maximumf %94, %95 : vector<7x32xf32>
    %97 = vector.broadcast %74 : vector<7x1xf32> to vector<7x32xf32>
    %98 = arith.mulf %96, %97 : vector<7x32xf32>
    %c0_42 = arith.constant 0 : index
    %c0_43 = arith.constant 0 : index
    %99 = vector.load %arg12[%c0_42, %c0_43] : memref<32x32xbf16, #tpu.memory_space<vmem>>, vector<32x32xbf16>
    %cst_44 = arith.constant dense<0.000000e+00> : vector<7x32xf32>
    %100 = tpu.matmul %5, %99, %cst_44 {dimension_numbers = #tpu.dot_dimension_numbers<[1], [0], [0], [1], [0, 0, 1, 1], [], []>} : vector<7x32xbf16>, vector<32x32xbf16>, vector<7x32xf32> -> vector<7x32xf32>
    %c0_45 = arith.constant 0 : index
    %c0_46 = arith.constant 0 : index
    %101 = vector.load %arg13[%c0_45, %c0_46] : memref<1x32xf32, #tpu.memory_space<vmem>>, vector<1x32xf32>
    %102 = vector.broadcast %101 : vector<1x32xf32> to vector<7x32xf32>
    %103 = arith.mulf %100, %102 : vector<7x32xf32>
    %c0_47 = arith.constant 0 : index
    %c0_48 = arith.constant 0 : index
    %104 = vector.load %arg14[%c0_47, %c0_48] : memref<1x32xf32, #tpu.memory_space<vmem>>, vector<1x32xf32>
    %105 = vector.broadcast %104 : vector<1x32xf32> to vector<7x32xf32>
    %106 = arith.addf %103, %105 : vector<7x32xf32>
    %cst_49 = arith.constant 0.000000e+00 : f32
    %107 = vector.broadcast %cst_49 : f32 to vector<7x32xf32>
    %108 = arith.maximumf %106, %107 : vector<7x32xf32>
    %109 = vector.broadcast %74 : vector<7x1xf32> to vector<7x32xf32>
    %110 = arith.mulf %108, %109 : vector<7x32xf32>
    %c0_50 = arith.constant 0 : index
    %c0_51 = arith.constant 0 : index
    %111 = vector.load %arg12[%c0_50, %c0_51] : memref<32x32xbf16, #tpu.memory_space<vmem>>, vector<32x32xbf16>
    %cst_52 = arith.constant dense<0.000000e+00> : vector<7x32xf32>
    %112 = tpu.matmul %7, %111, %cst_52 {dimension_numbers = #tpu.dot_dimension_numbers<[1], [0], [0], [1], [0, 0, 1, 1], [], []>} : vector<7x32xbf16>, vector<32x32xbf16>, vector<7x32xf32> -> vector<7x32xf32>
    %c0_53 = arith.constant 0 : index
    %c0_54 = arith.constant 0 : index
    %113 = vector.load %arg13[%c0_53, %c0_54] : memref<1x32xf32, #tpu.memory_space<vmem>>, vector<1x32xf32>
    %114 = vector.broadcast %113 : vector<1x32xf32> to vector<7x32xf32>
    %115 = arith.mulf %112, %114 : vector<7x32xf32>
    %c0_55 = arith.constant 0 : index
    %c0_56 = arith.constant 0 : index
    %116 = vector.load %arg14[%c0_55, %c0_56] : memref<1x32xf32, #tpu.memory_space<vmem>>, vector<1x32xf32>
    %117 = vector.broadcast %116 : vector<1x32xf32> to vector<7x32xf32>
    %118 = arith.addf %115, %117 : vector<7x32xf32>
    %cst_57 = arith.constant 0.000000e+00 : f32
    %119 = vector.broadcast %cst_57 : f32 to vector<7x32xf32>
    %120 = arith.maximumf %118, %119 : vector<7x32xf32>
    %121 = vector.broadcast %74 : vector<7x1xf32> to vector<7x32xf32>
    %122 = arith.mulf %120, %121 : vector<7x32xf32>
    %c0_58 = arith.constant 0 : index
    %c0_59 = arith.constant 0 : index
    %123 = vector.load %arg15[%c0_58, %c0_59] : memref<9x32xf32, #tpu.memory_space<vmem>>, vector<9x32xf32>
    %124 = vector.extract_strided_slice %122 {offsets = [0, 0], sizes = [4, 32], strides = [1, 1]} : vector<7x32xf32> to vector<4x32xf32>
    %125 = vector.extract_strided_slice %123 {offsets = [0, 0], sizes = [1, 32], strides = [1, 1]} : vector<9x32xf32> to vector<1x32xf32>
    %126 = vector.broadcast %125 : vector<1x32xf32> to vector<4x32xf32>
    %127 = arith.mulf %124, %126 : vector<4x32xf32>
    %128 = vector.extract_strided_slice %110 {offsets = [1, 0], sizes = [4, 32], strides = [1, 1]} : vector<7x32xf32> to vector<4x32xf32>
    %129 = vector.extract_strided_slice %123 {offsets = [1, 0], sizes = [1, 32], strides = [1, 1]} : vector<9x32xf32> to vector<1x32xf32>
    %130 = vector.broadcast %129 : vector<1x32xf32> to vector<4x32xf32>
    %131 = arith.mulf %128, %130 : vector<4x32xf32>
    %132 = arith.addf %127, %131 : vector<4x32xf32>
    %133 = vector.extract_strided_slice %122 {offsets = [1, 0], sizes = [4, 32], strides = [1, 1]} : vector<7x32xf32> to vector<4x32xf32>
    %134 = vector.extract_strided_slice %123 {offsets = [2, 0], sizes = [1, 32], strides = [1, 1]} : vector<9x32xf32> to vector<1x32xf32>
    %135 = vector.broadcast %134 : vector<1x32xf32> to vector<4x32xf32>
    %136 = arith.mulf %133, %135 : vector<4x32xf32>
    %137 = arith.addf %132, %136 : vector<4x32xf32>
    %138 = vector.extract_strided_slice %98 {offsets = [2, 0], sizes = [4, 32], strides = [1, 1]} : vector<7x32xf32> to vector<4x32xf32>
    %139 = vector.extract_strided_slice %123 {offsets = [3, 0], sizes = [1, 32], strides = [1, 1]} : vector<9x32xf32> to vector<1x32xf32>
    %140 = vector.broadcast %139 : vector<1x32xf32> to vector<4x32xf32>
    %141 = arith.mulf %138, %140 : vector<4x32xf32>
    %142 = arith.addf %137, %141 : vector<4x32xf32>
    %143 = vector.extract_strided_slice %86 {offsets = [3, 0], sizes = [4, 32], strides = [1, 1]} : vector<7x32xf32> to vector<4x32xf32>
    %144 = vector.extract_strided_slice %123 {offsets = [4, 0], sizes = [1, 32], strides = [1, 1]} : vector<9x32xf32> to vector<1x32xf32>
    %145 = vector.broadcast %144 : vector<1x32xf32> to vector<4x32xf32>
    %146 = arith.mulf %143, %145 : vector<4x32xf32>
    %147 = arith.addf %142, %146 : vector<4x32xf32>
    %148 = vector.extract_strided_slice %98 {offsets = [3, 0], sizes = [4, 32], strides = [1, 1]} : vector<7x32xf32> to vector<4x32xf32>
    %149 = vector.extract_strided_slice %123 {offsets = [5, 0], sizes = [1, 32], strides = [1, 1]} : vector<9x32xf32> to vector<1x32xf32>
    %150 = vector.broadcast %149 : vector<1x32xf32> to vector<4x32xf32>
    %151 = arith.mulf %148, %150 : vector<4x32xf32>
    %152 = arith.addf %147, %151 : vector<4x32xf32>
    %153 = vector.extract_strided_slice %122 {offsets = [2, 0], sizes = [4, 32], strides = [1, 1]} : vector<7x32xf32> to vector<4x32xf32>
    %154 = vector.extract_strided_slice %123 {offsets = [6, 0], sizes = [1, 32], strides = [1, 1]} : vector<9x32xf32> to vector<1x32xf32>
    %155 = vector.broadcast %154 : vector<1x32xf32> to vector<4x32xf32>
    %156 = arith.mulf %153, %155 : vector<4x32xf32>
    %157 = arith.addf %152, %156 : vector<4x32xf32>
    %158 = vector.extract_strided_slice %110 {offsets = [3, 0], sizes = [4, 32], strides = [1, 1]} : vector<7x32xf32> to vector<4x32xf32>
    %159 = vector.extract_strided_slice %123 {offsets = [7, 0], sizes = [1, 32], strides = [1, 1]} : vector<9x32xf32> to vector<1x32xf32>
    %160 = vector.broadcast %159 : vector<1x32xf32> to vector<4x32xf32>
    %161 = arith.mulf %158, %160 : vector<4x32xf32>
    %162 = arith.addf %157, %161 : vector<4x32xf32>
    %163 = vector.extract_strided_slice %122 {offsets = [3, 0], sizes = [4, 32], strides = [1, 1]} : vector<7x32xf32> to vector<4x32xf32>
    %164 = vector.extract_strided_slice %123 {offsets = [8, 0], sizes = [1, 32], strides = [1, 1]} : vector<9x32xf32> to vector<1x32xf32>
    %165 = vector.broadcast %164 : vector<1x32xf32> to vector<4x32xf32>
    %166 = arith.mulf %163, %165 : vector<4x32xf32>
    %167 = arith.addf %162, %166 : vector<4x32xf32>
    %c0_60 = arith.constant 0 : index
    %c0_61 = arith.constant 0 : index
    %168 = vector.load %arg16[%c0_60, %c0_61] : memref<1x32xf32, #tpu.memory_space<vmem>>, vector<1x32xf32>
    %169 = vector.broadcast %168 : vector<1x32xf32> to vector<4x32xf32>
    %170 = arith.mulf %167, %169 : vector<4x32xf32>
    %c0_62 = arith.constant 0 : index
    %c0_63 = arith.constant 0 : index
    %171 = vector.load %arg17[%c0_62, %c0_63] : memref<1x32xf32, #tpu.memory_space<vmem>>, vector<1x32xf32>
    %172 = vector.broadcast %171 : vector<1x32xf32> to vector<4x32xf32>
    %173 = arith.addf %170, %172 : vector<4x32xf32>
    %174 = arith.truncf %173 : vector<4x32xf32> to vector<4x32xbf16>
    %c0_64 = arith.constant 0 : index
    %c0_65 = arith.constant 0 : index
    %175 = vector.load %arg18[%c0_64, %c0_65] : memref<32x64xbf16, #tpu.memory_space<vmem>>, vector<32x64xbf16>
    %cst_66 = arith.constant dense<0.000000e+00> : vector<4x64xf32>
    %176 = tpu.matmul %174, %175, %cst_66 {dimension_numbers = #tpu.dot_dimension_numbers<[1], [0], [0], [1], [0, 0, 1, 1], [], []>} : vector<4x32xbf16>, vector<32x64xbf16>, vector<4x64xf32> -> vector<4x64xf32>
    %c0_67 = arith.constant 0 : index
    %c0_68 = arith.constant 0 : index
    %177 = vector.load %arg19[%c0_67, %c0_68] : memref<1x64xf32, #tpu.memory_space<vmem>>, vector<1x64xf32>
    %178 = vector.broadcast %177 : vector<1x64xf32> to vector<4x64xf32>
    %179 = arith.mulf %176, %178 : vector<4x64xf32>
    %c0_69 = arith.constant 0 : index
    %c0_70 = arith.constant 0 : index
    %180 = vector.load %arg20[%c0_69, %c0_70] : memref<1x64xf32, #tpu.memory_space<vmem>>, vector<1x64xf32>
    %181 = vector.broadcast %180 : vector<1x64xf32> to vector<4x64xf32>
    %182 = arith.addf %179, %181 : vector<4x64xf32>
    %cst_71 = arith.constant 0.000000e+00 : f32
    %183 = vector.broadcast %cst_71 : f32 to vector<4x64xf32>
    %184 = arith.maximumf %182, %183 : vector<4x64xf32>
    %185 = arith.addf %73, %184 : vector<4x64xf32>
    %186 = arith.truncf %185 : vector<4x64xf32> to vector<4x64xbf16>
    %c0_72 = arith.constant 0 : index
    %c0_73 = arith.constant 0 : index
    %c0_74 = arith.constant 0 : index
    %187 = vector.load %arg21[%c0_72, %c0_73, %c0_74] : memref<1x4x64xbf16, #tpu.memory_space<vmem>>, vector<1x4x64xbf16>
    %188 = vector.shape_cast %187 : vector<1x4x64xbf16> to vector<4x64xbf16>
    %189 = vector.shape_cast %186 : vector<4x64xbf16> to vector<1x4x64xbf16>
    tpu.vector_store %arg21[%c0_72, %c0_73, %c0_74], %189 {strides = array<i32>} : memref<1x4x64xbf16, #tpu.memory_space<vmem>>, vector<1x4x64xbf16>,
    return
  }
  func.func @transform_0(%arg0: i32) -> (i32, i32, i32) {
    %c0_i32 = arith.constant 0 : i32
    %c0_i32_0 = arith.constant 0 : i32
    %c0_i32_1 = arith.constant 0 : i32
    return %arg0, %c0_i32, %c0_i32_0 : i32, i32, i32
  }
  func.func @transform_1(%arg0: i32) -> (i32, i32, i32) {
    %c0_i32 = arith.constant 0 : i32
    %c0_i32_0 = arith.constant 0 : i32
    %c0_i32_1 = arith.constant 0 : i32
    return %arg0, %c0_i32, %c0_i32_0 : i32, i32, i32
  }
  func.func @transform_2(%arg0: i32) -> (i32, i32, i32) {
    %c0_i32 = arith.constant 0 : i32
    %c0_i32_0 = arith.constant 0 : i32
    %c0_i32_1 = arith.constant 0 : i32
    return %arg0, %c0_i32, %c0_i32_0 : i32, i32, i32
  }
  func.func @transform_3(%arg0: i32) -> (i32, i32, i32) {
    %c0_i32 = arith.constant 0 : i32
    %c0_i32_0 = arith.constant 0 : i32
    %c0_i32_1 = arith.constant 0 : i32
    return %arg0, %c0_i32, %c0_i32_0 : i32, i32, i32
  }
  func.func @transform_4(%arg0: i32) -> (i32, i32) {
    %c0_i32 = arith.constant 0 : i32
    %c0_i32_0 = arith.constant 0 : i32
    %c0_i32_1 = arith.constant 0 : i32
    return %c0_i32, %c0_i32_0 : i32, i32
  }
  func.func @transform_5(%arg0: i32) -> (i32, i32) {
    %c0_i32 = arith.constant 0 : i32
    %c0_i32_0 = arith.constant 0 : i32
    %c0_i32_1 = arith.constant 0 : i32
    return %c0_i32, %c0_i32_0 : i32, i32
  }
  func.func @transform_6(%arg0: i32) -> (i32, i32) {
    %c0_i32 = arith.constant 0 : i32
    %c0_i32_0 = arith.constant 0 : i32
    %c0_i32_1 = arith.constant 0 : i32
    return %c0_i32, %c0_i32_0 : i32, i32
  }
  func.func @transform_7(%arg0: i32) -> (i32, i32) {
    %c0_i32 = arith.constant 0 : i32
    %c0_i32_0 = arith.constant 0 : i32
    %c0_i32_1 = arith.constant 0 : i32
    return %c0_i32, %c0_i32_0 : i32, i32
  }
  func.func @transform_8(%arg0: i32) -> (i32, i32) {
    %c0_i32 = arith.constant 0 : i32
    %c0_i32_0 = arith.constant 0 : i32
    %c0_i32_1 = arith.constant 0 : i32
    return %c0_i32, %c0_i32_0 : i32, i32
  }
  func.func @transform_9(%arg0: i32) -> (i32, i32) {
    %c0_i32 = arith.constant 0 : i32
    %c0_i32_0 = arith.constant 0 : i32
    %c0_i32_1 = arith.constant 0 : i32
    return %c0_i32, %c0_i32_0 : i32, i32
  }
  func.func @transform_10(%arg0: i32) -> (i32, i32) {
    %c0_i32 = arith.constant 0 : i32
    %c0_i32_0 = arith.constant 0 : i32
    %c0_i32_1 = arith.constant 0 : i32
    return %c0_i32, %c0_i32_0 : i32, i32
  }
  func.func @transform_11(%arg0: i32) -> (i32, i32) {
    %c0_i32 = arith.constant 0 : i32
    %c0_i32_0 = arith.constant 0 : i32
    %c0_i32_1 = arith.constant 0 : i32
    return %c0_i32, %c0_i32_0 : i32, i32
  }
  func.func @transform_12(%arg0: i32) -> (i32, i32) {
    %c0_i32 = arith.constant 0 : i32
    %c0_i32_0 = arith.constant 0 : i32
    %c0_i32_1 = arith.constant 0 : i32
    return %c0_i32, %c0_i32_0 : i32, i32
  }
  func.func @transform_13(%arg0: i32) -> (i32, i32) {
    %c0_i32 = arith.constant 0 : i32
    %c0_i32_0 = arith.constant 0 : i32
    %c0_i32_1 = arith.constant 0 : i32
    return %c0_i32, %c0_i32_0 : i32, i32
  }
  func.func @transform_14(%arg0: i32) -> (i32, i32) {
    %c0_i32 = arith.constant 0 : i32
    %c0_i32_0 = arith.constant 0 : i32
    %c0_i32_1 = arith.constant 0 : i32
    return %c0_i32, %c0_i32_0 : i32, i32
  }
  func.func @transform_15(%arg0: i32) -> (i32, i32) {
    %c0_i32 = arith.constant 0 : i32
    %c0_i32_0 = arith.constant 0 : i32
    %c0_i32_1 = arith.constant 0 : i32
    return %c0_i32, %c0_i32_0 : i32, i32
  }
  func.func @transform_16(%arg0: i32) -> (i32, i32) {
    %c0_i32 = arith.constant 0 : i32
    %c0_i32_0 = arith.constant 0 : i32
    %c0_i32_1 = arith.constant 0 : i32
    return %c0_i32, %c0_i32_0 : i32, i32
  }
  func.func @transform_17(%arg0: i32) -> (i32, i32) {
    %c0_i32 = arith.constant 0 : i32
    %c0_i32_0 = arith.constant 0 : i32
    %c0_i32_1 = arith.constant 0 : i32
    return %c0_i32, %c0_i32_0 : i32, i32
  }
  func.func @transform_18(%arg0: i32) -> (i32, i32) {
    %c0_i32 = arith.constant 0 : i32
    %c0_i32_0 = arith.constant 0 : i32
    %c0_i32_1 = arith.constant 0 : i32
    return %c0_i32, %c0_i32_0 : i32, i32
  }
  func.func @transform_19(%arg0: i32) -> (i32, i32) {
    %c0_i32 = arith.constant 0 : i32
    %c0_i32_0 = arith.constant 0 : i32
    %c0_i32_1 = arith.constant 0 : i32
    return %c0_i32, %c0_i32_0 : i32, i32
  }
  func.func @transform_20(%arg0: i32) -> (i32, i32, i32) {
    %c0_i32 = arith.constant 0 : i32
    %c0_i32_0 = arith.constant 0 : i32
    %c0_i32_1 = arith.constant 0 : i32
    return %arg0, %c0_i32, %c0_i32_0 : i32, i32, i32
  }
}

module attributes {stable_mosaic.version = 11 : i64} {
  func.func @_block_s1_kernel(%arg0: i32, %arg1: memref<1x16x16xbf16, #tpu.memory_space<vmem>>, %arg2: memref<1x26x16xbf16, #tpu.memory_space<vmem>>, %arg3: memref<26x1xf32, #tpu.memory_space<vmem>>, %arg4: memref<16x16xbf16, #tpu.memory_space<vmem>>, %arg5: memref<1x16xf32, #tpu.memory_space<vmem>>, %arg6: memref<1x16xf32, #tpu.memory_space<vmem>>, %arg7: memref<9x16xf32, #tpu.memory_space<vmem>>, %arg8: memref<1x16xf32, #tpu.memory_space<vmem>>, %arg9: memref<1x16xf32, #tpu.memory_space<vmem>>, %arg10: memref<16x32xbf16, #tpu.memory_space<vmem>>, %arg11: memref<1x32xf32, #tpu.memory_space<vmem>>, %arg12: memref<1x32xf32, #tpu.memory_space<vmem>>, %arg13: memref<16x32xbf16, #tpu.memory_space<vmem>>, %arg14: memref<1x16x32xbf16, #tpu.memory_space<vmem>>) attributes {dimension_semantics = [#tpu.dimension_semantics<parallel>], iteration_bounds = array<i64: 2>, scalar_prefetch = 0 : i64, scratch_operands = 0 : i64, tpu.core_type = #tpu.core_type<tc>, window_params = [{transform_indices = @transform_0, window_bounds = array<i64: 1, 16, 16>}, {transform_indices = @transform_1, window_bounds = array<i64: 1, 26, 16>}, {pipeline_mode = #tpu.pipeline_mode<synchronous>, transform_indices = @transform_2, window_bounds = array<i64: 26, 1>}, {pipeline_mode = #tpu.pipeline_mode<synchronous>, transform_indices = @transform_3, window_bounds = array<i64: 16, 16>}, {pipeline_mode = #tpu.pipeline_mode<synchronous>, transform_indices = @transform_4, window_bounds = array<i64: 1, 16>}, {pipeline_mode = #tpu.pipeline_mode<synchronous>, transform_indices = @transform_5, window_bounds = array<i64: 1, 16>}, {pipeline_mode = #tpu.pipeline_mode<synchronous>, transform_indices = @transform_6, window_bounds = array<i64: 9, 16>}, {pipeline_mode = #tpu.pipeline_mode<synchronous>, transform_indices = @transform_7, window_bounds = array<i64: 1, 16>}, {pipeline_mode = #tpu.pipeline_mode<synchronous>, transform_indices = @transform_8, window_bounds = array<i64: 1, 16>}, {pipeline_mode = #tpu.pipeline_mode<synchronous>, transform_indices = @transform_9, window_bounds = array<i64: 16, 32>}, {pipeline_mode = #tpu.pipeline_mode<synchronous>, transform_indices = @transform_10, window_bounds = array<i64: 1, 32>}, {pipeline_mode = #tpu.pipeline_mode<synchronous>, transform_indices = @transform_11, window_bounds = array<i64: 1, 32>}, {pipeline_mode = #tpu.pipeline_mode<synchronous>, transform_indices = @transform_12, window_bounds = array<i64: 16, 32>}, {transform_indices = @transform_13, window_bounds = array<i64: 1, 16, 32>}]} {
    %c0 = arith.constant 0 : index
    %c0_0 = arith.constant 0 : index
    %c0_1 = arith.constant 0 : index
    %0 = vector.load %arg2[%c0, %c0_0, %c0_1] : memref<1x26x16xbf16, #tpu.memory_space<vmem>>, vector<1x26x16xbf16>
    %1 = vector.shape_cast %0 : vector<1x26x16xbf16> to vector<26x16xbf16>
    %c0_2 = arith.constant 0 : index
    %c0_3 = arith.constant 0 : index
    %2 = vector.load %arg4[%c0_2, %c0_3] : memref<16x16xbf16, #tpu.memory_space<vmem>>, vector<16x16xbf16>
    %cst = arith.constant dense<0.000000e+00> : vector<26x16xf32>
    %3 = tpu.matmul %1, %2, %cst {dimension_numbers = #tpu.dot_dimension_numbers<[1], [0], [0], [1], [0, 0, 1, 1], [], []>} : vector<26x16xbf16>, vector<16x16xbf16>, vector<26x16xf32> -> vector<26x16xf32>
    %c0_4 = arith.constant 0 : index
    %c0_5 = arith.constant 0 : index
    %4 = vector.load %arg5[%c0_4, %c0_5] : memref<1x16xf32, #tpu.memory_space<vmem>>, vector<1x16xf32>
    %5 = vector.broadcast %4 : vector<1x16xf32> to vector<26x16xf32>
    %6 = arith.mulf %3, %5 : vector<26x16xf32>
    %c0_6 = arith.constant 0 : index
    %c0_7 = arith.constant 0 : index
    %7 = vector.load %arg6[%c0_6, %c0_7] : memref<1x16xf32, #tpu.memory_space<vmem>>, vector<1x16xf32>
    %8 = vector.broadcast %7 : vector<1x16xf32> to vector<26x16xf32>
    %9 = arith.addf %6, %8 : vector<26x16xf32>
    %cst_8 = arith.constant 0.000000e+00 : f32
    %10 = vector.broadcast %cst_8 : f32 to vector<26x16xf32>
    %11 = arith.maximumf %9, %10 : vector<26x16xf32>
    %c0_9 = arith.constant 0 : index
    %c0_10 = arith.constant 0 : index
    %12 = vector.load %arg3[%c0_9, %c0_10] : memref<26x1xf32, #tpu.memory_space<vmem>>, vector<26x1xf32>
    %13 = vector.broadcast %12 : vector<26x1xf32> to vector<26x16xf32>
    %14 = arith.mulf %11, %13 : vector<26x16xf32>
    %c0_11 = arith.constant 0 : index
    %c0_12 = arith.constant 0 : index
    %15 = vector.load %arg7[%c0_11, %c0_12] : memref<9x16xf32, #tpu.memory_space<vmem>>, vector<9x16xf32>
    %16 = vector.extract_strided_slice %14 {offsets = [0, 0], sizes = [16, 16], strides = [1, 1]} : vector<26x16xf32> to vector<16x16xf32>
    %17 = vector.extract_strided_slice %15 {offsets = [0, 0], sizes = [1, 16], strides = [1, 1]} : vector<9x16xf32> to vector<1x16xf32>
    %18 = vector.broadcast %17 : vector<1x16xf32> to vector<16x16xf32>
    %19 = arith.mulf %16, %18 : vector<16x16xf32>
    %20 = vector.extract_strided_slice %14 {offsets = [1, 0], sizes = [16, 16], strides = [1, 1]} : vector<26x16xf32> to vector<16x16xf32>
    %21 = vector.extract_strided_slice %15 {offsets = [1, 0], sizes = [1, 16], strides = [1, 1]} : vector<9x16xf32> to vector<1x16xf32>
    %22 = vector.broadcast %21 : vector<1x16xf32> to vector<16x16xf32>
    %23 = arith.mulf %20, %22 : vector<16x16xf32>
    %24 = arith.addf %19, %23 : vector<16x16xf32>
    %25 = vector.extract_strided_slice %14 {offsets = [2, 0], sizes = [16, 16], strides = [1, 1]} : vector<26x16xf32> to vector<16x16xf32>
    %26 = vector.extract_strided_slice %15 {offsets = [2, 0], sizes = [1, 16], strides = [1, 1]} : vector<9x16xf32> to vector<1x16xf32>
    %27 = vector.broadcast %26 : vector<1x16xf32> to vector<16x16xf32>
    %28 = arith.mulf %25, %27 : vector<16x16xf32>
    %29 = arith.addf %24, %28 : vector<16x16xf32>
    %30 = vector.extract_strided_slice %14 {offsets = [4, 0], sizes = [16, 16], strides = [1, 1]} : vector<26x16xf32> to vector<16x16xf32>
    %31 = vector.extract_strided_slice %15 {offsets = [3, 0], sizes = [1, 16], strides = [1, 1]} : vector<9x16xf32> to vector<1x16xf32>
    %32 = vector.broadcast %31 : vector<1x16xf32> to vector<16x16xf32>
    %33 = arith.mulf %30, %32 : vector<16x16xf32>
    %34 = arith.addf %29, %33 : vector<16x16xf32>
    %35 = vector.extract_strided_slice %14 {offsets = [5, 0], sizes = [16, 16], strides = [1, 1]} : vector<26x16xf32> to vector<16x16xf32>
    %36 = vector.extract_strided_slice %15 {offsets = [4, 0], sizes = [1, 16], strides = [1, 1]} : vector<9x16xf32> to vector<1x16xf32>
    %37 = vector.broadcast %36 : vector<1x16xf32> to vector<16x16xf32>
    %38 = arith.mulf %35, %37 : vector<16x16xf32>
    %39 = arith.addf %34, %38 : vector<16x16xf32>
    %40 = vector.extract_strided_slice %14 {offsets = [6, 0], sizes = [16, 16], strides = [1, 1]} : vector<26x16xf32> to vector<16x16xf32>
    %41 = vector.extract_strided_slice %15 {offsets = [5, 0], sizes = [1, 16], strides = [1, 1]} : vector<9x16xf32> to vector<1x16xf32>
    %42 = vector.broadcast %41 : vector<1x16xf32> to vector<16x16xf32>
    %43 = arith.mulf %40, %42 : vector<16x16xf32>
    %44 = arith.addf %39, %43 : vector<16x16xf32>
    %45 = vector.extract_strided_slice %14 {offsets = [8, 0], sizes = [16, 16], strides = [1, 1]} : vector<26x16xf32> to vector<16x16xf32>
    %46 = vector.extract_strided_slice %15 {offsets = [6, 0], sizes = [1, 16], strides = [1, 1]} : vector<9x16xf32> to vector<1x16xf32>
    %47 = vector.broadcast %46 : vector<1x16xf32> to vector<16x16xf32>
    %48 = arith.mulf %45, %47 : vector<16x16xf32>
    %49 = arith.addf %44, %48 : vector<16x16xf32>
    %50 = vector.extract_strided_slice %14 {offsets = [9, 0], sizes = [16, 16], strides = [1, 1]} : vector<26x16xf32> to vector<16x16xf32>
    %51 = vector.extract_strided_slice %15 {offsets = [7, 0], sizes = [1, 16], strides = [1, 1]} : vector<9x16xf32> to vector<1x16xf32>
    %52 = vector.broadcast %51 : vector<1x16xf32> to vector<16x16xf32>
    %53 = arith.mulf %50, %52 : vector<16x16xf32>
    %54 = arith.addf %49, %53 : vector<16x16xf32>
    %55 = vector.extract_strided_slice %14 {offsets = [10, 0], sizes = [16, 16], strides = [1, 1]} : vector<26x16xf32> to vector<16x16xf32>
    %56 = vector.extract_strided_slice %15 {offsets = [8, 0], sizes = [1, 16], strides = [1, 1]} : vector<9x16xf32> to vector<1x16xf32>
    %57 = vector.broadcast %56 : vector<1x16xf32> to vector<16x16xf32>
    %58 = arith.mulf %55, %57 : vector<16x16xf32>
    %59 = arith.addf %54, %58 : vector<16x16xf32>
    %c0_13 = arith.constant 0 : index
    %c0_14 = arith.constant 0 : index
    %60 = vector.load %arg8[%c0_13, %c0_14] : memref<1x16xf32, #tpu.memory_space<vmem>>, vector<1x16xf32>
    %61 = vector.broadcast %60 : vector<1x16xf32> to vector<16x16xf32>
    %62 = arith.mulf %59, %61 : vector<16x16xf32>
    %c0_15 = arith.constant 0 : index
    %c0_16 = arith.constant 0 : index
    %63 = vector.load %arg9[%c0_15, %c0_16] : memref<1x16xf32, #tpu.memory_space<vmem>>, vector<1x16xf32>
    %64 = vector.broadcast %63 : vector<1x16xf32> to vector<16x16xf32>
    %65 = arith.addf %62, %64 : vector<16x16xf32>
    %66 = arith.truncf %65 : vector<16x16xf32> to vector<16x16xbf16>
    %c0_17 = arith.constant 0 : index
    %c0_18 = arith.constant 0 : index
    %67 = vector.load %arg10[%c0_17, %c0_18] : memref<16x32xbf16, #tpu.memory_space<vmem>>, vector<16x32xbf16>
    %cst_19 = arith.constant dense<0.000000e+00> : vector<16x32xf32>
    %68 = tpu.matmul %66, %67, %cst_19 {dimension_numbers = #tpu.dot_dimension_numbers<[1], [0], [0], [1], [0, 0, 1, 1], [], []>} : vector<16x16xbf16>, vector<16x32xbf16>, vector<16x32xf32> -> vector<16x32xf32>
    %c0_20 = arith.constant 0 : index
    %c0_21 = arith.constant 0 : index
    %69 = vector.load %arg11[%c0_20, %c0_21] : memref<1x32xf32, #tpu.memory_space<vmem>>, vector<1x32xf32>
    %70 = vector.broadcast %69 : vector<1x32xf32> to vector<16x32xf32>
    %71 = arith.mulf %68, %70 : vector<16x32xf32>
    %c0_22 = arith.constant 0 : index
    %c0_23 = arith.constant 0 : index
    %72 = vector.load %arg12[%c0_22, %c0_23] : memref<1x32xf32, #tpu.memory_space<vmem>>, vector<1x32xf32>
    %73 = vector.broadcast %72 : vector<1x32xf32> to vector<16x32xf32>
    %74 = arith.addf %71, %73 : vector<16x32xf32>
    %cst_24 = arith.constant 0.000000e+00 : f32
    %75 = vector.broadcast %cst_24 : f32 to vector<16x32xf32>
    %76 = arith.maximumf %74, %75 : vector<16x32xf32>
    %c0_25 = arith.constant 0 : index
    %c0_26 = arith.constant 0 : index
    %c0_27 = arith.constant 0 : index
    %77 = vector.load %arg1[%c0_25, %c0_26, %c0_27] : memref<1x16x16xbf16, #tpu.memory_space<vmem>>, vector<1x16x16xbf16>
    %78 = vector.shape_cast %77 : vector<1x16x16xbf16> to vector<16x16xbf16>
    %c0_28 = arith.constant 0 : index
    %c0_29 = arith.constant 0 : index
    %79 = vector.load %arg13[%c0_28, %c0_29] : memref<16x32xbf16, #tpu.memory_space<vmem>>, vector<16x32xbf16>
    %cst_30 = arith.constant dense<0.000000e+00> : vector<16x32xf32>
    %80 = tpu.matmul %78, %79, %cst_30 {dimension_numbers = #tpu.dot_dimension_numbers<[1], [0], [0], [1], [0, 0, 1, 1], [], []>} : vector<16x16xbf16>, vector<16x32xbf16>, vector<16x32xf32> -> vector<16x32xf32>
    %81 = arith.addf %80, %76 : vector<16x32xf32>
    %82 = arith.truncf %81 : vector<16x32xf32> to vector<16x32xbf16>
    %c0_31 = arith.constant 0 : index
    %c0_32 = arith.constant 0 : index
    %c0_33 = arith.constant 0 : index
    %83 = vector.load %arg14[%c0_31, %c0_32, %c0_33] : memref<1x16x32xbf16, #tpu.memory_space<vmem>>, vector<1x16x32xbf16>
    %84 = vector.shape_cast %83 : vector<1x16x32xbf16> to vector<16x32xbf16>
    %85 = vector.shape_cast %82 : vector<16x32xbf16> to vector<1x16x32xbf16>
    tpu.vector_store %arg14[%c0_31, %c0_32, %c0_33], %85 {strides = array<i32>} : memref<1x16x32xbf16, #tpu.memory_space<vmem>>, vector<1x16x32xbf16>,
    return
  }
  func.func @transform_0(%arg0: i32) -> (i32, i32, i32) {
    %c0_i32 = arith.constant 0 : i32
    %c0_i32_0 = arith.constant 0 : i32
    %c0_i32_1 = arith.constant 0 : i32
    return %arg0, %c0_i32, %c0_i32_0 : i32, i32, i32
  }
  func.func @transform_1(%arg0: i32) -> (i32, i32, i32) {
    %c0_i32 = arith.constant 0 : i32
    %c0_i32_0 = arith.constant 0 : i32
    %c0_i32_1 = arith.constant 0 : i32
    return %arg0, %c0_i32, %c0_i32_0 : i32, i32, i32
  }
  func.func @transform_2(%arg0: i32) -> (i32, i32) {
    %c0_i32 = arith.constant 0 : i32
    %c0_i32_0 = arith.constant 0 : i32
    %c0_i32_1 = arith.constant 0 : i32
    return %c0_i32, %c0_i32_0 : i32, i32
  }
  func.func @transform_3(%arg0: i32) -> (i32, i32) {
    %c0_i32 = arith.constant 0 : i32
    %c0_i32_0 = arith.constant 0 : i32
    %c0_i32_1 = arith.constant 0 : i32
    return %c0_i32, %c0_i32_0 : i32, i32
  }
  func.func @transform_4(%arg0: i32) -> (i32, i32) {
    %c0_i32 = arith.constant 0 : i32
    %c0_i32_0 = arith.constant 0 : i32
    %c0_i32_1 = arith.constant 0 : i32
    return %c0_i32, %c0_i32_0 : i32, i32
  }
  func.func @transform_5(%arg0: i32) -> (i32, i32) {
    %c0_i32 = arith.constant 0 : i32
    %c0_i32_0 = arith.constant 0 : i32
    %c0_i32_1 = arith.constant 0 : i32
    return %c0_i32, %c0_i32_0 : i32, i32
  }
  func.func @transform_6(%arg0: i32) -> (i32, i32) {
    %c0_i32 = arith.constant 0 : i32
    %c0_i32_0 = arith.constant 0 : i32
    %c0_i32_1 = arith.constant 0 : i32
    return %c0_i32, %c0_i32_0 : i32, i32
  }
  func.func @transform_7(%arg0: i32) -> (i32, i32) {
    %c0_i32 = arith.constant 0 : i32
    %c0_i32_0 = arith.constant 0 : i32
    %c0_i32_1 = arith.constant 0 : i32
    return %c0_i32, %c0_i32_0 : i32, i32
  }
  func.func @transform_8(%arg0: i32) -> (i32, i32) {
    %c0_i32 = arith.constant 0 : i32
    %c0_i32_0 = arith.constant 0 : i32
    %c0_i32_1 = arith.constant 0 : i32
    return %c0_i32, %c0_i32_0 : i32, i32
  }
  func.func @transform_9(%arg0: i32) -> (i32, i32) {
    %c0_i32 = arith.constant 0 : i32
    %c0_i32_0 = arith.constant 0 : i32
    %c0_i32_1 = arith.constant 0 : i32
    return %c0_i32, %c0_i32_0 : i32, i32
  }
  func.func @transform_10(%arg0: i32) -> (i32, i32) {
    %c0_i32 = arith.constant 0 : i32
    %c0_i32_0 = arith.constant 0 : i32
    %c0_i32_1 = arith.constant 0 : i32
    return %c0_i32, %c0_i32_0 : i32, i32
  }
  func.func @transform_11(%arg0: i32) -> (i32, i32) {
    %c0_i32 = arith.constant 0 : i32
    %c0_i32_0 = arith.constant 0 : i32
    %c0_i32_1 = arith.constant 0 : i32
    return %c0_i32, %c0_i32_0 : i32, i32
  }
  func.func @transform_12(%arg0: i32) -> (i32, i32) {
    %c0_i32 = arith.constant 0 : i32
    %c0_i32_0 = arith.constant 0 : i32
    %c0_i32_1 = arith.constant 0 : i32
    return %c0_i32, %c0_i32_0 : i32, i32
  }
  func.func @transform_13(%arg0: i32) -> (i32, i32, i32) {
    %c0_i32 = arith.constant 0 : i32
    %c0_i32_0 = arith.constant 0 : i32
    %c0_i32_1 = arith.constant 0 : i32
    return %arg0, %c0_i32, %c0_i32_0 : i32, i32, i32
  }
}

module attributes {stable_mosaic.version = 11 : i64} {
  func.func @_block_s1_kernel(%arg0: i32, %arg1: memref<1x9x32xbf16, #tpu.memory_space<vmem>>, %arg2: memref<1x17x32xbf16, #tpu.memory_space<vmem>>, %arg3: memref<17x1xf32, #tpu.memory_space<vmem>>, %arg4: memref<32x32xbf16, #tpu.memory_space<vmem>>, %arg5: memref<1x32xf32, #tpu.memory_space<vmem>>, %arg6: memref<1x32xf32, #tpu.memory_space<vmem>>, %arg7: memref<9x32xf32, #tpu.memory_space<vmem>>, %arg8: memref<1x32xf32, #tpu.memory_space<vmem>>, %arg9: memref<1x32xf32, #tpu.memory_space<vmem>>, %arg10: memref<32x64xbf16, #tpu.memory_space<vmem>>, %arg11: memref<1x64xf32, #tpu.memory_space<vmem>>, %arg12: memref<1x64xf32, #tpu.memory_space<vmem>>, %arg13: memref<32x64xbf16, #tpu.memory_space<vmem>>, %arg14: memref<1x9x64xbf16, #tpu.memory_space<vmem>>) attributes {dimension_semantics = [#tpu.dimension_semantics<parallel>], iteration_bounds = array<i64: 2>, scalar_prefetch = 0 : i64, scratch_operands = 0 : i64, tpu.core_type = #tpu.core_type<tc>, window_params = [{transform_indices = @transform_0, window_bounds = array<i64: 1, 9, 32>}, {transform_indices = @transform_1, window_bounds = array<i64: 1, 17, 32>}, {pipeline_mode = #tpu.pipeline_mode<synchronous>, transform_indices = @transform_2, window_bounds = array<i64: 17, 1>}, {pipeline_mode = #tpu.pipeline_mode<synchronous>, transform_indices = @transform_3, window_bounds = array<i64: 32, 32>}, {pipeline_mode = #tpu.pipeline_mode<synchronous>, transform_indices = @transform_4, window_bounds = array<i64: 1, 32>}, {pipeline_mode = #tpu.pipeline_mode<synchronous>, transform_indices = @transform_5, window_bounds = array<i64: 1, 32>}, {pipeline_mode = #tpu.pipeline_mode<synchronous>, transform_indices = @transform_6, window_bounds = array<i64: 9, 32>}, {pipeline_mode = #tpu.pipeline_mode<synchronous>, transform_indices = @transform_7, window_bounds = array<i64: 1, 32>}, {pipeline_mode = #tpu.pipeline_mode<synchronous>, transform_indices = @transform_8, window_bounds = array<i64: 1, 32>}, {pipeline_mode = #tpu.pipeline_mode<synchronous>, transform_indices = @transform_9, window_bounds = array<i64: 32, 64>}, {pipeline_mode = #tpu.pipeline_mode<synchronous>, transform_indices = @transform_10, window_bounds = array<i64: 1, 64>}, {pipeline_mode = #tpu.pipeline_mode<synchronous>, transform_indices = @transform_11, window_bounds = array<i64: 1, 64>}, {pipeline_mode = #tpu.pipeline_mode<synchronous>, transform_indices = @transform_12, window_bounds = array<i64: 32, 64>}, {transform_indices = @transform_13, window_bounds = array<i64: 1, 9, 64>}]} {
    %c0 = arith.constant 0 : index
    %c0_0 = arith.constant 0 : index
    %c0_1 = arith.constant 0 : index
    %0 = vector.load %arg2[%c0, %c0_0, %c0_1] : memref<1x17x32xbf16, #tpu.memory_space<vmem>>, vector<1x17x32xbf16>
    %1 = vector.shape_cast %0 : vector<1x17x32xbf16> to vector<17x32xbf16>
    %c0_2 = arith.constant 0 : index
    %c0_3 = arith.constant 0 : index
    %2 = vector.load %arg4[%c0_2, %c0_3] : memref<32x32xbf16, #tpu.memory_space<vmem>>, vector<32x32xbf16>
    %cst = arith.constant dense<0.000000e+00> : vector<17x32xf32>
    %3 = tpu.matmul %1, %2, %cst {dimension_numbers = #tpu.dot_dimension_numbers<[1], [0], [0], [1], [0, 0, 1, 1], [], []>} : vector<17x32xbf16>, vector<32x32xbf16>, vector<17x32xf32> -> vector<17x32xf32>
    %c0_4 = arith.constant 0 : index
    %c0_5 = arith.constant 0 : index
    %4 = vector.load %arg5[%c0_4, %c0_5] : memref<1x32xf32, #tpu.memory_space<vmem>>, vector<1x32xf32>
    %5 = vector.broadcast %4 : vector<1x32xf32> to vector<17x32xf32>
    %6 = arith.mulf %3, %5 : vector<17x32xf32>
    %c0_6 = arith.constant 0 : index
    %c0_7 = arith.constant 0 : index
    %7 = vector.load %arg6[%c0_6, %c0_7] : memref<1x32xf32, #tpu.memory_space<vmem>>, vector<1x32xf32>
    %8 = vector.broadcast %7 : vector<1x32xf32> to vector<17x32xf32>
    %9 = arith.addf %6, %8 : vector<17x32xf32>
    %cst_8 = arith.constant 0.000000e+00 : f32
    %10 = vector.broadcast %cst_8 : f32 to vector<17x32xf32>
    %11 = arith.maximumf %9, %10 : vector<17x32xf32>
    %c0_9 = arith.constant 0 : index
    %c0_10 = arith.constant 0 : index
    %12 = vector.load %arg3[%c0_9, %c0_10] : memref<17x1xf32, #tpu.memory_space<vmem>>, vector<17x1xf32>
    %13 = vector.broadcast %12 : vector<17x1xf32> to vector<17x32xf32>
    %14 = arith.mulf %11, %13 : vector<17x32xf32>
    %c0_11 = arith.constant 0 : index
    %c0_12 = arith.constant 0 : index
    %15 = vector.load %arg7[%c0_11, %c0_12] : memref<9x32xf32, #tpu.memory_space<vmem>>, vector<9x32xf32>
    %16 = vector.extract_strided_slice %14 {offsets = [0, 0], sizes = [9, 32], strides = [1, 1]} : vector<17x32xf32> to vector<9x32xf32>
    %17 = vector.extract_strided_slice %15 {offsets = [0, 0], sizes = [1, 32], strides = [1, 1]} : vector<9x32xf32> to vector<1x32xf32>
    %18 = vector.broadcast %17 : vector<1x32xf32> to vector<9x32xf32>
    %19 = arith.mulf %16, %18 : vector<9x32xf32>
    %20 = vector.extract_strided_slice %14 {offsets = [1, 0], sizes = [9, 32], strides = [1, 1]} : vector<17x32xf32> to vector<9x32xf32>
    %21 = vector.extract_strided_slice %15 {offsets = [1, 0], sizes = [1, 32], strides = [1, 1]} : vector<9x32xf32> to vector<1x32xf32>
    %22 = vector.broadcast %21 : vector<1x32xf32> to vector<9x32xf32>
    %23 = arith.mulf %20, %22 : vector<9x32xf32>
    %24 = arith.addf %19, %23 : vector<9x32xf32>
    %25 = vector.extract_strided_slice %14 {offsets = [2, 0], sizes = [9, 32], strides = [1, 1]} : vector<17x32xf32> to vector<9x32xf32>
    %26 = vector.extract_strided_slice %15 {offsets = [2, 0], sizes = [1, 32], strides = [1, 1]} : vector<9x32xf32> to vector<1x32xf32>
    %27 = vector.broadcast %26 : vector<1x32xf32> to vector<9x32xf32>
    %28 = arith.mulf %25, %27 : vector<9x32xf32>
    %29 = arith.addf %24, %28 : vector<9x32xf32>
    %30 = vector.extract_strided_slice %14 {offsets = [3, 0], sizes = [9, 32], strides = [1, 1]} : vector<17x32xf32> to vector<9x32xf32>
    %31 = vector.extract_strided_slice %15 {offsets = [3, 0], sizes = [1, 32], strides = [1, 1]} : vector<9x32xf32> to vector<1x32xf32>
    %32 = vector.broadcast %31 : vector<1x32xf32> to vector<9x32xf32>
    %33 = arith.mulf %30, %32 : vector<9x32xf32>
    %34 = arith.addf %29, %33 : vector<9x32xf32>
    %35 = vector.extract_strided_slice %14 {offsets = [4, 0], sizes = [9, 32], strides = [1, 1]} : vector<17x32xf32> to vector<9x32xf32>
    %36 = vector.extract_strided_slice %15 {offsets = [4, 0], sizes = [1, 32], strides = [1, 1]} : vector<9x32xf32> to vector<1x32xf32>
    %37 = vector.broadcast %36 : vector<1x32xf32> to vector<9x32xf32>
    %38 = arith.mulf %35, %37 : vector<9x32xf32>
    %39 = arith.addf %34, %38 : vector<9x32xf32>
    %40 = vector.extract_strided_slice %14 {offsets = [5, 0], sizes = [9, 32], strides = [1, 1]} : vector<17x32xf32> to vector<9x32xf32>
    %41 = vector.extract_strided_slice %15 {offsets = [5, 0], sizes = [1, 32], strides = [1, 1]} : vector<9x32xf32> to vector<1x32xf32>
    %42 = vector.broadcast %41 : vector<1x32xf32> to vector<9x32xf32>
    %43 = arith.mulf %40, %42 : vector<9x32xf32>
    %44 = arith.addf %39, %43 : vector<9x32xf32>
    %45 = vector.extract_strided_slice %14 {offsets = [6, 0], sizes = [9, 32], strides = [1, 1]} : vector<17x32xf32> to vector<9x32xf32>
    %46 = vector.extract_strided_slice %15 {offsets = [6, 0], sizes = [1, 32], strides = [1, 1]} : vector<9x32xf32> to vector<1x32xf32>
    %47 = vector.broadcast %46 : vector<1x32xf32> to vector<9x32xf32>
    %48 = arith.mulf %45, %47 : vector<9x32xf32>
    %49 = arith.addf %44, %48 : vector<9x32xf32>
    %50 = vector.extract_strided_slice %14 {offsets = [7, 0], sizes = [9, 32], strides = [1, 1]} : vector<17x32xf32> to vector<9x32xf32>
    %51 = vector.extract_strided_slice %15 {offsets = [7, 0], sizes = [1, 32], strides = [1, 1]} : vector<9x32xf32> to vector<1x32xf32>
    %52 = vector.broadcast %51 : vector<1x32xf32> to vector<9x32xf32>
    %53 = arith.mulf %50, %52 : vector<9x32xf32>
    %54 = arith.addf %49, %53 : vector<9x32xf32>
    %55 = vector.extract_strided_slice %14 {offsets = [8, 0], sizes = [9, 32], strides = [1, 1]} : vector<17x32xf32> to vector<9x32xf32>
    %56 = vector.extract_strided_slice %15 {offsets = [8, 0], sizes = [1, 32], strides = [1, 1]} : vector<9x32xf32> to vector<1x32xf32>
    %57 = vector.broadcast %56 : vector<1x32xf32> to vector<9x32xf32>
    %58 = arith.mulf %55, %57 : vector<9x32xf32>
    %59 = arith.addf %54, %58 : vector<9x32xf32>
    %c0_13 = arith.constant 0 : index
    %c0_14 = arith.constant 0 : index
    %60 = vector.load %arg8[%c0_13, %c0_14] : memref<1x32xf32, #tpu.memory_space<vmem>>, vector<1x32xf32>
    %61 = vector.broadcast %60 : vector<1x32xf32> to vector<9x32xf32>
    %62 = arith.mulf %59, %61 : vector<9x32xf32>
    %c0_15 = arith.constant 0 : index
    %c0_16 = arith.constant 0 : index
    %63 = vector.load %arg9[%c0_15, %c0_16] : memref<1x32xf32, #tpu.memory_space<vmem>>, vector<1x32xf32>
    %64 = vector.broadcast %63 : vector<1x32xf32> to vector<9x32xf32>
    %65 = arith.addf %62, %64 : vector<9x32xf32>
    %66 = arith.truncf %65 : vector<9x32xf32> to vector<9x32xbf16>
    %c0_17 = arith.constant 0 : index
    %c0_18 = arith.constant 0 : index
    %67 = vector.load %arg10[%c0_17, %c0_18] : memref<32x64xbf16, #tpu.memory_space<vmem>>, vector<32x64xbf16>
    %cst_19 = arith.constant dense<0.000000e+00> : vector<9x64xf32>
    %68 = tpu.matmul %66, %67, %cst_19 {dimension_numbers = #tpu.dot_dimension_numbers<[1], [0], [0], [1], [0, 0, 1, 1], [], []>} : vector<9x32xbf16>, vector<32x64xbf16>, vector<9x64xf32> -> vector<9x64xf32>
    %c0_20 = arith.constant 0 : index
    %c0_21 = arith.constant 0 : index
    %69 = vector.load %arg11[%c0_20, %c0_21] : memref<1x64xf32, #tpu.memory_space<vmem>>, vector<1x64xf32>
    %70 = vector.broadcast %69 : vector<1x64xf32> to vector<9x64xf32>
    %71 = arith.mulf %68, %70 : vector<9x64xf32>
    %c0_22 = arith.constant 0 : index
    %c0_23 = arith.constant 0 : index
    %72 = vector.load %arg12[%c0_22, %c0_23] : memref<1x64xf32, #tpu.memory_space<vmem>>, vector<1x64xf32>
    %73 = vector.broadcast %72 : vector<1x64xf32> to vector<9x64xf32>
    %74 = arith.addf %71, %73 : vector<9x64xf32>
    %cst_24 = arith.constant 0.000000e+00 : f32
    %75 = vector.broadcast %cst_24 : f32 to vector<9x64xf32>
    %76 = arith.maximumf %74, %75 : vector<9x64xf32>
    %c0_25 = arith.constant 0 : index
    %c0_26 = arith.constant 0 : index
    %c0_27 = arith.constant 0 : index
    %77 = vector.load %arg1[%c0_25, %c0_26, %c0_27] : memref<1x9x32xbf16, #tpu.memory_space<vmem>>, vector<1x9x32xbf16>
    %78 = vector.shape_cast %77 : vector<1x9x32xbf16> to vector<9x32xbf16>
    %c0_28 = arith.constant 0 : index
    %c0_29 = arith.constant 0 : index
    %79 = vector.load %arg13[%c0_28, %c0_29] : memref<32x64xbf16, #tpu.memory_space<vmem>>, vector<32x64xbf16>
    %cst_30 = arith.constant dense<0.000000e+00> : vector<9x64xf32>
    %80 = tpu.matmul %78, %79, %cst_30 {dimension_numbers = #tpu.dot_dimension_numbers<[1], [0], [0], [1], [0, 0, 1, 1], [], []>} : vector<9x32xbf16>, vector<32x64xbf16>, vector<9x64xf32> -> vector<9x64xf32>
    %81 = arith.addf %80, %76 : vector<9x64xf32>
    %82 = arith.truncf %81 : vector<9x64xf32> to vector<9x64xbf16>
    %c0_31 = arith.constant 0 : index
    %c0_32 = arith.constant 0 : index
    %c0_33 = arith.constant 0 : index
    %83 = vector.load %arg14[%c0_31, %c0_32, %c0_33] : memref<1x9x64xbf16, #tpu.memory_space<vmem>>, vector<1x9x64xbf16>
    %84 = vector.shape_cast %83 : vector<1x9x64xbf16> to vector<9x64xbf16>
    %85 = vector.shape_cast %82 : vector<9x64xbf16> to vector<1x9x64xbf16>
    tpu.vector_store %arg14[%c0_31, %c0_32, %c0_33], %85 {strides = array<i32>} : memref<1x9x64xbf16, #tpu.memory_space<vmem>>, vector<1x9x64xbf16>,
    return
  }
  func.func @transform_0(%arg0: i32) -> (i32, i32, i32) {
    %c0_i32 = arith.constant 0 : i32
    %c0_i32_0 = arith.constant 0 : i32
    %c0_i32_1 = arith.constant 0 : i32
    return %arg0, %c0_i32, %c0_i32_0 : i32, i32, i32
  }
  func.func @transform_1(%arg0: i32) -> (i32, i32, i32) {
    %c0_i32 = arith.constant 0 : i32
    %c0_i32_0 = arith.constant 0 : i32
    %c0_i32_1 = arith.constant 0 : i32
    return %arg0, %c0_i32, %c0_i32_0 : i32, i32, i32
  }
  func.func @transform_2(%arg0: i32) -> (i32, i32) {
    %c0_i32 = arith.constant 0 : i32
    %c0_i32_0 = arith.constant 0 : i32
    %c0_i32_1 = arith.constant 0 : i32
    return %c0_i32, %c0_i32_0 : i32, i32
  }
  func.func @transform_3(%arg0: i32) -> (i32, i32) {
    %c0_i32 = arith.constant 0 : i32
    %c0_i32_0 = arith.constant 0 : i32
    %c0_i32_1 = arith.constant 0 : i32
    return %c0_i32, %c0_i32_0 : i32, i32
  }
  func.func @transform_4(%arg0: i32) -> (i32, i32) {
    %c0_i32 = arith.constant 0 : i32
    %c0_i32_0 = arith.constant 0 : i32
    %c0_i32_1 = arith.constant 0 : i32
    return %c0_i32, %c0_i32_0 : i32, i32
  }
  func.func @transform_5(%arg0: i32) -> (i32, i32) {
    %c0_i32 = arith.constant 0 : i32
    %c0_i32_0 = arith.constant 0 : i32
    %c0_i32_1 = arith.constant 0 : i32
    return %c0_i32, %c0_i32_0 : i32, i32
  }
  func.func @transform_6(%arg0: i32) -> (i32, i32) {
    %c0_i32 = arith.constant 0 : i32
    %c0_i32_0 = arith.constant 0 : i32
    %c0_i32_1 = arith.constant 0 : i32
    return %c0_i32, %c0_i32_0 : i32, i32
  }
  func.func @transform_7(%arg0: i32) -> (i32, i32) {
    %c0_i32 = arith.constant 0 : i32
    %c0_i32_0 = arith.constant 0 : i32
    %c0_i32_1 = arith.constant 0 : i32
    return %c0_i32, %c0_i32_0 : i32, i32
  }
  func.func @transform_8(%arg0: i32) -> (i32, i32) {
    %c0_i32 = arith.constant 0 : i32
    %c0_i32_0 = arith.constant 0 : i32
    %c0_i32_1 = arith.constant 0 : i32
    return %c0_i32, %c0_i32_0 : i32, i32
  }
  func.func @transform_9(%arg0: i32) -> (i32, i32) {
    %c0_i32 = arith.constant 0 : i32
    %c0_i32_0 = arith.constant 0 : i32
    %c0_i32_1 = arith.constant 0 : i32
    return %c0_i32, %c0_i32_0 : i32, i32
  }
  func.func @transform_10(%arg0: i32) -> (i32, i32) {
    %c0_i32 = arith.constant 0 : i32
    %c0_i32_0 = arith.constant 0 : i32
    %c0_i32_1 = arith.constant 0 : i32
    return %c0_i32, %c0_i32_0 : i32, i32
  }
  func.func @transform_11(%arg0: i32) -> (i32, i32) {
    %c0_i32 = arith.constant 0 : i32
    %c0_i32_0 = arith.constant 0 : i32
    %c0_i32_1 = arith.constant 0 : i32
    return %c0_i32, %c0_i32_0 : i32, i32
  }
  func.func @transform_12(%arg0: i32) -> (i32, i32) {
    %c0_i32 = arith.constant 0 : i32
    %c0_i32_0 = arith.constant 0 : i32
    %c0_i32_1 = arith.constant 0 : i32
    return %c0_i32, %c0_i32_0 : i32, i32
  }
  func.func @transform_13(%arg0: i32) -> (i32, i32, i32) {
    %c0_i32 = arith.constant 0 : i32
    %c0_i32_0 = arith.constant 0 : i32
    %c0_i32_1 = arith.constant 0 : i32
    return %arg0, %c0_i32, %c0_i32_0 : i32, i32, i32
  }
}

module attributes {stable_mosaic.version = 11 : i64} {
  func.func @_head_kernel(%arg0: memref<2x1x64xbf16, #tpu.memory_space<vmem>>, %arg1: memref<64x128xbf16, #tpu.memory_space<vmem>>, %arg2: memref<1x128xf32, #tpu.memory_space<vmem>>, %arg3: memref<1x128xf32, #tpu.memory_space<vmem>>, %arg4: memref<128x10xbf16, #tpu.memory_space<vmem>>, %arg5: memref<1x10xf32, #tpu.memory_space<vmem>>, %arg6: memref<2x10xf32, #tpu.memory_space<vmem>>) attributes {dimension_semantics = [], scalar_prefetch = 0 : i64, scratch_operands = 0 : i64, tpu.core_type = #tpu.core_type<tc>} {
    %c0 = arith.constant 0 : index
    %c0_0 = arith.constant 0 : index
    %c0_1 = arith.constant 0 : index
    %0 = vector.load %arg0[%c0, %c0_0, %c0_1] : memref<2x1x64xbf16, #tpu.memory_space<vmem>>, vector<1x1x64xbf16>
    %1 = vector.shape_cast %0 : vector<1x1x64xbf16> to vector<1x64xbf16>
    %c0_2 = arith.constant 0 : index
    %c0_3 = arith.constant 0 : index
    %2 = vector.load %arg1[%c0_2, %c0_3] : memref<64x128xbf16, #tpu.memory_space<vmem>>, vector<64x128xbf16>
    %cst = arith.constant dense<0.000000e+00> : vector<1x128xf32>
    %3 = tpu.matmul %1, %2, %cst {dimension_numbers = #tpu.dot_dimension_numbers<[1], [0], [0], [1], [0, 0, 1, 1], [], []>} : vector<1x64xbf16>, vector<64x128xbf16>, vector<1x128xf32> -> vector<1x128xf32>
    %c0_4 = arith.constant 0 : index
    %c0_5 = arith.constant 0 : index
    %4 = vector.load %arg2[%c0_4, %c0_5] : memref<1x128xf32, #tpu.memory_space<vmem>>, vector<1x128xf32>
    %5 = arith.mulf %3, %4 : vector<1x128xf32>
    %c0_6 = arith.constant 0 : index
    %c0_7 = arith.constant 0 : index
    %6 = vector.load %arg3[%c0_6, %c0_7] : memref<1x128xf32, #tpu.memory_space<vmem>>, vector<1x128xf32>
    %7 = arith.addf %5, %6 : vector<1x128xf32>
    %cst_8 = arith.constant 0.000000e+00 : f32
    %8 = vector.broadcast %cst_8 : f32 to vector<1x128xf32>
    %9 = arith.maximumf %7, %8 : vector<1x128xf32>
    %cst_9 = arith.constant dense<0.000000e+00> : vector<128xf32>
    %10 = vector.multi_reduction <add>, %9, %cst_9 [0] : vector<1x128xf32> to vector<128xf32>
    %11 = vector.shape_cast %10 : vector<128xf32> to vector<1x128xf32>
    %cst_10 = arith.constant 1.000000e+00 : f32
    %12 = vector.broadcast %cst_10 : f32 to vector<1x128xf32>
    %13 = arith.divf %11, %12 : vector<1x128xf32>
    %14 = arith.truncf %13 : vector<1x128xf32> to vector<1x128xbf16>
    %c0_11 = arith.constant 0 : index
    %c0_12 = arith.constant 0 : index
    %15 = vector.load %arg4[%c0_11, %c0_12] : memref<128x10xbf16, #tpu.memory_space<vmem>>, vector<128x10xbf16>
    %cst_13 = arith.constant dense<0.000000e+00> : vector<1x10xf32>
    %16 = tpu.matmul %14, %15, %cst_13 {dimension_numbers = #tpu.dot_dimension_numbers<[1], [0], [0], [1], [0, 0, 1, 1], [], []>} : vector<1x128xbf16>, vector<128x10xbf16>, vector<1x10xf32> -> vector<1x10xf32>
    %c0_14 = arith.constant 0 : index
    %c0_15 = arith.constant 0 : index
    %17 = vector.load %arg5[%c0_14, %c0_15] : memref<1x10xf32, #tpu.memory_space<vmem>>, vector<1x10xf32>
    %18 = arith.addf %16, %17 : vector<1x10xf32>
    %c0_16 = arith.constant 0 : index
    %c0_17 = arith.constant 0 : index
    %19 = vector.load %arg6[%c0_16, %c0_17] : memref<2x10xf32, #tpu.memory_space<vmem>>, vector<1x10xf32>
    tpu.vector_store %arg6[%c0_16, %c0_17], %18 {strides = array<i32>} : memref<2x10xf32, #tpu.memory_space<vmem>>, vector<1x10xf32>,
    %c1 = arith.constant 1 : index
    %c0_18 = arith.constant 0 : index
    %c0_19 = arith.constant 0 : index
    %20 = vector.load %arg0[%c1, %c0_18, %c0_19] : memref<2x1x64xbf16, #tpu.memory_space<vmem>>, vector<1x1x64xbf16>
    %21 = vector.shape_cast %20 : vector<1x1x64xbf16> to vector<1x64xbf16>
    %c0_20 = arith.constant 0 : index
    %c0_21 = arith.constant 0 : index
    %22 = vector.load %arg1[%c0_20, %c0_21] : memref<64x128xbf16, #tpu.memory_space<vmem>>, vector<64x128xbf16>
    %cst_22 = arith.constant dense<0.000000e+00> : vector<1x128xf32>
    %23 = tpu.matmul %21, %22, %cst_22 {dimension_numbers = #tpu.dot_dimension_numbers<[1], [0], [0], [1], [0, 0, 1, 1], [], []>} : vector<1x64xbf16>, vector<64x128xbf16>, vector<1x128xf32> -> vector<1x128xf32>
    %c0_23 = arith.constant 0 : index
    %c0_24 = arith.constant 0 : index
    %24 = vector.load %arg2[%c0_23, %c0_24] : memref<1x128xf32, #tpu.memory_space<vmem>>, vector<1x128xf32>
    %25 = arith.mulf %23, %24 : vector<1x128xf32>
    %c0_25 = arith.constant 0 : index
    %c0_26 = arith.constant 0 : index
    %26 = vector.load %arg3[%c0_25, %c0_26] : memref<1x128xf32, #tpu.memory_space<vmem>>, vector<1x128xf32>
    %27 = arith.addf %25, %26 : vector<1x128xf32>
    %cst_27 = arith.constant 0.000000e+00 : f32
    %28 = vector.broadcast %cst_27 : f32 to vector<1x128xf32>
    %29 = arith.maximumf %27, %28 : vector<1x128xf32>
    %cst_28 = arith.constant dense<0.000000e+00> : vector<128xf32>
    %30 = vector.multi_reduction <add>, %29, %cst_28 [0] : vector<1x128xf32> to vector<128xf32>
    %31 = vector.shape_cast %30 : vector<128xf32> to vector<1x128xf32>
    %cst_29 = arith.constant 1.000000e+00 : f32
    %32 = vector.broadcast %cst_29 : f32 to vector<1x128xf32>
    %33 = arith.divf %31, %32 : vector<1x128xf32>
    %34 = arith.truncf %33 : vector<1x128xf32> to vector<1x128xbf16>
    %c0_30 = arith.constant 0 : index
    %c0_31 = arith.constant 0 : index
    %35 = vector.load %arg4[%c0_30, %c0_31] : memref<128x10xbf16, #tpu.memory_space<vmem>>, vector<128x10xbf16>
    %cst_32 = arith.constant dense<0.000000e+00> : vector<1x10xf32>
    %36 = tpu.matmul %34, %35, %cst_32 {dimension_numbers = #tpu.dot_dimension_numbers<[1], [0], [0], [1], [0, 0, 1, 1], [], []>} : vector<1x128xbf16>, vector<128x10xbf16>, vector<1x10xf32> -> vector<1x10xf32>
    %c0_33 = arith.constant 0 : index
    %c0_34 = arith.constant 0 : index
    %37 = vector.load %arg5[%c0_33, %c0_34] : memref<1x10xf32, #tpu.memory_space<vmem>>, vector<1x10xf32>
    %38 = arith.addf %36, %37 : vector<1x10xf32>
    %c1_35 = arith.constant 1 : index
    %c0_36 = arith.constant 0 : index
    %39 = vector.load %arg6[%c1_35, %c0_36] : memref<2x10xf32, #tpu.memory_space<vmem>>, vector<1x10xf32>
    tpu.vector_store %arg6[%c1_35, %c0_36], %38 {strides = array<i32>} : memref<2x10xf32, #tpu.memory_space<vmem>>, vector<1x10xf32>,
    return
  }
}

</mosaic_0001>

<bundles_post_ra>
// kernel: _lambda_.10
= control target key start
LH: loop header
LB: loop body
LE: loop exit
PB: predicated region body
PF: predicated region fallthrough
CT: control target
= control target key end

     0   :  { %s898_s15 = smov 0   ;;  %s1192_s0 = inlined_call_operand.vmem [shape: f32[2,91,8], index: 0, kind: input, shape index: {}]   ;;  %s1193_s1 = inlined_call_operand.vmem [shape: f32[2,91,8], index: 1, kind: input, shape index: {}]   ;;  %s1194_s2 = inlined_call_operand.vmem [shape: f32[2,91,8], index: 2, kind: input, shape index: {}]   ;;  %s1195_s3 = inlined_call_operand.vmem [shape: f32[2,91,8], index: 3, kind: input, shape index: {}]   ;;  %s1196_s4 = inlined_call_operand.vmem [shape: bf16[2,81,8], index: 4, kind: output, shape index: {}]  }
   0x1 LB: > { %s821_s16 = sadd.s32 4294967295, %s871_s15   ;;  %p825_p0 = scmp.ge.s32.totalorder %s871_s15, 1  ;;  %s871_s15 = sphi %s898_s15, %s14_s15  }
   0x2   : > { %p192_p1 = scmp.lt.s32.totalorder %s871_s15, 3 }
   0x4   : > { %p193_p2 = pnand %p825_p0, %p192_p1 }
   0x5   : > { %p233_p3 = scmp.lt.s32.totalorder (!%p193_p2), %s821_s16, 1  ;;  %vm315_vm0 = vcmask (!%p193_p2), 1046528   ;;  %vm478_vm1 = vcmask (!%p193_p2), 1045504   ;;  %vm713_vm2 = vcmask (!%p193_p2), 60416   ;;  %vm724_vm3 = vcmask (!%p193_p2), 57344  }
   0x6   : > { %196 = sbr.rel (%p193_p2) target bundleno = 92 (0x5c), region = 36  ;;  %vm725_vm4 = vsmask.f32 (!%p193_p2), 256 }
   0x7   : > { %vm726_vm5 = vmand (!%p193_p2), %vm724_vm3, %vm725_vm4 }
   0xd   : > { %s1198_s16 = smov (!%p233_p3, %s821_s16), 1 }
   0xe   : > { %s855_s17 = smul.u32 96, %s1198_s16 }
   0xf   : > { %s856_s30 = smul.u32 44, %s1198_s16 }
  0x10   : > { %s912_s20 = scalar_lea.vmem %s1192_s0, %s855_s17  ;;  %s917_s23 = scalar_lea.vmem %s1193_s1, %s855_s17 }
  0x11   : > { %s922_s26 = scalar_lea.vmem %s1194_s2, %s855_s17  ;;  %s927_s29 = scalar_lea.vmem %s1195_s3, %s855_s17  ;;  %v258_v0 = vld [vmem:[%s912_s20 + $0x8] sm:$0xff]  ;;  %v259_v1 = vld [vmem:[%s912_s20 + $0x10] sm:$0xff]  ;;  %v936_v4 = vld [vmem:[%s917_s23 + $0x18] sm:$0xff] }
  0x12   : > { %v269_v2 = vld [vmem:[%s917_s23 + $0x8] sm:$0xff]  ;;  %v933_v3 = vld [vmem:[%s917_s23 + $0x10] sm:$0xff]  ;;  %v280_v5 = vld [vmem:[%s922_s26] sm:$0xff]  ;;  %v479_v7 = vrot.slane %v258_v0, 2  ;;  %v480_v8 = vrot.slane %v259_v1, 2  ;;  %v427_v14 = vrot.slane %v936_v4, 1  ;;  %s1033_s7 = scalar_lea.vmem %s1196_s4, %s856_s30 }
  0x13   : > { %v424_v6 = vrot.slane %v269_v2, 1  ;;  %v281_v9 = vld [vmem:[%s922_s26 + $0x8] sm:$0xff]  ;;  %v941_v10 = vld [vmem:[%s922_s26 + $0x10] sm:$0xff]  ;;  %v292_v11 = vld [vmem:[%s927_s29] sm:$0xff]  ;;  %v316_v12 = vrot.slane %v280_v5, 1  ;;  %v425_v13 = vrot.slane %v933_v3, 1 }
  0x14   : > { %v293_v15 = vld [vmem:[%s927_s29 + $0x8] sm:$0xff]  ;;  %v294_v16 = vld [vmem:[%s927_s29 + $0x10] sm:$0xff]  ;;  %v317_v17 = vrot.slane %v281_v9, 1  ;;  %v319_v18 = vrot.slane %v941_v10, 1  ;;  %v370_v19 = vrot.slane %v292_v11, 1  ;;  %v481_v20 = vsel %vm478_vm1, %v479_v7, %v480_v8  ;;  %v956_v29 = vld [vmem:[%s922_s26 + $0x18] sm:$0xff] }
  0x15   : > { %v371_v21 = vrot.slane %v293_v15, 1  ;;  %v373_v22 = vrot.slane %v294_v16, 1  ;;  %v426_v23 = vsel %vm315_vm0, %v424_v6, %v425_v13  ;;  %v428_v24 = vsel %vm315_vm0, %v425_v13, %v427_v14  ;;  %v961_v34 = vld [vmem:[%s912_s20 + $0x18] sm:$0xff]  ;;  %v964_v35 = vld [vmem:[%s917_s23 + $0x20] sm:$0xff]  ;;  %v988_v59 = vld [vmem:[%s917_s23 + $0x28] sm:$0xff] }
  0x16   : > { %v318_v25 = vsel %vm315_vm0, %v316_v12, %v317_v17  ;;  %v320_v26 = vsel %vm315_vm0, %v317_v17, %v319_v18  ;;  %v522_v27 = vrot.slane %v269_v2, 2  ;;  %v523_v28 = vrot.slane %v933_v3, 2  ;;  %v967_v36 = vld [vmem:[%s927_s29 + $0x18] sm:$0xff]  ;;  %v979_v53 = vld [vmem:[%s922_s26 + $0x20] sm:$0xff]  ;;  %v1002_v13 = vld [vmem:[%s922_s26 + $0x28] sm:$0xff] }
  0x17   : > { %v348_v30 = vmax.f32 %v292_v11, %v318_v25  ;;  %v349_v31 = vmax.f32 %v293_v15, %v320_v26  ;;  %v372_v32 = vsel %vm315_vm0, %v370_v19, %v371_v21  ;;  %v374_v33 = vsel %vm315_vm0, %v371_v21, %v373_v22  ;;  %v982_v54 = vld [vmem:[%s927_s29 + $0x20] sm:$0xff]  ;;  %v1011_v25 = vld [vmem:[%s917_s23 + $0x30] sm:$0xff]  ;;  %v1014_v26 = vld [vmem:[%s927_s29 + $0x28] sm:$0xff] }
  0x18   : > { %v524_v37 = vsel %vm478_vm1, %v522_v27, %v523_v28  ;;  %v582_v38 = vrot.slane %v281_v9, 2  ;;  %v583_v39 = vrot.slane %v941_v10, 2  ;;  %v625_v40 = vrot.slane %v293_v15, 2 }
  0x19   : > { %v402_v41 = vmax.f32 %v348_v30, %v372_v32  ;;  %v403_v42 = vmax.f32 %v349_v31, %v374_v33  ;;  %v626_v43 = vrot.slane %v294_v16, 2  ;;  %v321_v44 = vrot.slane %v956_v29, 1  ;;  %v262_v32 = vld [vmem:[%s912_s20 + $0x28] sm:$0xff] }
  0x1a   : > { %v584_v45 = vsel %vm478_vm1, %v582_v38, %v583_v39  ;;  %v375_v46 = vrot.slane %v967_v36, 1  ;;  %v429_v47 = vrot.slane %v964_v35, 1  ;;  %v482_v48 = vrot.slane %v961_v34, 2 }
  0x1b   : > { %v456_v49 = vmax.f32 %v402_v41, %v426_v23  ;;  %v457_v50 = vmax.f32 %v403_v42, %v428_v24  ;;  %v627_v51 = vsel %vm478_vm1, %v625_v40, %v626_v43  ;;  %v322_v52 = vsel %vm315_vm0, %v319_v18, %v321_v44 }
  0x1c   : > { %v350_v55 = vmax.f32 %v294_v16, %v322_v52  ;;  %v376_v56 = vsel %vm315_vm0, %v373_v22, %v375_v46  ;;  %v430_v57 = vsel %vm315_vm0, %v427_v14, %v429_v47  ;;  %v483_v58 = vsel %vm478_vm1, %v480_v8, %v482_v48  ;;  %v261_v8 = vld [vmem:[%s912_s20 + $0x20] sm:$0xff] }
  0x1d   : > { %v511_v60 = vmax.f32 %v456_v49, %v481_v20  ;;  %v512_v61 = vmax.f32 %v457_v50, %v483_v58  ;;  %v525_v62 = vrot.slane %v936_v4, 2  ;;  %v585_v63 = vrot.slane %v956_v29, 2  ;;  %v1039_v50 = vld [vmem:[%s927_s29 + $0x30] sm:$0xff] }
  0x1e   : > { %v404_v0 = vmax.f32 %v350_v55, %v376_v56  ;;  %v628_v1 = vrot.slane %v967_v36, 2  ;;  %v323_v2 = vrot.slane %v979_v53, 1  ;;  %v377_v3 = vrot.slane %v982_v54, 1  ;;  %v1046_v55 = vld [vmem:[%s917_s23 + $0x38] sm:$0xff] }
  0x1f   : > { %v554_v5 = vmax.f32 %v511_v60, %v524_v37  ;;  %v526_v6 = vsel %vm478_vm1, %v523_v28, %v525_v62  ;;  %v586_v7 = vsel %vm478_vm1, %v583_v39, %v585_v63  ;;  %v431_v9 = vrot.slane %v988_v59, 1 }
  0x20   : > { %v458_v4 = vmax.f32 %v404_v0, %v430_v57  ;;  %v555_v10 = vmax.f32 %v512_v61, %v526_v6  ;;  %v629_v11 = vsel %vm478_vm1, %v626_v43, %v628_v1  ;;  %v324_v12 = vsel %vm315_vm0, %v321_v44, %v323_v2 }
  0x21   : > { %v570_v14 = vmax.f32 %v554_v5, %v374_v33  ;;  %v351_v15 = vmax.f32 %v967_v36, %v324_v12  ;;  %v378_v16 = vsel %vm315_vm0, %v375_v46, %v377_v3  ;;  %v432_v17 = vsel %vm315_vm0, %v429_v47, %v431_v9 }
  0x22   : > { %v571_v18 = vmax.f32 %v555_v10, %v376_v56  ;;  %v484_v19 = vrot.slane %v261_v8, 2  ;;  %v527_v20 = vrot.slane %v964_v35, 2  ;;  %v587_v21 = vrot.slane %v979_v53, 2 }
  0x23   : > { %v614_v22 = vmax.f32 %v570_v14, %v584_v45  ;;  %v405_v23 = vmax.f32 %v351_v15, %v378_v16  ;;  %v630_v24 = vrot.slane %v982_v54, 2  ;;  %v325_v27 = vrot.slane %v1002_v13, 1  ;;  %v1028_v45 = vld [vmem:[%s922_s26 + $0x30] sm:$0xff]  ;;  %v1068_v14 = vld [vmem:[%s927_s29 + $0x38] sm:$0xff] }
  0x24   : > { %v615_v28 = vmax.f32 %v571_v18, %v586_v7  ;;  %v485_v29 = vsel %vm478_vm1, %v482_v48, %v484_v19  ;;  %v528_v30 = vsel %vm478_vm1, %v525_v62, %v527_v20  ;;  %v588_v31 = vsel %vm478_vm1, %v585_v63, %v587_v21 }
  0x25   : > { %v657_v33 = vmax.f32 %v614_v22, %v627_v51  ;;  %v459_v34 = vmax.f32 %v405_v23, %v432_v17  ;;  %v513_v35 = vmax.f32 %v458_v4, %v485_v29  ;;  %v631_v36 = vsel %vm478_vm1, %v628_v1, %v630_v24 }
  0x26   : > { %v658_v37 = vmax.f32 %v615_v28, %v629_v11  ;;  %v326_v38 = vsel %vm315_vm0, %v323_v2, %v325_v27  ;;  %v379_v39 = vrot.slane %v1014_v26, 1  ;;  %v433_v40 = vrot.slane %v1011_v25, 1 }
  0x27   : > { %v844_v41 = vpack.c.bf16 %v657_v33, %v657_v33  ;;  %v556_v42 = vmax.f32 %v513_v35, %v528_v30  ;;  %v352_v43 = vmax.f32 %v982_v54, %v326_v38  ;;  %v486_v44 = vrot.slane %v262_v32, 2 }
  0x28   : > { %v845_v46 = vpack.c.bf16 %v658_v37, %v658_v37  ;;  %v380_v47 = vsel %vm315_vm0, %v377_v3, %v379_v39  ;;  %v434_v48 = vsel %vm315_vm0, %v431_v9, %v433_v40  ;;  %v529_v49 = vrot.slane %v988_v59, 2  ;;  %v263_v59 = vld [vmem:[%s912_s20 + $0x30] sm:$0xff]  ;;  %v1089_v37 = vld [vmem:[%s922_s26 + $0x40] sm:$0xff] }
  0x29   : > { %714 = vst.msk [vmem:[%s1033_s7] sm:$0xf] %vm713_vm2, %v844_v41  ;;  %v572_v51 = vmax.f32 %v556_v42, %v378_v16  ;;  %v406_v52 = vmax.f32 %v352_v43, %v380_v47  ;;  %v487_v53 = vsel %vm478_vm1, %v484_v19, %v486_v44  ;;  %v589_v54 = vrot.slane %v1002_v13, 2  ;;  %v1065_v13 = vld [vmem:[%s922_s26 + $0x38] sm:$0xff]  ;;  %v265_v42 = vld [vmem:[%s912_s20 + $0x40] sm:$0xff]  ;;  %v1095_v43 = vld [vmem:[%s917_s23 + $0x48] sm:$0xff] }
  0x2a   : > { %715 = vst.msk [vmem:[%s1033_s7 + $0x4] sm:$0xf] %vm713_vm2, %v845_v46  ;;  %v514_v56 = vmax.f32 %v459_v34, %v487_v53  ;;  %v530_v57 = vsel %vm478_vm1, %v527_v20, %v529_v49  ;;  %v632_v58 = vrot.slane %v1014_v26, 2  ;;  %v327_v60 = vrot.slane %v1028_v45, 1  ;;  %v264_v19 = vld [vmem:[%s912_s20 + $0x38] sm:$0xff]  ;;  %v1074_v20 = vld [vmem:[%s917_s23 + $0x40] sm:$0xff] }
  0x2b   : > { %v616_v61 = vmax.f32 %v572_v51, %v588_v31  ;;  %v460_v62 = vmax.f32 %v406_v52, %v434_v48  ;;  %v590_v63 = vsel %vm478_vm1, %v587_v21, %v589_v54  ;;  %v381_v0 = vrot.slane %v1039_v50, 1 }
  0x2c   : > { %v557_v1 = vmax.f32 %v514_v56, %v530_v57  ;;  %v633_v2 = vsel %vm478_vm1, %v630_v24, %v632_v58  ;;  %v328_v3 = vsel %vm315_vm0, %v325_v27, %v327_v60  ;;  %v435_v5 = vrot.slane %v1046_v55, 1 }
  0x2d   : > { %v659_v6 = vmax.f32 %v616_v61, %v631_v36  ;;  %v353_v7 = vmax.f32 %v1014_v26, %v328_v3  ;;  %v382_v8 = vsel %vm315_vm0, %v379_v39, %v381_v0  ;;  %v488_v9 = vrot.slane %v263_v59, 2  ;;  %v1112_v61 = vld [vmem:[%s922_s26 + $0x48] sm:$0xff] }
  0x2e   : > { %v573_v4 = vmax.f32 %v557_v1, %v380_v47  ;;  %v436_v10 = vsel %vm315_vm0, %v433_v40, %v435_v5  ;;  %v531_v11 = vrot.slane %v1011_v25, 2  ;;  %v591_v12 = vrot.slane %v1028_v45, 2  ;;  %v1122_v3 = vld [vmem:[%s927_s29 + $0x48] sm:$0xff] }
  0x2f   : > { %v846_v15 = vpack.c.bf16 %v659_v6, %v659_v6  ;;  %v407_v16 = vmax.f32 %v353_v7, %v382_v8  ;;  %v489_v17 = vsel %vm478_vm1, %v486_v44, %v488_v9  ;;  %v634_v18 = vrot.slane %v1039_v50, 2  ;;  %v1098_v44 = vld [vmem:[%s927_s29 + $0x40] sm:$0xff] }
  0x30   : > { %v617_v21 = vmax.f32 %v573_v4, %v590_v63  ;;  %v515_v22 = vmax.f32 %v460_v62, %v489_v17  ;;  %v532_v23 = vsel %vm478_vm1, %v529_v49, %v531_v11  ;;  %v592_v24 = vsel %vm478_vm1, %v589_v54, %v591_v12 }
  0x31   : > { %716 = vst.msk [vmem:[%s1033_s7 + $0x8] sm:$0xf] %vm713_vm2, %v846_v15  ;;  %v461_v25 = vmax.f32 %v407_v16, %v436_v10  ;;  %v635_v26 = vsel %vm478_vm1, %v632_v58, %v634_v18  ;;  %v329_v27 = vrot.slane %v1065_v13, 1  ;;  %v383_v28 = vrot.slane %v1068_v14, 1 }
  0x32   : > { %v660_v29 = vmax.f32 %v617_v21, %v633_v2  ;;  %v558_v30 = vmax.f32 %v515_v22, %v532_v23  ;;  %v437_v31 = vrot.slane %v1074_v20, 1  ;;  %v490_v32 = vrot.slane %v264_v19, 2  ;;  %v1119_v2 = vld [vmem:[%s917_s23 + $0x50] sm:$0xff] }
  0x33   : > { %v330_v33 = vsel %vm315_vm0, %v327_v60, %v329_v27  ;;  %v384_v34 = vsel %vm315_vm0, %v381_v0, %v383_v28  ;;  %v533_v35 = vrot.slane %v1046_v55, 2  ;;  %v593_v36 = vrot.slane %v1065_v13, 2 }
  0x34   : > { %v847_v38 = vpack.c.bf16 %v660_v29, %v660_v29  ;;  %v574_v39 = vmax.f32 %v558_v30, %v382_v8  ;;  %v354_v40 = vmax.f32 %v1039_v50, %v330_v33  ;;  %v438_v41 = vsel %vm315_vm0, %v435_v5, %v437_v31 }
  0x35   : > { %v491_v45 = vsel %vm478_vm1, %v488_v9, %v490_v32  ;;  %v534_v46 = vsel %vm478_vm1, %v531_v11, %v533_v35  ;;  %v594_v47 = vsel %vm478_vm1, %v591_v12, %v593_v36  ;;  %v636_v48 = vrot.slane %v1068_v14, 2 }
  0x36   : > { %717 = vst.msk [vmem:[%s1033_s7 + $0xc] sm:$0xf] %vm713_vm2, %v847_v38  ;;  %v618_v49 = vmax.f32 %v574_v39, %v592_v24  ;;  %v408_v50 = vmax.f32 %v354_v40, %v384_v34  ;;  %v516_v51 = vmax.f32 %v461_v25, %v491_v45  ;;  %v331_v52 = vrot.slane %v1089_v37, 1  ;;  %v267_v38 = vld [vmem:[%s912_s20 + $0x50] sm:$0xff]  ;;  %v279_v39 = vld [vmem:[%s917_s23 + $0x58] sm:$0x7] }
  0x37   : > { %v637_v53 = vsel %vm478_vm1, %v634_v18, %v636_v48  ;;  %v385_v54 = vrot.slane %v1098_v44, 1  ;;  %v439_v55 = vrot.slane %v1095_v43, 1  ;;  %v492_v56 = vrot.slane %v265_v42, 2 }
  0x38   : > { %v661_v57 = vmax.f32 %v618_v49, %v635_v26  ;;  %v462_v58 = vmax.f32 %v408_v50, %v438_v41  ;;  %v559_v59 = vmax.f32 %v516_v51, %v534_v46  ;;  %v332_v60 = vsel %vm315_vm0, %v329_v27, %v331_v52 }
  0x39   : > { %v355_v62 = vmax.f32 %v1068_v14, %v332_v60  ;;  %v386_v63 = vsel %vm315_vm0, %v383_v28, %v385_v54  ;;  %v440_v0 = vsel %vm315_vm0, %v437_v31, %v439_v55  ;;  %v493_v1 = vsel %vm478_vm1, %v490_v32, %v492_v56  ;;  %v266_v14 = vld [vmem:[%s912_s20 + $0x48] sm:$0xff]  ;;  %v1146_v32 = vld [vmem:[%s927_s29 + $0x50] sm:$0xff] }
  0x3a   : > { %v848_v5 = vpack.c.bf16 %v661_v57, %v661_v57  ;;  %v575_v6 = vmax.f32 %v559_v59, %v384_v34  ;;  %v517_v7 = vmax.f32 %v462_v58, %v493_v1  ;;  %v535_v8 = vrot.slane %v1074_v20, 2  ;;  %v1136_v20 = vld [vmem:[%s922_s26 + $0x50] sm:$0xff]  ;;  %v303_v59 = vld [vmem:[%s927_s29 + $0x58] sm:$0x7] }
  0x3b   : > { %v409_v9 = vmax.f32 %v355_v62, %v386_v63  ;;  %v595_v4 = vrot.slane %v1089_v37, 2  ;;  %v638_v10 = vrot.slane %v1098_v44, 2  ;;  %v333_v11 = vrot.slane %v1112_v61, 1 }
  0x3c   : > { %718 = vst.msk [vmem:[%s1033_s7 + $0x10] sm:$0xf] %vm713_vm2, %v848_v5  ;;  %v619_v12 = vmax.f32 %v575_v6, %v594_v47  ;;  %v536_v13 = vsel %vm478_vm1, %v533_v35, %v535_v8  ;;  %v387_v15 = vrot.slane %v1122_v3, 1  ;;  %v441_v16 = vrot.slane %v1119_v2, 1 }
  0x3d   : > { %v463_v17 = vmax.f32 %v409_v9, %v440_v0  ;;  %v560_v18 = vmax.f32 %v517_v7, %v536_v13  ;;  %v596_v19 = vsel %vm478_vm1, %v593_v36, %v595_v4  ;;  %v639_v22 = vsel %vm478_vm1, %v636_v48, %v638_v10  ;;  %v291_v0 = vld [vmem:[%s922_s26 + $0x58] sm:$0x7] }
  0x3e   : > { %v662_v21 = vmax.f32 %v619_v12, %v637_v53  ;;  %v334_v23 = vsel %vm315_vm0, %v331_v52, %v333_v11  ;;  %v388_v24 = vsel %vm315_vm0, %v385_v54, %v387_v15  ;;  %v494_v27 = vrot.slane %v266_v14, 2  ;;  %v268_v54 = vld [vmem:[%s912_s20 + $0x58] sm:$0x7] }
  0x3f   : > { %v576_v25 = vmax.f32 %v560_v18, %v386_v63  ;;  %v356_v26 = vmax.f32 %v1098_v44, %v334_v23  ;;  %v537_v28 = vrot.slane %v1095_v43, 2  ;;  %v442_v30 = vsel %vm315_vm0, %v439_v55, %v441_v16 }
  0x40   : > { %v849_v29 = vpack.c.bf16 %v662_v21, %v662_v21  ;;  %v597_v31 = vrot.slane %v1112_v61, 2  ;;  %v335_v33 = vrot.slane %v1136_v20, 1  ;;  %v495_v36 = vsel %vm478_vm1, %v492_v56, %v494_v27 }
  0x41   : > { %v620_v34 = vmax.f32 %v576_v25, %v596_v19  ;;  %v410_v35 = vmax.f32 %v356_v26, %v388_v24  ;;  %v538_v37 = vsel %vm478_vm1, %v535_v8, %v537_v28  ;;  %v518_v40 = vmax.f32 %v463_v17, %v495_v36 }
  0x42   : > { %719 = vst.msk [vmem:[%s1033_s7 + $0x14] sm:$0xf] %vm713_vm2, %v849_v29  ;;  %v640_v41 = vrot.slane %v1122_v3, 2  ;;  %v336_v42 = vsel %vm315_vm0, %v333_v11, %v335_v33  ;;  %v358_v46 = vmax.f32 %v1146_v32, %v335_v33  ;;  %v389_v48 = vrot.slane %v1146_v32, 1 }
  0x43   : > { %v663_v43 = vmax.f32 %v620_v34, %v639_v22  ;;  %v464_v44 = vmax.f32 %v410_v35, %v442_v30  ;;  %v357_v45 = vmax.f32 %v1122_v3, %v336_v42  ;;  %v561_v47 = vmax.f32 %v518_v40, %v538_v37  ;;  %v727_v37 = vld [vmem:[%s1033_s7 + $0x28] sm:$0x1] }
  0x44   : > { %v443_v49 = vrot.slane %v279_v39, 1  ;;  %v496_v50 = vrot.slane %v267_v38, 2  ;;  %v598_v52 = vsel %vm478_vm1, %v595_v4, %v597_v31  ;;  %v539_v53 = vrot.slane %v1119_v2, 2 }
  0x45   : > { %v850_v51 = vpack.c.bf16 %v663_v43, %v663_v43  ;;  %v577_v55 = vmax.f32 %v561_v47, %v388_v24  ;;  %v641_v56 = vsel %vm478_vm1, %v638_v10, %v640_v41  ;;  %v390_v57 = vsel %vm315_vm0, %v387_v15, %v389_v48 }
  0x46   : > { %v444_v58 = vsel %vm315_vm0, %v441_v16, %v443_v49  ;;  %v411_v60 = vmax.f32 %v357_v45, %v390_v57  ;;  %v497_v61 = vsel %vm478_vm1, %v494_v27, %v496_v50  ;;  %v540_v62 = vsel %vm478_vm1, %v537_v28, %v539_v53 }
  0x47   : > { %720 = vst.msk [vmem:[%s1033_s7 + $0x18] sm:$0xf] %vm713_vm2, %v850_v51  ;;  %v599_v63 = vrot.slane %v1136_v20, 2  ;;  %v621_v1 = vmax.f32 %v577_v55, %v598_v52  ;;  %v412_v2 = vmax.f32 %v358_v46, %v389_v48  ;;  %v519_v3 = vmax.f32 %v464_v44, %v497_v61 }
  0x48   : > { %v498_v5 = vrot.slane %v268_v54, 2  ;;  %v465_v6 = vmax.f32 %v411_v60, %v444_v58  ;;  %v642_v7 = vrot.slane %v1146_v32, 2  ;;  %v541_v8 = vrot.slane %v279_v39, 2 }
  0x49   : > { %v566_v9 = vrot.slane %v303_v59, 1  ;;  %v664_v4 = vmax.f32 %v621_v1, %v641_v56  ;;  %v562_v10 = vmax.f32 %v519_v3, %v540_v62  ;;  %v601_v12 = vrot.slane %v291_v0, 2 }
  0x4a   : > { %v499_v11 = vsel %vm478_vm1, %v496_v50, %v498_v5  ;;  %v600_v13 = vsel %vm478_vm1, %v597_v31, %v599_v63  ;;  %v542_v15 = vsel %vm478_vm1, %v539_v53, %v541_v8  ;;  %v644_v16 = vrot.slane %v303_v59, 2 }
  0x4b   : > { %v520_v14 = vmax.f32 %v465_v6, %v499_v11  ;;  %v851_v17 = vpack.c.bf16 %v664_v4, %v664_v4  ;;  %v578_v18 = vmax.f32 %v562_v10, %v390_v57  ;;  %v567_v19 = vsel %vm315_vm0, %v389_v48, %v566_v9 }
  0x4c   : > { %v466_v20 = vmax.f32 %v412_v2, %v443_v49  ;;  %v643_v21 = vsel %vm478_vm1, %v640_v41, %v642_v7  ;;  %v602_v24 = vsel %vm478_vm1, %v599_v63, %v601_v12  ;;  %v645_v28 = vsel %vm478_vm1, %v642_v7, %v644_v16 }
  0x4d   : > { %v563_v22 = vmax.f32 %v520_v14, %v542_v15  ;;  %721 = vst.msk [vmem:[%s1033_s7 + $0x1c] sm:$0xf] %vm713_vm2, %v851_v17  ;;  %v622_v23 = vmax.f32 %v578_v18, %v600_v13 }
  0x4e   : > { %v521_v25 = vmax.f32 %v466_v20, %v498_v5 }
  0x4f   : > { %v579_v26 = vmax.f32 %v563_v22, %v567_v19  ;;  %v665_v27 = vmax.f32 %v622_v23, %v643_v21 }
  0x50   : > { %v564_v29 = vmax.f32 %v521_v25, %v541_v8 }
  0x51   : > { %v623_v30 = vmax.f32 %v579_v26, %v602_v24  ;;  %v852_v31 = vpack.c.bf16 %v665_v27, %v665_v27 }
  0x52   : > { %v580_v32 = vmax.f32 %v564_v29, %v566_v9 }
  0x53   : > { %v666_v33 = vmax.f32 %v623_v30, %v645_v28  ;;  %722 = vst.msk [vmem:[%s1033_s7 + $0x20] sm:$0xf] %vm713_vm2, %v852_v31 }
  0x54   : > { %v624_v34 = vmax.f32 %v580_v32, %v601_v12 }
  0x55   : > { %v853_v35 = vpack.c.bf16 %v666_v33, %v666_v33 }
  0x56   : > { %v667_v36 = vmax.f32 %v624_v34, %v644_v16 }
  0x57   : > { %723 = vst.msk [vmem:[%s1033_s7 + $0x24] sm:$0xf] %vm713_vm2, %v853_v35 }
  0x58   : > { %v854_v38 = vpack.c.bf16 %v667_v36, %v667_v36 }
  0x5a   : > { %v728_v39 = vsel %vm726_vm5, %v854_v38, %v727_v37 }
  0x5b   : > { %729 = vst [vmem:[%s1033_s7 + $0x28] sm:$0x1] %v728_v39 }
  0x5c PF: > { %s14_s15 = sadd.s32 1, %s871_s15  }
  0x5d   : > { %p11_p4 = scmp.ge.s32.totalorder %s14_s15, 4  }
  0x5f   :  { %13 = sbr.rel (!%p11_p4) target bundleno = 1 (0x1), region = 75 }

// kernel: _lambda_.9
= control target key start
LH: loop header
LB: loop body
LE: loop exit
PB: predicated region body
PF: predicated region fallthrough
CT: control target
= control target key end

     0   :  { %s7004_s24 = smov 0   ;;  %s9123_s0 = inlined_call_operand.vmem [shape: f32[2,307,3], index: 0, kind: input, shape index: {}]   ;;  %s9124_s1 = inlined_call_operand.vmem [shape: f32[2,307,3], index: 1, kind: input, shape index: {}]   ;;  %s9125_s2 = inlined_call_operand.vmem [shape: f32[2,307,3], index: 2, kind: input, shape index: {}]   ;;  %s9126_s3 = inlined_call_operand.vmem [shape: f32[2,307,3], index: 3, kind: input, shape index: {}]   ;;  %s9127_s4 = inlined_call_operand.vmem [shape: f32[9,3,8], index: 4, kind: input, shape index: {}]   ;;  %s9128_s5 = inlined_call_operand.vmem [shape: f32[1,8], index: 5, kind: input, shape index: {}]   ;;  %s9129_s6 = inlined_call_operand.vmem [shape: f32[1,8], index: 6, kind: input, shape index: {}]   ;;  %s9130_s7 = inlined_call_operand.vmem [shape: f32[2,289,8], index: 7, kind: output, shape index: {}]  }
   0x1 LB: > { %s4560_s25 = sadd.s32 4294967295, %s6960_s24   ;;  %p4564_p0 = scmp.ge.s32.totalorder %s6960_s24, 1  ;;  %s6960_s24 = sphi %s7004_s24, %s17_s24  }
   0x2   : > { %p267_p1 = scmp.lt.s32.totalorder %s6960_s24, 3 }
   0x4   : > { %p268_p2 = pnand %p4564_p0, %p267_p1 }
   0x5   : > { %v495_v0 = vld [vmem:[%s9127_s4 + $0x10] sm:$0x7] (!%p268_p2)  ;;  %vm686_vm0 = vcmask (!%p268_p2), 1042432   ;;  %v492_v1 = vld [vmem:[%s9127_s4 + $0x4] sm:$0x7] (!%p268_p2)  ;;  %v6962_v2 = vmov (!%p268_p2), 0.0  }
   0x6   : > { %271 = sbr.rel (%p268_p2) target bundleno = 907 (0x38b), region = 48  ;;  %5710 = vmatprep.subr.mxu0 (!%p268_p2), %v6962_v2  ;;  %5258 = vmatprep.subr.mxu1 (!%p268_p2), %v6962_v2  ;;  %p314_p3 = scmp.lt.s32.totalorder (!%p268_p2), %s4560_s25, 1  ;;  %vm6963_vm1 = vmmov (!%p268_p2), 0   ;;  %vm537_vm2 = vcmask (!%p268_p2), 1046528   ;;  %vm611_vm3 = vcmask (!%p268_p2), 23552   ;;  %vm2252_vm4 = vcmask (!%p268_p2), 1045504  }
   0x7   : > { %5711 = vmatpush3.msk.msra.mxu0 (!%p268_p2), %vm686_vm0, %v495_v0  ;;  %5259 = vmatpush3.msk.msra.mxu1 (!%p268_p2), %vm686_vm0, %v492_v1  ;;  %v496_v17 = vld [vmem:[%s9127_s4 + $0x14] sm:$0x7] (!%p268_p2)  ;;  %v491_v20 = vld [vmem:[%s9127_s4] sm:$0x7] (!%p268_p2)  ;;  %vm4430_vm5 = vcmask (!%p268_p2), 64512   ;;  %vm4467_vm6 = vcmask (!%p268_p2), 57344  }
   0x8   : > { %5260 = vmatprep.mubr.msk.f32.mxu1 (!%p268_p2), %vm6963_vm1, %v6962_v2  ;;  %5712 = vmatprep.mubr.msk.f32.mxu0 (!%p268_p2), %vm6963_vm1, %v6962_v2 }
   0x9   : > { %5823 = vmatprep.subr.mxu0 (!%p268_p2), %v6962_v2  ;;  %5371 = vmatprep.subr.mxu1 (!%p268_p2), %v6962_v2 }
   0xd   : > { %s9132_s25 = smov (!%p314_p3, %s4560_s25), 1 }
   0xe   : > { %s7031_s30 = smul.u32 312, %s9132_s25 }
   0xf   : > { %s6833_s17 = smul.u32 296, %s9132_s25 }
  0x10   : > { %s7037_s10 = scalar_lea.vmem %s9125_s2, %s7031_s30  ;;  %s7043_s13 = scalar_lea.vmem %s9123_s0, %s7031_s30 }
  0x11   : > { %v413_v3 = vld [vmem:[%s7037_s10] sm:$0xff]  ;;  %v414_v4 = vld [vmem:[%s7037_s10 + $0x8] sm:$0xff]  ;;  %v339_v5 = vld [vmem:[%s7043_s13 + $0x10] sm:$0xff]  ;;  %s7232_s20 = scalar_lea.vmem %s9124_s1, %s7031_s30  ;;  %s7441_s27 = scalar_lea.vmem %s9126_s3, %s7031_s30 }
  0x12   : > { %v538_v6 = vrot.slane %v413_v3, 1  ;;  %v539_v7 = vrot.slane %v414_v4, 1  ;;  %v340_v8 = vld [vmem:[%s7043_s13 + $0x18] sm:$0xff]  ;;  %v2253_v9 = vrot.slane %v339_v5, 2  ;;  %v415_v10 = vld [vmem:[%s7037_s10 + $0x10] sm:$0xff]  ;;  %v341_v11 = vld [vmem:[%s7043_s13 + $0x20] sm:$0xff]  ;;  %s8959_s22 = scalar_lea.vmem %s9130_s7, %s6833_s17 }
  0x13   : > { %v2254_v12 = vrot.slane %v340_v8, 2  ;;  %v541_v13 = vrot.slane %v415_v10, 1  ;;  %v2256_v14 = vrot.slane %v341_v11, 2  ;;  %v416_v15 = vld [vmem:[%s7037_s10 + $0x18] sm:$0xff]  ;;  %v342_v18 = vld [vmem:[%s7043_s13 + $0x28] sm:$0xff]  ;;  %v417_v25 = vld [vmem:[%s7037_s10 + $0x20] sm:$0xff] }
  0x14   : > { %v540_v16 = vsel %vm537_vm2, %v538_v6, %v539_v7  ;;  %v543_v22 = vrot.slane %v416_v15, 1  ;;  %v2258_v24 = vrot.slane %v342_v18, 2  ;;  %v343_v26 = vld [vmem:[%s7043_s13 + $0x30] sm:$0xff]  ;;  %v545_v28 = vrot.slane %v417_v25, 1  ;;  %v418_v31 = vld [vmem:[%s7037_s10 + $0x28] sm:$0xff]  ;;  %v344_v32 = vld [vmem:[%s7043_s13 + $0x38] sm:$0xff] }
  0x15   : > { %5261 = vmatmul.mubr.msk.f32.vlgmr.msra.gmra.mrb[0].mxu1 %vm611_vm3, %v540_v16  ;;  %v2255_v19 = vsel %vm2252_vm4, %v2253_v9, %v2254_v12  ;;  %v542_v21 = vsel %vm537_vm2, %v539_v7, %v541_v13  ;;  %v2257_v23 = vsel %vm2252_vm4, %v2254_v12, %v2256_v14  ;;  %v2260_v30 = vrot.slane %v343_v26, 2  ;;  %v419_v37 = vld [vmem:[%s7037_s10 + $0x30] sm:$0xff]  ;;  %v345_v38 = vld [vmem:[%s7043_s13 + $0x40] sm:$0xff]  ;;  %v420_v43 = vld [vmem:[%s7037_s10 + $0x38] sm:$0xff] }
  0x16   : > { %5713 = vmatmul.mubr.msk.f32.vlgmr.msra.gmra.mrb[0].mxu0 %vm611_vm3, %v2255_v19  ;;  %5263 = vmatprep.mubr.msk.f32.mxu1 %vm6963_vm1, %v6962_v2  ;;  %v544_v27 = vsel %vm537_vm2, %v541_v13, %v543_v22  ;;  %v2259_v29 = vsel %vm2252_vm4, %v2256_v14, %v2258_v24  ;;  %v546_v33 = vsel %vm537_vm2, %v543_v22, %v545_v28  ;;  %v547_v34 = vrot.slane %v418_v31, 1  ;;  %v346_v44 = vld [vmem:[%s7043_s13 + $0x48] sm:$0xff]  ;;  %v421_v49 = vld [vmem:[%s7037_s10 + $0x40] sm:$0xff]  ;;  %v347_v50 = vld [vmem:[%s7043_s13 + $0x50] sm:$0xff] }
  0x17   : > { %5824 = vmatpush3.msk.msra.mxu0 %vm686_vm0, %v496_v17  ;;  %5715 = vmatprep.mubr.msk.f32.mxu0 %vm6963_vm1, %v6962_v2  ;;  %v2261_v35 = vsel %vm2252_vm4, %v2258_v24, %v2260_v30  ;;  %v2262_v36 = vrot.slane %v344_v32, 2  ;;  %v549_v40 = vrot.slane %v419_v37, 1  ;;  %v2264_v42 = vrot.slane %v345_v38, 2  ;;  %v422_v55 = vld [vmem:[%s7037_s10 + $0x48] sm:$0xff]  ;;  %v348_v56 = vld [vmem:[%s7043_s13 + $0x58] sm:$0xff]  ;;  %v423_v61 = vld [vmem:[%s7037_s10 + $0x50] sm:$0xff] }
  0x18   : > { %5372 = vmatpush3.msk.msra.mxu1 %vm686_vm0, %v491_v20  ;;  %5936 = vmatprep.subr.mxu0 %v6962_v2  ;;  %v548_v39 = vsel %vm537_vm2, %v545_v28, %v547_v34  ;;  %v551_v46 = vrot.slane %v420_v43, 1  ;;  %v2266_v48 = vrot.slane %v346_v44, 2  ;;  %v553_v52 = vrot.slane %v421_v49, 1  ;;  %v349_v62 = vld [vmem:[%s7043_s13 + $0x60] sm:$0xff]  ;;  %v424_v4 = vld [vmem:[%s7037_s10 + $0x58] sm:$0xff]  ;;  %v350_v5 = vld [vmem:[%s7043_s13 + $0x68] sm:$0xff] }
  0x19   : > { %5264 = vmatmul.mubr.msk.f32.gmra.mrb[2].mxu1 %vm611_vm3, %v542_v21  ;;  %5484 = vmatprep.subr.mxu1 %v6962_v2  ;;  %v2263_v41 = vsel %vm2252_vm4, %v2260_v30, %v2262_v36  ;;  %v550_v45 = vsel %vm537_vm2, %v547_v34, %v549_v40  ;;  %v2265_v47 = vsel %vm2252_vm4, %v2262_v36, %v2264_v42  ;;  %v2268_v54 = vrot.slane %v347_v50, 2  ;;  %v425_v10 = vld [vmem:[%s7037_s10 + $0x60] sm:$0xff]  ;;  %v351_v11 = vld [vmem:[%s7043_s13 + $0x70] sm:$0xff]  ;;  %v426_v16 = vld [vmem:[%s7037_s10 + $0x68] sm:$0xff] }
  0x1a   : > { %5716 = vmatmul.mubr.msk.f32.gmra.mrb[2].mxu0 %vm611_vm3, %v2257_v23  ;;  %5266 = vmatprep.mubr.msk.f32.mxu1 %vm6963_vm1, %v6962_v2  ;;  %v552_v51 = vsel %vm537_vm2, %v549_v40, %v551_v46  ;;  %v2267_v53 = vsel %vm2252_vm4, %v2264_v42, %v2266_v48  ;;  %v554_v57 = vsel %vm537_vm2, %v551_v46, %v553_v52  ;;  %v555_v58 = vrot.slane %v422_v55, 1  ;;  %v352_v17 = vld [vmem:[%s7043_s13 + $0x78] sm:$0xff]  ;;  %v427_v22 = vld [vmem:[%s7037_s10 + $0x70] sm:$0xff]  ;;  %v353_v23 = vld [vmem:[%s7043_s13 + $0x80] sm:$0xff] }
  0x1b   : > { %5718 = vmatprep.mubr.msk.f32.mxu0 %vm6963_vm1, %v6962_v2  ;;  %v2269_v59 = vsel %vm2252_vm4, %v2266_v48, %v2268_v54  ;;  %v2270_v60 = vrot.slane %v348_v56, 2  ;;  %v557_v0 = vrot.slane %v423_v61, 1  ;;  %v2272_v3 = vrot.slane %v349_v62, 2  ;;  %v428_v28 = vld [vmem:[%s7037_s10 + $0x78] sm:$0xff]  ;;  %v429_v34 = vld [vmem:[%s7037_s10 + $0x80] sm:$0xff]  ;;  %v430_v40 = vld [vmem:[%s7037_s10 + $0x88] sm:$0xff] }
  0x1c   : > { %v556_v63 = vsel %vm537_vm2, %v553_v52, %v555_v58  ;;  %v559_v7 = vrot.slane %v424_v4, 1  ;;  %v2274_v9 = vrot.slane %v350_v5, 2  ;;  %v561_v13 = vrot.slane %v425_v10, 1  ;;  %v431_v46 = vld [vmem:[%s7037_s10 + $0x90] sm:$0xff]  ;;  %v432_v52 = vld [vmem:[%s7037_s10 + $0x98] sm:$0xff]  ;;  %v378_v4 = vld [vmem:[%s7232_s20 + $0x20] sm:$0xff] }
  0x1d   : > { %5267 = vmatmul.mubr.msk.f32.gmra.mrb[4].mxu1 %vm611_vm3, %v544_v27  ;;  %v2271_v1 = vsel %vm2252_vm4, %v2268_v54, %v2270_v60  ;;  %v558_v6 = vsel %vm537_vm2, %v555_v58, %v557_v0  ;;  %v2273_v8 = vsel %vm2252_vm4, %v2270_v60, %v2272_v3  ;;  %v2276_v15 = vrot.slane %v351_v11, 2  ;;  %v433_v58 = vld [vmem:[%s7037_s10 + $0xa0] sm:$0xff]  ;;  %v377_v60 = vld [vmem:[%s7232_s20 + $0x18] sm:$0xff]  ;;  %v379_v11 = vld [vmem:[%s7232_s20 + $0x28] sm:$0xff] }
  0x1e   : > { %5719 = vmatmul.mubr.msk.f32.gmra.mrb[4].mxu0 %vm611_vm3, %v2259_v29  ;;  %5269 = vmatprep.mubr.msk.f32.mxu1 %vm6963_vm1, %v6962_v2  ;;  %v560_v12 = vsel %vm537_vm2, %v557_v0, %v559_v7  ;;  %v2275_v14 = vsel %vm2252_vm4, %v2272_v3, %v2274_v9  ;;  %v562_v18 = vsel %vm537_vm2, %v559_v7, %v561_v13  ;;  %v563_v19 = vrot.slane %v426_v16, 1  ;;  %v354_v29 = vld [vmem:[%s7043_s13 + $0x88] sm:$0xff]  ;;  %v497_v10 = vld [vmem:[%s9127_s4 + $0x18] sm:$0x7] }
  0x1f   : > { %5721 = vmatprep.mubr.msk.f32.mxu0 %vm6963_vm1, %v6962_v2  ;;  %v2277_v20 = vsel %vm2252_vm4, %v2274_v9, %v2276_v15  ;;  %v2278_v21 = vrot.slane %v352_v17, 2  ;;  %v565_v25 = vrot.slane %v427_v22, 1  ;;  %v2280_v27 = vrot.slane %v353_v23, 2  ;;  %v434_v3 = vld [vmem:[%s7037_s10 + $0xa8] sm:$0xff]  ;;  %v435_v9 = vld [vmem:[%s7037_s10 + $0xb0] sm:$0xff]  ;;  %v436_v16 = vld [vmem:[%s7037_s10 + $0xb8] sm:$0xff] }
  0x20   : > { %v564_v24 = vsel %vm537_vm2, %v561_v13, %v563_v19  ;;  %v567_v31 = vrot.slane %v428_v28, 1  ;;  %v569_v37 = vrot.slane %v429_v34, 1  ;;  %v571_v43 = vrot.slane %v430_v40, 1  ;;  %v380_v17 = vld [vmem:[%s7232_s20 + $0x30] sm:$0xff]  ;;  %v437_v22 = vld [vmem:[%s7037_s10 + $0xc0] sm:$0xff]  ;;  %v381_v23 = vld [vmem:[%s7232_s20 + $0x38] sm:$0xff] }
  0x21   : > { %5270 = vmatmul.mubr.msk.f32.gmra.mrb[6].mxu1 %vm611_vm3, %v546_v33  ;;  %v2279_v26 = vsel %vm2252_vm4, %v2276_v15, %v2278_v21  ;;  %v566_v30 = vsel %vm537_vm2, %v563_v19, %v565_v25  ;;  %v2281_v32 = vsel %vm2252_vm4, %v2278_v21, %v2280_v27  ;;  %v2282_v33 = vrot.slane %v354_v29, 2  ;;  %v438_v28 = vld [vmem:[%s7037_s10 + $0xc8] sm:$0xff]  ;;  %v382_v29 = vld [vmem:[%s7232_s20 + $0x40] sm:$0xff]  ;;  %v439_v34 = vld [vmem:[%s7037_s10 + $0xd0] sm:$0xff] }
  0x22   : > { %5722 = vmatmul.mubr.msk.f32.gmra.mrb[6].mxu0 %vm611_vm3, %v2261_v35  ;;  %5272 = vmatprep.mubr.msk.f32.mxu1 %vm6963_vm1, %v6962_v2  ;;  %v355_v35 = vld [vmem:[%s7043_s13 + $0x90] sm:$0xff]  ;;  %v568_v36 = vsel %vm537_vm2, %v565_v25, %v567_v31  ;;  %v570_v42 = vsel %vm537_vm2, %v567_v31, %v569_v37  ;;  %v572_v48 = vsel %vm537_vm2, %v569_v37, %v571_v43  ;;  %v573_v49 = vrot.slane %v431_v46, 1  ;;  %v440_v40 = vld [vmem:[%s7037_s10 + $0xd8] sm:$0xff]  ;;  %v441_v46 = vld [vmem:[%s7037_s10 + $0xe0] sm:$0xff] }
  0x23   : > { %5724 = vmatprep.mubr.msk.f32.mxu0 %vm6963_vm1, %v6962_v2  ;;  %v2283_v38 = vsel %vm2252_vm4, %v2280_v27, %v2282_v33  ;;  %v575_v55 = vrot.slane %v432_v52, 1  ;;  %v577_v62 = vrot.slane %v433_v58, 1  ;;  %v581_v13 = vrot.slane %v435_v9, 1  ;;  %v442_v52 = vld [vmem:[%s7037_s10 + $0xe8] sm:$0xff]  ;;  %v445_v9 = vld [vmem:[%s7037_s10 + $0x100] sm:$0xff] }
  0x24   : > { %v574_v54 = vsel %vm537_vm2, %v571_v43, %v573_v49  ;;  %v2695_v15 = vrot.slane %v379_v11, 2  ;;  %v583_v19 = vrot.slane %v436_v16, 1  ;;  %v2697_v21 = vrot.slane %v380_v17, 2  ;;  %v390_v16 = vld [vmem:[%s7232_s20 + $0x80] sm:$0xff] }
  0x25   : > { %5273 = vmatmul.mubr.msk.f32.gmra.mrb[8].mxu1 %vm611_vm3, %v548_v39  ;;  %v2284_v39 = vrot.slane %v355_v35, 2  ;;  %v576_v61 = vsel %vm537_vm2, %v573_v49, %v575_v55  ;;  %v578_v5 = vsel %vm537_vm2, %v575_v55, %v577_v62  ;;  %v585_v25 = vrot.slane %v437_v22, 1  ;;  %v383_v35 = vld [vmem:[%s7232_s20 + $0x48] sm:$0xff] }
  0x26   : > { %5725 = vmatmul.mubr.msk.f32.gmra.mrb[8].mxu0 %vm611_vm3, %v2263_v41  ;;  %5275 = vmatprep.mubr.msk.f32.mxu1 %vm6963_vm1, %v6962_v2  ;;  %v356_v41 = vld [vmem:[%s7043_s13 + $0x98] sm:$0xff]  ;;  %v2699_v27 = vrot.slane %v381_v23, 2  ;;  %v587_v31 = vrot.slane %v438_v28, 1  ;;  %v589_v37 = vrot.slane %v439_v34, 1  ;;  %v591_v43 = vrot.slane %v440_v40, 1  ;;  %v391_v22 = vld [vmem:[%s7232_s20 + $0x88] sm:$0xff] }
  0x27   : > { %5727 = vmatprep.mubr.msk.f32.mxu0 %vm6963_vm1, %v6962_v2  ;;  %v2285_v44 = vsel %vm2252_vm4, %v2282_v33, %v2284_v39  ;;  %v2701_v33 = vrot.slane %v382_v29, 2  ;;  %v593_v49 = vrot.slane %v441_v46, 1  ;;  %v392_v28 = vld [vmem:[%s7232_s20 + $0x90] sm:$0xff]  ;;  %v393_v34 = vld [vmem:[%s7232_s20 + $0x98] sm:$0xff] }
  0x28   : > { %v396_v46 = vld [vmem:[%s7232_s20 + $0xb0] sm:$0xff] }
  0x29   : > { %5276 = vmatmul.mubr.msk.f32.gmra.mrb[10].mxu1 %vm611_vm3, %v550_v45  ;;  %v2286_v45 = vrot.slane %v356_v41, 2  ;;  %v384_v41 = vld [vmem:[%s7232_s20 + $0x50] sm:$0xff]  ;;  %v594_v55 = vsel %vm537_vm2, %v591_v43, %v593_v49 }
  0x2a   : > { %5728 = vmatmul.mubr.msk.f32.gmra.mrb[10].mxu0 %vm611_vm3, %v2265_v47  ;;  %5278 = vmatprep.mubr.msk.f32.mxu1 %vm6963_vm1, %v6962_v2  ;;  %v357_v47 = vld [vmem:[%s7043_s13 + $0xa0] sm:$0xff] }
  0x2b   : > { %5730 = vmatprep.mubr.msk.f32.mxu0 %vm6963_vm1, %v6962_v2  ;;  %v2287_v50 = vsel %vm2252_vm4, %v2284_v39, %v2286_v45  ;;  %v2703_v39 = vrot.slane %v383_v35, 2 }
  0x2d   : > { %5279 = vmatmul.mubr.msk.f32.gmra.mrb[12].mxu1 %vm611_vm3, %v552_v51  ;;  %v2288_v51 = vrot.slane %v357_v47, 2  ;;  %v385_v47 = vld [vmem:[%s7232_s20 + $0x58] sm:$0xff] }
  0x2e   : > { %5731 = vmatmul.mubr.msk.f32.gmra.mrb[12].mxu0 %vm611_vm3, %v2267_v53  ;;  %5281 = vmatprep.mubr.msk.f32.mxu1 %vm6963_vm1, %v6962_v2  ;;  %v7225_v53 = vld [vmem:[%s7043_s13 + $0xa8] sm:$0xff] }
  0x2f   : > { %5733 = vmatprep.mubr.msk.f32.mxu0 %vm6963_vm1, %v6962_v2  ;;  %v2289_v56 = vsel %vm2252_vm4, %v2286_v45, %v2288_v51  ;;  %v2705_v45 = vrot.slane %v384_v41, 2 }
  0x31   : > { %5282 = vmatmul.mubr.msk.f32.gmra.mrb[14].mxu1 %vm611_vm3, %v554_v57  ;;  %v2290_v57 = vrot.slane %v7225_v53, 2 }
  0x32   : > { %5734 = vmatmul.mubr.msk.f32.gmra.mrb[14].mxu0 %vm611_vm3, %v2269_v59  ;;  %5284 = vmatprep.mubr.msk.f32.mxu1 %vm6963_vm1, %v6962_v2  ;;  %v376_v59 = vld [vmem:[%s7232_s20 + $0x10] sm:$0xff] }
  0x33   : > { %5736 = vmatprep.mubr.msk.f32.mxu0 %vm6963_vm1, %v6962_v2  ;;  %v2690_v0 = vrot.slane %v376_v59, 2 }
  0x35   : > { %5285 = vmatmul.mubr.msk.f32.gmra.mrb[16].mxu1 %vm611_vm3, %v556_v63  ;;  %v2291_v63 = vsel %vm2252_vm4, %v2288_v51, %v2290_v57  ;;  %v2707_v51 = vrot.slane %v385_v47, 2  ;;  %v7449_v47 = vld [vmem:[%s7441_s27] sm:$0xff] }
  0x36   : > { %5737 = vmatmul.mubr.msk.f32.gmra.mrb[16].mxu0 %vm611_vm3, %v2271_v1  ;;  %5287 = vmatprep.mubr.msk.f32.mxu1 %vm6963_vm1, %v6962_v2  ;;  %v2691_v1 = vrot.slane %v377_v60, 2  ;;  %v443_v60 = vld [vmem:[%s7037_s10 + $0xf0] sm:$0xff] }
  0x37   : > { %5739 = vmatprep.mubr.msk.f32.mxu0 %vm6963_vm1, %v6962_v2  ;;  %v2708_v58 = vsel %vm2252_vm4, %v2705_v45, %v2707_v51 }
  0x38   : > { %v2692_v7 = vsel %vm2252_vm4, %v2690_v0, %v2691_v1 }
  0x39   : > { %5288 = vmatmul.mubr.msk.f32.gmra.mrb[18].mxu1 %vm611_vm3, %v558_v6  ;;  %v579_v6 = vrot.slane %v434_v3, 1  ;;  %v444_v3 = vld [vmem:[%s7037_s10 + $0xf8] sm:$0xff] }
  0x3a   : > { %5740 = vmatmul.mubr.msk.f32.gmra.mrb[18].mxu0 %vm611_vm3, %v2273_v8  ;;  %5290 = vmatprep.mubr.msk.f32.mxu1 %vm6963_vm1, %v6962_v2  ;;  %v2693_v8 = vrot.slane %v378_v4, 2  ;;  %v388_v4 = vld [vmem:[%s7232_s20 + $0x70] sm:$0xff] }
  0x3b   : > { %5742 = vmatprep.mubr.msk.f32.mxu0 %vm6963_vm1, %v6962_v2 }
  0x3d   : > { %5291 = vmatmul.mubr.msk.f32.gmra.mrb[20].mxu1 %vm611_vm3, %v560_v12  ;;  %v580_v12 = vsel %vm537_vm2, %v577_v62, %v579_v6 }
  0x3e   : > { %5743 = vmatmul.mubr.msk.f32.gmra.mrb[20].mxu0 %vm611_vm3, %v2275_v14  ;;  %5293 = vmatprep.mubr.msk.f32.mxu1 %vm6963_vm1, %v6962_v2  ;;  %v2694_v14 = vsel %vm2252_vm4, %v2691_v1, %v2693_v8 }
  0x3f   : > { %5745 = vmatprep.mubr.msk.f32.mxu0 %vm6963_vm1, %v6962_v2 }
  0x41   : > { %5294 = vmatmul.mubr.msk.f32.gmra.mrb[22].mxu1 %vm611_vm3, %v562_v18  ;;  %v582_v18 = vsel %vm537_vm2, %v579_v6, %v581_v13  ;;  %v599_v6 = vrot.slane %v444_v3, 1  ;;  %v7502_v3 = vld [vmem:[%s7441_s27 + $0x20] sm:$0xff] }
  0x42   : > { %5746 = vmatmul.mubr.msk.f32.gmra.mrb[22].mxu0 %vm611_vm3, %v2277_v20  ;;  %5296 = vmatprep.mubr.msk.f32.mxu1 %vm6963_vm1, %v6962_v2  ;;  %v2696_v20 = vsel %vm2252_vm4, %v2693_v8, %v2695_v15  ;;  %v2713_v8 = vrot.slane %v388_v4, 2 }
  0x43   : > { %5748 = vmatprep.mubr.msk.f32.mxu0 %vm6963_vm1, %v6962_v2 }
  0x45   : > { %5297 = vmatmul.mubr.msk.f32.gmra.mrb[24].mxu1 %vm611_vm3, %v564_v24  ;;  %v584_v24 = vsel %vm537_vm2, %v581_v13, %v583_v19 }
  0x46   : > { %5749 = vmatmul.mubr.msk.f32.gmra.mrb[24].mxu0 %vm611_vm3, %v2279_v26  ;;  %5299 = vmatprep.mubr.msk.f32.mxu1 %vm6963_vm1, %v6962_v2  ;;  %v2698_v26 = vsel %vm2252_vm4, %v2695_v15, %v2697_v21  ;;  %v446_v15 = vld [vmem:[%s7037_s10 + $0x108] sm:$0xff] }
  0x47   : > { %5751 = vmatprep.mubr.msk.f32.mxu0 %vm6963_vm1, %v6962_v2 }
  0x49   : > { %5300 = vmatmul.mubr.msk.f32.gmra.mrb[26].mxu1 %vm611_vm3, %v566_v30  ;;  %v586_v30 = vsel %vm537_vm2, %v583_v19, %v585_v25 }
  0x4a   : > { %5752 = vmatmul.mubr.msk.f32.gmra.mrb[26].mxu0 %vm611_vm3, %v2281_v32  ;;  %5302 = vmatprep.mubr.msk.f32.mxu1 %vm6963_vm1, %v6962_v2  ;;  %v2700_v32 = vsel %vm2252_vm4, %v2697_v21, %v2699_v27  ;;  %v447_v21 = vld [vmem:[%s7037_s10 + $0x110] sm:$0xff] }
  0x4b   : > { %5754 = vmatprep.mubr.msk.f32.mxu0 %vm6963_vm1, %v6962_v2 }
  0x4d   : > { %5303 = vmatmul.mubr.msk.f32.gmra.mrb[28].mxu1 %vm611_vm3, %v568_v36  ;;  %v588_v36 = vsel %vm537_vm2, %v585_v25, %v587_v31 }
  0x4e   : > { %5755 = vmatmul.mubr.msk.f32.gmra.mrb[28].mxu0 %vm611_vm3, %v2283_v38  ;;  %5305 = vmatprep.mubr.msk.f32.mxu1 %vm6963_vm1, %v6962_v2  ;;  %v2702_v38 = vsel %vm2252_vm4, %v2699_v27, %v2701_v33  ;;  %v448_v27 = vld [vmem:[%s7037_s10 + $0x118] sm:$0xff] }
  0x4f   : > { %5757 = vmatprep.mubr.msk.f32.mxu0 %vm6963_vm1, %v6962_v2 }
  0x51   : > { %5306 = vmatmul.mubr.msk.f32.gmra.mrb[30].mxu1 %vm611_vm3, %v570_v42  ;;  %v590_v42 = vsel %vm537_vm2, %v587_v31, %v589_v37 }
  0x52   : > { %5758 = vmatmul.mubr.msk.f32.gmra.mrb[30].mxu0 %vm611_vm3, %v2285_v44  ;;  %5308 = vmatprep.mubr.msk.f32.mxu1 %vm6963_vm1, %v6962_v2  ;;  %v2704_v44 = vsel %vm2252_vm4, %v2701_v33, %v2703_v39  ;;  %v449_v33 = vld [vmem:[%s7037_s10 + $0x120] sm:$0xff] }
  0x53   : > { %5760 = vmatprep.mubr.msk.f32.mxu0 %vm6963_vm1, %v6962_v2 }
  0x55   : > { %5309 = vmatmul.mubr.msk.f32.gmra.mrb[32].mxu1 %vm611_vm3, %v572_v48  ;;  %v592_v48 = vsel %vm537_vm2, %v589_v37, %v591_v43  ;;  %v395_v43 = vld [vmem:[%s7232_s20 + $0xa8] sm:$0xff] }
  0x56   : > { %5761 = vmatmul.mubr.msk.f32.gmra.mrb[32].mxu0 %vm611_vm3, %v2287_v50  ;;  %5311 = vmatprep.mubr.msk.f32.mxu1 %vm6963_vm1, %v6962_v2  ;;  %v2706_v50 = vsel %vm2252_vm4, %v2703_v39, %v2705_v45  ;;  %v394_v39 = vld [vmem:[%s7232_s20 + $0xa0] sm:$0xff]  ;;  %v2727_v45 = vrot.slane %v395_v43, 2  ;;  %v7622_v43 = vld [vmem:[%s7441_s27 + $0x70] sm:$0xff] }
  0x57   : > { %5763 = vmatprep.mubr.msk.f32.mxu0 %vm6963_vm1, %v6962_v2 }
  0x59   : > { %5312 = vmatmul.mubr.msk.f32.gmra.mrb[34].mxu1 %vm611_vm3, %v574_v54  ;;  %v386_v54 = vld [vmem:[%s7232_s20 + $0x60] sm:$0xff] }
  0x5a   : > { %5764 = vmatmul.mubr.msk.f32.gmra.mrb[34].mxu0 %vm611_vm3, %v2289_v56  ;;  %5314 = vmatprep.mubr.msk.f32.mxu1 %vm6963_vm1, %v6962_v2  ;;  %v595_v56 = vrot.slane %v442_v52, 1  ;;  %v2709_v59 = vrot.slane %v386_v54, 2  ;;  %v7464_v52 = vld [vmem:[%s7441_s27 + $0x8] sm:$0xff] }
  0x5b   : > { %5766 = vmatprep.mubr.msk.f32.mxu0 %vm6963_vm1, %v6962_v2 }
  0x5c   : > { %v596_v62 = vsel %vm537_vm2, %v593_v49, %v595_v56  ;;  %v2710_v0 = vsel %vm2252_vm4, %v2707_v51, %v2709_v59  ;;  %v2729_v49 = vrot.slane %v396_v46, 2  ;;  %v397_v51 = vld [vmem:[%s7232_s20 + $0xb8] sm:$0xff]  ;;  %v411_v46 = vld [vmem:[%s7232_s20 + $0x128] sm:$0xff] }
  0x5d   : > { %5315 = vmatmul.mubr.msk.f32.gmra.mrb[36].mxu1 %vm611_vm3, %v576_v61  ;;  %v387_v61 = vld [vmem:[%s7232_s20 + $0x68] sm:$0xff] }
  0x5e   : > { %5767 = vmatmul.mubr.msk.f32.gmra.mrb[36].mxu0 %vm611_vm3, %v2291_v63  ;;  %5317 = vmatprep.mubr.msk.f32.mxu1 %vm6963_vm1, %v6962_v2  ;;  %v597_v63 = vrot.slane %v443_v60, 1  ;;  %v2711_v1 = vrot.slane %v387_v61, 2  ;;  %v2730_v54 = vsel %vm2252_vm4, %v2727_v45, %v2729_v49  ;;  %v399_v61 = vld [vmem:[%s7232_s20 + $0xc8] sm:$0xff] }
  0x5f   : > { %5825 = vmatprep.mubr.msk.f32.mxu0 %vm6963_vm1, %v6962_v2 }
  0x60   : > { %v600_v11 = vsel %vm537_vm2, %v597_v63, %v599_v6  ;;  %v2714_v13 = vsel %vm2252_vm4, %v2711_v1, %v2713_v8 }
  0x61   : > { %5318 = vmatmul.mubr.msk.f32.gmra.mrb[38].mxu1 %vm611_vm3, %v578_v5  ;;  %v598_v5 = vsel %vm537_vm2, %v595_v56, %v597_v63  ;;  %v398_v56 = vld [vmem:[%s7232_s20 + $0xc0] sm:$0xff] }
  0x62   : > { %5826 = vmatmul.mubr.msk.f32.vlgmr.msra.gmra.mrb[0].mxu0 %vm611_vm3, %v2692_v7  ;;  %5320 = vmatprep.mubr.msk.f32.mxu1 %vm6963_vm1, %v6962_v2  ;;  %v2712_v7 = vsel %vm2252_vm4, %v2709_v59, %v2711_v1  ;;  %v2733_v60 = vrot.slane %v398_v56, 2  ;;  %v400_v1 = vld [vmem:[%s7232_s20 + $0xd0] sm:$0xff] }
  0x63   : > { %5937 = vmatpush3.msk.msra.mxu0 %vm686_vm0, %v497_v10  ;;  %5828 = vmatprep.mubr.msk.f32.mxu0 %vm6963_vm1, %v6962_v2  ;;  %v389_v10 = vld [vmem:[%s7232_s20 + $0x78] sm:$0xff] }
  0x64   : > { %6049 = vmatprep.subr.mxu0 %v6962_v2 }
  0x65   : > { %5321 = vmatmul.mubr.msk.f32.gmra.mrb[40].mxu1 %vm611_vm3, %v580_v12  ;;  %v601_v12 = vrot.slane %v445_v9, 1 }
  0x66   : > { %5829 = vmatmul.mubr.msk.f32.gmra.mrb[2].mxu0 %vm611_vm3, %v2694_v14  ;;  %5323 = vmatprep.mubr.msk.f32.mxu1 %vm6963_vm1, %v6962_v2  ;;  %v2715_v14 = vrot.slane %v389_v10, 2  ;;  %v402_v10 = vld [vmem:[%s7232_s20 + $0xe0] sm:$0xff] }
  0x67   : > { %5831 = vmatprep.mubr.msk.f32.mxu0 %vm6963_vm1, %v6962_v2  ;;  %v602_v17 = vsel %vm537_vm2, %v599_v6, %v601_v12  ;;  %v401_v6 = vld [vmem:[%s7232_s20 + $0xd8] sm:$0xff] }
  0x68   : > { %v2716_v19 = vsel %vm2252_vm4, %v2713_v8, %v2715_v14  ;;  %v2739_v9 = vrot.slane %v401_v6, 2 }
  0x69   : > { %5324 = vmatmul.mubr.msk.f32.gmra.mrb[42].mxu1 %vm611_vm3, %v582_v18  ;;  %v603_v18 = vrot.slane %v446_v15, 1  ;;  %v7538_v15 = vld [vmem:[%s7441_s27 + $0x38] sm:$0xff] }
  0x6a   : > { %5832 = vmatmul.mubr.msk.f32.gmra.mrb[4].mxu0 %vm611_vm3, %v2696_v20  ;;  %5326 = vmatprep.mubr.msk.f32.mxu1 %vm6963_vm1, %v6962_v2  ;;  %v2717_v20 = vrot.slane %v390_v16, 2 }
  0x6b   : > { %5834 = vmatprep.mubr.msk.f32.mxu0 %vm6963_vm1, %v6962_v2  ;;  %v604_v23 = vsel %vm537_vm2, %v601_v12, %v603_v18 }
  0x6c   : > { %v2718_v25 = vsel %vm2252_vm4, %v2715_v14, %v2717_v20  ;;  %v403_v14 = vld [vmem:[%s7232_s20 + $0xe8] sm:$0xff] }
  0x6d   : > { %5327 = vmatmul.mubr.msk.f32.gmra.mrb[44].mxu1 %vm611_vm3, %v584_v24  ;;  %v605_v24 = vrot.slane %v447_v21, 1 }
  0x6e   : > { %5835 = vmatmul.mubr.msk.f32.gmra.mrb[6].mxu0 %vm611_vm3, %v2698_v26  ;;  %5329 = vmatprep.mubr.msk.f32.mxu1 %vm6963_vm1, %v6962_v2  ;;  %v2719_v26 = vrot.slane %v391_v22, 2  ;;  %v405_v22 = vld [vmem:[%s7232_s20 + $0xf8] sm:$0xff] }
  0x6f   : > { %5837 = vmatprep.mubr.msk.f32.mxu0 %vm6963_vm1, %v6962_v2  ;;  %v606_v29 = vsel %vm537_vm2, %v603_v18, %v605_v24  ;;  %v404_v18 = vld [vmem:[%s7232_s20 + $0xf0] sm:$0xff] }
  0x70   : > { %v2720_v31 = vsel %vm2252_vm4, %v2717_v20, %v2719_v26  ;;  %v2745_v21 = vrot.slane %v404_v18, 2 }
  0x71   : > { %5330 = vmatmul.mubr.msk.f32.gmra.mrb[46].mxu1 %vm611_vm3, %v586_v30  ;;  %v607_v30 = vrot.slane %v448_v27, 1  ;;  %v7574_v27 = vld [vmem:[%s7441_s27 + $0x50] sm:$0xff] }
  0x72   : > { %5838 = vmatmul.mubr.msk.f32.gmra.mrb[8].mxu0 %vm611_vm3, %v2700_v32  ;;  %5332 = vmatprep.mubr.msk.f32.mxu1 %vm6963_vm1, %v6962_v2  ;;  %v2721_v32 = vrot.slane %v392_v28, 2 }
  0x73   : > { %5840 = vmatprep.mubr.msk.f32.mxu0 %vm6963_vm1, %v6962_v2  ;;  %v608_v35 = vsel %vm537_vm2, %v605_v24, %v607_v30 }
  0x74   : > { %v2722_v37 = vsel %vm2252_vm4, %v2719_v26, %v2721_v32  ;;  %v406_v26 = vld [vmem:[%s7232_s20 + $0x100] sm:$0xff] }
  0x75   : > { %5333 = vmatmul.mubr.msk.f32.gmra.mrb[48].mxu1 %vm611_vm3, %v588_v36  ;;  %v609_v36 = vrot.slane %v449_v33, 1 }
  0x76   : > { %5841 = vmatmul.mubr.msk.f32.gmra.mrb[10].mxu0 %vm611_vm3, %v2702_v38  ;;  %5335 = vmatprep.mubr.msk.f32.mxu1 %vm6963_vm1, %v6962_v2  ;;  %v2723_v38 = vrot.slane %v393_v34, 2  ;;  %v408_v34 = vld [vmem:[%s7232_s20 + $0x110] sm:$0xff] }
  0x77   : > { %5843 = vmatprep.mubr.msk.f32.mxu0 %vm6963_vm1, %v6962_v2  ;;  %v610_v40 = vsel %vm537_vm2, %v607_v30, %v609_v36  ;;  %v407_v30 = vld [vmem:[%s7232_s20 + $0x108] sm:$0xff] }
  0x78   : > { %v2724_v41 = vsel %vm2252_vm4, %v2721_v32, %v2723_v38  ;;  %v2751_v33 = vrot.slane %v407_v30, 2 }
  0x79   : > { %5336 = vmatmul.mubr.msk.f32.gmra.mrb[50].mxu1 %vm611_vm3, %v590_v42  ;;  %v2725_v42 = vrot.slane %v394_v39, 2  ;;  %v7610_v39 = vld [vmem:[%s7441_s27 + $0x68] sm:$0xff] }
  0x7a   : > { %5844 = vmatmul.mubr.msk.f32.gmra.mrb[12].mxu0 %vm611_vm3, %v2704_v44  ;;  %5338 = vmatprep.mubr.msk.f32.mxu1 %vm6963_vm1, %v6962_v2 }
  0x7b   : > { %5846 = vmatprep.mubr.msk.f32.mxu0 %vm6963_vm1, %v6962_v2  ;;  %v2726_v44 = vsel %vm2252_vm4, %v2723_v38, %v2725_v42  ;;  %v409_v38 = vld [vmem:[%s7232_s20 + $0x118] sm:$0xff] }
  0x7d   : > { %5339 = vmatmul.mubr.msk.f32.gmra.mrb[52].mxu1 %vm611_vm3, %v592_v48  ;;  %v2728_v48 = vsel %vm2252_vm4, %v2725_v42, %v2727_v45  ;;  %v410_v42 = vld [vmem:[%s7232_s20 + $0x120] sm:$0xff] }
  0x7e   : > { %5847 = vmatmul.mubr.msk.f32.gmra.mrb[14].mxu0 %vm611_vm3, %v2706_v50  ;;  %5341 = vmatprep.mubr.msk.f32.mxu1 %vm6963_vm1, %v6962_v2  ;;  %v493_v50 = vld [vmem:[%s9127_s4 + $0x8] sm:$0x7]  ;;  %v2757_v45 = vrot.slane %v410_v42, 2 }
  0x7f   : > { %5849 = vmatprep.mubr.msk.f32.mxu0 %vm6963_vm1, %v6962_v2 }
  0x81   : > { %5342 = vmatmul.mubr.msk.f32.gmra.mrb[54].mxu1 %vm611_vm3, %v594_v55  ;;  %v2731_v55 = vrot.slane %v397_v51, 2  ;;  %v412_v51 = vld [vmem:[%s7232_s20 + $0x130] sm:$0x7] }
  0x82   : > { %5850 = vmatmul.mubr.msk.f32.gmra.mrb[16].mxu0 %vm611_vm3, %v2708_v58  ;;  %5344 = vmatprep.mubr.msk.f32.mxu1 %vm6963_vm1, %v6962_v2  ;;  %v7478_v58 = vld [vmem:[%s7441_s27 + $0x10] sm:$0xff]  ;;  %v2761_v56 = vrot.slane %v412_v51, 2 }
  0x83   : > { %5852 = vmatprep.mubr.msk.f32.mxu0 %vm6963_vm1, %v6962_v2  ;;  %v2732_v59 = vsel %vm2252_vm4, %v2729_v49, %v2731_v55  ;;  %v2734_v63 = vsel %vm2252_vm4, %v2731_v55, %v2733_v60 }
  0x85   : > { %5345 = vmatmul.mubr.msk.f32.gmra.mrb[56].mxu1 %vm611_vm3, %v596_v62  ;;  %v7490_v62 = vld [vmem:[%s7441_s27 + $0x18] sm:$0xff] }
  0x86   : > { %5853 = vmatmul.mubr.msk.f32.gmra.mrb[18].mxu0 %vm611_vm3, %v2710_v0  ;;  %5347 = vmatprep.mubr.msk.f32.mxu1 %vm6963_vm1, %v6962_v2  ;;  %v2735_v0 = vrot.slane %v399_v61, 2  ;;  %v7668_v61 = vld [vmem:[%s7441_s27 + $0x90] sm:$0xff] }
  0x87   : > { %5855 = vmatprep.mubr.msk.f32.mxu0 %vm6963_vm1, %v6962_v2  ;;  %v1339_v51 = vrot.slane %v7668_v61, 1 }
  0x88   : > { %v2736_v4 = vsel %vm2252_vm4, %v2733_v60, %v2735_v0 }
  0x89   : > { %5348 = vmatmul.mubr.msk.f32.gmra.mrb[58].mxu1 %vm611_vm3, %v598_v5  ;;  %v2737_v5 = vrot.slane %v400_v1, 2  ;;  %v7680_v1 = vld [vmem:[%s7441_s27 + $0x98] sm:$0xff] }
  0x8a   : > { %5856 = vmatmul.mubr.msk.f32.gmra.mrb[20].mxu0 %vm611_vm3, %v2712_v7  ;;  %5350 = vmatprep.mubr.msk.f32.mxu1 %vm6963_vm1, %v6962_v2  ;;  %v7514_v7 = vld [vmem:[%s7441_s27 + $0x28] sm:$0xff] }
  0x8b   : > { %5858 = vmatprep.mubr.msk.f32.mxu0 %vm6963_vm1, %v6962_v2  ;;  %v2738_v8 = vsel %vm2252_vm4, %v2735_v0, %v2737_v5  ;;  %v2740_v12 = vsel %vm2252_vm4, %v2737_v5, %v2739_v9  ;;  %v1309_v0 = vrot.slane %v7490_v62, 1  ;;  %v498_v5 = vld [vmem:[%s9127_s4 + $0x1c] sm:$0x7]  ;;  %v1313_v6 = vrot.slane %v7514_v7, 1 }
  0x8d   : > { %5351 = vmatmul.mubr.msk.f32.gmra.mrb[60].mxu1 %vm611_vm3, %v600_v11  ;;  %v7526_v11 = vld [vmem:[%s7441_s27 + $0x30] sm:$0xff] }
  0x8e   : > { %5859 = vmatmul.mubr.msk.f32.gmra.mrb[22].mxu0 %vm611_vm3, %v2714_v13  ;;  %5353 = vmatprep.mubr.msk.f32.mxu1 %vm6963_vm1, %v6962_v2  ;;  %v2741_v13 = vrot.slane %v402_v10, 2 }
  0x8f   : > { %5861 = vmatprep.mubr.msk.f32.mxu0 %vm6963_vm1, %v6962_v2 }
  0x90   : > { %v2742_v16 = vsel %vm2252_vm4, %v2739_v9, %v2741_v13  ;;  %v1315_v9 = vrot.slane %v7526_v11, 1 }
  0x91   : > { %5354 = vmatmul.mubr.msk.f32.gmra.mrb[62].mxu1 %vm611_vm3, %v602_v17  ;;  %v2743_v17 = vrot.slane %v403_v14, 2  ;;  %v7747_v14 = vld [vmem:[%s7441_s27 + $0xb8] sm:$0xff] }
  0x92   : > { %5862 = vmatmul.mubr.msk.f32.gmra.mrb[24].mxu0 %vm611_vm3, %v2716_v19  ;;  %5356 = vmatprep.mubr.msk.f32.mxu1 %vm6963_vm1, %v6962_v2  ;;  %v7550_v19 = vld [vmem:[%s7441_s27 + $0x40] sm:$0xff] }
  0x93   : > { %5864 = vmatprep.mubr.msk.f32.mxu0 %vm6963_vm1, %v6962_v2  ;;  %v2744_v20 = vsel %vm2252_vm4, %v2741_v13, %v2743_v17  ;;  %v2746_v24 = vsel %vm2252_vm4, %v2743_v17, %v2745_v21  ;;  %v7738_v13 = vsel %vm537_vm2, %v1313_v6, %v1315_v9  ;;  %v6844_v17 = vld [vmem:[%s7037_s10 + $0x10] sm:$0xff] }
  0x94   : > { %v3431_v18 = vrot.slane %v6844_v17, 2 }
  0x95   : > { %5357 = vmatmul.mubr.msk.f32.gmra.mrb[64].mxu1 %vm611_vm3, %v604_v23  ;;  %v7562_v23 = vld [vmem:[%s7441_s27 + $0x48] sm:$0xff] }
  0x96   : > { %5865 = vmatmul.mubr.msk.f32.gmra.mrb[26].mxu0 %vm611_vm3, %v2718_v25  ;;  %5359 = vmatprep.mubr.msk.f32.mxu1 %vm6963_vm1, %v6962_v2  ;;  %v2747_v25 = vrot.slane %v405_v22, 2  ;;  %v1321_v22 = vrot.slane %v7562_v23, 1 }
  0x97   : > { %5867 = vmatprep.mubr.msk.f32.mxu0 %vm6963_vm1, %v6962_v2 }
  0x98   : > { %v2748_v28 = vsel %vm2252_vm4, %v2745_v21, %v2747_v25 }
  0x99   : > { %5360 = vmatmul.mubr.msk.f32.gmra.mrb[66].mxu1 %vm611_vm3, %v606_v29  ;;  %v2749_v29 = vrot.slane %v406_v26, 2  ;;  %v1323_v26 = vrot.slane %v7574_v27, 1 }
  0x9a   : > { %5868 = vmatmul.mubr.msk.f32.gmra.mrb[28].mxu0 %vm611_vm3, %v2720_v31  ;;  %5362 = vmatprep.mubr.msk.f32.mxu1 %vm6963_vm1, %v6962_v2  ;;  %v7586_v31 = vld [vmem:[%s7441_s27 + $0x58] sm:$0xff] }
  0x9b   : > { %5870 = vmatprep.mubr.msk.f32.mxu0 %vm6963_vm1, %v6962_v2  ;;  %v2750_v32 = vsel %vm2252_vm4, %v2747_v25, %v2749_v29  ;;  %v7808_v30 = vsel %vm537_vm2, %v1321_v22, %v1323_v26 }
  0x9d   : > { %5363 = vmatmul.mubr.msk.f32.gmra.mrb[68].mxu1 %vm611_vm3, %v608_v35  ;;  %v7598_v35 = vld [vmem:[%s7441_s27 + $0x60] sm:$0xff] }
  0x9e   : > { %5871 = vmatmul.mubr.msk.f32.gmra.mrb[30].mxu0 %vm611_vm3, %v2722_v37  ;;  %5365 = vmatprep.mubr.msk.f32.mxu1 %vm6963_vm1, %v6962_v2  ;;  %v2753_v37 = vrot.slane %v408_v34, 2  ;;  %v7832_v34 = vld [vmem:[%s7441_s27 + $0xe0] sm:$0xff] }
  0x9f   : > { %5873 = vmatprep.mubr.msk.f32.mxu0 %vm6963_vm1, %v6962_v2 }
  0xa1   : > { %5366 = vmatmul.mubr.msk.f32.gmra.mrb[70].mxu1 %vm611_vm3, %v610_v40  ;;  %v2754_v40 = vsel %vm2252_vm4, %v2751_v33, %v2753_v37 }
  0xa2   : > { %5874 = vmatmul.mubr.msk.f32.gmra.mrb[32].mxu0 %vm611_vm3, %v2724_v41  ;;  %5368 = vmatprep.mubr.msk.f32.mxu1 %vm6963_vm1, %v6962_v2  ;;  %v2755_v41 = vrot.slane %v409_v38, 2  ;;  %v1331_v38 = vrot.slane %v7622_v43, 1 }
  0xa3   : > { %5876 = vmatprep.mubr.msk.f32.mxu0 %vm6963_vm1, %v6962_v2 }
  0xa4   : > { %v2758_v49 = vsel %vm2252_vm4, %v2755_v41, %v2757_v45 }
  0xa5   : > { %5369 = vmatmul.mubr.msk.f32.gmra.mrb[72].mxu1 %vm611_vm3, %v609_v36  ;;  %v2752_v36 = vsel %vm2252_vm4, %v2749_v29, %v2751_v33  ;;  %v7802_v29 = vld [vmem:[%s7441_s27 + $0xd0] sm:$0xff] }
  0xa6   : > { %5877 = vmatmul.mubr.msk.f32.gmra.mrb[34].mxu0 %vm611_vm3, %v2726_v44  ;;  %5373 = vmatprep.mubr.msk.f32.mxu1 %vm6963_vm1, %v6962_v2  ;;  %v2756_v44 = vsel %vm2252_vm4, %v2753_v37, %v2755_v41  ;;  %v7847_v37 = vld [vmem:[%s7441_s27 + $0xe8] sm:$0xff] }
  0xa7   : > { %5879 = vmatprep.mubr.msk.f32.mxu0 %vm6963_vm1, %v6962_v2 }
  0xa9   : > { %5374 = vmatmul.mubr.msk.f32.vlgmr.msra.gmra.mrb[0].mxu1 %vm611_vm3, %v7449_v47 }
  0xaa   : > { %5880 = vmatmul.mubr.msk.f32.gmra.mrb[36].mxu0 %vm611_vm3, %v2728_v48  ;;  %5376 = vmatprep.mubr.msk.f32.mxu1 %vm6963_vm1, %v6962_v2  ;;  %v7634_v48 = vld [vmem:[%s7441_s27 + $0x78] sm:$0xff] }
  0xab   : > { %5882 = vmatprep.mubr.msk.f32.mxu0 %vm6963_vm1, %v6962_v2  ;;  %5485 = vmatpush3.msk.msra.mxu1 %vm686_vm0, %v493_v50  ;;  %v2759_v50 = vrot.slane %v411_v46, 2  ;;  %v1333_v41 = vrot.slane %v7634_v48, 1  ;;  %v7892_v46 = vld [vmem:[%s7441_s27 + $0x100] sm:$0xff] }
  0xac   : > { %5597 = vmatprep.subr.mxu1 %v6962_v2 }
  0xad   : > { %5377 = vmatmul.mubr.msk.f32.gmra.mrb[2].mxu1 %vm611_vm3, %v7464_v52  ;;  %v2760_v55 = vsel %vm2252_vm4, %v2757_v45, %v2759_v50  ;;  %v2762_v60 = vsel %vm2252_vm4, %v2759_v50, %v2761_v56  ;;  %v7883_v45 = vsel %vm537_vm2, %v1331_v38, %v1333_v41  ;;  %v7907_v50 = vld [vmem:[%s7441_s27 + $0x108] sm:$0xff] }
  0xae   : > { %5883 = vmatmul.mubr.msk.f32.gmra.mrb[38].mxu0 %vm611_vm3, %v2730_v54  ;;  %5379 = vmatprep.mubr.msk.f32.mxu1 %vm6963_vm1, %v6962_v2  ;;  %v7646_v54 = vld [vmem:[%s7441_s27 + $0x80] sm:$0xff] }
  0xaf   : > { %5885 = vmatprep.mubr.msk.f32.mxu0 %vm6963_vm1, %v6962_v2 }
  0xb1   : > { %5380 = vmatmul.mubr.msk.f32.gmra.mrb[4].mxu1 %vm611_vm3, %v7478_v58 }
  0xb2   : > { %5886 = vmatmul.mubr.msk.f32.gmra.mrb[40].mxu0 %vm611_vm3, %v2732_v59  ;;  %5382 = vmatprep.mubr.msk.f32.mxu1 %vm6963_vm1, %v6962_v2  ;;  %v7657_v59 = vld [vmem:[%s7441_s27 + $0x88] sm:$0xff] }
  0xb3   : > { %5888 = vmatprep.mubr.msk.f32.mxu0 %vm6963_vm1, %v6962_v2 }
  0xb5   : > { %5383 = vmatmul.mubr.msk.f32.gmra.mrb[6].mxu1 %vm611_vm3, %v7490_v62 }
  0xb6   : > { %5889 = vmatmul.mubr.msk.f32.gmra.mrb[42].mxu0 %vm611_vm3, %v2734_v63  ;;  %5385 = vmatprep.mubr.msk.f32.mxu1 %vm6963_vm1, %v6962_v2  ;;  %v1307_v63 = vrot.slane %v7478_v58, 1 }
  0xb7   : > { %5891 = vmatprep.mubr.msk.f32.mxu0 %vm6963_vm1, %v6962_v2 }
  0xb8   : > { %v7688_v62 = vsel %vm537_vm2, %v1307_v63, %v1309_v0 }
  0xb9   : > { %5386 = vmatmul.mubr.msk.f32.gmra.mrb[8].mxu1 %vm611_vm3, %v7502_v3 }
  0xba   : > { %5892 = vmatmul.mubr.msk.f32.gmra.mrb[44].mxu0 %vm611_vm3, %v2736_v4  ;;  %5388 = vmatprep.mubr.msk.f32.mxu1 %vm6963_vm1, %v6962_v2  ;;  %v1311_v4 = vrot.slane %v7502_v3, 1  ;;  %v7700_v3 = vld [vmem:[%s7441_s27 + $0xa0] sm:$0xff] }
  0xbb   : > { %5894 = vmatprep.mubr.msk.f32.mxu0 %vm6963_vm1, %v6962_v2 }
  0xbc   : > { %v7723_v10 = vsel %vm537_vm2, %v1311_v4, %v1313_v6 }
  0xbd   : > { %5389 = vmatmul.mubr.msk.f32.gmra.mrb[10].mxu1 %vm611_vm3, %v7514_v7  ;;  %v7717_v7 = vld [vmem:[%s7441_s27 + $0xa8] sm:$0xff] }
  0xbe   : > { %5895 = vmatmul.mubr.msk.f32.gmra.mrb[46].mxu0 %vm611_vm3, %v2738_v8  ;;  %5391 = vmatprep.mubr.msk.f32.mxu1 %vm6963_vm1, %v6962_v2  ;;  %v7707_v8 = vsel %vm537_vm2, %v1309_v0, %v1311_v4  ;;  %v1305_v4 = vrot.slane %v7464_v52, 1 }
  0xbf   : > { %5897 = vmatprep.mubr.msk.f32.mxu0 %vm6963_vm1, %v6962_v2 }
  0xc1   : > { %5392 = vmatmul.mubr.msk.f32.gmra.mrb[12].mxu1 %vm611_vm3, %v7526_v11  ;;  %v1317_v11 = vrot.slane %v7538_v15, 1 }
  0xc2   : > { %5898 = vmatmul.mubr.msk.f32.gmra.mrb[48].mxu0 %vm611_vm3, %v2740_v12  ;;  %5394 = vmatprep.mubr.msk.f32.mxu1 %vm6963_vm1, %v6962_v2  ;;  %v7732_v12 = vld [vmem:[%s7441_s27 + $0xb0] sm:$0xff] }
  0xc3   : > { %5900 = vmatprep.mubr.msk.f32.mxu0 %vm6963_vm1, %v6962_v2  ;;  %v1347_v52 = vrot.slane %v7732_v12, 1 }
  0xc5   : > { %5395 = vmatmul.mubr.msk.f32.gmra.mrb[14].mxu1 %vm611_vm3, %v7538_v15  ;;  %v1319_v15 = vrot.slane %v7550_v19, 1 }
  0xc6   : > { %5901 = vmatmul.mubr.msk.f32.gmra.mrb[50].mxu0 %vm611_vm3, %v2742_v16  ;;  %5397 = vmatprep.mubr.msk.f32.mxu1 %vm6963_vm1, %v6962_v2  ;;  %v7753_v16 = vsel %vm537_vm2, %v1315_v9, %v1317_v11  ;;  %v494_v9 = vld [vmem:[%s9127_s4 + $0xc] sm:$0x7] }
  0xc7   : > { %5903 = vmatprep.mubr.msk.f32.mxu0 %vm6963_vm1, %v6962_v2 }
  0xc9   : > { %5398 = vmatmul.mubr.msk.f32.gmra.mrb[16].mxu1 %vm611_vm3, %v7550_v19  ;;  %v7767_v19 = vld [vmem:[%s7441_s27 + $0xc0] sm:$0xff] }
  0xca   : > { %5904 = vmatmul.mubr.msk.f32.gmra.mrb[52].mxu0 %vm611_vm3, %v2744_v20  ;;  %5400 = vmatprep.mubr.msk.f32.mxu1 %vm6963_vm1, %v6962_v2  ;;  %v7757_v20 = vld [vmem:[%s7037_s10 + $0x18] sm:$0xff]  ;;  %v1351_v58 = vrot.slane %v7767_v19, 1 }
  0xcb   : > { %5906 = vmatprep.mubr.msk.f32.mxu0 %vm6963_vm1, %v6962_v2  ;;  %v3432_v21 = vrot.slane %v7757_v20, 2  ;;  %v6848_v20 = vld [vmem:[%s7037_s10 + $0x30] sm:$0xff] }
  0xcd   : > { %5401 = vmatmul.mubr.msk.f32.gmra.mrb[18].mxu1 %vm611_vm3, %v7562_v23  ;;  %v7780_v25 = vsel %vm2252_vm4, %v3431_v18, %v3432_v21  ;;  %v7787_v23 = vld [vmem:[%s7441_s27 + $0xc8] sm:$0xff] }
  0xce   : > { %5907 = vmatmul.mubr.msk.f32.gmra.mrb[54].mxu0 %vm611_vm3, %v2746_v24  ;;  %5403 = vmatprep.mubr.msk.f32.mxu1 %vm6963_vm1, %v6962_v2  ;;  %v7773_v24 = vsel %vm537_vm2, %v1317_v11, %v1319_v15  ;;  %v1349_v11 = vrot.slane %v7747_v14, 1 }
  0xcf   : > { %5909 = vmatprep.mubr.msk.f32.mxu0 %vm6963_vm1, %v6962_v2 }
  0xd0   : > { %v8015_v17 = vsel %vm537_vm2, %v1349_v11, %v1351_v58 }
  0xd1   : > { %5404 = vmatmul.mubr.msk.f32.gmra.mrb[20].mxu1 %vm611_vm3, %v7574_v27  ;;  %v1325_v27 = vrot.slane %v7586_v31, 1 }
  0xd2   : > { %5910 = vmatmul.mubr.msk.f32.gmra.mrb[56].mxu0 %vm611_vm3, %v2748_v28  ;;  %5406 = vmatprep.mubr.msk.f32.mxu1 %vm6963_vm1, %v6962_v2  ;;  %v7793_v28 = vsel %vm537_vm2, %v1319_v15, %v1321_v22 }
  0xd3   : > { %5912 = vmatprep.mubr.msk.f32.mxu0 %vm6963_vm1, %v6962_v2  ;;  %v7823_v33 = vsel %vm537_vm2, %v1323_v26, %v1325_v27 }
  0xd5   : > { %5407 = vmatmul.mubr.msk.f32.gmra.mrb[22].mxu1 %vm611_vm3, %v7586_v31  ;;  %v1327_v31 = vrot.slane %v7598_v35, 1 }
  0xd6   : > { %5913 = vmatmul.mubr.msk.f32.gmra.mrb[58].mxu0 %vm611_vm3, %v2750_v32  ;;  %5409 = vmatprep.mubr.msk.f32.mxu1 %vm6963_vm1, %v6962_v2  ;;  %v7817_v32 = vld [vmem:[%s7441_s27 + $0xd8] sm:$0xff] }
  0xd7   : > { %5915 = vmatprep.mubr.msk.f32.mxu0 %vm6963_vm1, %v6962_v2 }
  0xd9   : > { %5410 = vmatmul.mubr.msk.f32.gmra.mrb[24].mxu1 %vm611_vm3, %v7598_v35  ;;  %v1329_v35 = vrot.slane %v7610_v39, 1 }
  0xda   : > { %5916 = vmatmul.mubr.msk.f32.gmra.mrb[60].mxu0 %vm611_vm3, %v2752_v36  ;;  %5412 = vmatprep.mubr.msk.f32.mxu1 %vm6963_vm1, %v6962_v2  ;;  %v7838_v36 = vsel %vm537_vm2, %v1325_v27, %v1327_v31 }
  0xdb   : > { %5918 = vmatprep.mubr.msk.f32.mxu0 %vm6963_vm1, %v6962_v2  ;;  %v7868_v42 = vsel %vm537_vm2, %v1329_v35, %v1331_v38  ;;  %v489_v38 = vld [vmem:[%s7441_s27 + $0x128] sm:$0xff] }
  0xdd   : > { %5413 = vmatmul.mubr.msk.f32.gmra.mrb[26].mxu1 %vm611_vm3, %v7610_v39  ;;  %v7853_v39 = vsel %vm537_vm2, %v1327_v31, %v1329_v35 }
  0xde   : > { %5919 = vmatmul.mubr.msk.f32.gmra.mrb[62].mxu0 %vm611_vm3, %v2754_v40  ;;  %5415 = vmatprep.mubr.msk.f32.mxu1 %vm6963_vm1, %v6962_v2  ;;  %v7862_v40 = vld [vmem:[%s7441_s27 + $0xf0] sm:$0xff] }
  0xdf   : > { %5921 = vmatprep.mubr.msk.f32.mxu0 %vm6963_vm1, %v6962_v2 }
  0xe1   : > { %5416 = vmatmul.mubr.msk.f32.gmra.mrb[28].mxu1 %vm611_vm3, %v7622_v43  ;;  %v7877_v43 = vld [vmem:[%s7441_s27 + $0xf8] sm:$0xff] }
  0xe2   : > { %5922 = vmatmul.mubr.msk.f32.gmra.mrb[64].mxu0 %vm611_vm3, %v2756_v44  ;;  %5418 = vmatprep.mubr.msk.f32.mxu1 %vm6963_vm1, %v6962_v2  ;;  %v1335_v44 = vrot.slane %v7646_v54, 1 }
  0xe3   : > { %5924 = vmatprep.mubr.msk.f32.mxu0 %vm6963_vm1, %v6962_v2 }
  0xe5   : > { %5419 = vmatmul.mubr.msk.f32.gmra.mrb[30].mxu1 %vm611_vm3, %v7634_v48  ;;  %v1337_v48 = vrot.slane %v7657_v59, 1 }
  0xe6   : > { %5925 = vmatmul.mubr.msk.f32.gmra.mrb[66].mxu0 %vm611_vm3, %v2758_v49  ;;  %5421 = vmatprep.mubr.msk.f32.mxu1 %vm6963_vm1, %v6962_v2  ;;  %v7898_v49 = vsel %vm537_vm2, %v1333_v41, %v1335_v44  ;;  %v490_v41 = vld [vmem:[%s7441_s27 + $0x130] sm:$0x7] }
  0xe7   : > { %5927 = vmatprep.mubr.msk.f32.mxu0 %vm6963_vm1, %v6962_v2 }
  0xe9   : > { %5422 = vmatmul.mubr.msk.f32.gmra.mrb[32].mxu1 %vm611_vm3, %v7646_v54  ;;  %v7913_v54 = vsel %vm537_vm2, %v1335_v44, %v1337_v48 }
  0xea   : > { %5928 = vmatmul.mubr.msk.f32.gmra.mrb[68].mxu0 %vm611_vm3, %v2760_v55  ;;  %5424 = vmatprep.mubr.msk.f32.mxu1 %vm6963_vm1, %v6962_v2  ;;  %v7922_v55 = vld [vmem:[%s7441_s27 + $0x110] sm:$0xff] }
  0xeb   : > { %5930 = vmatprep.mubr.msk.f32.mxu0 %vm6963_vm1, %v6962_v2  ;;  %v1371_v31 = vrot.slane %v7922_v55, 1 }
  0xed   : > { %5425 = vmatmul.mubr.msk.f32.gmra.mrb[34].mxu1 %vm611_vm3, %v7657_v59  ;;  %v7928_v59 = vsel %vm537_vm2, %v1337_v48, %v1339_v51  ;;  %v499_v48 = vld [vmem:[%s9127_s4 + $0x20] sm:$0x7] }
  0xee   : > { %5931 = vmatmul.mubr.msk.f32.gmra.mrb[70].mxu0 %vm611_vm3, %v2762_v60  ;;  %5427 = vmatprep.mubr.msk.f32.mxu1 %vm6963_vm1, %v6962_v2  ;;  %v7937_v60 = vld [vmem:[%s7441_s27 + $0x118] sm:$0xff] }
  0xef   : > { %5933 = vmatprep.mubr.msk.f32.mxu0 %vm6963_vm1, %v6962_v2 }
  0xf1   : > { %5428 = vmatmul.mubr.msk.f32.gmra.mrb[36].mxu1 %vm611_vm3, %v7668_v61  ;;  %v1343_v61 = vrot.slane %v7700_v3, 1 }
  0xf2   : > { %5934 = vmatmul.mubr.msk.f32.gmra.mrb[72].mxu0 %vm611_vm3, %v2761_v56  ;;  %5430 = vmatprep.mubr.msk.f32.mxu1 %vm6963_vm1, %v6962_v2  ;;  %v1341_v56 = vrot.slane %v7680_v1, 1 }
  0xf3   : > { %5938 = vmatprep.mubr.msk.f32.mxu0 %vm6963_vm1, %v6962_v2 }
  0xf4   : > { %v7943_v0 = vsel %vm537_vm2, %v1339_v51, %v1341_v56  ;;  %v7960_v6 = vsel %vm537_vm2, %v1341_v56, %v1343_v61 }
  0xf5   : > { %5431 = vmatmul.mubr.msk.f32.gmra.mrb[38].mxu1 %vm611_vm3, %v7680_v1  ;;  %v1304_v1 = vrot.slane %v7449_v47, 1 }
  0xf6   : > { %5939 = vmatmul.mubr.msk.f32.vlgmr.msra.gmra.mrb[0].mxu0 %vm611_vm3, %v7688_v62  ;;  %5433 = vmatprep.mubr.msk.f32.mxu1 %vm6963_vm1, %v6962_v2 }
  0xf7   : > { %6050 = vmatpush3.msk.msra.mxu0 %vm686_vm0, %v498_v5  ;;  %5941 = vmatprep.mubr.msk.f32.mxu0 %vm6963_vm1, %v6962_v2  ;;  %v7954_v5 = vld [vmem:[%s7441_s27 + $0x120] sm:$0xff]  ;;  %v1306_v47 = vsel %vm537_vm2, %v1304_v1, %v1305_v4  ;;  %v6851_v1 = vld [vmem:[%s7037_s10 + $0x48] sm:$0xff] }
  0xf8   : > { %6162 = vmatprep.subr.mxu0 %v6962_v2 }
  0xf9   : > { %5434 = vmatmul.mubr.msk.f32.gmra.mrb[40].mxu1 %vm611_vm3, %v7700_v3  ;;  %v1345_v3 = vrot.slane %v7717_v7, 1 }
  0xfa   : > { %5942 = vmatmul.mubr.msk.f32.gmra.mrb[2].mxu0 %vm611_vm3, %v7707_v8  ;;  %5436 = vmatprep.mubr.msk.f32.mxu1 %vm6963_vm1, %v6962_v2 }
  0xfb   : > { %5944 = vmatprep.mubr.msk.f32.mxu0 %vm6963_vm1, %v6962_v2  ;;  %v7991_v15 = vsel %vm537_vm2, %v1345_v3, %v1347_v52 }
  0xfd   : > { %5437 = vmatmul.mubr.msk.f32.gmra.mrb[42].mxu1 %vm611_vm3, %v7717_v7  ;;  %v7973_v7 = vsel %vm537_vm2, %v1343_v61, %v1345_v3  ;;  %v6852_v3 = vld [vmem:[%s7037_s10 + $0x50] sm:$0xff] }
  0xfe   : > { %5945 = vmatmul.mubr.msk.f32.gmra.mrb[4].mxu0 %vm611_vm3, %v7723_v10  ;;  %5439 = vmatprep.mubr.msk.f32.mxu1 %vm6963_vm1, %v6962_v2 }
  0xff   : > { %5947 = vmatprep.mubr.msk.f32.mxu0 %vm6963_vm1, %v6962_v2 }
 0x101   : > { %5440 = vmatmul.mubr.msk.f32.gmra.mrb[44].mxu1 %vm611_vm3, %v7732_v12  ;;  %v1308_v12 = vsel %vm537_vm2, %v1305_v4, %v1307_v63  ;;  %v8003_v63 = vsel %vm537_vm2, %v1347_v52, %v1349_v11  ;;  %v3444_v4 = vrot.slane %v6851_v1, 2  ;;  %v6853_v52 = vld [vmem:[%s7037_s10 + $0x58] sm:$0xff] }
 0x102   : > { %5948 = vmatmul.mubr.msk.f32.gmra.mrb[6].mxu0 %vm611_vm3, %v7738_v13  ;;  %5442 = vmatprep.mubr.msk.f32.mxu1 %vm6963_vm1, %v6962_v2 }
 0x103   : > { %5950 = vmatprep.mubr.msk.f32.mxu0 %vm6963_vm1, %v6962_v2 }
 0x105   : > { %5443 = vmatmul.mubr.msk.f32.gmra.mrb[46].mxu1 %vm611_vm3, %v7747_v14  ;;  %v1353_v14 = vrot.slane %v7787_v23, 1 }
 0x106   : > { %5951 = vmatmul.mubr.msk.f32.gmra.mrb[8].mxu0 %vm611_vm3, %v7753_v16  ;;  %5445 = vmatprep.mubr.msk.f32.mxu1 %vm6963_vm1, %v6962_v2 }
 0x107   : > { %5953 = vmatprep.mubr.msk.f32.mxu0 %vm6963_vm1, %v6962_v2  ;;  %v8027_v18 = vsel %vm537_vm2, %v1351_v58, %v1353_v14  ;;  %v6855_v58 = vld [vmem:[%s7037_s10 + $0x68] sm:$0xff] }
 0x109   : > { %5446 = vmatmul.mubr.msk.f32.gmra.mrb[48].mxu1 %vm611_vm3, %v7767_v19 }
 0x10a   : > { %5954 = vmatmul.mubr.msk.f32.gmra.mrb[10].mxu0 %vm611_vm3, %v7773_v24  ;;  %5448 = vmatprep.mubr.msk.f32.mxu1 %vm6963_vm1, %v6962_v2 }
 0x10b   : > { %5956 = vmatprep.mubr.msk.f32.mxu0 %vm6963_vm1, %v6962_v2 }
 0x10d   : > { %5449 = vmatmul.mubr.msk.f32.gmra.mrb[50].mxu1 %vm611_vm3, %v7787_v23 }
 0x10e   : > { %5957 = vmatmul.mubr.msk.f32.gmra.mrb[12].mxu0 %vm611_vm3, %v7793_v28  ;;  %5451 = vmatprep.mubr.msk.f32.mxu1 %vm6963_vm1, %v6962_v2 }
 0x10f   : > { %5959 = vmatprep.mubr.msk.f32.mxu0 %vm6963_vm1, %v6962_v2 }
 0x111   : > { %5452 = vmatmul.mubr.msk.f32.gmra.mrb[52].mxu1 %vm611_vm3, %v7802_v29 }
 0x112   : > { %5960 = vmatmul.mubr.msk.f32.gmra.mrb[14].mxu0 %vm611_vm3, %v7808_v30  ;;  %5454 = vmatprep.mubr.msk.f32.mxu1 %vm6963_vm1, %v6962_v2 }
 0x113   : > { %5962 = vmatprep.mubr.msk.f32.mxu0 %vm6963_vm1, %v6962_v2 }
 0x115   : > { %5455 = vmatmul.mubr.msk.f32.gmra.mrb[54].mxu1 %vm611_vm3, %v7817_v32 }
 0x116   : > { %5963 = vmatmul.mubr.msk.f32.gmra.mrb[16].mxu0 %vm611_vm3, %v7823_v33  ;;  %5457 = vmatprep.mubr.msk.f32.mxu1 %vm6963_vm1, %v6962_v2 }
 0x117   : > { %5965 = vmatprep.mubr.msk.f32.mxu0 %vm6963_vm1, %v6962_v2 }
 0x119   : > { %5458 = vmatmul.mubr.msk.f32.gmra.mrb[56].mxu1 %vm611_vm3, %v7832_v34 }
 0x11a   : > { %5966 = vmatmul.mubr.msk.f32.gmra.mrb[18].mxu0 %vm611_vm3, %v7838_v36  ;;  %5460 = vmatprep.mubr.msk.f32.mxu1 %vm6963_vm1, %v6962_v2 }
 0x11b   : > { %5968 = vmatprep.mubr.msk.f32.mxu0 %vm6963_vm1, %v6962_v2 }
 0x11d   : > { %5461 = vmatmul.mubr.msk.f32.gmra.mrb[58].mxu1 %vm611_vm3, %v7847_v37 }
 0x11e   : > { %5969 = vmatmul.mubr.msk.f32.gmra.mrb[20].mxu0 %vm611_vm3, %v7853_v39  ;;  %5463 = vmatprep.mubr.msk.f32.mxu1 %vm6963_vm1, %v6962_v2 }
 0x11f   : > { %5971 = vmatprep.mubr.msk.f32.mxu0 %vm6963_vm1, %v6962_v2 }
 0x121   : > { %5464 = vmatmul.mubr.msk.f32.gmra.mrb[60].mxu1 %vm611_vm3, %v7862_v40 }
 0x122   : > { %5972 = vmatmul.mubr.msk.f32.gmra.mrb[22].mxu0 %vm611_vm3, %v7868_v42  ;;  %5466 = vmatprep.mubr.msk.f32.mxu1 %vm6963_vm1, %v6962_v2 }
 0x123   : > { %5974 = vmatprep.mubr.msk.f32.mxu0 %vm6963_vm1, %v6962_v2 }
 0x125   : > { %5467 = vmatmul.mubr.msk.f32.gmra.mrb[62].mxu1 %vm611_vm3, %v7877_v43 }
 0x126   : > { %5975 = vmatmul.mubr.msk.f32.gmra.mrb[24].mxu0 %vm611_vm3, %v7883_v45  ;;  %5469 = vmatprep.mubr.msk.f32.mxu1 %vm6963_vm1, %v6962_v2 }
 0x127   : > { %5977 = vmatprep.mubr.msk.f32.mxu0 %vm6963_vm1, %v6962_v2 }
 0x129   : > { %5470 = vmatmul.mubr.msk.f32.gmra.mrb[64].mxu1 %vm611_vm3, %v7892_v46 }
 0x12a   : > { %5978 = vmatmul.mubr.msk.f32.gmra.mrb[26].mxu0 %vm611_vm3, %v7898_v49  ;;  %5472 = vmatprep.mubr.msk.f32.mxu1 %vm6963_vm1, %v6962_v2 }
 0x12b   : > { %5980 = vmatprep.mubr.msk.f32.mxu0 %vm6963_vm1, %v6962_v2 }
 0x12d   : > { %5473 = vmatmul.mubr.msk.f32.gmra.mrb[66].mxu1 %vm611_vm3, %v7907_v50 }
 0x12e   : > { %5981 = vmatmul.mubr.msk.f32.gmra.mrb[28].mxu0 %vm611_vm3, %v7913_v54  ;;  %5475 = vmatprep.mubr.msk.f32.mxu1 %vm6963_vm1, %v6962_v2 }
 0x12f   : > { %5983 = vmatprep.mubr.msk.f32.mxu0 %vm6963_vm1, %v6962_v2 }
 0x131   : > { %5476 = vmatmul.mubr.msk.f32.gmra.mrb[68].mxu1 %vm611_vm3, %v7922_v55  ;;  %v6849_v55 = vld [vmem:[%s7037_s10 + $0x38] sm:$0xff] }
 0x132   : > { %5984 = vmatmul.mubr.msk.f32.gmra.mrb[30].mxu0 %vm611_vm3, %v7928_v59  ;;  %5478 = vmatprep.mubr.msk.f32.mxu1 %vm6963_vm1, %v6962_v2  ;;  %v3440_v56 = vrot.slane %v6849_v55, 2 }
 0x133   : > { %5986 = vmatprep.mubr.msk.f32.mxu0 %vm6963_vm1, %v6962_v2 }
 0x135   : > { %5479 = vmatmul.mubr.msk.f32.gmra.mrb[70].mxu1 %vm611_vm3, %v7937_v60 }
 0x136   : > { %5987 = vmatmul.mubr.msk.f32.gmra.mrb[32].mxu0 %vm611_vm3, %v7943_v0  ;;  %5481 = vmatprep.mubr.msk.f32.mxu1 %vm6963_vm1, %v6962_v2 }
 0x137   : > { %5989 = vmatprep.mubr.msk.f32.mxu0 %vm6963_vm1, %v6962_v2 }
 0x139   : > { %5482 = vmatmul.mubr.msk.f32.gmra.mrb[72].mxu1 %vm611_vm3, %v7954_v5 }
 0x13a   : > { %5990 = vmatmul.mubr.msk.f32.gmra.mrb[34].mxu0 %vm611_vm3, %v7960_v6  ;;  %5486 = vmatprep.mubr.msk.f32.mxu1 %vm6963_vm1, %v6962_v2 }
 0x13b   : > { %5992 = vmatprep.mubr.msk.f32.mxu0 %vm6963_vm1, %v6962_v2 }
 0x13d   : > { %5487 = vmatmul.mubr.msk.f32.vlgmr.msra.gmra.mrb[0].mxu1 %vm611_vm3, %v1306_v47 }
 0x13e   : > { %5993 = vmatmul.mubr.msk.f32.gmra.mrb[36].mxu0 %vm611_vm3, %v7973_v7  ;;  %5489 = vmatprep.mubr.msk.f32.mxu1 %vm6963_vm1, %v6962_v2 }
 0x13f   : > { %5995 = vmatprep.mubr.msk.f32.mxu0 %vm6963_vm1, %v6962_v2  ;;  %5598 = vmatpush3.msk.msra.mxu1 %vm686_vm0, %v494_v9 }
 0x140   : > { %6275 = vmatprep.subr.mxu1 %v6962_v2 }
 0x141   : > { %5490 = vmatmul.mubr.msk.f32.gmra.mrb[2].mxu1 %vm611_vm3, %v1308_v12  ;;  %v6854_v12 = vld [vmem:[%s7037_s10 + $0x60] sm:$0xff] }
 0x142   : > { %5996 = vmatmul.mubr.msk.f32.gmra.mrb[38].mxu0 %vm611_vm3, %v7991_v15  ;;  %5492 = vmatprep.mubr.msk.f32.mxu1 %vm6963_vm1, %v6962_v2  ;;  %v3450_v11 = vrot.slane %v6854_v12, 2 }
 0x143   : > { %5998 = vmatprep.mubr.msk.f32.mxu0 %vm6963_vm1, %v6962_v2 }
 0x145   : > { %5493 = vmatmul.mubr.msk.f32.gmra.mrb[4].mxu1 %vm611_vm3, %v7688_v62  ;;  %v1355_v62 = vrot.slane %v7802_v29, 1 }
 0x146   : > { %5999 = vmatmul.mubr.msk.f32.gmra.mrb[40].mxu0 %vm611_vm3, %v8003_v63  ;;  %5495 = vmatprep.mubr.msk.f32.mxu1 %vm6963_vm1, %v6962_v2 }
 0x147   : > { %6001 = vmatprep.mubr.msk.f32.mxu0 %vm6963_vm1, %v6962_v2  ;;  %v8039_v19 = vsel %vm537_vm2, %v1353_v14, %v1355_v62 }
 0x149   : > { %5496 = vmatmul.mubr.msk.f32.gmra.mrb[6].mxu1 %vm611_vm3, %v7707_v8  ;;  %v1357_v8 = vrot.slane %v7817_v32, 1 }
 0x14a   : > { %6002 = vmatmul.mubr.msk.f32.gmra.mrb[42].mxu0 %vm611_vm3, %v8015_v17  ;;  %5498 = vmatprep.mubr.msk.f32.mxu1 %vm6963_vm1, %v6962_v2 }
 0x14b   : > { %6004 = vmatprep.mubr.msk.f32.mxu0 %vm6963_vm1, %v6962_v2  ;;  %v8051_v22 = vsel %vm537_vm2, %v1355_v62, %v1357_v8 }
 0x14d   : > { %5499 = vmatmul.mubr.msk.f32.gmra.mrb[8].mxu1 %vm611_vm3, %v7723_v10  ;;  %v1359_v10 = vrot.slane %v7832_v34, 1  ;;  %v1373_v34 = vrot.slane %v7937_v60, 1  ;;  %v6850_v60 = vld [vmem:[%s7037_s10 + $0x40] sm:$0xff] }
 0x14e   : > { %6005 = vmatmul.mubr.msk.f32.gmra.mrb[44].mxu0 %vm611_vm3, %v8027_v18  ;;  %5501 = vmatprep.mubr.msk.f32.mxu1 %vm6963_vm1, %v6962_v2  ;;  %v3442_v61 = vrot.slane %v6850_v60, 2 }
 0x14f   : > { %6007 = vmatprep.mubr.msk.f32.mxu0 %vm6963_vm1, %v6962_v2  ;;  %v8063_v23 = vsel %vm537_vm2, %v1357_v8, %v1359_v10  ;;  %v6857_v8 = vld [vmem:[%s7037_s10 + $0x78] sm:$0xff] }
 0x151   : > { %5502 = vmatmul.mubr.msk.f32.gmra.mrb[10].mxu1 %vm611_vm3, %v7738_v13  ;;  %v1361_v13 = vrot.slane %v7847_v37, 1  ;;  %v8149_v37 = vsel %vm537_vm2, %v1371_v31, %v1373_v34 }
 0x152   : > { %6008 = vmatmul.mubr.msk.f32.gmra.mrb[46].mxu0 %vm611_vm3, %v8039_v19  ;;  %5504 = vmatprep.mubr.msk.f32.mxu1 %vm6963_vm1, %v6962_v2 }
 0x153   : > { %6010 = vmatprep.mubr.msk.f32.mxu0 %vm6963_vm1, %v6962_v2  ;;  %v8075_v26 = vsel %vm537_vm2, %v1359_v10, %v1361_v13 }
 0x155   : > { %5505 = vmatmul.mubr.msk.f32.gmra.mrb[12].mxu1 %vm611_vm3, %v7753_v16  ;;  %v1363_v16 = vrot.slane %v7862_v40, 1  ;;  %v3129_v40 = vrot.slane %v489_v38, 1  ;;  %v6864_v38 = vld [vmem:[%s7232_s20 + $0x18] sm:$0xff] }
 0x156   : > { %6011 = vmatmul.mubr.msk.f32.gmra.mrb[48].mxu0 %vm611_vm3, %v8051_v22  ;;  %5507 = vmatprep.mubr.msk.f32.mxu1 %vm6963_vm1, %v6962_v2 }
 0x157   : > { %6013 = vmatprep.mubr.msk.f32.mxu0 %vm6963_vm1, %v6962_v2  ;;  %v8087_v29 = vsel %vm537_vm2, %v1361_v13, %v1363_v16 }
 0x159   : > { %5508 = vmatmul.mubr.msk.f32.gmra.mrb[14].mxu1 %vm611_vm3, %v7773_v24  ;;  %v1365_v24 = vrot.slane %v7877_v43, 1  ;;  %v3131_v43 = vrot.slane %v490_v41, 1 }
 0x15a   : > { %6014 = vmatmul.mubr.msk.f32.gmra.mrb[50].mxu0 %vm611_vm3, %v8063_v23  ;;  %5510 = vmatprep.mubr.msk.f32.mxu1 %vm6963_vm1, %v6962_v2 }
 0x15b   : > { %6016 = vmatprep.mubr.msk.f32.mxu0 %vm6963_vm1, %v6962_v2  ;;  %v8099_v27 = vsel %vm537_vm2, %v1363_v16, %v1365_v24  ;;  %v3132_v44 = vsel %vm537_vm2, %v3129_v40, %v3131_v43  ;;  %v6859_v16 = vld [vmem:[%s7037_s10 + $0x88] sm:$0xff] }
 0x15d   : > { %5511 = vmatmul.mubr.msk.f32.gmra.mrb[16].mxu1 %vm611_vm3, %v7793_v28  ;;  %v1367_v28 = vrot.slane %v7892_v46, 1 }
 0x15e   : > { %6017 = vmatmul.mubr.msk.f32.gmra.mrb[52].mxu0 %vm611_vm3, %v8075_v26  ;;  %5513 = vmatprep.mubr.msk.f32.mxu1 %vm6963_vm1, %v6962_v2 }
 0x15f   : > { %6019 = vmatprep.mubr.msk.f32.mxu0 %vm6963_vm1, %v6962_v2  ;;  %v8111_v32 = vsel %vm537_vm2, %v1365_v24, %v1367_v28 }
 0x161   : > { %5514 = vmatmul.mubr.msk.f32.gmra.mrb[18].mxu1 %vm611_vm3, %v7808_v30  ;;  %v1369_v30 = vrot.slane %v7907_v50, 1  ;;  %v6847_v50 = vld [vmem:[%s7037_s10 + $0x28] sm:$0xff] }
 0x162   : > { %6020 = vmatmul.mubr.msk.f32.gmra.mrb[54].mxu0 %vm611_vm3, %v8087_v29  ;;  %5516 = vmatprep.mubr.msk.f32.mxu1 %vm6963_vm1, %v6962_v2  ;;  %v3436_v51 = vrot.slane %v6847_v50, 2  ;;  %v6868_v50 = vld [vmem:[%s7232_s20 + $0x28] sm:$0xff] }
 0x163   : > { %6022 = vmatprep.mubr.msk.f32.mxu0 %vm6963_vm1, %v6962_v2  ;;  %v8135_v35 = vsel %vm537_vm2, %v1369_v30, %v1371_v31 }
 0x165   : > { %5517 = vmatmul.mubr.msk.f32.gmra.mrb[20].mxu1 %vm611_vm3, %v7823_v33  ;;  %v8123_v33 = vsel %vm537_vm2, %v1367_v28, %v1369_v30  ;;  %v6861_v30 = vld [vmem:[%s7037_s10 + $0x98] sm:$0xff] }
 0x166   : > { %6023 = vmatmul.mubr.msk.f32.gmra.mrb[56].mxu0 %vm611_vm3, %v8099_v27  ;;  %5519 = vmatprep.mubr.msk.f32.mxu1 %vm6963_vm1, %v6962_v2 }
 0x167   : > { %6025 = vmatprep.mubr.msk.f32.mxu0 %vm6963_vm1, %v6962_v2 }
 0x169   : > { %5520 = vmatmul.mubr.msk.f32.gmra.mrb[22].mxu1 %vm611_vm3, %v7838_v36  ;;  %v8144_v36 = vrot.slane %v7954_v5, 1  ;;  %v3445_v5 = vsel %vm2252_vm4, %v3442_v61, %v3444_v4 }
 0x16a   : > { %6026 = vmatmul.mubr.msk.f32.gmra.mrb[58].mxu0 %vm611_vm3, %v8111_v32  ;;  %5522 = vmatprep.mubr.msk.f32.mxu1 %vm6963_vm1, %v6962_v2 }
 0x16b   : > { %6028 = vmatprep.mubr.msk.f32.mxu0 %vm6963_vm1, %v6962_v2 }
 0x16d   : > { %5523 = vmatmul.mubr.msk.f32.gmra.mrb[24].mxu1 %vm611_vm3, %v7853_v39  ;;  %v8162_v39 = vsel %vm537_vm2, %v1373_v34, %v8144_v36 }
 0x16e   : > { %6029 = vmatmul.mubr.msk.f32.gmra.mrb[60].mxu0 %vm611_vm3, %v8123_v33  ;;  %5525 = vmatprep.mubr.msk.f32.mxu1 %vm6963_vm1, %v6962_v2 }
 0x16f   : > { %6031 = vmatprep.mubr.msk.f32.mxu0 %vm6963_vm1, %v6962_v2 }
 0x171   : > { %5526 = vmatmul.mubr.msk.f32.gmra.mrb[26].mxu1 %vm611_vm3, %v7868_v42  ;;  %v3130_v42 = vsel %vm537_vm2, %v8144_v36, %v3129_v40  ;;  %v1779_v40 = vrot.slane %v6864_v38, 1  ;;  %v6885_v38 = vld [vmem:[%s7232_s20 + $0x68] sm:$0xff] }
 0x172   : > { %6032 = vmatmul.mubr.msk.f32.gmra.mrb[62].mxu0 %vm611_vm3, %v8135_v35  ;;  %5528 = vmatprep.mubr.msk.f32.mxu1 %vm6963_vm1, %v6962_v2 }
 0x173   : > { %6034 = vmatprep.mubr.msk.f32.mxu0 %vm6963_vm1, %v6962_v2 }
 0x175   : > { %5529 = vmatmul.mubr.msk.f32.gmra.mrb[28].mxu1 %vm611_vm3, %v7883_v45  ;;  %v6846_v45 = vld [vmem:[%s7037_s10 + $0x20] sm:$0xff] }
 0x176   : > { %6035 = vmatmul.mubr.msk.f32.gmra.mrb[64].mxu0 %vm611_vm3, %v8149_v37  ;;  %5531 = vmatprep.mubr.msk.f32.mxu1 %vm6963_vm1, %v6962_v2  ;;  %v3434_v46 = vrot.slane %v6846_v45, 2 }
 0x177   : > { %6037 = vmatprep.mubr.msk.f32.mxu0 %vm6963_vm1, %v6962_v2 }
 0x179   : > { %5532 = vmatmul.mubr.msk.f32.gmra.mrb[30].mxu1 %vm611_vm3, %v7898_v49  ;;  %v3435_v49 = vsel %vm2252_vm4, %v3432_v21, %v3434_v46 }
 0x17a   : > { %6038 = vmatmul.mubr.msk.f32.gmra.mrb[66].mxu0 %vm611_vm3, %v8162_v39  ;;  %5534 = vmatprep.mubr.msk.f32.mxu1 %vm6963_vm1, %v6962_v2 }
 0x17b   : > { %6040 = vmatprep.mubr.msk.f32.mxu0 %vm6963_vm1, %v6962_v2 }
 0x17d   : > { %5535 = vmatmul.mubr.msk.f32.gmra.mrb[32].mxu1 %vm611_vm3, %v7913_v54  ;;  %v3438_v54 = vrot.slane %v6848_v20, 2 }
 0x17e   : > { %6041 = vmatmul.mubr.msk.f32.gmra.mrb[68].mxu0 %vm611_vm3, %v3130_v42  ;;  %5537 = vmatprep.mubr.msk.f32.mxu1 %vm6963_vm1, %v6962_v2  ;;  %v6865_v42 = vld [vmem:[%s7037_s10 + $0xa8] sm:$0xff] }
 0x17f   : > { %6043 = vmatprep.mubr.msk.f32.mxu0 %vm6963_vm1, %v6962_v2  ;;  %v3439_v21 = vsel %vm2252_vm4, %v3436_v51, %v3438_v54 }
 0x181   : > { %5538 = vmatmul.mubr.msk.f32.gmra.mrb[34].mxu1 %vm611_vm3, %v7928_v59  ;;  %v3441_v59 = vsel %vm2252_vm4, %v3438_v54, %v3440_v56  ;;  %v6870_v54 = vld [vmem:[%s7037_s10 + $0xb8] sm:$0xff] }
 0x182   : > { %6044 = vmatmul.mubr.msk.f32.gmra.mrb[70].mxu0 %vm611_vm3, %v3132_v44  ;;  %5540 = vmatprep.mubr.msk.f32.mxu1 %vm6963_vm1, %v6962_v2  ;;  %v6866_v44 = vld [vmem:[%s7232_s20 + $0x20] sm:$0xff] }
 0x183   : > { %6046 = vmatprep.mubr.msk.f32.mxu0 %vm6963_vm1, %v6962_v2  ;;  %v1781_v45 = vrot.slane %v6866_v44, 1  ;;  %v6887_v44 = vld [vmem:[%s7232_s20 + $0x70] sm:$0xff] }
 0x185   : > { %5541 = vmatmul.mubr.msk.f32.gmra.mrb[36].mxu1 %vm611_vm3, %v7943_v0  ;;  %v3443_v0 = vsel %vm2252_vm4, %v3440_v56, %v3442_v61  ;;  %v6871_v56 = vld [vmem:[%s7232_s20 + $0x30] sm:$0xff]  ;;  %v6872_v61 = vld [vmem:[%s7037_s10 + $0xc0] sm:$0xff] }
 0x186   : > { %6047 = vmatmul.mubr.msk.f32.gmra.mrb[72].mxu0 %vm611_vm3, %v3131_v43  ;;  %5543 = vmatprep.mubr.msk.f32.mxu1 %vm6963_vm1, %v6962_v2  ;;  %v3468_v43 = vrot.slane %v6865_v42, 2  ;;  %v6886_v42 = vld [vmem:[%s7037_s10 + $0xf8] sm:$0xff] }
 0x187   : > { %6051 = vmatprep.mubr.msk.f32.mxu0 %vm6963_vm1, %v6962_v2 }
 0x189   : > { %5544 = vmatmul.mubr.msk.f32.gmra.mrb[38].mxu1 %vm611_vm3, %v7960_v6  ;;  %v3446_v6 = vrot.slane %v6852_v3, 2 }
 0x18a   : > { %6052 = vmatmul.mubr.msk.f32.vlgmr.msra.gmra.mrb[0].mxu0 %vm611_vm3, %v7780_v25  ;;  %5546 = vmatprep.mubr.msk.f32.mxu1 %vm6963_vm1, %v6962_v2  ;;  %v3437_v25 = vsel %vm2252_vm4, %v3434_v46, %v3436_v51  ;;  %v1783_v51 = vrot.slane %v6868_v50, 1  ;;  %v6889_v50 = vld [vmem:[%s7232_s20 + $0x78] sm:$0xff] }
 0x18b   : > { %6163 = vmatpush3.msk.msra.mxu0 %vm686_vm0, %v499_v48  ;;  %6054 = vmatprep.mubr.msk.f32.mxu0 %vm6963_vm1, %v6962_v2  ;;  %v3447_v47 = vsel %vm2252_vm4, %v3444_v4, %v3446_v6  ;;  %v6867_v48 = vld [vmem:[%s7037_s10 + $0xb0] sm:$0xff]  ;;  %v6873_v4 = vld [vmem:[%s7232_s20 + $0x38] sm:$0xff] }
 0x18c   : > { %v1784_v55 = vsel %vm537_vm2, %v1781_v45, %v1783_v51 }
 0x18d   : > { %5547 = vmatmul.mubr.msk.f32.gmra.mrb[40].mxu1 %vm611_vm3, %v7973_v7  ;;  %v3448_v7 = vrot.slane %v6853_v52, 2 }
 0x18e   : > { %6055 = vmatmul.mubr.msk.f32.gmra.mrb[2].mxu0 %vm611_vm3, %v3435_v49  ;;  %5549 = vmatprep.mubr.msk.f32.mxu1 %vm6963_vm1, %v6962_v2  ;;  %v3470_v49 = vrot.slane %v6867_v48, 2  ;;  %v6888_v48 = vld [vmem:[%s7037_s10 + $0x100] sm:$0xff] }
 0x18f   : > { %6057 = vmatprep.mubr.msk.f32.mxu0 %vm6963_vm1, %v6962_v2  ;;  %v3449_v9 = vsel %vm2252_vm4, %v3446_v6, %v3448_v7  ;;  %v6874_v6 = vld [vmem:[%s7037_s10 + $0xc8] sm:$0xff] }
 0x190   : > { %v3471_v20 = vsel %vm2252_vm4, %v3468_v43, %v3470_v49 }
 0x191   : > { %5550 = vmatmul.mubr.msk.f32.gmra.mrb[42].mxu1 %vm611_vm3, %v7991_v15  ;;  %v3451_v15 = vsel %vm2252_vm4, %v3448_v7, %v3450_v11  ;;  %v6875_v7 = vld [vmem:[%s7232_s20 + $0x40] sm:$0xff] }
 0x192   : > { %6058 = vmatmul.mubr.msk.f32.gmra.mrb[4].mxu0 %vm611_vm3, %v3437_v25  ;;  %5552 = vmatprep.mubr.msk.f32.mxu1 %vm6963_vm1, %v6962_v2  ;;  %v6869_v25 = vld [vmem:[%s9127_s4 + $0x10] sm:$0x7] }
 0x193   : > { %6060 = vmatprep.mubr.msk.f32.mxu0 %vm6963_vm1, %v6962_v2 }
 0x195   : > { %5553 = vmatmul.mubr.msk.f32.gmra.mrb[44].mxu1 %vm611_vm3, %v8003_v63  ;;  %v3452_v63 = vrot.slane %v6855_v58, 2 }
 0x196   : > { %6061 = vmatmul.mubr.msk.f32.gmra.mrb[6].mxu0 %vm611_vm3, %v3439_v21  ;;  %5555 = vmatprep.mubr.msk.f32.mxu1 %vm6963_vm1, %v6962_v2  ;;  %v3472_v21 = vrot.slane %v6870_v54, 2 }
 0x197   : > { %6063 = vmatprep.mubr.msk.f32.mxu0 %vm6963_vm1, %v6962_v2  ;;  %v3453_v14 = vsel %vm2252_vm4, %v3450_v11, %v3452_v63  ;;  %v6876_v11 = vld [vmem:[%s7037_s10 + $0xd0] sm:$0xff] }
 0x198   : > { %v3473_v60 = vsel %vm2252_vm4, %v3470_v49, %v3472_v21  ;;  %v3490_v49 = vrot.slane %v6888_v48, 2 }
 0x199   : > { %5556 = vmatmul.mubr.msk.f32.gmra.mrb[46].mxu1 %vm611_vm3, %v8015_v17  ;;  %v6856_v17 = vld [vmem:[%s7037_s10 + $0x70] sm:$0xff] }
 0x19a   : > { %6064 = vmatmul.mubr.msk.f32.gmra.mrb[8].mxu0 %vm611_vm3, %v3441_v59  ;;  %5558 = vmatprep.mubr.msk.f32.mxu1 %vm6963_vm1, %v6962_v2  ;;  %v3454_v62 = vrot.slane %v6856_v17, 2  ;;  %v1785_v59 = vrot.slane %v6871_v56, 1 }
 0x19b   : > { %6066 = vmatprep.mubr.msk.f32.mxu0 %vm6963_vm1, %v6962_v2 }
 0x19c   : > { %v1786_v1 = vsel %vm537_vm2, %v1783_v51, %v1785_v59  ;;  %v1803_v51 = vrot.slane %v6889_v50, 1  ;;  %v6908_v50 = vld [vmem:[%s7441_s27 + $0x30] sm:$0xff] }
 0x19d   : > { %5559 = vmatmul.mubr.msk.f32.gmra.mrb[48].mxu1 %vm611_vm3, %v8027_v18  ;;  %v3455_v18 = vsel %vm2252_vm4, %v3452_v63, %v3454_v62  ;;  %v6877_v63 = vld [vmem:[%s7232_s20 + $0x48] sm:$0xff] }
 0x19e   : > { %6067 = vmatmul.mubr.msk.f32.gmra.mrb[10].mxu0 %vm611_vm3, %v3443_v0  ;;  %5561 = vmatprep.mubr.msk.f32.mxu1 %vm6963_vm1, %v6962_v2  ;;  %v3474_v0 = vrot.slane %v6872_v61, 2 }
 0x19f   : > { %6069 = vmatprep.mubr.msk.f32.mxu0 %vm6963_vm1, %v6962_v2 }
 0x1a0   : > { %v3475_v3 = vsel %vm2252_vm4, %v3472_v21, %v3474_v0 }
 0x1a1   : > { %5562 = vmatmul.mubr.msk.f32.gmra.mrb[50].mxu1 %vm611_vm3, %v8039_v19  ;;  %v3456_v19 = vrot.slane %v6857_v8, 2 }
 0x1a2   : > { %6070 = vmatmul.mubr.msk.f32.gmra.mrb[12].mxu0 %vm611_vm3, %v3445_v5  ;;  %5564 = vmatprep.mubr.msk.f32.mxu1 %vm6963_vm1, %v6962_v2  ;;  %v1787_v5 = vrot.slane %v6873_v4, 1 }
 0x1a3   : > { %6072 = vmatprep.mubr.msk.f32.mxu0 %vm6963_vm1, %v6962_v2  ;;  %v3457_v10 = vsel %vm2252_vm4, %v3454_v62, %v3456_v19  ;;  %v6878_v62 = vld [vmem:[%s7037_s10 + $0xd8] sm:$0xff] }
 0x1a4   : > { %v1788_v52 = vsel %vm537_vm2, %v1785_v59, %v1787_v5 }
 0x1a5   : > { %5565 = vmatmul.mubr.msk.f32.gmra.mrb[52].mxu1 %vm611_vm3, %v8051_v22  ;;  %v6858_v22 = vld [vmem:[%s7037_s10 + $0x80] sm:$0xff] }
 0x1a6   : > { %6073 = vmatmul.mubr.msk.f32.gmra.mrb[14].mxu0 %vm611_vm3, %v3447_v47  ;;  %5567 = vmatprep.mubr.msk.f32.mxu1 %vm6963_vm1, %v6962_v2  ;;  %v3458_v13 = vrot.slane %v6858_v22, 2  ;;  %v3476_v47 = vrot.slane %v6874_v6, 2 }
 0x1a7   : > { %6075 = vmatprep.mubr.msk.f32.mxu0 %vm6963_vm1, %v6962_v2 }
 0x1a8   : > { %v3477_v12 = vsel %vm2252_vm4, %v3474_v0, %v3476_v47 }
 0x1a9   : > { %5568 = vmatmul.mubr.msk.f32.gmra.mrb[54].mxu1 %vm611_vm3, %v8063_v23  ;;  %v3459_v23 = vsel %vm2252_vm4, %v3456_v19, %v3458_v13  ;;  %v6879_v19 = vld [vmem:[%s7232_s20 + $0x50] sm:$0xff] }
 0x1aa   : > { %6076 = vmatmul.mubr.msk.f32.gmra.mrb[16].mxu0 %vm611_vm3, %v3449_v9  ;;  %5570 = vmatprep.mubr.msk.f32.mxu1 %vm6963_vm1, %v6962_v2  ;;  %v1789_v9 = vrot.slane %v6875_v7, 1 }
 0x1ab   : > { %6078 = vmatprep.mubr.msk.f32.mxu0 %vm6963_vm1, %v6962_v2 }
 0x1ac   : > { %v1790_v58 = vsel %vm537_vm2, %v1787_v5, %v1789_v9 }
 0x1ad   : > { %5571 = vmatmul.mubr.msk.f32.gmra.mrb[56].mxu1 %vm611_vm3, %v8075_v26  ;;  %v3460_v26 = vrot.slane %v6859_v16, 2 }
 0x1ae   : > { %6079 = vmatmul.mubr.msk.f32.gmra.mrb[18].mxu0 %vm611_vm3, %v3451_v15  ;;  %5573 = vmatprep.mubr.msk.f32.mxu1 %vm6963_vm1, %v6962_v2  ;;  %v3478_v15 = vrot.slane %v6876_v11, 2 }
 0x1af   : > { %6081 = vmatprep.mubr.msk.f32.mxu0 %vm6963_vm1, %v6962_v2  ;;  %v3461_v24 = vsel %vm2252_vm4, %v3458_v13, %v3460_v26  ;;  %v6880_v13 = vld [vmem:[%s7037_s10 + $0xe0] sm:$0xff] }
 0x1b0   : > { %v3479_v17 = vsel %vm2252_vm4, %v3476_v47, %v3478_v15 }
 0x1b1   : > { %5574 = vmatmul.mubr.msk.f32.gmra.mrb[58].mxu1 %vm611_vm3, %v8087_v29  ;;  %v6860_v29 = vld [vmem:[%s7037_s10 + $0x90] sm:$0xff] }
 0x1b2   : > { %6082 = vmatmul.mubr.msk.f32.gmra.mrb[20].mxu0 %vm611_vm3, %v3453_v14  ;;  %5576 = vmatprep.mubr.msk.f32.mxu1 %vm6963_vm1, %v6962_v2  ;;  %v3462_v28 = vrot.slane %v6860_v29, 2  ;;  %v1791_v14 = vrot.slane %v6877_v63, 1  ;;  %v6897_v63 = vld [vmem:[%s7232_s20 + $0x98] sm:$0xff] }
 0x1b3   : > { %6084 = vmatprep.mubr.msk.f32.mxu0 %vm6963_vm1, %v6962_v2 }
 0x1b4   : > { %v1792_v8 = vsel %vm537_vm2, %v1789_v9, %v1791_v14 }
 0x1b5   : > { %5577 = vmatmul.mubr.msk.f32.gmra.mrb[60].mxu1 %vm611_vm3, %v8099_v27  ;;  %v3463_v27 = vsel %vm2252_vm4, %v3460_v26, %v3462_v28  ;;  %v6881_v26 = vld [vmem:[%s7232_s20 + $0x58] sm:$0xff] }
 0x1b6   : > { %6085 = vmatmul.mubr.msk.f32.gmra.mrb[22].mxu0 %vm611_vm3, %v3455_v18  ;;  %5579 = vmatprep.mubr.msk.f32.mxu1 %vm6963_vm1, %v6962_v2  ;;  %v3480_v18 = vrot.slane %v6878_v62, 2 }
 0x1b7   : > { %6087 = vmatprep.mubr.msk.f32.mxu0 %vm6963_vm1, %v6962_v2 }
 0x1b8   : > { %v3481_v22 = vsel %vm2252_vm4, %v3478_v15, %v3480_v18  ;;  %v450_v15 = vld [vmem:[%s7037_s10 + $0x128] sm:$0xff] }
 0x1b9   : > { %5580 = vmatmul.mubr.msk.f32.gmra.mrb[62].mxu1 %vm611_vm3, %v8111_v32  ;;  %v3464_v32 = vrot.slane %v6861_v30, 2  ;;  %v3500_v62 = vrot.slane %v450_v15, 2 }
 0x1ba   : > { %6088 = vmatmul.mubr.msk.f32.gmra.mrb[24].mxu0 %vm611_vm3, %v3457_v10  ;;  %5582 = vmatprep.mubr.msk.f32.mxu1 %vm6963_vm1, %v6962_v2  ;;  %v1793_v10 = vrot.slane %v6879_v19, 1  ;;  %v6898_v19 = vld [vmem:[%s7232_s20 + $0xa0] sm:$0xff] }
 0x1bb   : > { %6090 = vmatprep.mubr.msk.f32.mxu0 %vm6963_vm1, %v6962_v2  ;;  %v3465_v31 = vsel %vm2252_vm4, %v3462_v28, %v3464_v32  ;;  %v6882_v28 = vld [vmem:[%s7037_s10 + $0xe8] sm:$0xff] }
 0x1bc   : > { %v1794_v16 = vsel %vm537_vm2, %v1791_v14, %v1793_v10  ;;  %v1811_v14 = vrot.slane %v6897_v63, 1 }
 0x1bd   : > { %5583 = vmatmul.mubr.msk.f32.gmra.mrb[64].mxu1 %vm611_vm3, %v8123_v33  ;;  %v6862_v33 = vld [vmem:[%s7037_s10 + $0xa0] sm:$0xff] }
 0x1be   : > { %6091 = vmatmul.mubr.msk.f32.gmra.mrb[26].mxu0 %vm611_vm3, %v3459_v23  ;;  %5585 = vmatprep.mubr.msk.f32.mxu1 %vm6963_vm1, %v6962_v2  ;;  %v3466_v34 = vrot.slane %v6862_v33, 2  ;;  %v3482_v23 = vrot.slane %v6880_v13, 2 }
 0x1bf   : > { %6093 = vmatprep.mubr.msk.f32.mxu0 %vm6963_vm1, %v6962_v2 }
 0x1c0   : > { %v3467_v41 = vsel %vm2252_vm4, %v3464_v32, %v3466_v34  ;;  %v3469_v46 = vsel %vm2252_vm4, %v3466_v34, %v3468_v43  ;;  %v3483_v29 = vsel %vm2252_vm4, %v3480_v18, %v3482_v23  ;;  %v6883_v32 = vld [vmem:[%s7232_s20 + $0x60] sm:$0xff]  ;;  %v6884_v34 = vld [vmem:[%s7037_s10 + $0xf0] sm:$0xff]  ;;  %v3488_v43 = vrot.slane %v6886_v42, 2 }
 0x1c1   : > { %5586 = vmatmul.mubr.msk.f32.gmra.mrb[66].mxu1 %vm611_vm3, %v8135_v35  ;;  %v6863_v35 = vld [vmem:[%s7232_s20 + $0x10] sm:$0xff] }
 0x1c2   : > { %6094 = vmatmul.mubr.msk.f32.gmra.mrb[28].mxu0 %vm611_vm3, %v3461_v24  ;;  %5588 = vmatprep.mubr.msk.f32.mxu1 %vm6963_vm1, %v6962_v2  ;;  %v1795_v24 = vrot.slane %v6881_v26, 1  ;;  %v451_v18 = vld [vmem:[%s7037_s10 + $0x130] sm:$0x7] }
 0x1c3   : > { %6096 = vmatprep.mubr.msk.f32.mxu0 %vm6963_vm1, %v6962_v2  ;;  %v3502_v13 = vrot.slane %v451_v18, 2 }
 0x1c4   : > { %v1796_v30 = vsel %vm537_vm2, %v1793_v10, %v1795_v24  ;;  %v1813_v10 = vrot.slane %v6898_v19, 1 }
 0x1c5   : > { %5589 = vmatmul.mubr.msk.f32.gmra.mrb[68].mxu1 %vm611_vm3, %v8149_v37  ;;  %v1778_v37 = vrot.slane %v6863_v35, 1  ;;  %v3486_v35 = vrot.slane %v6884_v34, 2 }
 0x1c6   : > { %6097 = vmatmul.mubr.msk.f32.gmra.mrb[30].mxu0 %vm611_vm3, %v3463_v27  ;;  %5591 = vmatprep.mubr.msk.f32.mxu1 %vm6963_vm1, %v6962_v2  ;;  %v3484_v27 = vrot.slane %v6882_v28, 2  ;;  %v6900_v28 = vld [vmem:[%s7232_s20 + $0xb0] sm:$0xff] }
 0x1c7   : > { %6099 = vmatprep.mubr.msk.f32.mxu0 %vm6963_vm1, %v6962_v2 }
 0x1c8   : > { %v3485_v33 = vsel %vm2252_vm4, %v3482_v23, %v3484_v27  ;;  %v1814_v23 = vsel %vm537_vm2, %v1811_v14, %v1813_v10 }
 0x1c9   : > { %5592 = vmatmul.mubr.msk.f32.gmra.mrb[70].mxu1 %vm611_vm3, %v8162_v39  ;;  %v1780_v39 = vsel %vm537_vm2, %v1778_v37, %v1779_v40 }
 0x1ca   : > { %6100 = vmatmul.mubr.msk.f32.gmra.mrb[32].mxu0 %vm611_vm3, %v3465_v31  ;;  %5594 = vmatprep.mubr.msk.f32.mxu1 %vm6963_vm1, %v6962_v2  ;;  %v1797_v31 = vrot.slane %v6883_v32, 1 }
 0x1cb   : > { %6102 = vmatprep.mubr.msk.f32.mxu0 %vm6963_vm1, %v6962_v2 }
 0x1cc   : > { %v1798_v37 = vsel %vm537_vm2, %v1795_v24, %v1797_v31  ;;  %v3503_v24 = vsel %vm2252_vm4, %v3500_v62, %v3502_v13 }
 0x1cd   : > { %5595 = vmatmul.mubr.msk.f32.gmra.mrb[72].mxu1 %vm611_vm3, %v8144_v36  ;;  %v1782_v36 = vsel %vm537_vm2, %v1779_v40, %v1781_v45  ;;  %v1799_v40 = vrot.slane %v6885_v38, 1  ;;  %v1801_v45 = vrot.slane %v6887_v44, 1  ;;  %v6904_v38 = vld [vmem:[%s7441_s27 + $0x20] sm:$0xff]  ;;  %v6906_v44 = vld [vmem:[%s7441_s27 + $0x28] sm:$0xff] }
 0x1ce   : > { %6103 = vmatmul.mubr.msk.f32.gmra.mrb[34].mxu0 %vm611_vm3, %v3467_v41  ;;  %5599 = vmatprep.mubr.msk.f32.mxu1 %vm6963_vm1, %v6962_v2  ;;  %v3487_v41 = vsel %vm2252_vm4, %v3484_v27, %v3486_v35  ;;  %v1817_v27 = vrot.slane %v6900_v28, 1  ;;  %v6921_v28 = vld [vmem:[%s7232_s20 + $0x100] sm:$0xff] }
 0x1cf   : > { %6105 = vmatprep.mubr.msk.f32.mxu0 %vm6963_vm1, %v6962_v2  ;;  %v1804_v21 = vsel %vm537_vm2, %v1801_v45, %v1803_v51 }
 0x1d1   : > { %5600 = vmatmul.mubr.msk.f32.vlgmr.msra.gmra.mrb[0].mxu1 %vm611_vm3, %v1780_v39  ;;  %v1800_v39 = vsel %vm537_vm2, %v1797_v31, %v1799_v40  ;;  %v6902_v31 = vld [vmem:[%s7441_s27 + $0x18] sm:$0xff] }
 0x1d2   : > { %6106 = vmatmul.mubr.msk.f32.gmra.mrb[36].mxu0 %vm611_vm3, %v3469_v46  ;;  %5602 = vmatprep.mubr.msk.f32.mxu1 %vm6963_vm1, %v6962_v2  ;;  %v3489_v46 = vsel %vm2252_vm4, %v3486_v35, %v3488_v43  ;;  %v6903_v35 = vld [vmem:[%s7232_s20 + $0xb8] sm:$0xff] }
 0x1d3   : > { %6108 = vmatprep.mubr.msk.f32.mxu0 %vm6963_vm1, %v6962_v2  ;;  %6276 = vmatpush3.msk.msra.mxu1 %vm686_vm0, %v6869_v25  ;;  %v3491_v25 = vsel %vm2252_vm4, %v3488_v43, %v3490_v49  ;;  %v6905_v43 = vld [vmem:[%s7232_s20 + $0xc0] sm:$0xff] }
 0x1d5   : > { %5603 = vmatmul.mubr.msk.f32.gmra.mrb[2].mxu1 %vm611_vm3, %v1782_v36  ;;  %v1802_v36 = vsel %vm537_vm2, %v1799_v40, %v1801_v45  ;;  %v3871_v40 = vrot.slane %v6904_v38, 2  ;;  %v3873_v45 = vrot.slane %v6906_v44, 2 }
 0x1d6   : > { %6109 = vmatmul.mubr.msk.f32.gmra.mrb[38].mxu0 %vm611_vm3, %v3471_v20  ;;  %5605 = vmatprep.mubr.msk.f32.mxu1 %vm6963_vm1, %v6962_v2  ;;  %v6890_v20 = vld [vmem:[%s7037_s10 + $0x108] sm:$0xff] }
 0x1d7   : > { %6111 = vmatprep.mubr.msk.f32.mxu0 %vm6963_vm1, %v6962_v2  ;;  %v3492_v54 = vrot.slane %v6890_v20, 2 }
 0x1d9   : > { %5606 = vmatmul.mubr.msk.f32.gmra.mrb[4].mxu1 %vm611_vm3, %v1784_v55  ;;  %v6891_v55 = vld [vmem:[%s7232_s20 + $0x80] sm:$0xff]  ;;  %v3493_v59 = vsel %vm2252_vm4, %v3490_v49, %v3492_v54  ;;  %v6907_v49 = vld [vmem:[%s7232_s20 + $0xc8] sm:$0xff] }
 0x1da   : > { %6112 = vmatmul.mubr.msk.f32.gmra.mrb[40].mxu0 %vm611_vm3, %v3473_v60  ;;  %5608 = vmatprep.mubr.msk.f32.mxu1 %vm6963_vm1, %v6962_v2  ;;  %v1805_v56 = vrot.slane %v6891_v55, 1  ;;  %v6892_v60 = vld [vmem:[%s7037_s10 + $0x110] sm:$0xff]  ;;  %v6910_v55 = vld [vmem:[%s7441_s27 + $0x38] sm:$0xff] }
 0x1db   : > { %6114 = vmatprep.mubr.msk.f32.mxu0 %vm6963_vm1, %v6962_v2  ;;  %v3494_v61 = vrot.slane %v6892_v60, 2 }
 0x1dc   : > { %v1806_v0 = vsel %vm537_vm2, %v1803_v51, %v1805_v56  ;;  %v3875_v51 = vrot.slane %v6908_v50, 2 }
 0x1dd   : > { %5609 = vmatmul.mubr.msk.f32.gmra.mrb[6].mxu1 %vm611_vm3, %v1786_v1  ;;  %v6893_v1 = vld [vmem:[%s7232_s20 + $0x88] sm:$0xff]  ;;  %v3495_v5 = vsel %vm2252_vm4, %v3492_v54, %v3494_v61  ;;  %v6909_v54 = vld [vmem:[%s7232_s20 + $0xd0] sm:$0xff] }
 0x1de   : > { %6115 = vmatmul.mubr.msk.f32.gmra.mrb[42].mxu0 %vm611_vm3, %v3475_v3  ;;  %5611 = vmatprep.mubr.msk.f32.mxu1 %vm6963_vm1, %v6962_v2  ;;  %v1807_v4 = vrot.slane %v6893_v1, 1  ;;  %v6894_v3 = vld [vmem:[%s7037_s10 + $0x118] sm:$0xff]  ;;  %v6912_v1 = vld [vmem:[%s7441_s27 + $0x40] sm:$0xff] }
 0x1df   : > { %6117 = vmatprep.mubr.msk.f32.mxu0 %vm6963_vm1, %v6962_v2  ;;  %v3496_v6 = vrot.slane %v6894_v3, 2 }
 0x1e0   : > { %v1808_v47 = vsel %vm537_vm2, %v1805_v56, %v1807_v4  ;;  %v3877_v56 = vrot.slane %v6910_v55, 2 }
 0x1e1   : > { %5612 = vmatmul.mubr.msk.f32.gmra.mrb[8].mxu1 %vm611_vm3, %v1788_v52  ;;  %v6895_v52 = vld [vmem:[%s7232_s20 + $0x90] sm:$0xff]  ;;  %v3497_v9 = vsel %vm2252_vm4, %v3494_v61, %v3496_v6  ;;  %v6911_v61 = vld [vmem:[%s7232_s20 + $0xd8] sm:$0xff] }
 0x1e2   : > { %6118 = vmatmul.mubr.msk.f32.gmra.mrb[44].mxu0 %vm611_vm3, %v3477_v12  ;;  %5614 = vmatprep.mubr.msk.f32.mxu1 %vm6963_vm1, %v6962_v2  ;;  %v1809_v7 = vrot.slane %v6895_v52, 1  ;;  %v6896_v12 = vld [vmem:[%s7037_s10 + $0x120] sm:$0xff]  ;;  %v6914_v52 = vld [vmem:[%s7441_s27 + $0x48] sm:$0xff] }
 0x1e3   : > { %6120 = vmatprep.mubr.msk.f32.mxu0 %vm6963_vm1, %v6962_v2  ;;  %v3498_v11 = vrot.slane %v6896_v12, 2 }
 0x1e5   : > { %5615 = vmatmul.mubr.msk.f32.gmra.mrb[10].mxu1 %vm611_vm3, %v1790_v58  ;;  %v1810_v58 = vsel %vm537_vm2, %v1807_v4, %v1809_v7  ;;  %v3879_v4 = vrot.slane %v6912_v1, 2 }
 0x1e6   : > { %6121 = vmatmul.mubr.msk.f32.gmra.mrb[46].mxu0 %vm611_vm3, %v3479_v17  ;;  %5617 = vmatprep.mubr.msk.f32.mxu1 %vm6963_vm1, %v6962_v2  ;;  %v3499_v17 = vsel %vm2252_vm4, %v3496_v6, %v3498_v11  ;;  %v6913_v6 = vld [vmem:[%s7232_s20 + $0xe0] sm:$0xff] }
 0x1e7   : > { %6123 = vmatprep.mubr.msk.f32.mxu0 %vm6963_vm1, %v6962_v2 }
 0x1e9   : > { %5618 = vmatmul.mubr.msk.f32.gmra.mrb[12].mxu1 %vm611_vm3, %v1792_v8  ;;  %v1812_v8 = vsel %vm537_vm2, %v1809_v7, %v1811_v14  ;;  %v3881_v7 = vrot.slane %v6914_v52, 2 }
 0x1ea   : > { %6124 = vmatmul.mubr.msk.f32.gmra.mrb[48].mxu0 %vm611_vm3, %v3481_v22  ;;  %5620 = vmatprep.mubr.msk.f32.mxu1 %vm6963_vm1, %v6962_v2  ;;  %v3501_v22 = vsel %vm2252_vm4, %v3498_v11, %v3500_v62  ;;  %v6915_v11 = vld [vmem:[%s7232_s20 + $0xe8] sm:$0xff]  ;;  %v6917_v62 = vld [vmem:[%s7232_s20 + $0xf0] sm:$0xff] }
 0x1eb   : > { %6126 = vmatprep.mubr.msk.f32.mxu0 %vm6963_vm1, %v6962_v2  ;;  %v1831_v15 = vrot.slane %v6915_v11, 1  ;;  %v3882_v14 = vsel %vm2252_vm4, %v3879_v4, %v3881_v7  ;;  %v1833_v18 = vrot.slane %v6917_v62, 1 }
 0x1ed   : > { %5621 = vmatmul.mubr.msk.f32.gmra.mrb[14].mxu1 %vm611_vm3, %v1794_v16  ;;  %v6899_v16 = vld [vmem:[%s7232_s20 + $0xa8] sm:$0xff] }
 0x1ee   : > { %6127 = vmatmul.mubr.msk.f32.gmra.mrb[50].mxu0 %vm611_vm3, %v3483_v29  ;;  %5623 = vmatprep.mubr.msk.f32.mxu1 %vm6963_vm1, %v6962_v2  ;;  %v1815_v26 = vrot.slane %v6899_v16, 1  ;;  %v6920_v16 = vld [vmem:[%s7441_s27 + $0x60] sm:$0xff] }
 0x1ef   : > { %6129 = vmatprep.mubr.msk.f32.mxu0 %vm6963_vm1, %v6962_v2 }
 0x1f0   : > { %v1816_v29 = vsel %vm537_vm2, %v1813_v10, %v1815_v26  ;;  %v1818_v34 = vsel %vm537_vm2, %v1815_v26, %v1817_v27  ;;  %v3887_v26 = vrot.slane %v6920_v16, 2  ;;  %v6938_v16 = vld [vmem:[%s7441_s27 + $0xb8] sm:$0xff] }
 0x1f1   : > { %5624 = vmatmul.mubr.msk.f32.gmra.mrb[16].mxu1 %vm611_vm3, %v1796_v30  ;;  %v6901_v30 = vld [vmem:[%s7441_s27 + $0x10] sm:$0xff] }
 0x1f2   : > { %6130 = vmatmul.mubr.msk.f32.gmra.mrb[52].mxu0 %vm611_vm3, %v3485_v33  ;;  %5626 = vmatprep.mubr.msk.f32.mxu1 %vm6963_vm1, %v6962_v2  ;;  %v3868_v32 = vrot.slane %v6901_v30, 2  ;;  %v3869_v33 = vrot.slane %v6902_v31, 2  ;;  %v6922_v30 = vld [vmem:[%s7441_s27 + $0x68] sm:$0xff] }
 0x1f3   : > { %6132 = vmatprep.mubr.msk.f32.mxu0 %vm6963_vm1, %v6962_v2 }
 0x1f5   : > { %5627 = vmatmul.mubr.msk.f32.gmra.mrb[18].mxu1 %vm611_vm3, %v1798_v37  ;;  %v1819_v37 = vrot.slane %v6903_v35, 1 }
 0x1f6   : > { %6133 = vmatmul.mubr.msk.f32.gmra.mrb[54].mxu0 %vm611_vm3, %v3487_v41  ;;  %5629 = vmatprep.mubr.msk.f32.mxu1 %vm6963_vm1, %v6962_v2  ;;  %v3870_v41 = vsel %vm2252_vm4, %v3868_v32, %v3869_v33  ;;  %v3889_v32 = vrot.slane %v6922_v30, 2  ;;  %v6939_v30 = vld [vmem:[%s7441_s27 + $0xc0] sm:$0xff] }
 0x1f7   : > { %6135 = vmatprep.mubr.msk.f32.mxu0 %vm6963_vm1, %v6962_v2  ;;  %v1820_v42 = vsel %vm537_vm2, %v1817_v27, %v1819_v37  ;;  %v1837_v27 = vrot.slane %v6921_v28, 1 }
 0x1f9   : > { %5630 = vmatmul.mubr.msk.f32.gmra.mrb[20].mxu1 %vm611_vm3, %v1800_v39  ;;  %v1821_v39 = vrot.slane %v6905_v43, 1 }
 0x1fa   : > { %6136 = vmatmul.mubr.msk.f32.gmra.mrb[56].mxu0 %vm611_vm3, %v3489_v46  ;;  %5632 = vmatprep.mubr.msk.f32.mxu1 %vm6963_vm1, %v6962_v2  ;;  %v3872_v46 = vsel %vm2252_vm4, %v3869_v33, %v3871_v40 }
 0x1fb   : > { %6138 = vmatprep.mubr.msk.f32.mxu0 %vm6963_vm1, %v6962_v2  ;;  %v1822_v48 = vsel %vm537_vm2, %v1819_v37, %v1821_v39  ;;  %v6924_v37 = vld [vmem:[%s7441_s27 + $0x70] sm:$0xff] }
 0x1fc   : > { %v3891_v38 = vrot.slane %v6924_v37, 2  ;;  %v6940_v37 = vld [vmem:[%s7441_s27 + $0xc8] sm:$0xff] }
 0x1fd   : > { %5633 = vmatmul.mubr.msk.f32.gmra.mrb[22].mxu1 %vm611_vm3, %v1802_v36  ;;  %v1823_v36 = vrot.slane %v6907_v49, 1 }
 0x1fe   : > { %6139 = vmatmul.mubr.msk.f32.gmra.mrb[58].mxu0 %vm611_vm3, %v3491_v25  ;;  %5635 = vmatprep.mubr.msk.f32.mxu1 %vm6963_vm1, %v6962_v2  ;;  %v3874_v25 = vsel %vm2252_vm4, %v3871_v40, %v3873_v45  ;;  %v3890_v40 = vsel %vm2252_vm4, %v3887_v26, %v3889_v32 }
 0x1ff   : > { %6141 = vmatprep.mubr.msk.f32.mxu0 %vm6963_vm1, %v6962_v2  ;;  %v1824_v20 = vsel %vm537_vm2, %v1821_v39, %v1823_v36  ;;  %v6926_v39 = vld [vmem:[%s7441_s27 + $0x78] sm:$0xff] }
 0x200   : > { %v3893_v44 = vrot.slane %v6926_v39, 2  ;;  %v6941_v39 = vld [vmem:[%s7441_s27 + $0xd0] sm:$0xff] }
 0x201   : > { %5636 = vmatmul.mubr.msk.f32.gmra.mrb[24].mxu1 %vm611_vm3, %v1804_v21  ;;  %v1825_v21 = vrot.slane %v6909_v54, 1 }
 0x202   : > { %6142 = vmatmul.mubr.msk.f32.gmra.mrb[60].mxu0 %vm611_vm3, %v3493_v59  ;;  %5638 = vmatprep.mubr.msk.f32.mxu1 %vm6963_vm1, %v6962_v2  ;;  %v3876_v59 = vsel %vm2252_vm4, %v3873_v45, %v3875_v51  ;;  %v3892_v45 = vsel %vm2252_vm4, %v3889_v32, %v3891_v38  ;;  %v3911_v32 = vrot.slane %v6939_v30, 2  ;;  %v373_v30 = vld [vmem:[%s7043_s13 + $0x120] sm:$0xff] }
 0x203   : > { %6144 = vmatprep.mubr.msk.f32.mxu0 %vm6963_vm1, %v6962_v2  ;;  %v1826_v60 = vsel %vm537_vm2, %v1823_v36, %v1825_v21  ;;  %v6928_v36 = vld [vmem:[%s7441_s27 + $0x80] sm:$0xff] }
 0x204   : > { %v3895_v50 = vrot.slane %v6928_v36, 2  ;;  %v6942_v36 = vld [vmem:[%s7441_s27 + $0xd8] sm:$0xff] }
 0x205   : > { %5639 = vmatmul.mubr.msk.f32.gmra.mrb[26].mxu1 %vm611_vm3, %v1806_v0  ;;  %v1827_v0 = vrot.slane %v6911_v61, 1 }
 0x206   : > { %6145 = vmatmul.mubr.msk.f32.gmra.mrb[62].mxu0 %vm611_vm3, %v3495_v5  ;;  %5641 = vmatprep.mubr.msk.f32.mxu1 %vm6963_vm1, %v6962_v2  ;;  %v3878_v5 = vsel %vm2252_vm4, %v3875_v51, %v3877_v56  ;;  %v3894_v51 = vsel %vm2252_vm4, %v3891_v38, %v3893_v44  ;;  %v3913_v38 = vrot.slane %v6940_v37, 2  ;;  %v374_v37 = vld [vmem:[%s7043_s13 + $0x128] sm:$0xff] }
 0x207   : > { %6147 = vmatprep.mubr.msk.f32.mxu0 %vm6963_vm1, %v6962_v2  ;;  %v1828_v3 = vsel %vm537_vm2, %v1825_v21, %v1827_v0  ;;  %v6930_v21 = vld [vmem:[%s7441_s27 + $0x88] sm:$0xff] }
 0x208   : > { %v3897_v55 = vrot.slane %v6930_v21, 2  ;;  %v6943_v21 = vld [vmem:[%s7441_s27 + $0xe0] sm:$0xff] }
 0x209   : > { %5642 = vmatmul.mubr.msk.f32.gmra.mrb[28].mxu1 %vm611_vm3, %v1808_v47  ;;  %v1829_v47 = vrot.slane %v6913_v6, 1 }
 0x20a   : > { %6148 = vmatmul.mubr.msk.f32.gmra.mrb[64].mxu0 %vm611_vm3, %v3497_v9  ;;  %5644 = vmatprep.mubr.msk.f32.mxu1 %vm6963_vm1, %v6962_v2  ;;  %v3880_v9 = vsel %vm2252_vm4, %v3877_v56, %v3879_v4  ;;  %v3896_v56 = vsel %vm2252_vm4, %v3893_v44, %v3895_v50  ;;  %v3898_v4 = vsel %vm2252_vm4, %v3895_v50, %v3897_v55  ;;  %v3915_v44 = vrot.slane %v6941_v39, 2  ;;  %v375_v39 = vld [vmem:[%s7043_s13 + $0x130] sm:$0x7] }
 0x20b   : > { %6150 = vmatprep.mubr.msk.f32.mxu0 %vm6963_vm1, %v6962_v2  ;;  %v1830_v12 = vsel %vm537_vm2, %v1827_v0, %v1829_v47  ;;  %v6932_v0 = vld [vmem:[%s7441_s27 + $0x90] sm:$0xff]  ;;  %v3917_v50 = vrot.slane %v6942_v36, 2 }
 0x20c   : > { %v3899_v1 = vrot.slane %v6932_v0, 2  ;;  %v6944_v0 = vld [vmem:[%s7441_s27 + $0xe8] sm:$0xff] }
 0x20d   : > { %5645 = vmatmul.mubr.msk.f32.gmra.mrb[30].mxu1 %vm611_vm3, %v1810_v58  ;;  %v6916_v58 = vld [vmem:[%s7441_s27 + $0x50] sm:$0xff] }
 0x20e   : > { %6151 = vmatmul.mubr.msk.f32.gmra.mrb[66].mxu0 %vm611_vm3, %v3499_v17  ;;  %5647 = vmatprep.mubr.msk.f32.mxu1 %vm6963_vm1, %v6962_v2  ;;  %v3883_v63 = vrot.slane %v6916_v58, 2  ;;  %v1832_v17 = vsel %vm537_vm2, %v1829_v47, %v1831_v15  ;;  %v6934_v47 = vld [vmem:[%s7441_s27 + $0x98] sm:$0xff]  ;;  %v359_v58 = vld [vmem:[%s7043_s13 + $0xb0] sm:$0xff] }
 0x20f   : > { %6153 = vmatprep.mubr.msk.f32.mxu0 %vm6963_vm1, %v6962_v2  ;;  %v3901_v52 = vrot.slane %v6934_v47, 2  ;;  %v6945_v47 = vld [vmem:[%s7441_s27 + $0xf0] sm:$0xff] }
 0x210   : > { %v3884_v10 = vsel %vm2252_vm4, %v3881_v7, %v3883_v63  ;;  %v3900_v7 = vsel %vm2252_vm4, %v3897_v55, %v3899_v1  ;;  %v3919_v55 = vrot.slane %v6943_v21, 2 }
 0x211   : > { %5648 = vmatmul.mubr.msk.f32.gmra.mrb[32].mxu1 %vm611_vm3, %v1812_v8  ;;  %v6918_v8 = vld [vmem:[%s7441_s27 + $0x58] sm:$0xff] }
 0x212   : > { %6154 = vmatmul.mubr.msk.f32.gmra.mrb[68].mxu0 %vm611_vm3, %v3501_v22  ;;  %5650 = vmatprep.mubr.msk.f32.mxu1 %vm6963_vm1, %v6962_v2  ;;  %v3885_v19 = vrot.slane %v6918_v8, 2  ;;  %v1834_v22 = vsel %vm537_vm2, %v1831_v15, %v1833_v18  ;;  %v3902_v15 = vsel %vm2252_vm4, %v3899_v1, %v3901_v52  ;;  %v3921_v1 = vrot.slane %v6944_v0, 2 }
 0x213   : > { %6156 = vmatprep.mubr.msk.f32.mxu0 %vm6963_vm1, %v6962_v2 }
 0x214   : > { %v3888_v31 = vsel %vm2252_vm4, %v3885_v19, %v3887_v26  ;;  %v3909_v26 = vrot.slane %v6938_v16, 2  ;;  %v372_v16 = vld [vmem:[%s7043_s13 + $0x118] sm:$0xff] }
 0x215   : > { %5651 = vmatmul.mubr.msk.f32.gmra.mrb[34].mxu1 %vm611_vm3, %v1814_v23 }
 0x216   : > { %6157 = vmatmul.mubr.msk.f32.gmra.mrb[70].mxu0 %vm611_vm3, %v3503_v24  ;;  %5653 = vmatprep.mubr.msk.f32.mxu1 %vm6963_vm1, %v6962_v2  ;;  %v3886_v24 = vsel %vm2252_vm4, %v3883_v63, %v3885_v19  ;;  %v2292_v63 = vrot.slane %v359_v58, 2 }
 0x217   : > { %6159 = vmatprep.mubr.msk.f32.mxu0 %vm6963_vm1, %v6962_v2 }
 0x218   : > { %v2293_v8 = vsel %vm2252_vm4, %v2290_v57, %v2292_v63 }
 0x219   : > { %5654 = vmatmul.mubr.msk.f32.gmra.mrb[36].mxu1 %vm611_vm3, %v1816_v29 }
 0x21a   : > { %6160 = vmatmul.mubr.msk.f32.gmra.mrb[72].mxu0 %vm611_vm3, %v3502_v13  ;;  %5656 = vmatprep.mubr.msk.f32.mxu1 %vm6963_vm1, %v6962_v2  ;;  %v6919_v13 = vld [vmem:[%s7232_s20 + $0xf8] sm:$0xff] }
 0x21b   : > { %6164 = vmatprep.mubr.msk.f32.mxu0 %vm6963_vm1, %v6962_v2  ;;  %v1835_v23 = vrot.slane %v6919_v13, 1 }
 0x21d   : > { %5657 = vmatmul.mubr.msk.f32.gmra.mrb[38].mxu1 %vm611_vm3, %v1818_v34  ;;  %v1836_v29 = vsel %vm537_vm2, %v1833_v18, %v1835_v23  ;;  %v1838_v33 = vsel %vm537_vm2, %v1835_v23, %v1837_v27  ;;  %v6923_v34 = vld [vmem:[%s7232_s20 + $0x108] sm:$0xff]  ;;  %v360_v18 = vld [vmem:[%s7043_s13 + $0xb8] sm:$0xff]  ;;  %v361_v23 = vld [vmem:[%s7043_s13 + $0xc0] sm:$0xff] }
 0x21e   : > { %6165 = vmatmul.mubr.msk.f32.vlgmr.msra.gmra.mrb[0].mxu0 %vm611_vm3, %v3870_v41  ;;  %5659 = vmatprep.mubr.msk.f32.mxu1 %vm6963_vm1, %v6962_v2  ;;  %v1839_v35 = vrot.slane %v6923_v34, 1  ;;  %v2294_v19 = vrot.slane %v360_v18, 2  ;;  %v2296_v57 = vrot.slane %v361_v23, 2  ;;  %v6947_v18 = vld [vmem:[%s7441_s27 + $0x100] sm:$0xff]  ;;  %v6948_v23 = vld [vmem:[%s7441_s27 + $0x108] sm:$0xff] }
 0x21f   : > { %6167 = vmatprep.mubr.msk.f32.mxu0 %vm6963_vm1, %v6962_v2 }
 0x220   : > { %v1840_v41 = vsel %vm537_vm2, %v1837_v27, %v1839_v35  ;;  %v2295_v53 = vsel %vm2252_vm4, %v2292_v63, %v2294_v19  ;;  %v2297_v28 = vsel %vm2252_vm4, %v2294_v19, %v2296_v57 }
 0x221   : > { %5660 = vmatmul.mubr.msk.f32.gmra.mrb[40].mxu1 %vm611_vm3, %v1820_v42  ;;  %v6925_v42 = vld [vmem:[%s7232_s20 + $0x110] sm:$0xff] }
 0x222   : > { %6168 = vmatmul.mubr.msk.f32.gmra.mrb[2].mxu0 %vm611_vm3, %v3872_v46  ;;  %5662 = vmatprep.mubr.msk.f32.mxu1 %vm6963_vm1, %v6962_v2  ;;  %v1841_v43 = vrot.slane %v6925_v42, 1 }
 0x223   : > { %6170 = vmatprep.mubr.msk.f32.mxu0 %vm6963_vm1, %v6962_v2 }
 0x224   : > { %v1842_v46 = vsel %vm537_vm2, %v1839_v35, %v1841_v43 }
 0x225   : > { %5663 = vmatmul.mubr.msk.f32.gmra.mrb[42].mxu1 %vm611_vm3, %v1822_v48  ;;  %v6927_v48 = vld [vmem:[%s7232_s20 + $0x118] sm:$0xff] }
 0x226   : > { %6171 = vmatmul.mubr.msk.f32.gmra.mrb[4].mxu0 %vm611_vm3, %v3874_v25  ;;  %5665 = vmatprep.mubr.msk.f32.mxu1 %vm6963_vm1, %v6962_v2  ;;  %v1843_v49 = vrot.slane %v6927_v48, 1 }
 0x227   : > { %6173 = vmatprep.mubr.msk.f32.mxu0 %vm6963_vm1, %v6962_v2 }
 0x228   : > { %v1844_v25 = vsel %vm537_vm2, %v1841_v43, %v1843_v49 }
 0x229   : > { %5666 = vmatmul.mubr.msk.f32.gmra.mrb[44].mxu1 %vm611_vm3, %v1824_v20  ;;  %v6929_v20 = vld [vmem:[%s7232_s20 + $0x120] sm:$0xff] }
 0x22a   : > { %6174 = vmatmul.mubr.msk.f32.gmra.mrb[6].mxu0 %vm611_vm3, %v3876_v59  ;;  %5668 = vmatprep.mubr.msk.f32.mxu1 %vm6963_vm1, %v6962_v2  ;;  %v1845_v54 = vrot.slane %v6929_v20, 1 }
 0x22b   : > { %6176 = vmatprep.mubr.msk.f32.mxu0 %vm6963_vm1, %v6962_v2 }
 0x22c   : > { %v1846_v59 = vsel %vm537_vm2, %v1843_v49, %v1845_v54 }
 0x22d   : > { %5669 = vmatmul.mubr.msk.f32.gmra.mrb[46].mxu1 %vm611_vm3, %v1826_v60  ;;  %v6931_v60 = vld [vmem:[%s7232_s20 + $0x128] sm:$0xff] }
 0x22e   : > { %6177 = vmatmul.mubr.msk.f32.gmra.mrb[8].mxu0 %vm611_vm3, %v3878_v5  ;;  %5671 = vmatprep.mubr.msk.f32.mxu1 %vm6963_vm1, %v6962_v2  ;;  %v1847_v61 = vrot.slane %v6931_v60, 1 }
 0x22f   : > { %6179 = vmatprep.mubr.msk.f32.mxu0 %vm6963_vm1, %v6962_v2 }
 0x230   : > { %v1848_v5 = vsel %vm537_vm2, %v1845_v54, %v1847_v61 }
 0x231   : > { %5672 = vmatmul.mubr.msk.f32.gmra.mrb[48].mxu1 %vm611_vm3, %v1828_v3  ;;  %v6933_v3 = vld [vmem:[%s7232_s20 + $0x130] sm:$0x7] }
 0x232   : > { %6180 = vmatmul.mubr.msk.f32.gmra.mrb[10].mxu0 %vm611_vm3, %v3880_v9  ;;  %5674 = vmatprep.mubr.msk.f32.mxu1 %vm6963_vm1, %v6962_v2  ;;  %v1849_v6 = vrot.slane %v6933_v3, 1 }
 0x233   : > { %6182 = vmatprep.mubr.msk.f32.mxu0 %vm6963_vm1, %v6962_v2 }
 0x234   : > { %v1850_v9 = vsel %vm537_vm2, %v1847_v61, %v1849_v6 }
 0x235   : > { %5675 = vmatmul.mubr.msk.f32.gmra.mrb[50].mxu1 %vm611_vm3, %v1830_v12  ;;  %v6935_v12 = vld [vmem:[%s7441_s27 + $0xa0] sm:$0xff] }
 0x236   : > { %6183 = vmatmul.mubr.msk.f32.gmra.mrb[12].mxu0 %vm611_vm3, %v3882_v14  ;;  %5677 = vmatprep.mubr.msk.f32.mxu1 %vm6963_vm1, %v6962_v2  ;;  %v3903_v11 = vrot.slane %v6935_v12, 2  ;;  %v6936_v14 = vld [vmem:[%s7441_s27 + $0xa8] sm:$0xff] }
 0x237   : > { %6185 = vmatprep.mubr.msk.f32.mxu0 %vm6963_vm1, %v6962_v2 }
 0x238   : > { %v3904_v62 = vsel %vm2252_vm4, %v3901_v52, %v3903_v11  ;;  %v3923_v52 = vrot.slane %v6945_v47, 2 }
 0x239   : > { %5678 = vmatmul.mubr.msk.f32.gmra.mrb[52].mxu1 %vm611_vm3, %v1832_v17  ;;  %v3905_v17 = vrot.slane %v6936_v14, 2  ;;  %v370_v14 = vld [vmem:[%s7043_s13 + $0x108] sm:$0xff] }
 0x23a   : > { %6186 = vmatmul.mubr.msk.f32.gmra.mrb[14].mxu0 %vm611_vm3, %v3884_v10  ;;  %5680 = vmatprep.mubr.msk.f32.mxu1 %vm6963_vm1, %v6962_v2  ;;  %v6937_v10 = vld [vmem:[%s7441_s27 + $0xb0] sm:$0xff]  ;;  %v3924_v63 = vsel %vm2252_vm4, %v3921_v1, %v3923_v52 }
 0x23b   : > { %6188 = vmatprep.mubr.msk.f32.mxu0 %vm6963_vm1, %v6962_v2  ;;  %v3906_v13 = vsel %vm2252_vm4, %v3903_v11, %v3905_v17 }
 0x23d   : > { %5681 = vmatmul.mubr.msk.f32.gmra.mrb[54].mxu1 %vm611_vm3, %v1834_v22  ;;  %v3907_v22 = vrot.slane %v6937_v10, 2  ;;  %v371_v10 = vld [vmem:[%s7043_s13 + $0x110] sm:$0xff] }
 0x23e   : > { %6189 = vmatmul.mubr.msk.f32.gmra.mrb[16].mxu0 %vm611_vm3, %v3886_v24  ;;  %5683 = vmatprep.mubr.msk.f32.mxu1 %vm6963_vm1, %v6962_v2 }
 0x23f   : > { %6191 = vmatprep.mubr.msk.f32.mxu0 %vm6963_vm1, %v6962_v2  ;;  %v3908_v24 = vsel %vm2252_vm4, %v3905_v17, %v3907_v22 }
 0x241   : > { %5684 = vmatmul.mubr.msk.f32.gmra.mrb[56].mxu1 %vm611_vm3, %v1836_v29  ;;  %v362_v29 = vld [vmem:[%s7043_s13 + $0xc8] sm:$0xff] }
 0x242   : > { %6192 = vmatmul.mubr.msk.f32.gmra.mrb[18].mxu0 %vm611_vm3, %v3888_v31  ;;  %5686 = vmatprep.mubr.msk.f32.mxu1 %vm6963_vm1, %v6962_v2  ;;  %v2298_v27 = vrot.slane %v362_v29, 2  ;;  %v3910_v31 = vsel %vm2252_vm4, %v3907_v22, %v3909_v26  ;;  %v6949_v29 = vld [vmem:[%s7441_s27 + $0x110] sm:$0xff] }
 0x243   : > { %6194 = vmatprep.mubr.msk.f32.mxu0 %vm6963_vm1, %v6962_v2 }
 0x244   : > { %v2299_v34 = vsel %vm2252_vm4, %v2296_v57, %v2298_v27 }
 0x245   : > { %5687 = vmatmul.mubr.msk.f32.gmra.mrb[58].mxu1 %vm611_vm3, %v1838_v33  ;;  %v363_v33 = vld [vmem:[%s7043_s13 + $0xd0] sm:$0xff] }
 0x246   : > { %6195 = vmatmul.mubr.msk.f32.gmra.mrb[20].mxu0 %vm611_vm3, %v3890_v40  ;;  %5689 = vmatprep.mubr.msk.f32.mxu1 %vm6963_vm1, %v6962_v2  ;;  %v2300_v35 = vrot.slane %v363_v33, 2  ;;  %v3912_v40 = vsel %vm2252_vm4, %v3909_v26, %v3911_v32  ;;  %v6950_v33 = vld [vmem:[%s7441_s27 + $0x118] sm:$0xff] }
 0x247   : > { %6197 = vmatprep.mubr.msk.f32.mxu0 %vm6963_vm1, %v6962_v2 }
 0x248   : > { %v2301_v42 = vsel %vm2252_vm4, %v2298_v27, %v2300_v35 }
 0x249   : > { %5690 = vmatmul.mubr.msk.f32.gmra.mrb[60].mxu1 %vm611_vm3, %v1840_v41  ;;  %v364_v41 = vld [vmem:[%s7043_s13 + $0xd8] sm:$0xff] }
 0x24a   : > { %6198 = vmatmul.mubr.msk.f32.gmra.mrb[22].mxu0 %vm611_vm3, %v3892_v45  ;;  %5692 = vmatprep.mubr.msk.f32.mxu1 %vm6963_vm1, %v6962_v2  ;;  %v2302_v43 = vrot.slane %v364_v41, 2  ;;  %v3914_v45 = vsel %vm2252_vm4, %v3911_v32, %v3913_v38  ;;  %v6951_v41 = vld [vmem:[%s7441_s27 + $0x120] sm:$0xff] }
 0x24b   : > { %6200 = vmatprep.mubr.msk.f32.mxu0 %vm6963_vm1, %v6962_v2 }
 0x24c   : > { %v2303_v48 = vsel %vm2252_vm4, %v2300_v35, %v2302_v43 }
 0x24d   : > { %5693 = vmatmul.mubr.msk.f32.gmra.mrb[62].mxu1 %vm611_vm3, %v1842_v46  ;;  %v365_v46 = vld [vmem:[%s7043_s13 + $0xe0] sm:$0xff] }
 0x24e   : > { %6201 = vmatmul.mubr.msk.f32.gmra.mrb[24].mxu0 %vm611_vm3, %v3894_v51  ;;  %5695 = vmatprep.mubr.msk.f32.mxu1 %vm6963_vm1, %v6962_v2  ;;  %v2304_v49 = vrot.slane %v365_v46, 2  ;;  %v3916_v51 = vsel %vm2252_vm4, %v3913_v38, %v3915_v44 }
 0x24f   : > { %6203 = vmatprep.mubr.msk.f32.mxu0 %vm6963_vm1, %v6962_v2 }
 0x250   : > { %v2305_v20 = vsel %vm2252_vm4, %v2302_v43, %v2304_v49 }
 0x251   : > { %5696 = vmatmul.mubr.msk.f32.gmra.mrb[64].mxu1 %vm611_vm3, %v1844_v25  ;;  %v366_v25 = vld [vmem:[%s7043_s13 + $0xe8] sm:$0xff] }
 0x252   : > { %6204 = vmatmul.mubr.msk.f32.gmra.mrb[26].mxu0 %vm611_vm3, %v3896_v56  ;;  %5698 = vmatprep.mubr.msk.f32.mxu1 %vm6963_vm1, %v6962_v2  ;;  %v2306_v54 = vrot.slane %v366_v25, 2  ;;  %v3918_v56 = vsel %vm2252_vm4, %v3915_v44, %v3917_v50 }
 0x253   : > { %6206 = vmatprep.mubr.msk.f32.mxu0 %vm6963_vm1, %v6962_v2 }
 0x254   : > { %v2307_v60 = vsel %vm2252_vm4, %v2304_v49, %v2306_v54 }
 0x255   : > { %5699 = vmatmul.mubr.msk.f32.gmra.mrb[66].mxu1 %vm611_vm3, %v1846_v59  ;;  %v367_v59 = vld [vmem:[%s7043_s13 + $0xf0] sm:$0xff] }
 0x256   : > { %6207 = vmatmul.mubr.msk.f32.gmra.mrb[28].mxu0 %vm611_vm3, %v3898_v4  ;;  %5701 = vmatprep.mubr.msk.f32.mxu1 %vm6963_vm1, %v6962_v2  ;;  %v2308_v61 = vrot.slane %v367_v59, 2  ;;  %v3920_v4 = vsel %vm2252_vm4, %v3917_v50, %v3919_v55 }
 0x257   : > { %6209 = vmatprep.mubr.msk.f32.mxu0 %vm6963_vm1, %v6962_v2 }
 0x258   : > { %v2309_v3 = vsel %vm2252_vm4, %v2306_v54, %v2308_v61 }
 0x259   : > { %5702 = vmatmul.mubr.msk.f32.gmra.mrb[68].mxu1 %vm611_vm3, %v1848_v5  ;;  %v368_v5 = vld [vmem:[%s7043_s13 + $0xf8] sm:$0xff] }
 0x25a   : > { %6210 = vmatmul.mubr.msk.f32.gmra.mrb[30].mxu0 %vm611_vm3, %v3900_v7  ;;  %5704 = vmatprep.mubr.msk.f32.mxu1 %vm6963_vm1, %v6962_v2  ;;  %v3922_v7 = vsel %vm2252_vm4, %v3919_v55, %v3921_v1 }
 0x25b   : > { %6212 = vmatprep.mubr.msk.f32.mxu0 %vm6963_vm1, %v6962_v2 }
 0x25d   : > { %5705 = vmatmul.mubr.msk.f32.gmra.mrb[70].mxu1 %vm611_vm3, %v1850_v9  ;;  %v369_v9 = vld [vmem:[%s7043_s13 + $0x100] sm:$0xff] }
 0x25e   : > { %6213 = vmatmul.mubr.msk.f32.gmra.mrb[32].mxu0 %vm611_vm3, %v3902_v15  ;;  %5707 = vmatprep.mubr.msk.f32.mxu1 %vm6963_vm1, %v6962_v2  ;;  %v2312_v11 = vrot.slane %v369_v9, 2  ;;  %v6946_v15 = vld [vmem:[%s7441_s27 + $0xf8] sm:$0xff] }
 0x25f   : > { %6215 = vmatprep.mubr.msk.f32.mxu0 %vm6963_vm1, %v6962_v2  ;;  %v3925_v58 = vrot.slane %v6946_v15, 2 }
 0x261   : > { %5708 = vmatmul.mubr.msk.f32.gmra.mrb[72].mxu1 %vm611_vm3, %v1849_v6  ;;  %v2310_v6 = vrot.slane %v368_v5, 2  ;;  %v3926_v19 = vsel %vm2252_vm4, %v3923_v52, %v3925_v58 }
 0x262   : > { %6216 = vmatmul.mubr.msk.f32.gmra.mrb[34].mxu0 %vm611_vm3, %v3904_v62  ;;  %5769 = vmatprep.mubr.msk.f32.mxu1 %vm6963_vm1, %v6962_v2  ;;  %v2314_v62 = vrot.slane %v370_v14, 2 }
 0x263   : > { %6218 = vmatprep.mubr.msk.f32.mxu0 %vm6963_vm1, %v6962_v2  ;;  %v2311_v12 = vsel %vm2252_vm4, %v2308_v61, %v2310_v6  ;;  %v2313_v17 = vsel %vm2252_vm4, %v2310_v6, %v2312_v11 }
 0x264   : > { %v2315_v22 = vsel %vm2252_vm4, %v2312_v11, %v2314_v62 }
 0x265   : > { %5770 = vmatmul.mubr.msk.f32.vlgmr.msra.gmra.mrb[38].mxu1 %vm611_vm3, %v2293_v8  ;;  %v3927_v8 = vrot.slane %v6947_v18, 2 }
 0x266   : > { %6219 = vmatmul.mubr.msk.f32.gmra.mrb[36].mxu0 %vm611_vm3, %v3906_v13  ;;  %5772 = vmatprep.mubr.msk.f32.mxu1 %vm6963_vm1, %v6962_v2  ;;  %v2316_v13 = vrot.slane %v371_v10, 2 }
 0x267   : > { %6221 = vmatprep.mubr.msk.f32.mxu0 %vm6963_vm1, %v6962_v2  ;;  %v3928_v57 = vsel %vm2252_vm4, %v3925_v58, %v3927_v8 }
 0x268   : > { %v2317_v26 = vsel %vm2252_vm4, %v2314_v62, %v2316_v13 }
 0x269   : > { %5773 = vmatmul.mubr.msk.f32.gmra.mrb[40].mxu1 %vm611_vm3, %v2295_v53  ;;  %v3929_v53 = vrot.slane %v6948_v23, 2 }
 0x26a   : > { %6222 = vmatmul.mubr.msk.f32.gmra.mrb[38].mxu0 %vm611_vm3, %v3908_v24  ;;  %5775 = vmatprep.mubr.msk.f32.mxu1 %vm6963_vm1, %v6962_v2  ;;  %v2318_v24 = vrot.slane %v372_v16, 2 }
 0x26b   : > { %6224 = vmatprep.mubr.msk.f32.mxu0 %vm6963_vm1, %v6962_v2  ;;  %v3930_v27 = vsel %vm2252_vm4, %v3927_v8, %v3929_v53 }
 0x26c   : > { %v2319_v32 = vsel %vm2252_vm4, %v2316_v13, %v2318_v24 }
 0x26d   : > { %5776 = vmatmul.mubr.msk.f32.gmra.mrb[42].mxu1 %vm611_vm3, %v2297_v28  ;;  %v3931_v28 = vrot.slane %v6949_v29, 2 }
 0x26e   : > { %6225 = vmatmul.mubr.msk.f32.gmra.mrb[40].mxu0 %vm611_vm3, %v3910_v31  ;;  %5778 = vmatprep.mubr.msk.f32.mxu1 %vm6963_vm1, %v6962_v2  ;;  %v2320_v31 = vrot.slane %v373_v30, 2 }
 0x26f   : > { %6227 = vmatprep.mubr.msk.f32.mxu0 %vm6963_vm1, %v6962_v2  ;;  %v3932_v35 = vsel %vm2252_vm4, %v3929_v53, %v3931_v28 }
 0x270   : > { %v2321_v38 = vsel %vm2252_vm4, %v2318_v24, %v2320_v31 }
 0x271   : > { %5779 = vmatmul.mubr.msk.f32.gmra.mrb[44].mxu1 %vm611_vm3, %v2299_v34  ;;  %v3933_v34 = vrot.slane %v6950_v33, 2 }
 0x272   : > { %6228 = vmatmul.mubr.msk.f32.gmra.mrb[42].mxu0 %vm611_vm3, %v3912_v40  ;;  %5781 = vmatprep.mubr.msk.f32.mxu1 %vm6963_vm1, %v6962_v2  ;;  %v2322_v40 = vrot.slane %v374_v37, 2 }
 0x273   : > { %6230 = vmatprep.mubr.msk.f32.mxu0 %vm6963_vm1, %v6962_v2  ;;  %v3934_v43 = vsel %vm2252_vm4, %v3931_v28, %v3933_v34  ;;  %v8946_v28 = vld [vmem:[%s9128_s5] ss:$0 sm:$0xff] }
 0x274   : > { %v2323_v44 = vsel %vm2252_vm4, %v2320_v31, %v2322_v40 }
 0x275   : > { %5782 = vmatmul.mubr.msk.f32.gmra.mrb[46].mxu1 %vm611_vm3, %v2301_v42  ;;  %v3935_v42 = vrot.slane %v6951_v41, 2 }
 0x276   : > { %6231 = vmatmul.mubr.msk.f32.gmra.mrb[44].mxu0 %vm611_vm3, %v3914_v45  ;;  %5784 = vmatprep.mubr.msk.f32.mxu1 %vm6963_vm1, %v6962_v2  ;;  %v2324_v45 = vrot.slane %v375_v39, 2 }
 0x277   : > { %6233 = vmatprep.mubr.msk.f32.mxu0 %vm6963_vm1, %v6962_v2  ;;  %v3936_v46 = vsel %vm2252_vm4, %v3933_v34, %v3935_v42 }
 0x278   : > { %v2325_v36 = vsel %vm2252_vm4, %v2322_v40, %v2324_v45 }
 0x279   : > { %5785 = vmatmul.mubr.msk.f32.gmra.mrb[48].mxu1 %vm611_vm3, %v2303_v48  ;;  %v6952_v48 = vld [vmem:[%s7441_s27 + $0x128] sm:$0xff] }
 0x27a   : > { %6234 = vmatmul.mubr.msk.f32.gmra.mrb[46].mxu0 %vm611_vm3, %v3916_v51  ;;  %5787 = vmatprep.mubr.msk.f32.mxu1 %vm6963_vm1, %v6962_v2  ;;  %v3937_v49 = vrot.slane %v6952_v48, 2  ;;  %v6953_v51 = vld [vmem:[%s7441_s27 + $0x130] sm:$0x7] }
 0x27b   : > { %6236 = vmatprep.mubr.msk.f32.mxu0 %vm6963_vm1, %v6962_v2  ;;  %v3939_v25 = vrot.slane %v6953_v51, 2 }
 0x27c   : > { %v3938_v50 = vsel %vm2252_vm4, %v3935_v42, %v3937_v49 }
 0x27d   : > { %5788 = vmatmul.mubr.msk.f32.gmra.mrb[50].mxu1 %vm611_vm3, %v2305_v20  ;;  %v3940_v21 = vsel %vm2252_vm4, %v3937_v49, %v3939_v25 }
 0x27e   : > { %6237 = vmatmul.mubr.msk.f32.gmra.mrb[48].mxu0 %vm611_vm3, %v3918_v56  ;;  %5790 = vmatprep.mubr.msk.f32.mxu1 %vm6963_vm1, %v6962_v2 }
 0x27f   : > { %6239 = vmatprep.mubr.msk.f32.mxu0 %vm6963_vm1, %v6962_v2 }
 0x281   : > { %5791 = vmatmul.mubr.msk.f32.gmra.mrb[52].mxu1 %vm611_vm3, %v2307_v60 }
 0x282   : > { %6240 = vmatmul.mubr.msk.f32.gmra.mrb[50].mxu0 %vm611_vm3, %v3920_v4  ;;  %5793 = vmatprep.mubr.msk.f32.mxu1 %vm6963_vm1, %v6962_v2 }
 0x283   : > { %6242 = vmatprep.mubr.msk.f32.mxu0 %vm6963_vm1, %v6962_v2 }
 0x285   : > { %5794 = vmatmul.mubr.msk.f32.gmra.mrb[54].mxu1 %vm611_vm3, %v2309_v3 }
 0x286   : > { %6243 = vmatmul.mubr.msk.f32.gmra.mrb[52].mxu0 %vm611_vm3, %v3922_v7  ;;  %5796 = vmatprep.mubr.msk.f32.mxu1 %vm6963_vm1, %v6962_v2 }
 0x287   : > { %6245 = vmatprep.mubr.msk.f32.mxu0 %vm6963_vm1, %v6962_v2 }
 0x289   : > { %5797 = vmatmul.mubr.msk.f32.gmra.mrb[56].mxu1 %vm611_vm3, %v2311_v12 }
 0x28a   : > { %6246 = vmatmul.mubr.msk.f32.gmra.mrb[54].mxu0 %vm611_vm3, %v3924_v63  ;;  %5799 = vmatprep.mubr.msk.f32.mxu1 %vm6963_vm1, %v6962_v2 }
 0x28b   : > { %6248 = vmatprep.mubr.msk.f32.mxu0 %vm6963_vm1, %v6962_v2 }
 0x28d   : > { %5800 = vmatmul.mubr.msk.f32.gmra.mrb[58].mxu1 %vm611_vm3, %v2313_v17 }
 0x28e   : > { %6249 = vmatmul.mubr.msk.f32.gmra.mrb[56].mxu0 %vm611_vm3, %v3926_v19  ;;  %5802 = vmatprep.mubr.msk.f32.mxu1 %vm6963_vm1, %v6962_v2 }
 0x28f   : > { %6251 = vmatprep.mubr.msk.f32.mxu0 %vm6963_vm1, %v6962_v2 }
 0x291   : > { %5803 = vmatmul.mubr.msk.f32.gmra.mrb[60].mxu1 %vm611_vm3, %v2315_v22 }
 0x292   : > { %6252 = vmatmul.mubr.msk.f32.gmra.mrb[58].mxu0 %vm611_vm3, %v3928_v57  ;;  %5805 = vmatprep.mubr.msk.f32.mxu1 %vm6963_vm1, %v6962_v2 }
 0x293   : > { %6254 = vmatprep.mubr.msk.f32.mxu0 %vm6963_vm1, %v6962_v2 }
 0x295   : > { %5806 = vmatmul.mubr.msk.f32.gmra.mrb[62].mxu1 %vm611_vm3, %v2317_v26 }
 0x296   : > { %6255 = vmatmul.mubr.msk.f32.gmra.mrb[60].mxu0 %vm611_vm3, %v3930_v27  ;;  %5808 = vmatprep.mubr.msk.f32.mxu1 %vm6963_vm1, %v6962_v2 }
 0x297   : > { %6257 = vmatprep.mubr.msk.f32.mxu0 %vm6963_vm1, %v6962_v2 }
 0x299   : > { %5809 = vmatmul.mubr.msk.f32.gmra.mrb[64].mxu1 %vm611_vm3, %v2319_v32  ;;  %v8952_v32 = vld [vmem:[%s9129_s6] ss:$0 sm:$0xff] }
 0x29a   : > { %6258 = vmatmul.mubr.msk.f32.gmra.mrb[62].mxu0 %vm611_vm3, %v3932_v35  ;;  %5811 = vmatprep.mubr.msk.f32.mxu1 %vm6963_vm1, %v6962_v2 }
 0x29b   : > { %6260 = vmatprep.mubr.msk.f32.mxu0 %vm6963_vm1, %v6962_v2 }
 0x29d   : > { %5812 = vmatmul.mubr.msk.f32.gmra.mrb[66].mxu1 %vm611_vm3, %v2321_v38 }
 0x29e   : > { %6261 = vmatmul.mubr.msk.f32.gmra.mrb[64].mxu0 %vm611_vm3, %v3934_v43  ;;  %5814 = vmatprep.mubr.msk.f32.mxu1 %vm6963_vm1, %v6962_v2 }
 0x29f   : > { %6263 = vmatprep.mubr.msk.f32.mxu0 %vm6963_vm1, %v6962_v2 }
 0x2a1   : > { %5815 = vmatmul.mubr.msk.f32.gmra.mrb[68].mxu1 %vm611_vm3, %v2323_v44 }
 0x2a2   : > { %6264 = vmatmul.mubr.msk.f32.gmra.mrb[66].mxu0 %vm611_vm3, %v3936_v46  ;;  %5817 = vmatprep.mubr.msk.f32.mxu1 %vm6963_vm1, %v6962_v2 }
 0x2a3   : > { %6266 = vmatprep.mubr.msk.f32.mxu0 %vm6963_vm1, %v6962_v2 }
 0x2a4   : > { %v1994_v20 = vpop.f32.mrb[0].mxu1 }
 0x2a5   : > { %v5601_v54 = vpop.f32.mrb[1].mxu1  ;;  %5818 = vmatmul.mubr.msk.f32.gmra.mrb[70].mxu1 %vm611_vm3, %v2325_v36 }
 0x2a6   : > { %6267 = vmatmul.mubr.msk.f32.gmra.mrb[68].mxu0 %vm611_vm3, %v3938_v50  ;;  %5820 = vmatprep.mubr.msk.f32.mxu1 %vm6963_vm1, %v6962_v2 }
 0x2a7   : > { %6269 = vmatprep.mubr.msk.f32.mxu0 %vm6963_vm1, %v6962_v2 }
 0x2a8   : > { %v1999_v55 = vpop.f32.mrb[2].mxu1 }
 0x2a9   : > { %v5604_v56 = vpop.f32.mrb[3].mxu1  ;;  %5821 = vmatmul.mubr.msk.f32.gmra.mrb[72].mxu1 %vm611_vm3, %v2324_v45 }
 0x2aa   : > { %6270 = vmatmul.mubr.msk.f32.gmra.mrb[70].mxu0 %vm611_vm3, %v3940_v21 }
 0x2ab   : > { %6272 = vmatprep.mubr.msk.f32.mxu0 %vm6963_vm1, %v6962_v2 }
 0x2ac   : > { %v2004_v59 = vpop.f32.mrb[4].mxu1 }
 0x2ad   : > { %v5607_v60 = vpop.f32.mrb[5].mxu1 }
 0x2ae   : > { %6273 = vmatmul.mubr.msk.f32.gmra.mrb[72].mxu0 %vm611_vm3, %v3939_v25 }
 0x2b0   : > { %v2009_v61 = vpop.f32.mrb[6].mxu1 }
 0x2b1   : > { %v5610_v0 = vpop.f32.mrb[7].mxu1 }
 0x2b4   : > { %v2014_v1 = vpop.f32.mrb[8].mxu1 }
 0x2b5   : > { %v5613_v4 = vpop.f32.mrb[9].mxu1 }
 0x2b8   : > { %v8915_v5 = vpop.f32.mrb[10].mxu1 }
 0x2b9   : > { %v5616_v3 = vpop.f32.mrb[11].mxu1 }
 0x2bc   : > { %v8917_v6 = vpop.f32.mrb[12].mxu1 }
 0x2bd   : > { %v5619_v47 = vpop.f32.mrb[13].mxu1 }
 0x2c0   : > { %v8919_v52 = vpop.f32.mrb[14].mxu1 }
 0x2c1   : > { %v5622_v7 = vpop.f32.mrb[15].mxu1 }
 0x2c4   : > { %v8921_v9 = vpop.f32.mrb[16].mxu1 }
 0x2c5   : > { %v5625_v2 = vpop.f32.mrb[17].mxu1 }
 0x2c8   : > { %v8923_v12 = vpop.f32.mrb[18].mxu1 }
 0x2c9   : > { %v5628_v11 = vpop.f32.mrb[19].mxu1 }
 0x2cc   : > { %v8925_v15 = vpop.f32.mrb[20].mxu1 }
 0x2cd   : > { %v5631_v58 = vpop.f32.mrb[21].mxu1 }
 0x2d0   : > { %v8927_v63 = vpop.f32.mrb[22].mxu1 }
 0x2d1   : > { %v5634_v14 = vpop.f32.mrb[23].mxu1 }
 0x2d4   : > { %v8929_v17 = vpop.f32.mrb[24].mxu1 }
 0x2d5   : > { %v5637_v62 = vpop.f32.mrb[25].mxu1 }
 0x2d8   : > { %v8931_v18 = vpop.f32.mrb[26].mxu1 }
 0x2d9   : > { %v5640_v8 = vpop.f32.mrb[27].mxu1 }
 0x2dc   : > { %v8933_v19 = vpop.f32.mrb[28].mxu1 }
 0x2dd   : > { %v5643_v10 = vpop.f32.mrb[29].mxu1 }
 0x2e0   : > { %v8935_v22 = vpop.f32.mrb[30].mxu1 }
 0x2e1   : > { %v5646_v13 = vpop.f32.mrb[31].mxu1 }
 0x2e4   : > { %v8937_v23 = vpop.f32.mrb[32].mxu1 }
 0x2e5   : > { %v5649_v53 = vpop.f32.mrb[33].mxu1 }
 0x2e8   : > { %v8939_v57 = vpop.f32.mrb[34].mxu1 }
 0x2e9   : > { %v5652_v16 = vpop.f32.mrb[35].mxu1 }
 0x2ec   : > { %v8941_v26 = vpop.f32.mrb[36].mxu1 }
 0x2ed   : > { %v5655_v24 = vpop.f32.mrb[37].mxu1 }
 0x2f1   : > { %v4084_v29 = vpop.f32.mrb[0].mxu0 }
 0x2f2   : > { %v6277_v27 = vadd.f32 %v4084_v29, %v1994_v20  ;;  %v6166_v30 = vpop.f32.mrb[1].mxu0 }
 0x2f4   : > { %v4312_v31 = vmul.f32 %v6277_v27, %v8946_v28 }
 0x2f5   : > { %v4089_v33 = vpop.f32.mrb[2].mxu0 }
 0x2f6   : > { %v4356_v34 = vadd.f32 %v8952_v32, %v4312_v31  ;;  %v6278_v35 = vadd.f32 %v4089_v33, %v1999_v55  ;;  %v6169_v37 = vpop.f32.mrb[3].mxu0 }
 0x2f8   : > { %v4393_v38 = vmax.f32 %v4356_v34, 0.0  ;;  %v4313_v40 = vmul.f32 %v6278_v35, %v8946_v28 }
 0x2f9   : > { %v4094_v41 = vpop.f32.mrb[4].mxu0 }
 0x2fa   : > { %4431 = vst.msk [vmem:[%s8959_s22] sm:$0xff] %vm4430_vm5, %v4393_v38  ;;  %v4357_v42 = vadd.f32 %v8952_v32, %v4313_v40  ;;  %v6279_v43 = vadd.f32 %v4094_v41, %v2004_v59  ;;  %v6172_v39 = vpop.f32.mrb[5].mxu0 }
 0x2fc   : > { %v4394_v44 = vmax.f32 %v4357_v42, 0.0  ;;  %v4314_v45 = vmul.f32 %v6279_v43, %v8946_v28 }
 0x2fd   : > { %v4099_v46 = vpop.f32.mrb[6].mxu0 }
 0x2fe   : > { %4432 = vst.msk [vmem:[%s8959_s22 + $0x8] sm:$0xff] %vm4430_vm5, %v4394_v44  ;;  %v4358_v48 = vadd.f32 %v8952_v32, %v4314_v45  ;;  %v6280_v49 = vadd.f32 %v4099_v46, %v2009_v61  ;;  %v6175_v36 = vpop.f32.mrb[7].mxu0 }
 0x300   : > { %v4395_v50 = vmax.f32 %v4358_v48, 0.0  ;;  %v4315_v51 = vmul.f32 %v6280_v49, %v8946_v28 }
 0x301   : > { %v4104_v25 = vpop.f32.mrb[8].mxu0 }
 0x302   : > { %4433 = vst.msk [vmem:[%s8959_s22 + $0x10] sm:$0xff] %vm4430_vm5, %v4395_v50  ;;  %v4359_v20 = vadd.f32 %v8952_v32, %v4315_v51  ;;  %v6281_v54 = vadd.f32 %v4104_v25, %v2014_v1  ;;  %v6178_v21 = vpop.f32.mrb[9].mxu0 }
 0x304   : > { %v4396_v55 = vmax.f32 %v4359_v20, 0.0  ;;  %v4316_v56 = vmul.f32 %v6281_v54, %v8946_v28 }
 0x305   : > { %v4109_v59 = vpop.f32.mrb[10].mxu0 }
 0x306   : > { %4434 = vst.msk [vmem:[%s8959_s22 + $0x18] sm:$0xff] %vm4430_vm5, %v4396_v55  ;;  %v4360_v60 = vadd.f32 %v8952_v32, %v4316_v56  ;;  %v6282_v61 = vadd.f32 %v4109_v59, %v8915_v5  ;;  %v6181_v0 = vpop.f32.mrb[11].mxu0 }
 0x308   : > { %v4397_v4 = vmax.f32 %v4360_v60, 0.0  ;;  %v4317_v3 = vmul.f32 %v6282_v61, %v8946_v28 }
 0x309   : > { %v4114_v47 = vpop.f32.mrb[12].mxu0 }
 0x30a   : > { %4435 = vst.msk [vmem:[%s8959_s22 + $0x20] sm:$0xff] %vm4430_vm5, %v4397_v4  ;;  %v4361_v1 = vadd.f32 %v8952_v32, %v4317_v3  ;;  %v6283_v7 = vadd.f32 %v4114_v47, %v8917_v6  ;;  %v6184_v2 = vpop.f32.mrb[13].mxu0 }
 0x30c   : > { %v4398_v11 = vmax.f32 %v4361_v1, 0.0  ;;  %v4318_v58 = vmul.f32 %v6283_v7, %v8946_v28 }
 0x30d   : > { %v4119_v14 = vpop.f32.mrb[14].mxu0 }
 0x30e   : > { %4436 = vst.msk [vmem:[%s8959_s22 + $0x28] sm:$0xff] %vm4430_vm5, %v4398_v11  ;;  %v4362_v5 = vadd.f32 %v8952_v32, %v4318_v58  ;;  %v6284_v62 = vadd.f32 %v4119_v14, %v8919_v52  ;;  %v6187_v8 = vpop.f32.mrb[15].mxu0 }
 0x310   : > { %v4399_v10 = vmax.f32 %v4362_v5, 0.0  ;;  %v4319_v13 = vmul.f32 %v6284_v62, %v8946_v28 }
 0x311   : > { %v4124_v53 = vpop.f32.mrb[16].mxu0 }
 0x312   : > { %4437 = vst.msk [vmem:[%s8959_s22 + $0x30] sm:$0xff] %vm4430_vm5, %v4399_v10  ;;  %v4363_v6 = vadd.f32 %v8952_v32, %v4319_v13  ;;  %v6285_v16 = vadd.f32 %v4124_v53, %v8921_v9  ;;  %v6190_v24 = vpop.f32.mrb[17].mxu0 }
 0x314   : > { %v4400_v29 = vmax.f32 %v4363_v6, 0.0  ;;  %v4320_v27 = vmul.f32 %v6285_v16, %v8946_v28 }
 0x315   : > { %v4129_v30 = vpop.f32.mrb[18].mxu0 }
 0x316   : > { %4438 = vst.msk [vmem:[%s8959_s22 + $0x38] sm:$0xff] %vm4430_vm5, %v4400_v29  ;;  %v4364_v52 = vadd.f32 %v8952_v32, %v4320_v27  ;;  %v6286_v31 = vadd.f32 %v4129_v30, %v8923_v12  ;;  %v6193_v33 = vpop.f32.mrb[19].mxu0 }
 0x318   : > { %v4401_v34 = vmax.f32 %v4364_v52, 0.0  ;;  %v4321_v35 = vmul.f32 %v6286_v31, %v8946_v28 }
 0x319   : > { %v4134_v37 = vpop.f32.mrb[20].mxu0 }
 0x31a   : > { %4439 = vst.msk [vmem:[%s8959_s22 + $0x40] sm:$0xff] %vm4430_vm5, %v4401_v34  ;;  %v4365_v9 = vadd.f32 %v8952_v32, %v4321_v35  ;;  %v6287_v38 = vadd.f32 %v4134_v37, %v8925_v15  ;;  %v6196_v40 = vpop.f32.mrb[21].mxu0 }
 0x31c   : > { %v4402_v41 = vmax.f32 %v4365_v9, 0.0  ;;  %v4322_v42 = vmul.f32 %v6287_v38, %v8946_v28 }
 0x31d   : > { %v4139_v43 = vpop.f32.mrb[22].mxu0 }
 0x31e   : > { %4440 = vst.msk [vmem:[%s8959_s22 + $0x48] sm:$0xff] %vm4430_vm5, %v4402_v41  ;;  %v4366_v12 = vadd.f32 %v8952_v32, %v4322_v42  ;;  %v6288_v39 = vadd.f32 %v4139_v43, %v8927_v63  ;;  %v6199_v44 = vpop.f32.mrb[23].mxu0 }
 0x320   : > { %v4403_v45 = vmax.f32 %v4366_v12, 0.0  ;;  %v4323_v46 = vmul.f32 %v6288_v39, %v8946_v28 }
 0x321   : > { %v4144_v48 = vpop.f32.mrb[24].mxu0 }
 0x322   : > { %4441 = vst.msk [vmem:[%s8959_s22 + $0x50] sm:$0xff] %vm4430_vm5, %v4403_v45  ;;  %v4367_v15 = vadd.f32 %v8952_v32, %v4323_v46  ;;  %v6289_v49 = vadd.f32 %v4144_v48, %v8929_v17  ;;  %v6202_v36 = vpop.f32.mrb[25].mxu0 }
 0x324   : > { %v4404_v50 = vmax.f32 %v4367_v15, 0.0  ;;  %v4324_v51 = vmul.f32 %v6289_v49, %v8946_v28 }
 0x325   : > { %v4149_v25 = vpop.f32.mrb[26].mxu0 }
 0x326   : > { %4442 = vst.msk [vmem:[%s8959_s22 + $0x58] sm:$0xff] %vm4430_vm5, %v4404_v50  ;;  %v4368_v63 = vadd.f32 %v8952_v32, %v4324_v51  ;;  %v6290_v20 = vadd.f32 %v4149_v25, %v8931_v18  ;;  %v6205_v54 = vpop.f32.mrb[27].mxu0 }
 0x328   : > { %v4405_v21 = vmax.f32 %v4368_v63, 0.0  ;;  %v4325_v55 = vmul.f32 %v6290_v20, %v8946_v28 }
 0x329   : > { %v4154_v56 = vpop.f32.mrb[28].mxu0 }
 0x32a   : > { %4443 = vst.msk [vmem:[%s8959_s22 + $0x60] sm:$0xff] %vm4430_vm5, %v4405_v21  ;;  %v4369_v17 = vadd.f32 %v8952_v32, %v4325_v55  ;;  %v6291_v59 = vadd.f32 %v4154_v56, %v8933_v19  ;;  %v6208_v60 = vpop.f32.mrb[29].mxu0 }
 0x32c   : > { %v4406_v61 = vmax.f32 %v4369_v17, 0.0  ;;  %v4326_v0 = vmul.f32 %v6291_v59, %v8946_v28 }
 0x32d   : > { %v4159_v4 = vpop.f32.mrb[30].mxu0 }
 0x32e   : > { %4444 = vst.msk [vmem:[%s8959_s22 + $0x68] sm:$0xff] %vm4430_vm5, %v4406_v61  ;;  %v4370_v18 = vadd.f32 %v8952_v32, %v4326_v0  ;;  %v6292_v3 = vadd.f32 %v4159_v4, %v8935_v22  ;;  %v6211_v47 = vpop.f32.mrb[31].mxu0 }
 0x330   : > { %v4407_v1 = vmax.f32 %v4370_v18, 0.0  ;;  %v4327_v7 = vmul.f32 %v6292_v3, %v8946_v28 }
 0x331   : > { %v4164_v2 = vpop.f32.mrb[32].mxu0 }
 0x332   : > { %4445 = vst.msk [vmem:[%s8959_s22 + $0x70] sm:$0xff] %vm4430_vm5, %v4407_v1  ;;  %v4371_v19 = vadd.f32 %v8952_v32, %v4327_v7  ;;  %v6293_v11 = vadd.f32 %v4164_v2, %v8937_v23  ;;  %v6214_v58 = vpop.f32.mrb[33].mxu0 }
 0x334   : > { %v4408_v14 = vmax.f32 %v4371_v19, 0.0  ;;  %v4328_v5 = vmul.f32 %v6293_v11, %v8946_v28 }
 0x335   : > { %v4169_v62 = vpop.f32.mrb[34].mxu0 }
 0x336   : > { %4446 = vst.msk [vmem:[%s8959_s22 + $0x78] sm:$0xff] %vm4430_vm5, %v4408_v14  ;;  %v4372_v22 = vadd.f32 %v8952_v32, %v4328_v5  ;;  %v6294_v8 = vadd.f32 %v4169_v62, %v8939_v57  ;;  %v6217_v10 = vpop.f32.mrb[35].mxu0 }
 0x338   : > { %v4409_v13 = vmax.f32 %v4372_v22, 0.0  ;;  %v4329_v53 = vmul.f32 %v6294_v8, %v8946_v28  ;;  %v2564_v6 = vpop.f32.mrb[38].mxu1 }
 0x339   : > { %v4174_v16 = vpop.f32.mrb[36].mxu0  ;;  %v5771_v24 = vpop.f32.mrb[39].mxu1 }
 0x33a   : > { %4447 = vst.msk [vmem:[%s8959_s22 + $0x80] sm:$0xff] %vm4430_vm5, %v4409_v13  ;;  %v4373_v23 = vadd.f32 %v8952_v32, %v4329_v53  ;;  %v6295_v29 = vadd.f32 %v4174_v16, %v8941_v26  ;;  %v6220_v27 = vpop.f32.mrb[37].mxu0 }
 0x33c   : > { %v4410_v30 = vmax.f32 %v4373_v23, 0.0  ;;  %v4330_v52 = vmul.f32 %v6295_v29, %v8946_v28  ;;  %v2569_v57 = vpop.f32.mrb[40].mxu1 }
 0x33d   : > { %v4179_v31 = vpop.f32.mrb[38].mxu0  ;;  %v5774_v33 = vpop.f32.mrb[41].mxu1 }
 0x33e   : > { %4448 = vst.msk [vmem:[%s8959_s22 + $0x88] sm:$0xff] %vm4430_vm5, %v4410_v30  ;;  %v4374_v34 = vadd.f32 %v8952_v32, %v4330_v52  ;;  %v6296_v35 = vadd.f32 %v4179_v31, %v2564_v6  ;;  %v6223_v37 = vpop.f32.mrb[39].mxu0 }
 0x340   : > { %v4411_v9 = vmax.f32 %v4374_v34, 0.0  ;;  %v4331_v38 = vmul.f32 %v6296_v35, %v8946_v28  ;;  %v2574_v40 = vpop.f32.mrb[42].mxu1 }
 0x341   : > { %v4184_v26 = vpop.f32.mrb[40].mxu0  ;;  %v5777_v41 = vpop.f32.mrb[43].mxu1 }
 0x342   : > { %4449 = vst.msk [vmem:[%s8959_s22 + $0x90] sm:$0xff] %vm4430_vm5, %v4411_v9  ;;  %v4375_v42 = vadd.f32 %v8952_v32, %v4331_v38  ;;  %v6297_v43 = vadd.f32 %v4184_v26, %v2569_v57  ;;  %v6226_v12 = vpop.f32.mrb[41].mxu0 }
 0x344   : > { %v4412_v39 = vmax.f32 %v4375_v42, 0.0  ;;  %v4332_v44 = vmul.f32 %v6297_v43, %v8946_v28  ;;  %v2579_v45 = vpop.f32.mrb[44].mxu1 }
 0x345   : > { %v4189_v46 = vpop.f32.mrb[42].mxu0  ;;  %v5780_v48 = vpop.f32.mrb[45].mxu1 }
 0x346   : > { %4450 = vst.msk [vmem:[%s8959_s22 + $0x98] sm:$0xff] %vm4430_vm5, %v4412_v39  ;;  %v4376_v15 = vadd.f32 %v8952_v32, %v4332_v44  ;;  %v6298_v49 = vadd.f32 %v4189_v46, %v2574_v40  ;;  %v6229_v36 = vpop.f32.mrb[43].mxu0 }
 0x348   : > { %v4413_v50 = vmax.f32 %v4376_v15, 0.0  ;;  %v4333_v51 = vmul.f32 %v6298_v49, %v8946_v28  ;;  %v2584_v25 = vpop.f32.mrb[46].mxu1 }
 0x349   : > { %v4194_v63 = vpop.f32.mrb[44].mxu0  ;;  %v5783_v20 = vpop.f32.mrb[47].mxu1 }
 0x34a   : > { %4451 = vst.msk [vmem:[%s8959_s22 + $0xa0] sm:$0xff] %vm4430_vm5, %v4413_v50  ;;  %v4377_v54 = vadd.f32 %v8952_v32, %v4333_v51  ;;  %v6299_v21 = vadd.f32 %v4194_v63, %v2579_v45  ;;  %v6232_v55 = vpop.f32.mrb[45].mxu0 }
 0x34c   : > { %v4414_v56 = vmax.f32 %v4377_v54, 0.0  ;;  %v4334_v17 = vmul.f32 %v6299_v21, %v8946_v28  ;;  %v2589_v59 = vpop.f32.mrb[48].mxu1 }
 0x34d   : > { %v4199_v60 = vpop.f32.mrb[46].mxu0  ;;  %v5786_v61 = vpop.f32.mrb[49].mxu1 }
 0x34e   : > { %4452 = vst.msk [vmem:[%s8959_s22 + $0xa8] sm:$0xff] %vm4430_vm5, %v4414_v56  ;;  %v4378_v0 = vadd.f32 %v8952_v32, %v4334_v17  ;;  %v6300_v4 = vadd.f32 %v4199_v60, %v2584_v25  ;;  %v6235_v18 = vpop.f32.mrb[47].mxu0 }
 0x350   : > { %v4415_v3 = vmax.f32 %v4378_v0, 0.0  ;;  %v4335_v47 = vmul.f32 %v6300_v4, %v8946_v28  ;;  %v2594_v1 = vpop.f32.mrb[50].mxu1 }
 0x351   : > { %v4204_v7 = vpop.f32.mrb[48].mxu0  ;;  %v5789_v2 = vpop.f32.mrb[51].mxu1 }
 0x352   : > { %4453 = vst.msk [vmem:[%s8959_s22 + $0xb0] sm:$0xff] %vm4430_vm5, %v4415_v3  ;;  %v4379_v19 = vadd.f32 %v8952_v32, %v4335_v47  ;;  %v6301_v11 = vadd.f32 %v4204_v7, %v2589_v59  ;;  %v6238_v58 = vpop.f32.mrb[49].mxu0 }
 0x354   : > { %v4416_v14 = vmax.f32 %v4379_v19, 0.0  ;;  %v4336_v5 = vmul.f32 %v6301_v11, %v8946_v28  ;;  %v2599_v62 = vpop.f32.mrb[52].mxu1 }
 0x355   : > { %v4209_v22 = vpop.f32.mrb[50].mxu0  ;;  %v5792_v8 = vpop.f32.mrb[53].mxu1 }
 0x356   : > { %4454 = vst.msk [vmem:[%s8959_s22 + $0xb8] sm:$0xff] %vm4430_vm5, %v4416_v14  ;;  %v4380_v10 = vadd.f32 %v8952_v32, %v4336_v5  ;;  %v6302_v13 = vadd.f32 %v4209_v22, %v2594_v1  ;;  %v6241_v53 = vpop.f32.mrb[51].mxu0 }
 0x358   : > { %v4417_v6 = vmax.f32 %v4380_v10, 0.0  ;;  %v4337_v16 = vmul.f32 %v6302_v13, %v8946_v28  ;;  %v2604_v24 = vpop.f32.mrb[54].mxu1 }
 0x359   : > { %v4214_v23 = vpop.f32.mrb[52].mxu0  ;;  %v5795_v29 = vpop.f32.mrb[55].mxu1 }
 0x35a   : > { %4455 = vst.msk [vmem:[%s8959_s22 + $0xc0] sm:$0xff] %vm4430_vm5, %v4417_v6  ;;  %v4381_v27 = vadd.f32 %v8952_v32, %v4337_v16  ;;  %v6303_v30 = vadd.f32 %v4214_v23, %v2599_v62  ;;  %v6244_v52 = vpop.f32.mrb[53].mxu0 }
 0x35c   : > { %v4418_v57 = vmax.f32 %v4381_v27, 0.0  ;;  %v4338_v31 = vmul.f32 %v6303_v30, %v8946_v28  ;;  %v2609_v33 = vpop.f32.mrb[56].mxu1 }
 0x35d   : > { %v4219_v34 = vpop.f32.mrb[54].mxu0  ;;  %v5798_v35 = vpop.f32.mrb[57].mxu1 }
 0x35e   : > { %4456 = vst.msk [vmem:[%s8959_s22 + $0xc8] sm:$0xff] %vm4430_vm5, %v4418_v57  ;;  %v4382_v37 = vadd.f32 %v8952_v32, %v4338_v31  ;;  %v6304_v9 = vadd.f32 %v4219_v34, %v2604_v24  ;;  %v6247_v38 = vpop.f32.mrb[55].mxu0 }
 0x360   : > { %v4419_v40 = vmax.f32 %v4382_v37, 0.0  ;;  %v4339_v26 = vmul.f32 %v6304_v9, %v8946_v28  ;;  %v2614_v41 = vpop.f32.mrb[58].mxu1 }
 0x361   : > { %v4224_v42 = vpop.f32.mrb[56].mxu0  ;;  %v5801_v43 = vpop.f32.mrb[59].mxu1 }
 0x362   : > { %4457 = vst.msk [vmem:[%s8959_s22 + $0xd0] sm:$0xff] %vm4430_vm5, %v4419_v40  ;;  %v4383_v12 = vadd.f32 %v8952_v32, %v4339_v26  ;;  %v6305_v39 = vadd.f32 %v4224_v42, %v2609_v33  ;;  %v6250_v44 = vpop.f32.mrb[57].mxu0 }
 0x364   : > { %v4420_v45 = vmax.f32 %v4383_v12, 0.0  ;;  %v4340_v46 = vmul.f32 %v6305_v39, %v8946_v28  ;;  %v2619_v48 = vpop.f32.mrb[60].mxu1 }
 0x365   : > { %v4229_v15 = vpop.f32.mrb[58].mxu0  ;;  %v5804_v49 = vpop.f32.mrb[61].mxu1 }
 0x366   : > { %4458 = vst.msk [vmem:[%s8959_s22 + $0xd8] sm:$0xff] %vm4430_vm5, %v4420_v45  ;;  %v4384_v36 = vadd.f32 %v8952_v32, %v4340_v46  ;;  %v6306_v50 = vadd.f32 %v4229_v15, %v2614_v41  ;;  %v6253_v51 = vpop.f32.mrb[59].mxu0 }
 0x368   : > { %v4421_v25 = vmax.f32 %v4384_v36, 0.0  ;;  %v4341_v63 = vmul.f32 %v6306_v50, %v8946_v28  ;;  %v2624_v20 = vpop.f32.mrb[62].mxu1 }
 0x369   : > { %v4234_v54 = vpop.f32.mrb[60].mxu0  ;;  %v5807_v21 = vpop.f32.mrb[63].mxu1 }
 0x36a   : > { %4459 = vst.msk [vmem:[%s8959_s22 + $0xe0] sm:$0xff] %vm4430_vm5, %v4421_v25  ;;  %v4385_v55 = vadd.f32 %v8952_v32, %v4341_v63  ;;  %v6307_v56 = vadd.f32 %v4234_v54, %v2619_v48  ;;  %v6256_v17 = vpop.f32.mrb[61].mxu0 }
 0x36c   : > { %v4422_v59 = vmax.f32 %v4385_v55, 0.0  ;;  %v4342_v60 = vmul.f32 %v6307_v56, %v8946_v28  ;;  %v2629_v61 = vpop.f32.mrb[64].mxu1 }
 0x36d   : > { %v4239_v0 = vpop.f32.mrb[62].mxu0  ;;  %v5810_v4 = vpop.f32.mrb[65].mxu1 }
 0x36e   : > { %4460 = vst.msk [vmem:[%s8959_s22 + $0xe8] sm:$0xff] %vm4430_vm5, %v4422_v59  ;;  %v4386_v18 = vadd.f32 %v8952_v32, %v4342_v60  ;;  %v6308_v3 = vadd.f32 %v4239_v0, %v2624_v20  ;;  %v6259_v47 = vpop.f32.mrb[63].mxu0 }
 0x370   : > { %v4423_v1 = vmax.f32 %v4386_v18, 0.0  ;;  %v4343_v7 = vmul.f32 %v6308_v3, %v8946_v28  ;;  %v2634_v2 = vpop.f32.mrb[66].mxu1 }
 0x371   : > { %v4244_v19 = vpop.f32.mrb[64].mxu0  ;;  %v5813_v11 = vpop.f32.mrb[67].mxu1 }
 0x372   : > { %4461 = vst.msk [vmem:[%s8959_s22 + $0xf0] sm:$0xff] %vm4430_vm5, %v4423_v1  ;;  %v4387_v58 = vadd.f32 %v8952_v32, %v4343_v7  ;;  %v6309_v14 = vadd.f32 %v4244_v19, %v2629_v61  ;;  %v6262_v5 = vpop.f32.mrb[65].mxu0 }
 0x374   : > { %v4424_v62 = vmax.f32 %v4387_v58, 0.0  ;;  %v4344_v22 = vmul.f32 %v6309_v14, %v8946_v28  ;;  %v2639_v8 = vpop.f32.mrb[68].mxu1 }
 0x375   : > { %v4249_v10 = vpop.f32.mrb[66].mxu0  ;;  %v5816_v13 = vpop.f32.mrb[69].mxu1 }
 0x376   : > { %4462 = vst.msk [vmem:[%s8959_s22 + $0xf8] sm:$0xff] %vm4430_vm5, %v4424_v62  ;;  %v4388_v53 = vadd.f32 %v8952_v32, %v4344_v22  ;;  %v6310_v6 = vadd.f32 %v4249_v10, %v2634_v2  ;;  %v6265_v16 = vpop.f32.mrb[67].mxu0 }
 0x378   : > { %v4425_v24 = vmax.f32 %v4388_v53, 0.0  ;;  %v4345_v23 = vmul.f32 %v6310_v6, %v8946_v28  ;;  %v2644_v29 = vpop.f32.mrb[70].mxu1 }
 0x379   : > { %v4254_v27 = vpop.f32.mrb[68].mxu0  ;;  %v5819_v30 = vpop.f32.mrb[71].mxu1 }
 0x37a   : > { %4463 = vst.msk [vmem:[%s8959_s22 + $0x100] sm:$0xff] %vm4430_vm5, %v4425_v24  ;;  %v4389_v52 = vadd.f32 %v8952_v32, %v4345_v23  ;;  %v6311_v57 = vadd.f32 %v4254_v27, %v2639_v8  ;;  %v6268_v31 = vpop.f32.mrb[69].mxu0 }
 0x37c   : > { %v4426_v33 = vmax.f32 %v4389_v52, 0.0  ;;  %v4346_v34 = vmul.f32 %v6311_v57, %v8946_v28  ;;  %v2649_v35 = vpop.f32.mrb[72].mxu1 }
 0x37d   : > { %v4259_v37 = vpop.f32.mrb[70].mxu0  ;;  %v5822_v9 = vpop.f32.mrb[73].mxu1 }
 0x37e   : > { %4464 = vst.msk [vmem:[%s8959_s22 + $0x108] sm:$0xff] %vm4430_vm5, %v4426_v33  ;;  %v4390_v38 = vadd.f32 %v8952_v32, %v4346_v34  ;;  %v6312_v40 = vadd.f32 %v4259_v37, %v2644_v29  ;;  %v6271_v26 = vpop.f32.mrb[71].mxu0 }
 0x380   : > { %v4427_v41 = vmax.f32 %v4390_v38, 0.0  ;;  %v4347_v42 = vmul.f32 %v6312_v40, %v8946_v28 }
 0x381   : > { %v4264_v43 = vpop.f32.mrb[72].mxu0 }
 0x382   : > { %4465 = vst.msk [vmem:[%s8959_s22 + $0x110] sm:$0xff] %vm4430_vm5, %v4427_v41  ;;  %v4391_v12 = vadd.f32 %v8952_v32, %v4347_v42  ;;  %v6313_v39 = vadd.f32 %v4264_v43, %v2649_v35  ;;  %v6274_v44 = vpop.f32.mrb[73].mxu0 }
 0x384   : > { %v4428_v45 = vmax.f32 %v4391_v12, 0.0  ;;  %v4348_v46 = vmul.f32 %v6313_v39, %v8946_v28 }
 0x386   : > { %4466 = vst.msk [vmem:[%s8959_s22 + $0x118] sm:$0xff] %vm4430_vm5, %v4428_v45  ;;  %v4392_v48 = vadd.f32 %v8952_v32, %v4348_v46 }
 0x388   : > { %v4429_v15 = vmax.f32 %v4392_v48, 0.0 }
 0x38a   : > { %4468 = vst.msk [vmem:[%s8959_s22 + $0x120] sm:$0x1] %vm4467_vm6, %v4429_v15 }
 0x38b PF: > { %s17_s24 = sadd.s32 1, %s6960_s24  }
 0x38c   : > { %p14_p4 = scmp.ge.s32.totalorder %s17_s24, 4  }
 0x38e   :  { %16 = sbr.rel (!%p14_p4) target bundleno = 1 (0x1), region = 87 }

// kernel: _lambda_.12
= control target key start
LH: loop header
LB: loop body
LE: loop exit
PB: predicated region body
PF: predicated region fallthrough
CT: control target
= control target key end

     0   :  { %s1439_s25 = smov 0   ;;  %s1834_s0 = inlined_call_operand.vmem [shape: bf16[2,36,8], index: 0, kind: input, shape index: {}]   ;;  %s1835_s1 = inlined_call_operand.vmem [shape: bf16[2,50,8], index: 1, kind: input, shape index: {}]   ;;  %s1836_s2 = inlined_call_operand.vmem [shape: f32[50,1], index: 2, kind: input, shape index: {}]   ;;  %s1837_s3 = inlined_call_operand.vmem [shape: bf16[8,8], index: 3, kind: input, shape index: {}]   ;;  %s1838_s4 = inlined_call_operand.vmem [shape: f32[1,8], index: 4, kind: input, shape index: {}]   ;;  %s1839_s5 = inlined_call_operand.vmem [shape: f32[1,8], index: 5, kind: input, shape index: {}]   ;;  %s1840_s6 = inlined_call_operand.vmem [shape: f32[9,8], index: 6, kind: input, shape index: {}]   ;;  %s1841_s7 = inlined_call_operand.vmem [shape: f32[1,8], index: 7, kind: input, shape index: {}]   ;;  %s1842_s8 = inlined_call_operand.vmem [shape: f32[1,8], index: 8, kind: input, shape index: {}]   ;;  %s1843_s9 = inlined_call_operand.vmem [shape: bf16[8,16], index: 9, kind: input, shape index: {}]   ;;  %s1844_s10 = inlined_call_operand.vmem [shape: f32[1,16], index: 10, kind: input, shape index: {}]   ;;  %s1845_s11 = inlined_call_operand.vmem [shape: f32[1,16], index: 11, kind: input, shape index: {}]   ;;  %s1846_s12 = inlined_call_operand.vmem [shape: bf16[8,16], index: 12, kind: input, shape index: {}]   ;;  %s1847_s13 = inlined_call_operand.vmem [shape: bf16[2,36,16], index: 13, kind: output, shape index: {}]  }
   0x1 LB: > { %s1237_s26 = sadd.s32 4294967295, %s1364_s25   ;;  %p1241_p0 = scmp.ge.s32.totalorder %s1364_s25, 1  ;;  %s1364_s25 = sphi %s1439_s25, %s23_s25  }
   0x2   : > { %p397_p1 = scmp.lt.s32.totalorder %s1364_s25, 3 }
   0x4   : > { %p398_p2 = pnand %p1241_p0, %p397_p1 }
   0x5   : > { %v469_v0 = vld [vmem:[%s1837_s3] sm:$0xf] (!%p398_p2)  ;;  %vm501_vm0 = vcmask (!%p398_p2), 1043456   ;;  %p446_p3 = scmp.lt.s32.totalorder (!%p398_p2), %s1237_s26, 1  ;;  %v606_v3 = vld [vmem:[%s1836_s2 + $0x10] sm:$0xff] (!%p398_p2)  ;;  %v1366_v4 = vmov (!%p398_p2), 0   ;;  %v655_v23 = vlaneseq (!%p398_p2) }
   0x6   : > { %401 = sbr.rel (%p398_p2) target bundleno = 521 (0x209), region = 72  ;;  %1334 = vmatprep.subr.msk.bf16.mxu0 (!%p398_p2), %vm501_vm0, %v469_v0  ;;  %1335 = vmatprep.subr.msk.bf16.mxu1 (!%p398_p2), %vm501_vm0, %v469_v0  ;;  %v503_v1 = vsel (!%p398_p2), %vm501_vm0, %v469_v0, 0  ;;  %v604_v2 = vld [vmem:[%s1836_s2] sm:$0xff] (!%p398_p2)  ;;  %v605_v5 = vld [vmem:[%s1836_s2 + $0x8] sm:$0xff] (!%p398_p2)  ;;  %v607_v6 = vld [vmem:[%s1836_s2 + $0x18] sm:$0xff] (!%p398_p2)  ;;  %vm488_vm1 = vcmask (!%p398_p2), 64512  }
   0x7   : > { %1295 = vmatpush3.bf16.msra.mxu0 (!%p398_p2), %v503_v1  ;;  %1333 = vmatpush3.bf16.msra.mxu1 (!%p398_p2), %v503_v1  ;;  %v608_v7 = vld [vmem:[%s1836_s2 + $0x20] sm:$0xff] (!%p398_p2)  ;;  %v609_v9 = vld [vmem:[%s1836_s2 + $0x28] sm:$0xff] (!%p398_p2)  ;;  %v610_v13 = vld [vmem:[%s1836_s2 + $0x30] sm:$0x3] (!%p398_p2)  ;;  %v1367_v16 = vmov (!%p398_p2), 0.0   ;;  %vm1368_vm2 = vmmov (!%p398_p2), 0  }
   0x8   : > { %1349 = vset.pattern.permute.xlu0 (!%p398_p2), %v1366_v4  ;;  %1350 = vset.pattern.permute.xlu1 (!%p398_p2), %v1366_v4  ;;  %v957_v14 = vld [vmem:[%s1843_s9] sm:$0xf] (!%p398_p2)  ;;  %v656_v24 = vshrl.u32 (!%p398_p2), %v655_v23, 7  ;;  %vm678_vm3 = vcmask (!%p398_p2), 1046528   ;;  %vm712_vm4 = vcmask (!%p398_p2), 1045504   ;;  %vm748_vm5 = vcmask (!%p398_p2), 1041408  }
   0x9   : > { %613 = vperm.xlu0 (!%p398_p2), %1349, %v604_v2   ;;  %623 = vperm.xlu1 (!%p398_p2), %1350, %v606_v3   ;;  %v1060_v15 = vld [vmem:[%s1846_s12] sm:$0xf] (!%p398_p2)  ;;  %v968_v17 = vsel (!%p398_p2), %vm501_vm0, %v957_v14, 0  ;;  %vm786_vm6 = vcmask (!%p398_p2), 1040384   ;;  %vm871_vm7 = vcmask (!%p398_p2), 1042432   ;;  %vm1163_vm8 = vcmask (!%p398_p2), 125952  }
   0xa   : > { %1304 = vmatprep.subr.bf16.mxu1 (!%p398_p2), %v1367_v16  ;;  %1318 = vmatprep.subr.bf16.mxu0 (!%p398_p2), %v1367_v16  ;;  %v1084_v18 = vsel (!%p398_p2), %vm501_vm0, %v1060_v15, 0  ;;  %v657_v26 = vsub.s32 (!%p398_p2), 0, %v656_v24  ;;  %v653_v27 = vld [vmem:[%s1840_s6] sm:$0xff] (!%p398_p2)  ;;  %v666_v28 = vsub.s32 (!%p398_p2), 1, %v656_v24  ;;  %v700_v29 = vsub.s32 (!%p398_p2), 2, %v656_v24 }
   0xb   : > { %v734_v30 = vsub.s32 (!%p398_p2), 3, %v656_v24  ;;  %v1253_v31 = vld [vmem:[%s1838_s4] ss:$0 sm:$0xff] (!%p398_p2)  ;;  %v772_v32 = vsub.s32 (!%p398_p2), 4, %v656_v24  ;;  %v857_v35 = vsub.s32 (!%p398_p2), 7, %v656_v24  ;;  %v810_v50 = vsub.s32 (!%p398_p2), 5, %v656_v24 }
   0xc   : > { %v1254_v37 = vld [vmem:[%s1839_s5] ss:$0 sm:$0xff] (!%p398_p2)  ;;  %v1522_v38 = vrot.slane (!%p398_p2), %v653_v27, %v657_v26  ;;  %v1524_v42 = vrot.slane (!%p398_p2), %v653_v27, %v666_v28  ;;  %v1526_v43 = vrot.slane (!%p398_p2), %v653_v27, %v700_v29  ;;  %v824_v61 = vsub.s32 (!%p398_p2), 6, %v656_v24 }
   0xd   : > { %s1849_s26 = smov (!%p446_p3, %s1237_s26), 1  ;;  %618 = vperm.xlu0 %1349, %v605_v5   ;;  %628 = vperm.xlu1 %1350, %v607_v6   ;;  %v1528_v44 = vrot.slane %v653_v27, %v734_v30  ;;  %v1530_v47 = vrot.slane %v653_v27, %v772_v32  ;;  %v1532_v56 = vrot.slane %v653_v27, %v857_v35  ;;  %v1537_v6 = vld [vmem:[%s1840_s6 + $0x8] ss:$0 sm:$0xff]  ;;  %vm1168_vm9 = vcmask 123904  }
   0xe   : > { %s1337_s16 = smul.u32 28, %s1849_s26 }
   0xf   : > { %s1336_s19 = smul.u32 20, %s1849_s26 }
  0x10   : > { %s455_s23 = scalar_lea.vmem %s1835_s1, %s1337_s16 }
  0x11   : > { %v1351_v8 = vld [vmem:[%s455_s23] sm:$0xff]   ;;  %v1352_v10 = vld [vmem:[%s455_s23 + $0x10] sm:$0xff]   ;;  %v1353_v11 = vld [vmem:[%s455_s23 + $0x8] sm:$0xff]   ;;  %633 = vperm.xlu0 %1349, %v608_v7   ;;  %638 = vperm.xlu1 %1350, %v609_v9   ;;  %s450_s22 = scalar_lea.vmem %s1834_s0, %s1336_s19  ;;  %s1820_s29 = scalar_lea.vmem %s1847_s13, %s1336_s19 }
  0x12   : > { %1296 = vmatprep.mubr.msk.bf16.mxu0 %vm488_vm1, %v1351_v8  ;;  %1300 = vmatprep.mubr.msk.bf16.mxu1 %vm488_vm1, %v1352_v10  ;;  %v1354_v12 = vld [vmem:[%s455_s23 + $0x18] ss:$0 sps:$4 sm:$0x11]   ;;  %v1355_v19 = vld [vmem:[%s450_s22] sm:$0xff]   ;;  %v1356_v20 = vld [vmem:[%s450_s22 + $0x8] sm:$0xff]   ;;  %v1539_v8 = vrot.slane %v653_v27, %v810_v50 }
  0x13   : > { %1297 = vmatmul.mubr.msk.bf16.vlgmr.msra.gmra.mrb[0].mxu0 %vm488_vm1, %v1353_v11  ;;  %1301 = vmatmul.mubr.msk.bf16.vlgmr.msra.gmra.mrb[0].mxu1 %vm488_vm1, %v1354_v12  ;;  %v1357_v21 = vld [vmem:[%s450_s22 + $0x10] ss:$0 sps:$4 sm:$0x33]  }
  0x14   : > { %1305 = vmatpush3.bf16.msra.mxu1 %v968_v17  ;;  %1319 = vmatpush3.bf16.msra.mxu0 %v1084_v18  ;;  %v1543_v17 = vrot.slane %v653_v27, %v824_v61 }
  0x15   : > { %643 = vperm.xlu0 %1349, %v610_v13   ;;  %1306 = vmatprep.mubr.msk.bf16.mxu1 %vm1368_vm2, %v1367_v16 }
  0x16   : > { %1320 = vmatprep.mubr.msk.bf16.mxu0 %vm1368_vm2, %v1367_v16 }
  0x1b   : > { %1321 = vmatmul.mubr.msk.bf16.vlgmr.msra.gmra.mrb[4].mxu0 %vm488_vm1, %v1355_v19 }
  0x1c   : > { %1324 = vmatprep.mubr.msk.bf16.mxu0 %vm1368_vm2, %v1367_v16 }
  0x23   : > { %1325 = vmatmul.mubr.msk.bf16.gmra.mrb[8].mxu0 %vm488_vm1, %v1356_v20 }
  0x24   : > { %1328 = vmatprep.mubr.msk.bf16.mxu0 %vm1368_vm2, %v1367_v16 }
  0x2b   : > { %1329 = vmatmul.mubr.msk.bf16.gmra.mrb[12].mxu0 %vm488_vm1, %v1357_v21 }
  0x88   : > { %v614_v22 = vpop.permute.xlu0 %613  ;;  %v624_v33 = vpop.permute.xlu1 %623 }
  0x8c   : > { %v1511_v25 = vpop.permute.xlu0 %618  ;;  %v629_v2 = vpop.permute.xlu1 %628 }
  0x90   : > { %v634_v34 = vpop.permute.xlu0 %633  ;;  %v639_v30 = vpop.permute.xlu1 %638 }
  0x94   : > { %v644_v3 = vpop.permute.xlu0 %643 }
  0xe6   : > { %v1298_v36 = vpop.f32.mrb[0].mxu0  ;;  %v1302_v40 = vpop.f32.mrb[0].mxu1 }
  0xe7   : > { %v578_v39 = vmul.f32 %v1298_v36, %v1253_v31  ;;  %v539_v41 = vpop.f32.mrb[1].mxu0  ;;  %v582_v45 = vmul.f32 %v1302_v40, %v1253_v31  ;;  %v555_v48 = vpop.f32.mrb[1].mxu1 }
  0xe8   : > { %v576_v46 = vmul.f32 %v1253_v31, %v539_v41  ;;  %v1299_v49 = vpop.f32.mrb[2].mxu0  ;;  %v580_v52 = vmul.f32 %v1253_v31, %v555_v48  ;;  %v1303_v54 = vpop.f32.mrb[2].mxu1 }
  0xe9   : > { %v592_v51 = vadd.f32 %v1254_v37, %v578_v39  ;;  %v579_v53 = vmul.f32 %v1299_v49, %v1253_v31  ;;  %v542_v55 = vpop.f32.mrb[3].mxu0  ;;  %v596_v57 = vadd.f32 %v1254_v37, %v582_v45  ;;  %v558_v60 = vpop.f32.mrb[3].mxu1 }
  0xea   : > { %v590_v58 = vadd.f32 %v1254_v37, %v576_v46  ;;  %v577_v59 = vmul.f32 %v1253_v31, %v542_v55  ;;  %v594_v63 = vadd.f32 %v1254_v37, %v580_v52  ;;  %v581_v1 = vmul.f32 %v1253_v31, %v558_v60 }
  0xeb   : > { %v599_v62 = vmax.f32 %v592_v51, 0.0  ;;  %v593_v0 = vadd.f32 %v1254_v37, %v579_v53  ;;  %v603_v7 = vmax.f32 %v596_v57, 0.0 }
  0xec   : > { %v597_v4 = vmax.f32 %v590_v58, 0.0  ;;  %v591_v5 = vadd.f32 %v1254_v37, %v577_v59  ;;  %v601_v10 = vmax.f32 %v594_v63, 0.0  ;;  %v595_v11 = vadd.f32 %v1254_v37, %v581_v1 }
  0xed   : > { %v1541_v9 = vmul.f32 %v624_v33, %v599_v62  ;;  %v600_v12 = vmax.f32 %v593_v0, 0.0  ;;  %v652_v15 = vmul.f32 %v644_v3, %v603_v7 }
  0xee   : > { %v646_v13 = vmul.f32 %v614_v22, %v597_v4  ;;  %v598_v14 = vmax.f32 %v591_v5, 0.0  ;;  %v1545_v18 = vmul.f32 %v634_v34, %v601_v10  ;;  %v602_v22 = vmax.f32 %v595_v11, 0.0 }
  0xef   : > { %v1547_v19 = vmul.f32 %v629_v2, %v600_v12  ;;  %v1551_v20 = vmul.f32 %v1537_v6, %v1541_v9  ;;  %v1563_v28 = vmul.f32 %v1532_v56, %v652_v15  ;;  %v1571_v34 = vmul.f32 %v1537_v6, %v652_v15 }
  0xf0   : > { %v668_v21 = vmul.f32 %v1524_v42, %v646_v13  ;;  %v702_v23 = vmul.f32 %v1526_v43, %v646_v13  ;;  %v736_v24 = vmul.f32 %v1528_v44, %v646_v13  ;;  %v1557_v26 = vmul.f32 %v1530_v47, %v646_v13 }
  0xf1   : > { %v1560_v27 = vmul.f32 %v1511_v25, %v598_v14  ;;  %v1567_v29 = vmul.f32 %v1537_v6, %v1547_v19  ;;  %v659_v31 = vmul.f32 %v1522_v38, %v646_v13  ;;  %v881_v25 = vrot.slane %v1563_v28, 5 }
  0xf2   : > { %v679_v32 = vrot.slane %v668_v21, 1  ;;  %v713_v33 = vrot.slane %v702_v23, 2  ;;  %v749_v35 = vrot.slane %v736_v24, 6  ;;  %v787_v36 = vrot.slane %v1557_v26, 7 }
  0xf3   : > { %v1577_v37 = vmul.f32 %v1537_v6, %v1560_v27  ;;  %v910_v39 = vrot.slane %v1551_v20, 6  ;;  %v912_v40 = vrot.slane %v1567_v29, 6  ;;  %v918_v41 = vrot.slane %v1571_v34, 6 }
  0xf4   : > { %v1582_v45 = vmul.f32 %v639_v30, %v602_v22  ;;  %v660_v46 = vmul.f32 %v1522_v38, %v1560_v27  ;;  %v669_v48 = vmul.f32 %v1524_v42, %v1560_v27  ;;  %v1590_v49 = vmul.f32 %v1524_v42, %v1541_v9 }
  0xf5   : > { %v703_v50 = vmul.f32 %v1526_v43, %v1560_v27  ;;  %v909_v51 = vrot.slane %v1577_v37, 6  ;;  %v1621_v63 = vmul.f32 %v1526_v43, %v1541_v9  ;;  %v737_v10 = vmul.f32 %v1528_v44, %v1560_v27 }
  0xf6   : > { %v1597_v52 = vmul.f32 %v1528_v44, %v1582_v45  ;;  %v1601_v53 = vmul.f32 %v1530_v47, %v1582_v45  ;;  %v1605_v54 = vmul.f32 %v1543_v17, %v1582_v45  ;;  %v1609_v55 = vmul.f32 %v1532_v56, %v1582_v45 }
  0xf7   : > { %v1613_v57 = vmul.f32 %v1537_v6, %v1582_v45  ;;  %v680_v58 = vrot.slane %v669_v48, 1  ;;  %v682_v59 = vrot.slane %v1590_v49, 1  ;;  %v714_v3 = vrot.slane %v703_v50, 2  ;;  %v1733_v49 = vld [vmem:[%s1842_s8] ss:$0 sm:$0xff] }
  0xf8   : > { %v758_v60 = vrot.slane %v1597_v52, 6  ;;  %v796_v61 = vrot.slane %v1601_v53, 7  ;;  %v843_v62 = vrot.slane %v1605_v54, 4  ;;  %v879_v0 = vrot.slane %v1609_v55, 5 }
  0xf9   : > { %v681_v1 = vsel %vm678_vm3, %v679_v32, %v680_v58  ;;  %v683_v2 = vsel %vm678_vm3, %v680_v58, %v682_v59  ;;  %v716_v7 = vrot.slane %v1621_v63, 2  ;;  %v715_v11 = vsel %vm712_vm4, %v713_v33, %v714_v3 }
  0xfa   : > { %v693_v4 = vadd.f32 %v681_v1, %v659_v31  ;;  %v694_v5 = vadd.f32 %v683_v2, %v660_v46  ;;  %v1634_v12 = vmul.f32 %v1528_v44, %v1541_v9  ;;  %v775_v13 = vmul.f32 %v1530_v47, %v1560_v27 }
  0xfb   : > { %v1640_v14 = vmul.f32 %v1530_v47, %v1541_v9  ;;  %v717_v15 = vsel %vm712_vm4, %v714_v3, %v716_v7  ;;  %v750_v23 = vrot.slane %v737_v10, 6  ;;  %v812_v24 = vmul.f32 %v1539_v8, %v1560_v27 }
  0xfc   : > { %v727_v21 = vadd.f32 %v715_v11, %v693_v4  ;;  %v728_v22 = vadd.f32 %v717_v15, %v694_v5  ;;  %v752_v26 = vrot.slane %v1634_v12, 6  ;;  %v788_v30 = vrot.slane %v775_v13, 7 }
  0xfd   : > { %v790_v31 = vrot.slane %v1640_v14, 7  ;;  %v751_v32 = vsel %vm748_vm5, %v749_v35, %v750_v23  ;;  %v813_v33 = vmul.f32 %v1539_v8, %v1541_v9  ;;  %v826_v37 = vmul.f32 %v1543_v17, %v1560_v27 }
  0xfe   : > { %v827_v46 = vmul.f32 %v1543_v17, %v1541_v9  ;;  %v753_v48 = vsel %vm748_vm5, %v750_v23, %v752_v26  ;;  %v765_v50 = vadd.f32 %v751_v32, %v727_v21  ;;  %v789_v58 = vsel %vm786_vm6, %v787_v36, %v788_v30 }
  0xff   : > { %v791_v35 = vsel %vm786_vm6, %v788_v30, %v790_v31  ;;  %v766_v1 = vadd.f32 %v753_v48, %v728_v22  ;;  %v1665_v2 = vmul.f32 %v1543_v17, %v1547_v19  ;;  %v836_v3 = vrot.slane %v826_v37, 4 }
 0x100   : > { %v837_v4 = vrot.slane %v827_v46, 4  ;;  %v803_v5 = vadd.f32 %v789_v58, %v765_v50  ;;  %v859_v10 = vmul.f32 %v1532_v56, %v1560_v27  ;;  %v860_v11 = vmul.f32 %v1532_v56, %v1541_v9 }
 0x101   : > { %v1673_v36 = vmul.f32 %v1532_v56, %v1547_v19  ;;  %v804_v13 = vadd.f32 %v791_v35, %v766_v1  ;;  %v839_v21 = vrot.slane %v1665_v2, 4  ;;  %v911_v23 = vsel %vm748_vm5, %v909_v51, %v910_v39 }
 0x102   : > { %v838_v15 = vsel %vm501_vm0, %v836_v3, %v837_v4  ;;  %v817_v22 = vadd.f32 %v812_v24, %v803_v5  ;;  %v872_v30 = vrot.slane %v859_v10, 5  ;;  %v873_v32 = vrot.slane %v860_v11, 5 }
 0x103   : > { %v875_v27 = vrot.slane %v1673_v36, 5  ;;  %v818_v37 = vadd.f32 %v813_v33, %v804_v13  ;;  %v840_v46 = vsel %vm501_vm0, %v837_v4, %v839_v21  ;;  %v913_v48 = vsel %vm748_vm5, %v910_v39, %v912_v40 }
 0x104   : > { %v661_v50 = vmul.f32 %v1522_v38, %v1541_v9  ;;  %v850_v51 = vadd.f32 %v838_v15, %v817_v22  ;;  %v874_v24 = vsel %vm871_vm7, %v872_v30, %v873_v32  ;;  %v662_v58 = vmul.f32 %v1522_v38, %v1547_v19 }
 0x105   : > { %v876_v33 = vsel %vm871_vm7, %v873_v32, %v875_v27  ;;  %v851_v35 = vadd.f32 %v840_v46, %v818_v37  ;;  %v671_v1 = vmul.f32 %v1524_v42, %v1547_v19  ;;  %v1701_v20 = vmul.f32 %v1524_v42, %v1545_v18 }
 0x106   : > { %v705_v9 = vmul.f32 %v1526_v43, %v1547_v19  ;;  %v888_v39 = vadd.f32 %v874_v24, %v850_v51  ;;  %v1707_v3 = vmul.f32 %v1526_v43, %v1545_v18  ;;  %v739_v4 = vmul.f32 %v1528_v44, %v1547_v19  ;;  %v1718_v43 = vld [vmem:[%s1841_s7] ss:$0 sm:$0xff] }
 0x107   : > { %v740_v5 = vmul.f32 %v1528_v44, %v1545_v18  ;;  %v889_v10 = vadd.f32 %v876_v33, %v851_v35  ;;  %v684_v11 = vrot.slane %v671_v1, 1  ;;  %v686_v13 = vrot.slane %v1701_v20, 1 }
 0x108   : > { %v718_v42 = vrot.slane %v705_v9, 2  ;;  %v925_v15 = vadd.f32 %v911_v23, %v888_v39  ;;  %v720_v22 = vrot.slane %v1707_v3, 2  ;;  %v754_v30 = vrot.slane %v739_v4, 6 }
 0x109   : > { %v756_v32 = vrot.slane %v740_v5, 6  ;;  %v926_v37 = vadd.f32 %v913_v48, %v889_v10  ;;  %v685_v44 = vsel %vm678_vm3, %v682_v59, %v684_v11  ;;  %v687_v46 = vsel %vm678_vm3, %v684_v11, %v686_v13 }
 0x10a   : > { %v719_v23 = vsel %vm712_vm4, %v716_v7, %v718_v42  ;;  %v937_v51 = vmul.f32 %v1718_v43, %v925_v15  ;;  %v695_v24 = vadd.f32 %v685_v44, %v661_v50  ;;  %v696_v33 = vadd.f32 %v687_v46, %v662_v58 }
 0x10b   : > { %v721_v48 = vsel %vm712_vm4, %v718_v42, %v720_v22  ;;  %v938_v35 = vmul.f32 %v1718_v43, %v926_v37  ;;  %v755_v59 = vsel %vm748_vm5, %v752_v26, %v754_v30  ;;  %v757_v63 = vsel %vm748_vm5, %v754_v30, %v756_v32 }
 0x10c   : > { %v777_v7 = vmul.f32 %v1530_v47, %v1547_v19  ;;  %v949_v50 = vadd.f32 %v1733_v49, %v937_v51  ;;  %v729_v58 = vadd.f32 %v719_v23, %v695_v24  ;;  %v730_v1 = vadd.f32 %v721_v48, %v696_v33 }
 0x10d   : > { %v778_v20 = vmul.f32 %v1530_v47, %v1545_v18  ;;  %v950_v9 = vadd.f32 %v1733_v49, %v938_v35  ;;  %v814_v12 = vmul.f32 %v1539_v8, %v1547_v19  ;;  %v815_v26 = vmul.f32 %v1539_v8, %v1545_v18 }
 0x10e   : > { %v792_v39 = vrot.slane %v777_v7, 7  ;;  %v767_v3 = vadd.f32 %v755_v59, %v729_v58  ;;  %v768_v4 = vadd.f32 %v757_v63, %v730_v1  ;;  %v829_v10 = vmul.f32 %v1543_v17, %v1545_v18 }
 0x10f   : > { %v794_v5 = vrot.slane %v778_v20, 7  ;;  %v954_v11 = vpack.c.bf16 %v950_v9, %v949_v50  ;;  %v862_v42 = vmul.f32 %v1532_v56, %v1545_v18  ;;  %v900_v19 = vmul.f32 %v1537_v6, %v1545_v18  ;;  %v1120_v50 = vpop.f32.mrb[4].mxu0 }
 0x110   : > { %v793_v47 = vsel %vm786_vm6, %v790_v31, %v792_v39  ;;  %v841_v37 = vrot.slane %v829_v10, 4  ;;  %v916_v44 = vrot.slane %v1613_v57, 6  ;;  %v663_v14 = vmul.f32 %v1522_v38, %v1545_v18  ;;  %v1322_v58 = vpop.f32.mrb[5].mxu0 }
 0x111   : > { %v795_v15 = vsel %vm786_vm6, %v792_v39, %v794_v5  ;;  %v805_v30 = vadd.f32 %v793_v47, %v767_v3  ;;  %1307 = vmatmul.mubr.msk.bf16.vlgmr.msra.gmra.mrb[4].mxu1 %vm488_vm1, %v954_v11  ;;  %v877_v46 = vrot.slane %v862_v42, 5  ;;  %v914_v23 = vrot.slane %v900_v19, 6  ;;  %v1123_v1 = vpop.f32.mrb[6].mxu0 }
 0x112   : > { %v806_v17 = vadd.f32 %v795_v15, %v768_v4  ;;  %1310 = vmatprep.mubr.msk.bf16.mxu1 %vm1368_vm2, %v1367_v16  ;;  %v842_v6 = vsel %vm501_vm0, %v839_v21, %v841_v37  ;;  %v844_v57 = vsel %vm501_vm0, %v841_v37, %v843_v62  ;;  %v759_v31 = vsel %vm748_vm5, %v756_v32, %v758_v60  ;;  %v1323_v54 = vpop.f32.mrb[7].mxu0  ;;  %v1262_v4 = vld [vmem:[%s1845_s11] ss:$0 sm:$0xff] }
 0x113   : > { %v819_v56 = vadd.f32 %v814_v12, %v805_v30  ;;  %v878_v38 = vsel %vm871_vm7, %v875_v27, %v877_v46  ;;  %v880_v18 = vsel %vm871_vm7, %v877_v46, %v879_v0  ;;  %v915_v2 = vsel %vm748_vm5, %v912_v40, %v914_v23 }
 0x114   : > { %v820_v51 = vadd.f32 %v815_v26, %v806_v17  ;;  %v917_v24 = vsel %vm748_vm5, %v914_v23, %v916_v44  ;;  %v697_v33 = vadd.f32 %v686_v13, %v663_v14  ;;  %v797_v52 = vsel %vm786_vm6, %v794_v5, %v796_v61 }
 0x115   : > { %v852_v21 = vadd.f32 %v842_v6, %v819_v56  ;;  %v882_v36 = vsel %vm871_vm7, %v879_v0, %v881_v25  ;;  %v919_v29 = vsel %vm748_vm5, %v916_v44, %v918_v41  ;;  %v816_v53 = vmul.f32 %v1539_v8, %v1582_v45 }
 0x116   : > { %v853_v60 = vadd.f32 %v844_v57, %v820_v51  ;;  %v731_v27 = vadd.f32 %v720_v22, %v697_v33 }
 0x117   : > { %v890_v40 = vadd.f32 %v878_v38, %v852_v21 }
 0x118   : > { %v891_v32 = vadd.f32 %v880_v18, %v853_v60  ;;  %v769_v13 = vadd.f32 %v759_v31, %v731_v27 }
 0x119   : > { %v927_v48 = vadd.f32 %v915_v2, %v890_v40 }
 0x11a   : > { %v928_v35 = vadd.f32 %v917_v24, %v891_v32  ;;  %v807_v28 = vadd.f32 %v797_v52, %v769_v13 }
 0x11b   : > { %v939_v61 = vmul.f32 %v1718_v43, %v927_v48 }
 0x11c   : > { %v940_v55 = vmul.f32 %v1718_v43, %v928_v35  ;;  %v821_v0 = vadd.f32 %v816_v53, %v807_v28 }
 0x11d   : > { %v951_v25 = vadd.f32 %v1733_v49, %v939_v61 }
 0x11e   : > { %v952_v34 = vadd.f32 %v1733_v49, %v940_v55  ;;  %v854_v41 = vadd.f32 %v843_v62, %v821_v0  ;;  %v1128_v62 = vpop.f32.mrb[8].mxu0 }
 0x11f   : > { %v1326_v20 = vpop.f32.mrb[9].mxu0 }
 0x120   : > { %v955_v22 = vpack.c.bf16 %v952_v34, %v951_v25  ;;  %v892_v59 = vadd.f32 %v882_v36, %v854_v41  ;;  %v1131_v9 = vpop.f32.mrb[10].mxu0 }
 0x121   : > { %v1327_v39 = vpop.f32.mrb[11].mxu0 }
 0x122   : > { %1311 = vmatmul.mubr.msk.bf16.gmra.mrb[8].mxu1 %vm488_vm1, %v955_v22  ;;  %v929_v8 = vadd.f32 %v919_v29, %v892_v59  ;;  %v1136_v12 = vpop.f32.mrb[12].mxu0 }
 0x123   : > { %1314 = vmatprep.mubr.msk.bf16.mxu1 %vm1368_vm2, %v1367_v16  ;;  %v1330_v26 = vpop.f32.mrb[13].mxu0 }
 0x124   : > { %v941_v45 = vmul.f32 %v1718_v43, %v929_v8  ;;  %v1139_v16 = vpop.f32.mrb[14].mxu0  ;;  %v1261_v43 = vld [vmem:[%s1844_s10] ss:$0 sm:$0xff] }
 0x125   : > { %v1331_v3 = vpop.f32.mrb[15].mxu0 }
 0x126   : > { %v953_v63 = vadd.f32 %v1733_v49, %v941_v45 }
 0x128   : > { %v956_v7 = vpack.c.bf16 %v953_v63, %v953_v63 }
 0x12a   : > { %1315 = vmatmul.mubr.msk.bf16.gmra.mrb[12].mxu1 %vm488_vm1, %v956_v7 }
 0x1e4   : > { %v1004_v49 = vpop.f32.mrb[4].mxu1 }
 0x1e5   : > { %v1033_v5 = vmul.f32 %v1261_v43, %v1004_v49  ;;  %v1308_v10 = vpop.f32.mrb[5].mxu1 }
 0x1e6   : > { %v1007_v11 = vpop.f32.mrb[6].mxu1 }
 0x1e7   : > { %v1045_v47 = vadd.f32 %v1262_v4, %v1033_v5  ;;  %v1034_v42 = vmul.f32 %v1261_v43, %v1007_v11  ;;  %v1309_v19 = vpop.f32.mrb[7].mxu1 }
 0x1e9   : > { %v1046_v15 = vadd.f32 %v1262_v4, %v1034_v42  ;;  %v1050_v30 = vmax.f32 %v1045_v47, 0.0 }
 0x1eb   : > { %v1121_v37 = vadd.f32 %v1120_v50, %v1050_v30  ;;  %v1051_v44 = vmax.f32 %v1046_v15, 0.0 }
 0x1ed   : > { %v1276_v17 = vpack.c.bf16 %v1121_v37, %v1121_v37  ;;  %v1124_v46 = vadd.f32 %v1123_v1, %v1051_v44 }
 0x1ef   : > { %1164 = vst.msk [vmem:[%s1820_s29] sm:$0xf] %vm1163_vm8, %v1276_v17  ;;  %v1277_v23 = vpack.c.bf16 %v1124_v46, %v1124_v46 }
 0x1f1   : > { %1165 = vst.msk [vmem:[%s1820_s29 + $0x4] sm:$0xf] %vm1163_vm8, %v1277_v23 }
 0x1f5   : > { %v1012_v14 = vpop.f32.mrb[8].mxu1 }
 0x1f6   : > { %v1035_v56 = vmul.f32 %v1261_v43, %v1012_v14  ;;  %v1312_v6 = vpop.f32.mrb[9].mxu1 }
 0x1f7   : > { %v1015_v57 = vpop.f32.mrb[10].mxu1 }
 0x1f8   : > { %v1047_v31 = vadd.f32 %v1262_v4, %v1035_v56  ;;  %v1036_v51 = vmul.f32 %v1261_v43, %v1015_v57  ;;  %v1313_v38 = vpop.f32.mrb[11].mxu1 }
 0x1fa   : > { %v1048_v18 = vadd.f32 %v1262_v4, %v1036_v51  ;;  %v1052_v2 = vmax.f32 %v1047_v31, 0.0 }
 0x1fc   : > { %v1129_v21 = vadd.f32 %v1128_v62, %v1052_v2  ;;  %v1053_v24 = vmax.f32 %v1048_v18, 0.0 }
 0x1fd   : > { %v1020_v60 = vpop.f32.mrb[12].mxu1 }
 0x1fe   : > { %v1278_v33 = vpack.c.bf16 %v1129_v21, %v1129_v21  ;;  %v1132_v52 = vadd.f32 %v1131_v9, %v1053_v24  ;;  %v1037_v36 = vmul.f32 %v1261_v43, %v1020_v60  ;;  %v1316_v29 = vpop.f32.mrb[13].mxu1 }
 0x1ff   : > { %v1023_v27 = vpop.f32.mrb[14].mxu1 }
 0x200   : > { %1166 = vst.msk [vmem:[%s1820_s29 + $0x8] sm:$0xf] %vm1163_vm8, %v1278_v33  ;;  %v1279_v40 = vpack.c.bf16 %v1132_v52, %v1132_v52  ;;  %v1049_v32 = vadd.f32 %v1262_v4, %v1037_v36  ;;  %v1317_v48 = vpop.f32.mrb[15].mxu1 }
 0x202   : > { %1167 = vst.msk [vmem:[%s1820_s29 + $0xc] sm:$0xf] %vm1163_vm8, %v1279_v40  ;;  %v1054_v13 = vmax.f32 %v1049_v32, 0.0 }
 0x204   : > { %v1137_v35 = vadd.f32 %v1136_v12, %v1054_v13 }
 0x206   : > { %v1280_v53 = vpack.c.bf16 %v1137_v35, %v1137_v35 }
 0x208   : > { %1169 = vst.msk [vmem:[%s1820_s29 + $0x10] sm:$0x3] %vm1168_vm9, %v1280_v53 }
 0x209 PF: > { %s23_s25 = sadd.s32 1, %s1364_s25  }
 0x20a   : > { %p20_p4 = scmp.ge.s32.totalorder %s23_s25, 4  }
 0x20c   :  { %22 = sbr.rel (!%p20_p4) target bundleno = 1 (0x1), region = 105 }

// kernel: _lambda_.11
= control target key start
LH: loop header
LB: loop body
LE: loop exit
PB: predicated region body
PF: predicated region fallthrough
CT: control target
= control target key end

     0   :  { %s2722_s0 = inlined_call_operand.vmem [shape: bf16[2,31,8], index: 0, kind: input, shape index: {}]   ;;  %s2723_s1 = inlined_call_operand.vmem [shape: bf16[2,31,8], index: 1, kind: input, shape index: {}]   ;;  %s2724_s2 = inlined_call_operand.vmem [shape: bf16[2,31,8], index: 2, kind: input, shape index: {}]   ;;  %s2725_s3 = inlined_call_operand.vmem [shape: bf16[2,31,8], index: 3, kind: input, shape index: {}]   ;;  %s2726_s4 = inlined_call_operand.vmem [shape: f32[31,1], index: 4, kind: input, shape index: {}]   ;;  %s2727_s5 = inlined_call_operand.vmem [shape: f32[9,8], index: 5, kind: input, shape index: {}]   ;;  %s2728_s6 = inlined_call_operand.vmem [shape: f32[1,8], index: 6, kind: input, shape index: {}]   ;;  %s2729_s7 = inlined_call_operand.vmem [shape: f32[1,8], index: 7, kind: input, shape index: {}]   ;;  %s2730_s8 = inlined_call_operand.vmem [shape: bf16[8,16], index: 8, kind: input, shape index: {}]   ;;  %s2731_s9 = inlined_call_operand.vmem [shape: f32[1,16], index: 9, kind: input, shape index: {}]   ;;  %s2732_s10 = inlined_call_operand.vmem [shape: f32[1,16], index: 10, kind: input, shape index: {}]   ;;  %s2733_s11 = inlined_call_operand.vmem [shape: bf16[8,8], index: 11, kind: input, shape index: {}]   ;;  %s2734_s12 = inlined_call_operand.vmem [shape: f32[1,8], index: 12, kind: input, shape index: {}]   ;;  %s2735_s13 = inlined_call_operand.vmem [shape: f32[1,8], index: 13, kind: input, shape index: {}]   ;;  %s2736_s14 = inlined_call_operand.vmem [shape: f32[9,8], index: 14, kind: input, shape index: {}]   ;;  %s2737_s15 = inlined_call_operand.vmem [shape: f32[1,8], index: 15, kind: input, shape index: {}]   ;;  %s2738_s16 = inlined_call_operand.vmem [shape: f32[1,8], index: 16, kind: input, shape index: {}]   ;;  %s2739_s17 = inlined_call_operand.vmem [shape: bf16[8,16], index: 17, kind: input, shape index: {}]   ;;  %s2740_s18 = inlined_call_operand.vmem [shape: f32[1,16], index: 18, kind: input, shape index: {}]   ;;  %s2741_s19 = inlined_call_operand.vmem [shape: f32[1,16], index: 19, kind: input, shape index: {}]   ;;  %s2742_s20 = inlined_call_operand.vmem [shape: bf16[2,25,16], index: 20, kind: output, shape index: {}]  }
   0x1   :  { %2745 = sst [smem:[#allocation2_spill]] %s2722_s0 }
   0x2   :  { %2746 = sst [smem:[#allocation3_spill]] %s2723_s1  ;;  %s2148_s1 = smov 0  }
   0x3   :  { %2747 = sst [smem:[#allocation4_spill]] %s2724_s2 }
   0x4   :  { %2748 = sst [smem:[#allocation5_spill]] %s2725_s3 }
   0x5   :  { %2749 = sst [smem:[#allocation6_spill]] %s2726_s4 }
   0x6 LB: > { %s1885_s22 = sadd.s32 4294967295, %s2040_s1   ;;  %p1889_p0 = scmp.ge.s32.totalorder %s2040_s1, 1  ;;  %s2040_s1 = sphi %s2148_s1, %s30_s1  }
   0x7   : > { %p592_p1 = scmp.lt.s32.totalorder %s2040_s1, 3 }
   0x9   : > { %p593_p2 = pnand %p1889_p0, %p592_p1 }
   0xa   : > { %v976_v0 = vld [vmem:[%s2730_s8] sm:$0xf] (!%p593_p2)  ;;  %vm984_vm0 = vcmask (!%p593_p2), 1043456   ;;  %p665_p3 = scmp.lt.s32.totalorder (!%p593_p2), %s1885_s22, 1  ;;  %v725_v2 = vlaneseq (!%p593_p2)  ;;  %vm745_vm1 = vcmask (!%p593_p2), 1046528   ;;  %s2750_s4 = sld [smem:[#allocation6_spill]] (!%p593_p2) }
   0xb   : > { %596 = sbr.rel (%p593_p2) target bundleno = 573 (0x23d), region = 100  ;;  %v2162_v1 = vld [vmem:[%s2733_s11] sm:$0xf] (!%p593_p2)  ;;  %2001 = vmatprep.subr.msk.bf16.mxu0 (!%p593_p2), %vm984_vm0, %v976_v0  ;;  %v986_v3 = vsel (!%p593_p2), %vm984_vm0, %v976_v0, 0  ;;  %v2042_v12 = vmov (!%p593_p2), 0   ;;  %s2751_s23 = sld [smem:[#allocation2_spill]] (!%p593_p2) }
   0xc   : > { %2002 = vmatprep.subr.msk.bf16.mxu1 (!%p593_p2), %vm984_vm0, %v2162_v1  ;;  %1966 = vmatpush3.bf16.msra.mxu0 (!%p593_p2), %v986_v3  ;;  %v2168_v4 = vshrl.u32 (!%p593_p2), %v725_v2, 7  ;;  %v2173_v5 = vld [vmem:[%s2727_s5] sm:$0xff] (!%p593_p2)  ;;  %v2177_v6 = vsel (!%p593_p2), %vm984_vm0, %v2162_v1, 0  ;;  %s2752_s3 = sld [smem:[#allocation3_spill]] (!%p593_p2)  ;;  %vm800_vm2 = vcmask (!%p593_p2), 1042432   ;;  %s2753_s21 = sld [smem:[#allocation4_spill]] (!%p593_p2) }
   0xd   : > { %2003 = vmatprep.subr.msk.bf16.mxu0 (!%p593_p2), %vm984_vm0, %v2162_v1  ;;  %1972 = vmatpush3.bf16.msra.mxu1 (!%p593_p2), %v2177_v6  ;;  %s2754_s25 = sld [smem:[#allocation5_spill]] (!%p593_p2)  ;;  %vm828_vm3 = vcmask (!%p593_p2), 1041408   ;;  %vm977_vm4 = vcmask (!%p593_p2), 64512   ;;  %vm1788_vm5 = vcmask (!%p593_p2), 122880   ;;  %vm1789_vm6 = vsmask.f32 (!%p593_p2), 256 }
   0xe   : > { %v727_v8 = vsub.s32 (!%p593_p2), 0, %v2168_v4  ;;  %v735_v9 = vsub.s32 (!%p593_p2), 1, %v2168_v4  ;;  %v763_v10 = vsub.s32 (!%p593_p2), 2, %v2168_v4  ;;  %v790_v11 = vsub.s32 (!%p593_p2), 3, %v2168_v4  ;;  %2017 = vset.pattern.permute.xlu1 (!%p593_p2), %v2042_v12  ;;  %2004 = vmatprep.subr.msk.bf16.mxu1 (!%p593_p2), %vm984_vm0, %v2162_v1  ;;  %vm1790_vm8 = vmand (!%p593_p2), %vm1788_vm5, %vm1789_vm6 }
   0xf   : > { %v818_v14 = vsub.s32 (!%p593_p2), 4, %v2168_v4  ;;  %v846_v15 = vsub.s32 (!%p593_p2), 5, %v2168_v4  ;;  %v2744_v16 = vsub.s32 (!%p593_p2), 6, %v2168_v4  ;;  %v900_v17 = vsub.s32 (!%p593_p2), 7, %v2168_v4  ;;  %2016 = vset.pattern.permute.xlu0 (!%p593_p2), %v2042_v12 }
  0x10   : > { %v1065_v7 = vld [vmem:[%s2750_s4 + $0x10] sm:$0xff] (!%p593_p2)  ;;  %v1063_v13 = vld [vmem:[%s2750_s4] sm:$0xff] (!%p593_p2)  ;;  %v1066_v18 = vld [vmem:[%s2750_s4 + $0x18] sm:$0x7f] (!%p593_p2)  ;;  %v2228_v22 = vrot.slane (!%p593_p2), %v2173_v5, %v727_v8  ;;  %v2233_v23 = vrot.slane (!%p593_p2), %v2173_v5, %v735_v9  ;;  %v2238_v24 = vrot.slane (!%p593_p2), %v2173_v5, %v763_v10  ;;  %v2243_v25 = vrot.slane (!%p593_p2), %v2173_v5, %v790_v11 }
  0x11   : > { %1174 = vperm.xlu1 (!%p593_p2), %2017, %v1065_v7   ;;  %1164 = vperm.xlu0 (!%p593_p2), %2016, %v1063_v13   ;;  %v1064_v39 = vld [vmem:[%s2750_s4 + $0x8] sm:$0xff] (!%p593_p2)  ;;  %v2314_v7 = vrot.slane (!%p593_p2), %v2173_v5, %v818_v14  ;;  %vm1784_vm7 = vcmask (!%p593_p2), 125952  }
  0x12   : > { %s2757_s22 = smov (!%p665_p3, %s1885_s22), 1 }
  0x13   : > { %s2184_s29 = sshll.u32 %s2757_s22, 4 }
  0x14   : > { %s669_s24 = scalar_lea.vmem %s2751_s23, %s2184_s29  ;;  %s674_s26 = scalar_lea.vmem %s2752_s3, %s2184_s29 }
  0x15   : > { %s679_s22 = scalar_lea.vmem %s2753_s21, %s2184_s29  ;;  %s684_s3 = scalar_lea.vmem %s2754_s25, %s2184_s29  ;;  %v2219_v19 = vld [vmem:[%s669_s24] sm:$0xff]   ;;  %v2221_v20 = vld [vmem:[%s669_s24 + $0x8] sm:$0xff]   ;;  %1179 = vperm.xlu1 %2017, %v1066_v18   ;;  %1169 = vperm.xlu0 %2016, %v1064_v39  }
  0x16   : > { %v2223_v21 = vld [vmem:[%s674_s26] sm:$0xff]   ;;  %v2245_v26 = vld [vmem:[%s674_s26 + $0x8] sm:$0xff]   ;;  %v707_v29 = vunpack.c.l.bf16 %v2219_v19  ;;  %v708_v30 = vunpack.c.h.bf16 %v2219_v19  ;;  %v709_v31 = vunpack.c.l.bf16 %v2221_v20  ;;  %1973 = vmatprep.mubr.msk.bf16.mxu1 %vm977_vm4, %v2219_v19  ;;  %s689_s23 = scalar_lea.vmem %s2742_s20, %s2184_s29 }
  0x17   : > { %v2247_v27 = vld [vmem:[%s679_s22] sm:$0xff]   ;;  %v2249_v28 = vld [vmem:[%s679_s22 + $0x8] sm:$0xff]   ;;  %v711_v32 = vunpack.c.l.bf16 %v2223_v21  ;;  %v712_v35 = vunpack.c.h.bf16 %v2223_v21  ;;  %v713_v36 = vunpack.c.l.bf16 %v2245_v26  ;;  %1974 = vmatmul.mubr.msk.bf16.vlgmr.msra.gmra.mrb[0].mxu1 %vm977_vm4, %v2221_v20 }
  0x18   : > { %v2255_v33 = vld [vmem:[%s684_s3] sm:$0xff]   ;;  %v2257_v34 = vld [vmem:[%s684_s3 + $0x8] sm:$0xff]   ;;  %v715_v37 = vunpack.c.l.bf16 %v2247_v27  ;;  %v716_v38 = vunpack.c.h.bf16 %v2247_v27  ;;  %v717_v40 = vunpack.c.l.bf16 %v2249_v28  ;;  %1984 = vmatpush3.bf16.msra.mxu1 %v2177_v6  ;;  %1985 = vmatprep.mubr.msk.bf16.mxu1 %vm977_vm4, %v2247_v27 }
  0x19   : > { %v2268_v41 = vunpack.c.l.bf16 %v2255_v33  ;;  %v2271_v42 = vunpack.c.h.bf16 %v2255_v33  ;;  %v2274_v43 = vunpack.c.l.bf16 %v2257_v34  ;;  %v792_v46 = vmul.f32 %v2243_v25, %v711_v32 }
  0x1a   : > { %v737_v44 = vmul.f32 %v2233_v23, %v715_v37  ;;  %v738_v45 = vmul.f32 %v2233_v23, %v716_v38  ;;  %v793_v47 = vmul.f32 %v2243_v25, %v712_v35  ;;  %v2291_v50 = vmul.f32 %v2233_v23, %v717_v40 }
  0x1b   : > { %v729_v48 = vmul.f32 %v2228_v22, %v2268_v41  ;;  %v730_v49 = vmul.f32 %v2228_v22, %v2271_v42  ;;  %v765_v51 = vmul.f32 %v2238_v24, %v2268_v41  ;;  %v766_v54 = vmul.f32 %v2238_v24, %v2271_v42 }
  0x1c   : > { %v746_v52 = vrot.slane %v737_v44, 1  ;;  %v747_v53 = vrot.slane %v738_v45, 1  ;;  %v2299_v55 = vmul.f32 %v2238_v24, %v2274_v43  ;;  %v749_v56 = vrot.slane %v2291_v50, 1 }
  0x1d   : > { %v773_v57 = vrot.slane %v765_v51, 1  ;;  %v2303_v58 = vmul.f32 %v2243_v25, %v713_v36  ;;  %v801_v59 = vrot.slane %v792_v46, 5  ;;  %v774_v61 = vrot.slane %v766_v54, 1 }
  0x1e   : > { %v748_v60 = vsel %vm745_vm1, %v746_v52, %v747_v53  ;;  %v776_v62 = vrot.slane %v2299_v55, 1  ;;  %v802_v63 = vrot.slane %v793_v47, 5  ;;  %v750_v0 = vsel %vm745_vm1, %v747_v53, %v749_v56 }
  0x1f   : > { %v757_v2 = vadd.f32 %v748_v60, %v729_v48  ;;  %v804_v3 = vrot.slane %v2303_v58, 5  ;;  %v758_v12 = vadd.f32 %v750_v0, %v730_v49  ;;  %v775_v13 = vsel %vm745_vm1, %v773_v57, %v774_v61  ;;  %1986 = vmatmul.mubr.msk.bf16.vlgmr.msra.gmra.mrb[4].mxu1 %vm977_vm4, %v2249_v28 }
  0x20   : > { %v777_v18 = vsel %vm745_vm1, %v774_v61, %v776_v62  ;;  %v803_v39 = vsel %vm800_vm2, %v801_v59, %v802_v63  ;;  %v820_v46 = vmul.f32 %v2314_v7, %v707_v29  ;;  %v821_v47 = vmul.f32 %v2314_v7, %v708_v30 }
  0x21   : > { %v784_v44 = vadd.f32 %v775_v13, %v757_v2  ;;  %v805_v45 = vsel %vm800_vm2, %v802_v63, %v804_v3  ;;  %v785_v48 = vadd.f32 %v777_v18, %v758_v12  ;;  %v2327_v49 = vmul.f32 %v2314_v7, %v709_v31 }
  0x22   : > { %v2332_v51 = vrot.slane %v2173_v5, %v846_v15  ;;  %v2337_v52 = vrot.slane %v2173_v5, %v2744_v16  ;;  %v829_v54 = vrot.slane %v820_v46, 6  ;;  %v830_v57 = vrot.slane %v821_v47, 6 }
  0x23   : > { %v812_v53 = vadd.f32 %v803_v39, %v784_v44  ;;  %v2342_v29 = vrot.slane %v2173_v5, %v900_v17  ;;  %v813_v30 = vadd.f32 %v805_v45, %v785_v48  ;;  %v832_v31 = vrot.slane %v2327_v49, 6  ;;  %v2366_v44 = vld [vmem:[%s2727_s5 + $0x8] ss:$0 sm:$0xff] }
  0x24   : > { %v848_v59 = vmul.f32 %v2332_v51, %v711_v32  ;;  %v849_v60 = vmul.f32 %v2332_v51, %v712_v35  ;;  %v831_v61 = vsel %vm828_vm3, %v829_v54, %v830_v57  ;;  %v2349_v63 = vmul.f32 %v2332_v51, %v713_v36 }
  0x25   : > { %v875_v0 = vmul.f32 %v2337_v52, %v2268_v41  ;;  %v876_v2 = vmul.f32 %v2337_v52, %v2271_v42  ;;  %v833_v5 = vsel %vm828_vm3, %v830_v57, %v832_v31  ;;  %v840_v12 = vadd.f32 %v831_v61, %v812_v53 }
  0x26   : > { %v856_v13 = vrot.slane %v848_v59, 6  ;;  %v857_v32 = vrot.slane %v849_v60, 6  ;;  %v841_v18 = vadd.f32 %v833_v5, %v813_v30  ;;  %v859_v35 = vrot.slane %v2349_v63, 6 }
  0x27   : > { %v2361_v36 = vmul.f32 %v2337_v52, %v2274_v43  ;;  %v883_v39 = vrot.slane %v875_v0, 5  ;;  %v884_v46 = vrot.slane %v876_v2, 5  ;;  %v902_v47 = vmul.f32 %v2342_v29, %v715_v37 }
  0x28   : > { %v858_v45 = vsel %vm828_vm3, %v856_v13, %v857_v32  ;;  %v903_v48 = vmul.f32 %v2342_v29, %v716_v38  ;;  %v860_v53 = vsel %vm828_vm3, %v857_v32, %v859_v35  ;;  %v2382_v30 = vmul.f32 %v2342_v29, %v717_v40 }
  0x29   : > { %v867_v54 = vadd.f32 %v858_v45, %v840_v12  ;;  %v886_v57 = vrot.slane %v2361_v36, 5  ;;  %v868_v59 = vadd.f32 %v860_v53, %v841_v18  ;;  %v885_v60 = vsel %vm800_vm2, %v883_v39, %v884_v46 }
  0x2a   : > { %v910_v37 = vrot.slane %v902_v47, 6  ;;  %v911_v61 = vrot.slane %v903_v48, 6  ;;  %v913_v2 = vrot.slane %v2382_v30, 6  ;;  %v929_v5 = vmul.f32 %v2366_v44, %v2268_v41 }
  0x2b   : > { %v887_v38 = vsel %vm800_vm2, %v884_v46, %v886_v57  ;;  %v894_v0 = vadd.f32 %v885_v60, %v867_v54  ;;  %v930_v40 = vmul.f32 %v2366_v44, %v2271_v42  ;;  %v2396_v32 = vmul.f32 %v2366_v44, %v2274_v43 }
  0x2c   : > { %v895_v12 = vadd.f32 %v887_v38, %v868_v59  ;;  %v912_v13 = vsel %vm828_vm3, %v910_v37, %v911_v61  ;;  %v914_v18 = vsel %vm828_vm3, %v911_v61, %v913_v2  ;;  %v937_v45 = vrot.slane %v929_v5, 6  ;;  %v1901_v37 = vld [vmem:[%s2728_s6] ss:$0 sm:$0xff] }
  0x2d   : > { %v921_v39 = vadd.f32 %v912_v13, %v894_v0  ;;  %v710_v46 = vunpack.c.h.bf16 %v2221_v20  ;;  %v938_v41 = vrot.slane %v930_v40, 6  ;;  %v940_v48 = vrot.slane %v2396_v32, 6  ;;  %v1902_v40 = vld [vmem:[%s2729_s7] ss:$0 sm:$0xff] }
  0x2e   : > { %v922_v47 = vadd.f32 %v914_v18, %v895_v12  ;;  %v714_v53 = vunpack.c.h.bf16 %v2245_v26  ;;  %v718_v42 = vunpack.c.h.bf16 %v2249_v28  ;;  %v722_v54 = vunpack.c.h.bf16 %v2257_v34  ;;  %v1679_v28 = vld [vmem:[%s2739_s17] sm:$0xf] }
  0x2f   : > { %v939_v59 = vsel %vm828_vm3, %v937_v45, %v938_v41  ;;  %v941_v60 = vsel %vm828_vm3, %v938_v41, %v940_v48  ;;  %v823_v38 = vmul.f32 %v2314_v7, %v710_v46  ;;  %v731_v32 = vmul.f32 %v2228_v22, %v2274_v43  ;;  %2006 = vmatprep.subr.msk.bf16.mxu1 %vm984_vm0, %v1679_v28 }
  0x30   : > { %v795_v61 = vmul.f32 %v2243_v25, %v714_v53  ;;  %v948_v0 = vadd.f32 %v939_v59, %v921_v39  ;;  %v949_v5 = vadd.f32 %v941_v60, %v922_v47  ;;  %v732_v12 = vmul.f32 %v2228_v22, %v722_v54 }
  0x31   : > { %v740_v13 = vmul.f32 %v2233_v23, %v718_v42  ;;  %v768_v18 = vmul.f32 %v2238_v24, %v722_v54  ;;  %v851_v25 = vmul.f32 %v2332_v51, %v714_v53  ;;  %v834_v47 = vrot.slane %v823_v38, 6 }
  0x32   : > { %v806_v45 = vrot.slane %v795_v61, 5  ;;  %v959_v41 = vmul.f32 %v1901_v37, %v948_v0  ;;  %v960_v7 = vmul.f32 %v1901_v37, %v949_v5  ;;  %v878_v23 = vmul.f32 %v2337_v52, %v722_v54 }
  0x33   : > { %v751_v39 = vrot.slane %v740_v13, 1  ;;  %v778_v46 = vrot.slane %v768_v18, 1  ;;  %v861_v53 = vrot.slane %v851_v25, 6  ;;  %v905_v52 = vmul.f32 %v2342_v29, %v718_v42 }
  0x34   : > { %v970_v59 = vadd.f32 %v1902_v40, %v959_v41  ;;  %v971_v60 = vadd.f32 %v1902_v40, %v960_v7  ;;  %v807_v51 = vsel %vm800_vm2, %v804_v3, %v806_v45  ;;  %v888_v55 = vrot.slane %v878_v23, 5 }
  0x35   : > { %v752_v16 = vsel %vm745_vm1, %v749_v56, %v751_v39  ;;  %v760_v22 = vadd.f32 %v751_v39, %v732_v12  ;;  %v779_v24 = vsel %vm745_vm1, %v776_v62, %v778_v46  ;;  %v932_v56 = vmul.f32 %v2366_v44, %v722_v54 }
  0x36   : > { %v759_v43 = vadd.f32 %v752_v16, %v731_v32  ;;  %v974_v61 = vpack.c.bf16 %v971_v60, %v970_v59  ;;  %v835_v16 = vsel %vm828_vm3, %v832_v31, %v834_v47  ;;  %v862_v3 = vsel %vm828_vm3, %v859_v35, %v861_v53 }
  0x37   : > { %v787_v38 = vadd.f32 %v778_v46, %v760_v22  ;;  %v915_v29 = vrot.slane %v905_v52, 6  ;;  %v889_v19 = vsel %vm800_vm2, %v886_v57, %v888_v55  ;;  %v942_v44 = vrot.slane %v932_v56, 6 }
  0x38   : > { %v786_v0 = vadd.f32 %v779_v24, %v759_v43  ;;  %1967 = vmatprep.mubr.msk.bf16.mxu0 %vm977_vm4, %v974_v61 }
  0x39   : > { %v815_v50 = vadd.f32 %v806_v45, %v787_v38  ;;  %v916_v63 = vsel %vm828_vm3, %v913_v2, %v915_v29  ;;  %v943_v5 = vsel %vm828_vm3, %v940_v48, %v942_v44 }
  0x3a   : > { %v814_v58 = vadd.f32 %v807_v51, %v786_v0 }
  0x3b   : > { %v843_v62 = vadd.f32 %v834_v47, %v815_v50 }
  0x3c   : > { %v842_v49 = vadd.f32 %v835_v16, %v814_v58 }
  0x3d   : > { %v870_v31 = vadd.f32 %v861_v53, %v843_v62 }
  0x3e   : > { %v869_v42 = vadd.f32 %v862_v3, %v842_v49 }
  0x3f   : > { %v897_v20 = vadd.f32 %v888_v55, %v870_v31 }
  0x40   : > { %v896_v35 = vadd.f32 %v889_v19, %v869_v42 }
  0x41   : > { %v924_v54 = vadd.f32 %v915_v29, %v897_v20 }
  0x42   : > { %v923_v12 = vadd.f32 %v916_v63, %v896_v35 }
  0x43   : > { %v951_v27 = vadd.f32 %v942_v44, %v924_v54 }
  0x44   : > { %v950_v13 = vadd.f32 %v943_v5, %v923_v12 }
  0x45   : > { %v962_v36 = vmul.f32 %v1901_v37, %v951_v27 }
  0x46   : > { %v961_v32 = vmul.f32 %v1901_v37, %v950_v13 }
  0x47   : > { %v973_v57 = vadd.f32 %v1902_v40, %v962_v36 }
  0x48   : > { %v972_v18 = vadd.f32 %v1902_v40, %v961_v32  ;;  %v2494_v40 = vld [vmem:[%s2736_s14] sm:$0xff] }
  0x49   : > { %v1523_v59 = vrot.slane %v2494_v40, %v818_v14  ;;  %v1442_v56 = vrot.slane %v2494_v40, %v735_v9  ;;  %v1604_v54 = vrot.slane %v2494_v40, %v900_v17 }
  0x4a   : > { %v975_v45 = vpack.c.bf16 %v973_v57, %v972_v18 }
  0x4c   : > { %1968 = vmatmul.mubr.msk.bf16.vlgmr.msra.gmra.mrb[0].mxu0 %vm977_vm4, %v975_v45 }
  0x4d   : > { %1978 = vmatpush3.bf16.msra.mxu0 %v2177_v6  ;;  %1979 = vmatprep.mubr.msk.bf16.mxu0 %vm977_vm4, %v2223_v21  ;;  %v1687_v21 = vsel %vm984_vm0, %v1679_v28, 0 }
  0x4e   : > { %2005 = vmatprep.subr.msk.bf16.mxu0 %vm984_vm0, %v2162_v1  ;;  %1996 = vmatpush3.bf16.msra.mxu1 %v1687_v21  ;;  %v2478_v1 = vld [vmem:[%s2734_s12] ss:$0 sm:$0xff] }
  0x54   : > { %1980 = vmatmul.mubr.msk.bf16.vlgmr.msra.gmra.mrb[4].mxu0 %vm977_vm4, %v2245_v26  ;;  %v2483_v26 = vld [vmem:[%s2735_s13] ss:$0 sm:$0xff] }
  0x55   : > { %1990 = vmatpush3.bf16.msra.mxu0 %v2177_v6  ;;  %1991 = vmatprep.mubr.msk.bf16.mxu0 %vm977_vm4, %v2255_v33 }
  0x5c   : > { %1992 = vmatmul.mubr.msk.bf16.vlgmr.msra.gmra.mrb[8].mxu0 %vm977_vm4, %v2257_v34 }
  0x90   : > { %v2485_v33 = vpop.permute.xlu1 %1174  ;;  %v2488_v2 = vpop.permute.xlu0 %1164 }
  0x94   : > { %v2505_v43 = vpop.permute.xlu1 %1179  ;;  %v2508_v53 = vpop.permute.xlu0 %1169 }
  0xea   : > { %v1975_v6 = vpop.f32.mrb[0].mxu1 }
  0xeb   : > { %v1145_v34 = vmul.f32 %v1975_v6, %v2478_v1  ;;  %v1121_v30 = vpop.f32.mrb[1].mxu1 }
  0xec   : > { %v1143_v48 = vmul.f32 %v2478_v1, %v1121_v30  ;;  %v1976_v37 = vpop.f32.mrb[2].mxu1 }
  0xed   : > { %v1156_v25 = vadd.f32 %v2483_v26, %v1145_v34  ;;  %v1146_v41 = vmul.f32 %v1976_v37, %v2478_v1  ;;  %v1124_v7 = vpop.f32.mrb[3].mxu1 }
  0xee   : > { %v1154_v39 = vadd.f32 %v2483_v26, %v1143_v48  ;;  %v1144_v46 = vmul.f32 %v2478_v1, %v1124_v7 }
  0xef   : > { %v1160_v47 = vmax.f32 %v1156_v25, 0.0  ;;  %v1157_v23 = vadd.f32 %v2483_v26, %v1146_v41 }
  0xf0   : > { %v1158_v60 = vmax.f32 %v1154_v39, 0.0  ;;  %v1155_v22 = vadd.f32 %v2483_v26, %v1144_v46 }
  0xf1   : > { %v1161_v24 = vmax.f32 %v1157_v23, 0.0  ;;  %v1184_v51 = vmul.f32 %v2485_v33, %v1160_v47 }
  0xf2   : > { %v1159_v61 = vmax.f32 %v1155_v22, 0.0  ;;  %v1182_v38 = vmul.f32 %v2488_v2, %v1158_v60  ;;  %v1987_v52 = vpop.f32.mrb[4].mxu1 }
  0xf3   : > { %v1526_v0 = vmul.f32 %v1523_v59, %v1184_v51  ;;  %v1334_v50 = vmul.f32 %v1987_v52, %v2478_v1  ;;  %v1317_v16 = vpop.f32.mrb[5].mxu1  ;;  %v1185_v14 = vmul.f32 %v2505_v43, %v1161_v24 }
  0xf4   : > { %v1524_v55 = vmul.f32 %v1523_v59, %v1182_v38  ;;  %v1332_v58 = vmul.f32 %v2478_v1, %v1317_v16  ;;  %v1183_v62 = vmul.f32 %v2508_v53, %v1159_v61  ;;  %v1988_v3 = vpop.f32.mrb[6].mxu1 }
  0xf5   : > { %v1535_v29 = vrot.slane %v1526_v0, 6  ;;  %v1338_v49 = vadd.f32 %v2483_v26, %v1334_v50  ;;  %v2519_v31 = vmul.f32 %v1523_v59, %v1185_v14  ;;  %v1335_v19 = vmul.f32 %v1988_v3, %v2478_v1  ;;  %v1320_v44 = vpop.f32.mrb[7].mxu1 }
  0xf6   : > { %v1532_v42 = vrot.slane %v1524_v55, 6  ;;  %v1336_v20 = vadd.f32 %v2483_v26, %v1332_v58  ;;  %v1525_v63 = vmul.f32 %v1523_v59, %v1183_v62  ;;  %v1333_v35 = vmul.f32 %v2478_v1, %v1320_v44 }
  0xf7   : > { %v1342_v9 = vmax.f32 %v1338_v49, 0.0  ;;  %v1537_v5 = vrot.slane %v2519_v31, 6  ;;  %v1339_v12 = vadd.f32 %v2483_v26, %v1335_v19 }
  0xf8   : > { %v1340_v27 = vmax.f32 %v1336_v20, 0.0  ;;  %v1533_v13 = vrot.slane %v1525_v63, 6  ;;  %v1337_v36 = vadd.f32 %v2483_v26, %v1333_v35 }
  0xf9   : > { %v1346_v32 = vmul.f32 %v1342_v9, %v2485_v33  ;;  %v2534_v57 = vsel %vm828_vm3, %v1535_v29, %v1537_v5  ;;  %v1343_v18 = vmax.f32 %v1339_v12, 0.0  ;;  %v1496_v12 = vrot.slane %v2494_v40, %v790_v11 }
  0xfa   : > { %v1344_v45 = vmul.f32 %v1340_v27, %v2488_v2  ;;  %v2538_v17 = vsel %vm828_vm3, %v1532_v42, %v1533_v13  ;;  %v2541_v28 = vsel %vm828_vm3, %v1533_v13, %v1535_v29  ;;  %v1341_v21 = vmax.f32 %v1337_v36, 0.0 }
  0xfb   : > { %v1445_v6 = vmul.f32 %v1442_v56, %v1346_v32  ;;  %v1607_v34 = vmul.f32 %v1604_v54, %v1346_v32  ;;  %v1347_v30 = vmul.f32 %v1343_v18, %v2505_v43  ;;  %v1550_v27 = vrot.slane %v2494_v40, %v846_v15 }
  0xfc   : > { %v1443_v37 = vmul.f32 %v1442_v56, %v1344_v45  ;;  %v1605_v25 = vmul.f32 %v1604_v54, %v1344_v45  ;;  %v1345_v41 = vmul.f32 %v1341_v21, %v2508_v53  ;;  %v2600_v11 = vrot.slane %v2494_v40, %v727_v8 }
  0xfd   : > { %v1454_v39 = vrot.slane %v1445_v6, 1  ;;  %v2549_v46 = vmul.f32 %v1442_v56, %v1347_v30  ;;  %v1616_v23 = vrot.slane %v1607_v34, 6  ;;  %v2553_v59 = vmul.f32 %v1604_v54, %v1347_v30 }
  0xfe   : > { %v1451_v22 = vrot.slane %v1443_v37, 1  ;;  %v1444_v51 = vmul.f32 %v1442_v56, %v1345_v41  ;;  %v1613_v61 = vrot.slane %v1605_v25, 6  ;;  %v1606_v52 = vmul.f32 %v1604_v54, %v1345_v41 }
  0xff   : > { %v1456_v24 = vrot.slane %v2549_v46, 1  ;;  %v1618_v38 = vrot.slane %v2553_v59, 6 }
 0x100   : > { %v1452_v50 = vrot.slane %v1444_v51, 1  ;;  %v1614_v14 = vrot.slane %v1606_v52, 6 }
 0x101   : > { %v2562_v0 = vsel %vm745_vm1, %v1454_v39, %v1456_v24  ;;  %v2567_v16 = vsel %vm828_vm3, %v1616_v23, %v1618_v38 }
 0x102   : > { %v2570_v55 = vsel %vm745_vm1, %v1451_v22, %v1452_v50  ;;  %v2573_v56 = vsel %vm745_vm1, %v1452_v50, %v1454_v39  ;;  %v2576_v62 = vsel %vm828_vm3, %v1613_v61, %v1614_v14  ;;  %v2579_v3 = vsel %vm828_vm3, %v1614_v14, %v1616_v23 }
 0x11f   : > { %v2544_v48 = vpop.f32.mrb[0].mxu0 }
 0x120   : > { %v2547_v7 = vpop.f32.mrb[1].mxu0 }
 0x121   : > { %v2551_v47 = vpop.f32.mrb[2].mxu0 }
 0x122   : > { %v2555_v60 = vpop.f32.mrb[3].mxu0 }
 0x127   : > { %v1981_v58 = vpop.f32.mrb[4].mxu0 }
 0x128   : > { %v1253_v29 = vmul.f32 %v1981_v58, %v2478_v1  ;;  %v1236_v49 = vpop.f32.mrb[5].mxu0 }
 0x129   : > { %v1251_v19 = vmul.f32 %v2478_v1, %v1236_v49  ;;  %v1982_v44 = vpop.f32.mrb[6].mxu0 }
 0x12a   : > { %v1257_v42 = vadd.f32 %v2483_v26, %v1253_v29  ;;  %v1254_v20 = vmul.f32 %v1982_v44, %v2478_v1  ;;  %v1239_v63 = vpop.f32.mrb[7].mxu0 }
 0x12b   : > { %v1255_v35 = vadd.f32 %v2483_v26, %v1251_v19  ;;  %v1252_v9 = vmul.f32 %v2478_v1, %v1239_v63 }
 0x12c   : > { %v1261_v54 = vmax.f32 %v1257_v42, 0.0  ;;  %v1258_v13 = vadd.f32 %v2483_v26, %v1254_v20 }
 0x12d   : > { %v1259_v36 = vmax.f32 %v1255_v35, 0.0  ;;  %v1256_v32 = vadd.f32 %v2483_v26, %v1252_v9 }
 0x12e   : > { %v1265_v18 = vmul.f32 %v1261_v54, %v2485_v33  ;;  %v1262_v45 = vmax.f32 %v1258_v13, 0.0 }
 0x12f   : > { %v1263_v21 = vmul.f32 %v1259_v36, %v2488_v2  ;;  %v1260_v6 = vmax.f32 %v1256_v32, 0.0  ;;  %v1993_v34 = vpop.f32.mrb[8].mxu0 }
 0x130   : > { %v1499_v30 = vmul.f32 %v1496_v12, %v1265_v18  ;;  %v1553_v37 = vmul.f32 %v1550_v27, %v1265_v18  ;;  %v1266_v15 = vmul.f32 %v1262_v45, %v2505_v43  ;;  %v1415_v25 = vmul.f32 %v1993_v34, %v2478_v1  ;;  %v1398_v41 = vpop.f32.mrb[9].mxu0 }
 0x131   : > { %v1497_v39 = vmul.f32 %v1496_v12, %v1263_v21  ;;  %v1551_v23 = vmul.f32 %v1550_v27, %v1263_v21  ;;  %v1264_v22 = vmul.f32 %v1260_v6, %v2508_v53  ;;  %v1413_v51 = vmul.f32 %v2478_v1, %v1398_v41  ;;  %v1994_v61 = vpop.f32.mrb[10].mxu0  ;;  %v1925_v41 = vld [vmem:[%s2736_s14 + $0x8] ss:$0 sm:$0xff] }
 0x132   : > { %v1508_v52 = vrot.slane %v1499_v30, 5  ;;  %v1562_v50 = vrot.slane %v1553_v37, 6  ;;  %v2606_v14 = vmul.f32 %v1496_v12, %v1266_v15  ;;  %v2608_v8 = vmul.f32 %v1550_v27, %v1266_v15  ;;  %v1401_v58 = vpop.f32.mrb[11].mxu0 }
 0x133   : > { %v1505_v29 = vrot.slane %v1497_v39, 5  ;;  %v1559_v49 = vrot.slane %v1551_v23, 6  ;;  %v1498_v19 = vmul.f32 %v1496_v12, %v1264_v22  ;;  %v1552_v44 = vmul.f32 %v1550_v27, %v1264_v22 }
 0x134   : > { %v1510_v42 = vrot.slane %v2606_v14, 5  ;;  %v1564_v20 = vrot.slane %v2608_v8, 6  ;;  %v1419_v63 = vadd.f32 %v2483_v26, %v1415_v25  ;;  %v1417_v35 = vadd.f32 %v2483_v26, %v1413_v51  ;;  %v1926_v8 = vld [vmem:[%s2737_s15] ss:$0 sm:$0xff] }
 0x135   : > { %v1506_v9 = vrot.slane %v1498_v19, 5  ;;  %v1560_v54 = vrot.slane %v1552_v44, 6  ;;  %v1416_v13 = vmul.f32 %v1994_v61, %v2478_v1  ;;  %v1414_v36 = vmul.f32 %v2478_v1, %v1401_v58 }
 0x136   : > { %v2619_v32 = vsel %vm800_vm2, %v1508_v52, %v1510_v42  ;;  %v2624_v12 = vsel %vm828_vm3, %v1562_v50, %v1564_v20  ;;  %v1423_v27 = vmax.f32 %v1419_v63, 0.0  ;;  %v1421_v18 = vmax.f32 %v1417_v35, 0.0 }
 0x137   : > { %v2627_v45 = vsel %vm800_vm2, %v1505_v29, %v1506_v9  ;;  %v2630_v21 = vsel %vm800_vm2, %v1506_v9, %v1508_v52  ;;  %v2633_v1 = vsel %vm828_vm3, %v1559_v49, %v1560_v54  ;;  %v2636_v6 = vsel %vm828_vm3, %v1560_v54, %v1562_v50 }
 0x138   : > { %v1427_v34 = vmul.f32 %v1423_v27, %v2485_v33  ;;  %v1469_v30 = vrot.slane %v2494_v40, %v763_v10  ;;  %v2755_v37 = vsub.s32 6, %v2168_v4  ;;  %v1425_v25 = vmul.f32 %v1421_v18, %v2488_v2 }
 0x139   : > { %v1420_v23 = vadd.f32 %v2483_v26, %v1416_v13  ;;  %v1418_v33 = vadd.f32 %v2483_v26, %v1414_v36 }
 0x13a   : > { %v1577_v15 = vrot.slane %v2494_v40, %v2755_v37  ;;  %v1437_v39 = vmul.f32 %v2600_v11, %v1427_v34  ;;  %v1435_v22 = vmul.f32 %v2600_v11, %v1425_v25  ;;  %v1472_v51 = vmul.f32 %v1469_v30, %v1427_v34 }
 0x13b   : > { %v1634_v61 = vmul.f32 %v1925_v41, %v1427_v34  ;;  %v1470_v2 = vmul.f32 %v1469_v30, %v1425_v25  ;;  %v1632_v50 = vmul.f32 %v1925_v41, %v1425_v25  ;;  %v1424_v58 = vmax.f32 %v1420_v23, 0.0 }
 0x13c   : > { %v1464_v10 = vadd.f32 %v2562_v0, %v1437_v39  ;;  %v1580_v4 = vmul.f32 %v1577_v15, %v1427_v34  ;;  %v1462_v40 = vadd.f32 %v2570_v55, %v1435_v22  ;;  %v1578_v52 = vmul.f32 %v1577_v15, %v1425_v25 }
 0x13d   : > { %v1422_v29 = vmax.f32 %v1418_v33, 0.0  ;;  %v1481_v49 = vrot.slane %v1472_v51, 1  ;;  %v1428_v44 = vmul.f32 %v1424_v58, %v2505_v43  ;;  %v1643_v63 = vrot.slane %v1634_v61, 6 }
 0x13e   : > { %v1589_v19 = vrot.slane %v1580_v4, 5  ;;  %v1478_v35 = vrot.slane %v1470_v2, 1  ;;  %v1586_v9 = vrot.slane %v1578_v52, 5  ;;  %v1640_v0 = vrot.slane %v1632_v50, 6 }
 0x13f   : > { %v1426_v26 = vmul.f32 %v1422_v29, %v2508_v53  ;;  %v1438_v54 = vmul.f32 %v2600_v11, %v1428_v44  ;;  %v1473_v13 = vmul.f32 %v1469_v30, %v1428_v44  ;;  %v1581_v36 = vmul.f32 %v1577_v15, %v1428_v44 }
 0x140   : > { %v1635_v55 = vmul.f32 %v1925_v41, %v1428_v44 }
 0x141   : > { %v1436_v27 = vmul.f32 %v2600_v11, %v1426_v26  ;;  %v1471_v18 = vmul.f32 %v1469_v30, %v1426_v26  ;;  %v1579_v34 = vmul.f32 %v1577_v15, %v1426_v26  ;;  %v1633_v37 = vmul.f32 %v1925_v41, %v1426_v26 }
 0x142   : > { %v1465_v25 = vadd.f32 %v1456_v24, %v1438_v54  ;;  %v1483_v43 = vrot.slane %v1473_v13, 1  ;;  %v1591_v39 = vrot.slane %v1581_v36, 5  ;;  %v1645_v53 = vrot.slane %v1635_v55, 6 }
 0x143   : > { %v1463_v23 = vadd.f32 %v2573_v56, %v1436_v27  ;;  %v1479_v33 = vrot.slane %v1471_v18, 1  ;;  %v1587_v22 = vrot.slane %v1579_v34, 5  ;;  %v1641_v51 = vrot.slane %v1633_v37, 6  ;;  %v1906_v37 = vld [vmem:[%s2732_s10] ss:$0 sm:$0xff] }
 0x144   : > { %v1484_v4 = vsel %vm745_vm1, %v1481_v49, %v1483_v43  ;;  %v1492_v61 = vadd.f32 %v1483_v43, %v1465_v25  ;;  %v1592_v2 = vsel %vm800_vm2, %v1589_v19, %v1591_v39  ;;  %v1646_v11 = vsel %vm828_vm3, %v1643_v63, %v1645_v53 }
 0x145   : > { %v1491_v30 = vadd.f32 %v1484_v4, %v1464_v10  ;;  %v1480_v15 = vsel %vm745_vm1, %v1478_v35, %v1479_v33  ;;  %v1482_v46 = vsel %vm745_vm1, %v1479_v33, %v1481_v49  ;;  %v1588_v24 = vsel %vm800_vm2, %v1586_v9, %v1587_v22  ;;  %v1931_v33 = vld [vmem:[%s2741_s19] ss:$0 sm:$0xff] }
 0x146   : > { %v1519_v56 = vadd.f32 %v1510_v42, %v1492_v61  ;;  %v1489_v41 = vadd.f32 %v1480_v15, %v1462_v40  ;;  %v1490_v52 = vadd.f32 %v1482_v46, %v1463_v23  ;;  %v1590_v50 = vsel %vm800_vm2, %v1587_v22, %v1589_v19 }
 0x147   : > { %v1518_v58 = vadd.f32 %v2619_v32, %v1491_v30  ;;  %v1642_v29 = vsel %vm828_vm3, %v1640_v0, %v1641_v51  ;;  %v1644_v44 = vsel %vm828_vm3, %v1641_v51, %v1643_v63 }
 0x148   : > { %v1546_v10 = vadd.f32 %v1537_v5, %v1519_v56  ;;  %v1516_v49 = vadd.f32 %v2627_v45, %v1489_v41  ;;  %v1517_v26 = vadd.f32 %v2630_v21, %v1490_v52 }
 0x149   : > { %v1545_v14 = vadd.f32 %v2534_v57, %v1518_v58 }
 0x14a   : > { %v1573_v42 = vadd.f32 %v1564_v20, %v1546_v10  ;;  %v1544_v40 = vadd.f32 %v2541_v28, %v1517_v26  ;;  %v1543_v32 = vadd.f32 %v2538_v17, %v1516_v49 }
 0x14b   : > { %v1572_v19 = vadd.f32 %v2624_v12, %v1545_v14 }
 0x14c   : > { %v1600_v35 = vadd.f32 %v1591_v39, %v1573_v42  ;;  %v1570_v63 = vadd.f32 %v2633_v1, %v1543_v32  ;;  %v1571_v31 = vadd.f32 %v2636_v6, %v1544_v40  ;;  %v1927_v1 = vld [vmem:[%s2738_s16] ss:$0 sm:$0xff] }
 0x14d   : > { %v1599_v5 = vadd.f32 %v1592_v2, %v1572_v19  ;;  %v1930_v39 = vld [vmem:[%s2740_s18] ss:$0 sm:$0xff]  ;;  %v1791_v19 = vld [vmem:[%s689_s23 + $0xc] sm:$0x1] }
 0x14e   : > { %v1627_v45 = vadd.f32 %v1618_v38, %v1600_v35  ;;  %v1597_v21 = vadd.f32 %v1588_v24, %v1570_v63  ;;  %v1598_v57 = vadd.f32 %v1590_v50, %v1571_v31 }
 0x14f   : > { %v1626_v28 = vadd.f32 %v2567_v16, %v1599_v5 }
 0x150   : > { %v1654_v17 = vadd.f32 %v1645_v53, %v1627_v45  ;;  %v1624_v20 = vadd.f32 %v2576_v62, %v1597_v21  ;;  %v1625_v12 = vadd.f32 %v2579_v3, %v1598_v57  ;;  %v1905_v62 = vld [vmem:[%s2731_s9] ss:$0 sm:$0xff] }
 0x151   : > { %v1653_v6 = vadd.f32 %v1646_v11, %v1626_v28  ;;  %v1046_v3 = vmul.f32 %v2544_v48, %v1905_v62  ;;  %v1044_v25 = vmul.f32 %v1905_v62, %v2547_v7  ;;  %v1047_v43 = vmul.f32 %v2551_v47, %v1905_v62 }
 0x152   : > { %v1651_v59 = vadd.f32 %v1642_v29, %v1624_v20  ;;  %v1652_v38 = vadd.f32 %v1644_v44, %v1625_v12  ;;  %v1665_v9 = vmul.f32 %v1926_v8, %v1654_v17  ;;  %v1045_v53 = vmul.f32 %v1905_v62, %v2555_v60 }
 0x153   : > { %v1664_v0 = vmul.f32 %v1926_v8, %v1653_v6  ;;  %v1057_v48 = vadd.f32 %v1906_v37, %v1046_v3  ;;  %v1055_v4 = vadd.f32 %v1906_v37, %v1044_v25  ;;  %v1058_v61 = vadd.f32 %v1906_v37, %v1047_v43 }
 0x154   : > { %v1662_v54 = vmul.f32 %v1926_v8, %v1651_v59  ;;  %v1663_v13 = vmul.f32 %v1926_v8, %v1652_v38  ;;  %v1676_v36 = vadd.f32 %v1927_v1, %v1665_v9  ;;  %v1056_v15 = vadd.f32 %v1906_v37, %v1045_v53 }
 0x155   : > { %v1675_v55 = vadd.f32 %v1927_v1, %v1664_v0  ;;  %v1061_v60 = vmax.f32 %v1057_v48, 0.0  ;;  %v1059_v52 = vmax.f32 %v1055_v4, 0.0  ;;  %v1062_v50 = vmax.f32 %v1058_v61, 0.0 }
 0x156   : > { %v1673_v27 = vadd.f32 %v1927_v1, %v1662_v54  ;;  %v1674_v16 = vadd.f32 %v1927_v1, %v1663_v13  ;;  %v1060_v49 = vmax.f32 %v1056_v15, 0.0 }
 0x157   : > { %v1678_v18 = vpack.c.bf16 %v1676_v36, %v1675_v55 }
 0x158   : > { %v1677_v34 = vpack.c.bf16 %v1674_v16, %v1673_v27 }
 0x15a   : > { %1997 = vmatprep.mubr.msk.bf16.mxu1 %vm977_vm4, %v1677_v34 }
 0x15b   : > { %1998 = vmatmul.mubr.msk.bf16.vlgmr.msra.gmra.mrb[8].mxu1 %vm977_vm4, %v1678_v18 }
 0x22e   : > { %v1999_v23 = vpop.f32.mrb[8].mxu1 }
 0x22f   : > { %v1747_v22 = vmul.f32 %v1999_v23, %v1930_v39  ;;  %v1723_v51 = vpop.f32.mrb[9].mxu1 }
 0x230   : > { %v1745_v7 = vmul.f32 %v1930_v39, %v1723_v51  ;;  %v2000_v2 = vpop.f32.mrb[10].mxu1 }
 0x231   : > { %v1758_v47 = vadd.f32 %v1931_v33, %v1747_v22  ;;  %v1748_v11 = vmul.f32 %v2000_v2, %v1930_v39  ;;  %v1726_v30 = vpop.f32.mrb[11].mxu1 }
 0x232   : > { %v1756_v46 = vadd.f32 %v1931_v33, %v1745_v7  ;;  %v1746_v24 = vmul.f32 %v1930_v39, %v1726_v30 }
 0x233   : > { %v1762_v56 = vmax.f32 %v1758_v47, 0.0  ;;  %v1759_v41 = vadd.f32 %v1931_v33, %v1748_v11 }
 0x234   : > { %v1760_v58 = vmax.f32 %v1756_v46, 0.0  ;;  %v1757_v29 = vadd.f32 %v1931_v33, %v1746_v24 }
 0x235   : > { %v1766_v44 = vadd.f32 %v1762_v56, %v1061_v60  ;;  %v1763_v10 = vmax.f32 %v1759_v41, 0.0 }
 0x236   : > { %v1764_v26 = vadd.f32 %v1760_v58, %v1059_v52  ;;  %v1761_v14 = vmax.f32 %v1757_v29, 0.0 }
 0x237   : > { %v1945_v42 = vpack.c.bf16 %v1766_v44, %v1766_v44  ;;  %v1767_v40 = vadd.f32 %v1763_v10, %v1062_v50 }
 0x238   : > { %v1943_v32 = vpack.c.bf16 %v1764_v26, %v1764_v26  ;;  %v1765_v35 = vadd.f32 %v1761_v14, %v1060_v49 }
 0x239   : > { %1787 = vst.msk [vmem:[%s689_s23 + $0x8] sm:$0xf] %vm1784_vm7, %v1945_v42  ;;  %v1946_v63 = vpack.c.bf16 %v1767_v40, %v1767_v40 }
 0x23a   : > { %1785 = vst.msk [vmem:[%s689_s23] sm:$0xf] %vm1784_vm7, %v1943_v32  ;;  %v1944_v31 = vpack.c.bf16 %v1765_v35, %v1765_v35 }
 0x23b   : > { %v1792_v5 = vsel %vm1790_vm8, %v1946_v63, %v1791_v19 }
 0x23c   : > { %1793 = vst [vmem:[%s689_s23 + $0xc] sm:$0x1] %v1792_v5  ;;  %1786 = vst.msk [vmem:[%s689_s23 + $0x4] sm:$0xf] %vm1784_vm7, %v1944_v31 }
 0x23d PF: > { %s30_s1 = sadd.s32 1, %s2040_s1  }
 0x23e   : > { %p27_p4 = scmp.ge.s32.totalorder %s30_s1, 4  }
 0x240   :  { %29 = sbr.rel (!%p27_p4) target bundleno = 6 (0x6), region = 139 }

// kernel: _lambda_.13
= control target key start
LH: loop header
LB: loop body
LE: loop exit
PB: predicated region body
PF: predicated region fallthrough
CT: control target
= control target key end

     0   :  { %s2027_s0 = inlined_call_operand.vmem [shape: bf16[2,13,16], index: 0, kind: input, shape index: {}]   ;;  %s2028_s1 = inlined_call_operand.vmem [shape: bf16[2,13,16], index: 1, kind: input, shape index: {}]   ;;  %s2029_s2 = inlined_call_operand.vmem [shape: bf16[2,13,16], index: 2, kind: input, shape index: {}]   ;;  %s2030_s3 = inlined_call_operand.vmem [shape: bf16[2,13,16], index: 3, kind: input, shape index: {}]   ;;  %s2031_s4 = inlined_call_operand.vmem [shape: f32[13,1], index: 4, kind: input, shape index: {}]   ;;  %s2032_s5 = inlined_call_operand.vmem [shape: f32[9,16], index: 5, kind: input, shape index: {}]   ;;  %s2033_s6 = inlined_call_operand.vmem [shape: f32[1,16], index: 6, kind: input, shape index: {}]   ;;  %s2034_s7 = inlined_call_operand.vmem [shape: f32[1,16], index: 7, kind: input, shape index: {}]   ;;  %s2035_s8 = inlined_call_operand.vmem [shape: bf16[16,32], index: 8, kind: input, shape index: {}]   ;;  %s2036_s9 = inlined_call_operand.vmem [shape: f32[1,32], index: 9, kind: input, shape index: {}]   ;;  %s2037_s10 = inlined_call_operand.vmem [shape: f32[1,32], index: 10, kind: input, shape index: {}]   ;;  %s2038_s11 = inlined_call_operand.vmem [shape: bf16[16,16], index: 11, kind: input, shape index: {}]   ;;  %s2039_s12 = inlined_call_operand.vmem [shape: f32[1,16], index: 12, kind: input, shape index: {}]   ;;  %s2040_s13 = inlined_call_operand.vmem [shape: f32[1,16], index: 13, kind: input, shape index: {}]   ;;  %s2041_s14 = inlined_call_operand.vmem [shape: f32[9,16], index: 14, kind: input, shape index: {}]   ;;  %s2042_s15 = inlined_call_operand.vmem [shape: f32[1,16], index: 15, kind: input, shape index: {}]   ;;  %s2043_s16 = inlined_call_operand.vmem [shape: f32[1,16], index: 16, kind: input, shape index: {}]   ;;  %s2044_s17 = inlined_call_operand.vmem [shape: bf16[16,32], index: 17, kind: input, shape index: {}]   ;;  %s2045_s18 = inlined_call_operand.vmem [shape: f32[1,32], index: 18, kind: input, shape index: {}]   ;;  %s2046_s19 = inlined_call_operand.vmem [shape: f32[1,32], index: 19, kind: input, shape index: {}]   ;;  %s2047_s20 = inlined_call_operand.vmem [shape: bf16[2,9,32], index: 20, kind: output, shape index: {}]  }
   0x1   :  { %2049 = sst [smem:[#allocation2_spill]] %s2027_s0 }
   0x2   :  { %2050 = sst [smem:[#allocation3_spill]] %s2028_s1  ;;  %s1754_s1 = smov 0  }
   0x3   :  { %2051 = sst [smem:[#allocation4_spill]] %s2029_s2 }
   0x4   :  { %2052 = sst [smem:[#allocation5_spill]] %s2030_s3 }
   0x5   :  { %2053 = sst [smem:[#allocation6_spill]] %s2031_s4 }
   0x6 LB: > { %s1520_s22 = sadd.s32 4294967295, %s1644_s1   ;;  %p1524_p0 = scmp.ge.s32.totalorder %s1644_s1, 1  ;;  %s1644_s1 = sphi %s1754_s1, %s30_s1  }
   0x7   : > { %p592_p1 = scmp.lt.s32.totalorder %s1644_s1, 3 }
   0x9   : > { %p593_p2 = pnand %p1524_p0, %p592_p1 }
   0xa   : > { %v1631_v0 = vld [vmem:[%s2035_s8] sm:$0xff] (!%p593_p2)   ;;  %v709_v1 = vlaneseq (!%p593_p2)  ;;  %v1646_v2 = vmov (!%p593_p2), 0.0   ;;  %vm1647_vm0 = vmmov (!%p593_p2), 0   ;;  %p665_p3 = scmp.lt.s32.totalorder (!%p593_p2), %s1520_s22, 1  ;;  %vm723_vm1 = vcmask (!%p593_p2), 1046528   ;;  %s2054_s29 = sld [smem:[#allocation2_spill]] (!%p593_p2) }
   0xb   : > { %596 = sbr.rel (%p593_p2) target bundleno = 543 (0x21f), region = 100  ;;  %1583 = vmatprep.subr.bf16.mxu0 (!%p593_p2), %v1646_v2  ;;  %1589 = vmatprep.subr.bf16.mxu1 (!%p593_p2), %v1646_v2  ;;  %v1770_v3 = vld [vmem:[%s2038_s11] sm:$0xff] (!%p593_p2)   ;;  %vm754_vm2 = vcmask (!%p593_p2), 1044480   ;;  %vm770_vm3 = vcmask (!%p593_p2), 1043456   ;;  %s2055_s23 = sld [smem:[#allocation3_spill]] (!%p593_p2)  ;;  %vm865_vm4 = vcmask (!%p593_p2), 130048  }
   0xc   : > { %1584 = vmatpush3.bf16.msra.mxu0 (!%p593_p2), %v1631_v0  ;;  %1585 = vmatprep.mubr.msk.bf16.mxu0 (!%p593_p2), %vm1647_vm0, %v1646_v2  ;;  %v1774_v4 = vshrl.u32 (!%p593_p2), %v709_v1, 7  ;;  %v707_v5 = vld [vmem:[%s2032_s5] sm:$0xff] (!%p593_p2)  ;;  %s2056_s25 = sld [smem:[#allocation4_spill]] (!%p593_p2)  ;;  %s2057_s4 = sld [smem:[#allocation5_spill]] (!%p593_p2)  ;;  %v1535_v61 = vld [vmem:[%s2032_s5 + $0x8] ss:$0 sm:$0xff] (!%p593_p2) }
   0xd   : > { %1590 = vmatpush3.bf16.msra.mxu1 (!%p593_p2), %v1770_v3  ;;  %1595 = vmatprep.subr.bf16.mxu0 (!%p593_p2), %v1646_v2  ;;  %vm1423_vm5 = vcmask (!%p593_p2), 253952   ;;  %vm1424_vm6 = vsmask.f32 (!%p593_p2), 256  ;;  %vm1421_vm7 = vcmask (!%p593_p2), 257024  }
   0xe   : > { %v711_v6 = vsub.s32 (!%p593_p2), 0, %v1774_v4  ;;  %v717_v7 = vsub.s32 (!%p593_p2), 1, %v1774_v4  ;;  %v733_v8 = vsub.s32 (!%p593_p2), 2, %v1774_v4  ;;  %v748_v9 = vsub.s32 (!%p593_p2), 3, %v1774_v4  ;;  %1591 = vmatprep.mubr.msk.bf16.mxu1 (!%p593_p2), %vm1647_vm0, %v1646_v2  ;;  %1601 = vmatprep.subr.bf16.mxu1 (!%p593_p2), %v1646_v2  ;;  %vm1425_vm8 = vmand (!%p593_p2), %vm1423_vm5, %vm1424_vm6 }
   0xf   : > { %v764_v10 = vsub.s32 (!%p593_p2), 4, %v1774_v4  ;;  %v780_v11 = vsub.s32 (!%p593_p2), 5, %v1774_v4  ;;  %v795_v12 = vsub.s32 (!%p593_p2), 6, %v1774_v4  ;;  %v810_v13 = vsub.s32 (!%p593_p2), 7, %v1774_v4 }
  0x10   : > { %v712_v14 = vrot.slane (!%p593_p2), %v707_v5, %v711_v6  ;;  %v718_v15 = vrot.slane (!%p593_p2), %v707_v5, %v717_v7  ;;  %v749_v16 = vrot.slane (!%p593_p2), %v707_v5, %v748_v9  ;;  %v734_v21 = vrot.slane (!%p593_p2), %v707_v5, %v733_v8 }
  0x11   : > { %v765_v17 = vrot.slane (!%p593_p2), %v707_v5, %v764_v10  ;;  %v781_v22 = vrot.slane (!%p593_p2), %v707_v5, %v780_v11  ;;  %v796_v23 = vrot.slane (!%p593_p2), %v707_v5, %v795_v12  ;;  %v811_v24 = vrot.slane (!%p593_p2), %v707_v5, %v810_v13 }
  0x12   : > { %s2060_s22 = smov (!%p665_p3, %s1520_s22), 1 }
  0x13   : > { %s1792_s27 = sshll.u32 %s2060_s22, 3 }
  0x14   : > { %s669_s30 = scalar_lea.vmem %s2054_s29, %s1792_s27  ;;  %s674_s24 = scalar_lea.vmem %s2055_s23, %s1792_s27 }
  0x15   : > { %s679_s3 = scalar_lea.vmem %s2056_s25, %s1792_s27  ;;  %s684_s29 = scalar_lea.vmem %s2057_s4, %s1792_s27  ;;  %v691_v18 = vld [vmem:[%s669_s30] sm:$0xf]  ;;  %v692_v19 = vld [vmem:[%s669_s30 + $0x4] sm:$0x7] }
  0x16   : > { %v1818_v20 = vld [vmem:[%s674_s24] sm:$0xf]  ;;  %v1828_v25 = vld [vmem:[%s674_s24 + $0x4] sm:$0x7]  ;;  %v699_v28 = vunpack.c.l.bf16 %v691_v18  ;;  %v700_v29 = vunpack.c.l.bf16 %v692_v19  ;;  %v1542_v31 = vcombine.low %v691_v18, %v692_v19  ;;  %s2058_s24 = sld [smem:[#allocation6_spill]]  ;;  %s689_s4 = scalar_lea.vmem %s2047_s20, %s1792_s27 }
  0x17   : > { %v1830_v26 = vld [vmem:[%s679_s3] sm:$0xf]  ;;  %v1832_v27 = vld [vmem:[%s679_s3 + $0x4] sm:$0x7]  ;;  %v701_v30 = vunpack.c.l.bf16 %v1818_v20  ;;  %v702_v34 = vunpack.c.l.bf16 %v1828_v25 }
  0x18   : > { %v1835_v32 = vld [vmem:[%s684_s29] sm:$0xf]  ;;  %v1837_v33 = vld [vmem:[%s684_s29 + $0x4] sm:$0x7]  ;;  %v703_v35 = vunpack.c.l.bf16 %v1830_v26  ;;  %v704_v36 = vunpack.c.l.bf16 %v1832_v27  ;;  %v766_v40 = vmul.f32 %v765_v17, %v699_v28  ;;  %1592 = vmatmul.mubr.msk.bf16.vlgmr.msra.gmra.mrb[0].mxu1 %vm865_vm4, %v1542_v31  ;;  %v767_v44 = vmul.f32 %v765_v17, %v700_v29 }
  0x19   : > { %v705_v37 = vunpack.c.l.bf16 %v1835_v32  ;;  %v706_v38 = vunpack.c.l.bf16 %v1837_v33  ;;  %v750_v39 = vmul.f32 %v749_v16, %v701_v30  ;;  %v751_v43 = vmul.f32 %v749_v16, %v702_v34  ;;  %1602 = vmatpush3.bf16.msra.mxu1 %v1770_v3  ;;  %1603 = vmatprep.mubr.msk.bf16.mxu1 %vm1647_vm0, %v1646_v2 }
  0x1a   : > { %v719_v41 = vmul.f32 %v718_v15, %v703_v35  ;;  %v720_v42 = vmul.f32 %v718_v15, %v704_v36  ;;  %1613 = vmatprep.subr.bf16.mxu1 %v1646_v2  ;;  %v771_v55 = vrot.slane %v766_v40, 4  ;;  %v772_v56 = vrot.slane %v767_v44, 4 }
  0x1b   : > { %v713_v45 = vmul.f32 %v712_v14, %v705_v37  ;;  %v714_v46 = vmul.f32 %v712_v14, %v706_v38  ;;  %v735_v47 = vmul.f32 %v734_v21, %v705_v37  ;;  %v736_v48 = vmul.f32 %v734_v21, %v706_v38 }
  0x1c   : > { %v724_v49 = vrot.slane %v719_v41, 1  ;;  %v725_v50 = vrot.slane %v720_v42, 1  ;;  %v755_v51 = vrot.slane %v750_v39, 3  ;;  %v756_v52 = vrot.slane %v751_v43, 3 }
  0x1d   : > { %v739_v53 = vrot.slane %v735_v47, 1  ;;  %v740_v54 = vrot.slane %v736_v48, 1  ;;  %v782_v60 = vmul.f32 %v781_v22, %v701_v30  ;;  %v773_v0 = vsel %vm770_vm3, %v771_v55, %v772_v56 }
  0x1e   : > { %v726_v57 = vsel %vm723_vm1, %v724_v49, %v725_v50  ;;  %v730_v58 = vadd.f32 %v725_v50, %v714_v46  ;;  %v757_v59 = vsel %vm754_vm2, %v755_v51, %v756_v52  ;;  %v783_v1 = vmul.f32 %v781_v22, %v702_v34  ;;  %v1536_v51 = vld [vmem:[%s2033_s6] ss:$0 sm:$0xff] }
  0x1f   : > { %v729_v62 = vadd.f32 %v726_v57, %v713_v45  ;;  %v741_v63 = vsel %vm723_vm1, %v739_v53, %v740_v54  ;;  %v786_v14 = vrot.slane %v782_v60, 4  ;;  %v797_v15 = vmul.f32 %v796_v23, %v705_v37 }
  0x20   : > { %v745_v5 = vadd.f32 %v740_v54, %v730_v58  ;;  %v798_v16 = vmul.f32 %v796_v23, %v706_v38  ;;  %v787_v18 = vrot.slane %v783_v1, 4  ;;  %v812_v19 = vmul.f32 %v811_v24, %v703_v35  ;;  %v1537_v54 = vld [vmem:[%s2034_s7] ss:$0 sm:$0xff] }
  0x21   : > { %v744_v17 = vadd.f32 %v741_v63, %v729_v62  ;;  %v813_v21 = vmul.f32 %v811_v24, %v704_v36  ;;  %v801_v29 = vrot.slane %v797_v15, 3  ;;  %v827_v31 = vmul.f32 %v1535_v61, %v705_v37  ;;  %v930_v24 = vld [vmem:[%s2058_s24] sm:$0xff] }
  0x22   : > { %v761_v28 = vadd.f32 %v756_v52, %v745_v5  ;;  %v802_v30 = vrot.slane %v798_v16, 3  ;;  %v788_v40 = vsel %vm770_vm3, %v786_v14, %v787_v18  ;;  %v816_v42 = vrot.slane %v812_v19, 4  ;;  %v1637_v62 = vld [vmem:[%s2044_s17] sm:$0xff]  }
  0x23   : > { %v760_v39 = vadd.f32 %v757_v59, %v744_v17  ;;  %v817_v43 = vrot.slane %v813_v21, 4  ;;  %v828_v44 = vmul.f32 %v1535_v61, %v706_v38  ;;  %v1549_v23 = vcombine.low %v1830_v26, %v1832_v27  ;;  %v931_v27 = vld [vmem:[%s2058_s24 + $0x8] sm:$0x1f] }
  0x24   : > { %v777_v41 = vadd.f32 %v772_v56, %v761_v28  ;;  %v803_v34 = vsel %vm754_vm2, %v801_v29, %v802_v30  ;;  %v831_v36 = vrot.slane %v827_v31, 4  ;;  %v1648_v46 = vmov 0  }
  0x25   : > { %v776_v22 = vadd.f32 %v773_v0, %v760_v39  ;;  %v832_v37 = vrot.slane %v828_v44, 4  ;;  %1604 = vmatmul.mubr.msk.bf16.vlgmr.msra.gmra.mrb[4].mxu1 %vm865_vm4, %v1549_v23  ;;  %1630 = vset.pattern.permute.xlu0 %v1648_v46  ;;  %v818_v38 = vsel %vm770_vm3, %v816_v42, %v817_v43  ;;  %v1547_v60 = vcombine.low %v1818_v20, %v1828_v25  ;;  %v1897_v20 = vld [vmem:[%s2039_s12] ss:$0 sm:$0xff] }
  0x26   : > { %v792_v35 = vadd.f32 %v787_v18, %v777_v41  ;;  %1011 = vperm.xlu0 %1630, %v930_v24   ;;  %1615 = vmatprep.mubr.msk.bf16.mxu1 %vm1647_vm0, %v1646_v2  ;;  %v1551_v61 = vcombine.low %v1835_v32, %v1837_v33  ;;  %v1910_v0 = vld [vmem:[%s2041_s14] sm:$0xff] }
  0x27   : > { %v791_v45 = vadd.f32 %v788_v40, %v776_v22  ;;  %v833_v49 = vsel %vm770_vm3, %v831_v36, %v832_v37  ;;  %1614 = vmatpush3.bf16.msra.mxu1 %v1637_v62  ;;  %v1248_v17 = vrot.slane %v1910_v0, %v764_v10  ;;  %v1203_v24 = vrot.slane %v1910_v0, %v717_v7 }
  0x28   : > { %v807_v47 = vadd.f32 %v802_v30, %v792_v35  ;;  %v1293_v35 = vrot.slane %v1910_v0, %v810_v13 }
  0x29   : > { %v806_v26 = vadd.f32 %v803_v34, %v791_v45 }
  0x2a   : > { %v822_v48 = vadd.f32 %v817_v43, %v807_v47  ;;  %1016 = vperm.xlu0 %1630, %v931_v27  }
  0x2b   : > { %v821_v50 = vadd.f32 %v818_v38, %v806_v26 }
  0x2c   : > { %v837_v52 = vadd.f32 %v832_v37, %v822_v48 }
  0x2d   : > { %v836_v53 = vadd.f32 %v833_v49, %v821_v50 }
  0x2e   : > { %v846_v55 = vmul.f32 %v1536_v51, %v837_v52 }
  0x2f   : > { %v845_v56 = vmul.f32 %v1536_v51, %v836_v53 }
  0x30   : > { %v855_v57 = vadd.f32 %v1537_v54, %v846_v55 }
  0x31   : > { %v854_v58 = vadd.f32 %v1537_v54, %v845_v56 }
  0x33   : > { %v856_v59 = vpack.c.bf16 %v855_v57, %v854_v58 }
  0x35   : > { %1586 = vmatmul.mubr.msk.bf16.vlgmr.msra.gmra.mrb[0].mxu0 %vm865_vm4, %v856_v59 }
  0x36   : > { %1596 = vmatpush3.bf16.msra.mxu0 %v1770_v3  ;;  %1597 = vmatprep.mubr.msk.bf16.mxu0 %vm1647_vm0, %v1646_v2 }
  0x37   : > { %1607 = vmatprep.subr.bf16.mxu0 %v1646_v2 }
  0x3d   : > { %1598 = vmatmul.mubr.msk.bf16.vlgmr.msra.gmra.mrb[4].mxu0 %vm865_vm4, %v1547_v60 }
  0x3e   : > { %1608 = vmatpush3.bf16.msra.mxu0 %v1770_v3  ;;  %1609 = vmatprep.mubr.msk.bf16.mxu0 %vm1647_vm0, %v1646_v2  ;;  %v1902_v2 = vld [vmem:[%s2040_s13] ss:$0 sm:$0xff] }
  0x45   : > { %1610 = vmatmul.mubr.msk.bf16.vlgmr.msra.gmra.mrb[8].mxu0 %vm865_vm4, %v1551_v61 }
  0xa5   : > { %v1904_v3 = vpop.permute.xlu0 %1011 }
  0xa9   : > { %v1918_v18 = vpop.permute.xlu0 %1016 }
  0xeb   : > { %v982_v25 = vpop.f32.mrb[0].mxu1 }
  0xec   : > { %v996_v32 = vmul.f32 %v1897_v20, %v982_v25  ;;  %v1593_v33 = vpop.f32.mrb[1].mxu1 }
  0xed   : > { %v985_v63 = vpop.f32.mrb[2].mxu1  ;;  %v1263_v33 = vrot.slane %v1910_v0, %v780_v11  ;;  %v1197_v11 = vrot.slane %v1910_v0, %v711_v6 }
  0xee   : > { %v1005_v1 = vadd.f32 %v1902_v2, %v996_v32  ;;  %v997_v5 = vmul.f32 %v1897_v20, %v985_v63  ;;  %v1594_v14 = vpop.f32.mrb[3].mxu1  ;;  %v1233_v32 = vrot.slane %v1910_v0, %v748_v9 }
  0xf0   : > { %v1007_v15 = vmax.f32 %v1005_v1, 0.0  ;;  %v1006_v16 = vadd.f32 %v1902_v2, %v997_v5 }
  0xf2   : > { %v1008_v19 = vmax.f32 %v1006_v16, 0.0  ;;  %v1019_v21 = vmul.f32 %v1904_v3, %v1007_v15 }
  0xf4   : > { %v1020_v28 = vmul.f32 %v1918_v18, %v1008_v19  ;;  %v1249_v29 = vmul.f32 %v1248_v17, %v1019_v21 }
  0xf6   : > { %v1922_v30 = vmul.f32 %v1248_v17, %v1020_v28  ;;  %v1253_v31 = vrot.slane %v1249_v29, 4 }
  0xf8   : > { %v1254_v39 = vrot.slane %v1922_v30, 4  ;;  %v1120_v40 = vpop.f32.mrb[4].mxu1  ;;  %v1555_v30 = vld [vmem:[%s2043_s16] ss:$0 sm:$0xff] }
  0xf9   : > { %v1127_v41 = vmul.f32 %v1897_v20, %v1120_v40  ;;  %v1605_v42 = vpop.f32.mrb[5].mxu1 }
  0xfa   : > { %v1929_v10 = vsel %vm770_vm3, %v1253_v31, %v1254_v39  ;;  %v1123_v43 = vpop.f32.mrb[6].mxu1 }
  0xfb   : > { %v1129_v44 = vadd.f32 %v1902_v2, %v1127_v41  ;;  %v1128_v22 = vmul.f32 %v1897_v20, %v1123_v43  ;;  %v1606_v34 = vpop.f32.mrb[7].mxu1 }
  0xfd   : > { %v1131_v23 = vmax.f32 %v1129_v44, 0.0  ;;  %v1130_v36 = vadd.f32 %v1902_v2, %v1128_v22 }
  0xff   : > { %v1133_v37 = vmul.f32 %v1131_v23, %v1904_v3  ;;  %v1132_v45 = vmax.f32 %v1130_v36, 0.0  ;;  %v1218_v23 = vrot.slane %v1910_v0, %v733_v8 }
 0x101   : > { %v1204_v46 = vmul.f32 %v1203_v24, %v1133_v37  ;;  %v1294_v47 = vmul.f32 %v1293_v35, %v1133_v37  ;;  %v1134_v38 = vmul.f32 %v1132_v45, %v1918_v18 }
 0x103   : > { %v1208_v26 = vrot.slane %v1204_v46, 1  ;;  %v1298_v27 = vrot.slane %v1294_v47, 4  ;;  %v1942_v48 = vmul.f32 %v1203_v24, %v1134_v38  ;;  %v1944_v49 = vmul.f32 %v1293_v35, %v1134_v38 }
 0x104   : > { %v1278_v24 = vrot.slane %v1910_v0, %v795_v12 }
 0x105   : > { %v1209_v7 = vrot.slane %v1942_v48, 1  ;;  %v1299_v50 = vrot.slane %v1944_v49, 4  ;;  %v1540_v49 = vld [vmem:[%s2036_s9] ss:$0 sm:$0xff] }
 0x107   : > { %v1210_v52 = vsel %vm723_vm1, %v1208_v26, %v1209_v7  ;;  %v1954_v53 = vsel %vm770_vm3, %v1298_v27, %v1299_v50 }
 0x108   : > { %v1948_v13 = vpop.f32.mrb[0].mxu0 }
 0x109   : > { %v1587_v51 = vpop.f32.mrb[1].mxu0 }
 0x10a   : > { %v1956_v54 = vpop.f32.mrb[2].mxu0 }
 0x10b   : > { %v1588_v55 = vpop.f32.mrb[3].mxu0 }
 0x110   : > { %v1063_v56 = vpop.f32.mrb[4].mxu0 }
 0x111   : > { %v1070_v57 = vmul.f32 %v1897_v20, %v1063_v56  ;;  %v1599_v58 = vpop.f32.mrb[5].mxu0 }
 0x112   : > { %v1066_v59 = vpop.f32.mrb[6].mxu0 }
 0x113   : > { %v1072_v60 = vadd.f32 %v1902_v2, %v1070_v57  ;;  %v1071_v61 = vmul.f32 %v1897_v20, %v1066_v59  ;;  %v1600_v62 = vpop.f32.mrb[7].mxu0 }
 0x115   : > { %v1074_v25 = vmax.f32 %v1072_v60, 0.0  ;;  %v1073_v63 = vadd.f32 %v1902_v2, %v1071_v61 }
 0x117   : > { %v1076_v1 = vmul.f32 %v1074_v25, %v1904_v3  ;;  %v1075_v5 = vmax.f32 %v1073_v63, 0.0 }
 0x118   : > { %v1177_v14 = vpop.f32.mrb[8].mxu0 }
 0x119   : > { %v1234_v15 = vmul.f32 %v1233_v32, %v1076_v1  ;;  %v1264_v16 = vmul.f32 %v1263_v33, %v1076_v1  ;;  %v1077_v17 = vmul.f32 %v1075_v5, %v1918_v18  ;;  %v1184_v19 = vmul.f32 %v1897_v20, %v1177_v14  ;;  %v1611_v21 = vpop.f32.mrb[9].mxu0 }
 0x11a   : > { %v1180_v28 = vpop.f32.mrb[10].mxu0 }
 0x11b   : > { %v1235_v29 = vmul.f32 %v1233_v32, %v1077_v17  ;;  %v1265_v9 = vmul.f32 %v1263_v33, %v1077_v17  ;;  %v1612_v31 = vpop.f32.mrb[11].mxu0  ;;  %v1186_v40 = vadd.f32 %v1902_v2, %v1184_v19  ;;  %v1185_v41 = vmul.f32 %v1897_v20, %v1180_v28  ;;  %v1553_v20 = vld [vmem:[%s2041_s14 + $0x8] ss:$0 sm:$0xff] }
 0x11c   : > { %v1238_v42 = vrot.slane %v1234_v15, 3  ;;  %v1268_v43 = vrot.slane %v1264_v16, 4  ;;  %v1554_v16 = vld [vmem:[%s2042_s15] ss:$0 sm:$0xff] }
 0x11d   : > { %v1239_v44 = vrot.slane %v1235_v29, 3  ;;  %v1269_v22 = vrot.slane %v1265_v9, 4  ;;  %v1188_v34 = vmax.f32 %v1186_v40, 0.0  ;;  %v1187_v35 = vadd.f32 %v1902_v2, %v1185_v41  ;;  %v1558_v31 = vld [vmem:[%s2045_s18] ss:$0 sm:$0xff] }
 0x11e   : > { %v918_v9 = vmul.f32 %v1540_v49, %v1956_v54 }
 0x11f   : > { %v1240_v36 = vsel %vm754_vm2, %v1238_v42, %v1239_v44  ;;  %v1270_v6 = vsel %vm770_vm3, %v1268_v43, %v1269_v22  ;;  %v1190_v37 = vmul.f32 %v1188_v34, %v1904_v3  ;;  %v1189_v45 = vmax.f32 %v1187_v35, 0.0 }
 0x121   : > { %v1198_v46 = vmul.f32 %v1197_v11, %v1190_v37  ;;  %v1219_v47 = vmul.f32 %v1218_v23, %v1190_v37  ;;  %v1279_v8 = vmul.f32 %v1278_v24, %v1190_v37  ;;  %v1309_v38 = vmul.f32 %v1553_v20, %v1190_v37 }
 0x122   : > { %v1191_v4 = vmul.f32 %v1189_v45, %v1918_v18 }
 0x123   : > { %v1213_v12 = vadd.f32 %v1210_v52, %v1198_v46  ;;  %v1223_v48 = vrot.slane %v1219_v47, 1  ;;  %v1283_v51 = vrot.slane %v1279_v8, 3  ;;  %v1313_v55 = vrot.slane %v1309_v38, 4  ;;  %v1426_v46 = vld [vmem:[%s689_s4 + $0x4] sm:$0x1] }
 0x124   : > { %v1199_v0 = vmul.f32 %v1197_v11, %v1191_v4  ;;  %v1220_v2 = vmul.f32 %v1218_v23, %v1191_v4  ;;  %v1280_v26 = vmul.f32 %v1278_v24, %v1191_v4  ;;  %v1310_v27 = vmul.f32 %v1553_v20, %v1191_v4  ;;  %v1559_v11 = vld [vmem:[%s2046_s19] ss:$0 sm:$0xff] }
 0x126   : > { %v1214_v56 = vadd.f32 %v1209_v7, %v1199_v0  ;;  %v1224_v57 = vrot.slane %v1220_v2, 1  ;;  %v1284_v58 = vrot.slane %v1280_v26, 3  ;;  %v1314_v59 = vrot.slane %v1310_v27, 4 }
 0x128   : > { %v1225_v3 = vsel %vm723_vm1, %v1223_v48, %v1224_v57  ;;  %v1229_v60 = vadd.f32 %v1224_v57, %v1214_v56  ;;  %v1285_v61 = vsel %vm754_vm2, %v1283_v51, %v1284_v58  ;;  %v1315_v62 = vsel %vm770_vm3, %v1313_v55, %v1314_v59 }
 0x129   : > { %v1228_v18 = vadd.f32 %v1225_v3, %v1213_v12 }
 0x12a   : > { %v1244_v52 = vadd.f32 %v1239_v44, %v1229_v60 }
 0x12b   : > { %v1243_v25 = vadd.f32 %v1240_v36, %v1228_v18 }
 0x12c   : > { %v1259_v32 = vadd.f32 %v1254_v39, %v1244_v52 }
 0x12d   : > { %v1258_v33 = vadd.f32 %v1929_v10, %v1243_v25 }
 0x12e   : > { %v1274_v63 = vadd.f32 %v1269_v22, %v1259_v32 }
 0x12f   : > { %v1273_v7 = vadd.f32 %v1270_v6, %v1258_v33 }
 0x130   : > { %v1289_v1 = vadd.f32 %v1284_v58, %v1274_v63 }
 0x131   : > { %v1288_v5 = vadd.f32 %v1285_v61, %v1273_v7 }
 0x132   : > { %v1304_v14 = vadd.f32 %v1299_v50, %v1289_v1  ;;  %v917_v50 = vmul.f32 %v1540_v49, %v1948_v13 }
 0x133   : > { %v1303_v15 = vadd.f32 %v1954_v53, %v1288_v5  ;;  %v1541_v53 = vld [vmem:[%s2037_s10] ss:$0 sm:$0xff] }
 0x134   : > { %v1319_v17 = vadd.f32 %v1314_v59, %v1304_v14  ;;  %v926_v41 = vadd.f32 %v1541_v53, %v917_v50  ;;  %v927_v13 = vadd.f32 %v1541_v53, %v918_v9 }
 0x135   : > { %v1318_v19 = vadd.f32 %v1315_v62, %v1303_v15 }
 0x136   : > { %v1328_v39 = vmul.f32 %v1554_v16, %v1319_v17  ;;  %v928_v24 = vmax.f32 %v926_v41, 0.0  ;;  %v929_v36 = vmax.f32 %v927_v13, 0.0 }
 0x137   : > { %v1327_v10 = vmul.f32 %v1554_v16, %v1318_v19 }
 0x138   : > { %v1337_v21 = vadd.f32 %v1555_v30, %v1328_v39 }
 0x139   : > { %v1336_v28 = vadd.f32 %v1555_v30, %v1327_v10 }
 0x13b   : > { %v1338_v29 = vpack.c.bf16 %v1337_v21, %v1336_v28 }
 0x13d   : > { %1616 = vmatmul.mubr.msk.bf16.vlgmr.msra.gmra.mrb[8].mxu1 %vm865_vm4, %v1338_v29 }
 0x210   : > { %v1384_v40 = vpop.f32.mrb[8].mxu1 }
 0x211   : > { %v1398_v42 = vmul.f32 %v1558_v31, %v1384_v40  ;;  %v1617_v43 = vpop.f32.mrb[9].mxu1 }
 0x212   : > { %v1387_v44 = vpop.f32.mrb[10].mxu1 }
 0x213   : > { %v1407_v22 = vadd.f32 %v1559_v11, %v1398_v42  ;;  %v1399_v34 = vmul.f32 %v1558_v31, %v1387_v44  ;;  %v1618_v23 = vpop.f32.mrb[11].mxu1 }
 0x215   : > { %v1409_v54 = vmax.f32 %v1407_v22, 0.0  ;;  %v1408_v35 = vadd.f32 %v1559_v11, %v1399_v34 }
 0x217   : > { %v1411_v6 = vadd.f32 %v1409_v54, %v928_v24  ;;  %v1410_v20 = vmax.f32 %v1408_v35, 0.0 }
 0x219   : > { %v1569_v37 = vpack.c.bf16 %v1411_v6, %v1411_v6  ;;  %v1412_v45 = vadd.f32 %v1410_v20, %v929_v36 }
 0x21b   : > { %1422 = vst.msk [vmem:[%s689_s4] sm:$0xf] %vm1421_vm7, %v1569_v37  ;;  %v1570_v47 = vpack.c.bf16 %v1412_v45, %v1412_v45 }
 0x21d   : > { %v1427_v8 = vsel %vm1425_vm8, %v1570_v47, %v1426_v46 }
 0x21e   : > { %1428 = vst [vmem:[%s689_s4 + $0x4] sm:$0x1] %v1427_v8 }
 0x21f PF: > { %s30_s1 = sadd.s32 1, %s1644_s1  }
 0x220   : > { %p27_p4 = scmp.ge.s32.totalorder %s30_s1, 4  }
 0x222   :  { %29 = sbr.rel (!%p27_p4) target bundleno = 6 (0x6), region = 139 }

// kernel: _lambda_.14
= control target key start
LH: loop header
LB: loop body
LE: loop exit
PB: predicated region body
PF: predicated region fallthrough
CT: control target
= control target key end

     0   :  { %s1138_s25 = smov 0   ;;  %s1252_s0 = inlined_call_operand.vmem [shape: bf16[2,16,16], index: 0, kind: input, shape index: {}]   ;;  %s1253_s1 = inlined_call_operand.vmem [shape: bf16[2,26,16], index: 1, kind: input, shape index: {}]   ;;  %s1254_s2 = inlined_call_operand.vmem [shape: f32[26,1], index: 2, kind: input, shape index: {}]   ;;  %s1255_s3 = inlined_call_operand.vmem [shape: bf16[16,16], index: 3, kind: input, shape index: {}]   ;;  %s1256_s4 = inlined_call_operand.vmem [shape: f32[1,16], index: 4, kind: input, shape index: {}]   ;;  %s1257_s5 = inlined_call_operand.vmem [shape: f32[1,16], index: 5, kind: input, shape index: {}]   ;;  %s1258_s6 = inlined_call_operand.vmem [shape: f32[9,16], index: 6, kind: input, shape index: {}]   ;;  %s1259_s7 = inlined_call_operand.vmem [shape: f32[1,16], index: 7, kind: input, shape index: {}]   ;;  %s1260_s8 = inlined_call_operand.vmem [shape: f32[1,16], index: 8, kind: input, shape index: {}]   ;;  %s1261_s9 = inlined_call_operand.vmem [shape: bf16[16,32], index: 9, kind: input, shape index: {}]   ;;  %s1262_s10 = inlined_call_operand.vmem [shape: f32[1,32], index: 10, kind: input, shape index: {}]   ;;  %s1263_s11 = inlined_call_operand.vmem [shape: f32[1,32], index: 11, kind: input, shape index: {}]   ;;  %s1264_s12 = inlined_call_operand.vmem [shape: bf16[16,32], index: 12, kind: input, shape index: {}]   ;;  %s1265_s13 = inlined_call_operand.vmem [shape: bf16[2,16,32], index: 13, kind: output, shape index: {}]  }
   0x1 LB: > { %s976_s26 = sadd.s32 4294967295, %s1063_s25   ;;  %p980_p0 = scmp.ge.s32.totalorder %s1063_s25, 1  ;;  %s1063_s25 = sphi %s1138_s25, %s23_s25  }
   0x2   : > { %p397_p1 = scmp.lt.s32.totalorder %s1063_s25, 3 }
   0x4   : > { %p398_p2 = pnand %p980_p0, %p397_p1 }
   0x5   : > { %v1051_v0 = vld [vmem:[%s1255_s3] sm:$0xff] (!%p398_p2)   ;;  %p446_p3 = scmp.lt.s32.totalorder (!%p398_p2), %s976_s26, 1  ;;  %v1065_v2 = vmov (!%p398_p2), 0   ;;  %v568_v3 = vld [vmem:[%s1254_s2 + $0x10] sm:$0xff] (!%p398_p2)  ;;  %v567_v4 = vld [vmem:[%s1254_s2 + $0x8] sm:$0xff] (!%p398_p2)  ;;  %vm484_vm0 = vcmask (!%p398_p2), 130048   ;;  %v596_v12 = vlaneseq (!%p398_p2) }
   0x6   : > { %401 = sbr.rel (%p398_p2) target bundleno = 493 (0x1ed), region = 72  ;;  %v566_v1 = vld [vmem:[%s1254_s2] sm:$0xff] (!%p398_p2)  ;;  %1020 = vmatprep.subr.bf16.mxu0 (!%p398_p2), %v1051_v0  ;;  %1049 = vset.pattern.permute.xlu0 (!%p398_p2), %v1065_v2  ;;  %v569_v5 = vld [vmem:[%s1254_s2 + $0x18] sm:$0x3] (!%p398_p2)  ;;  %v1066_v10 = vmov (!%p398_p2), 0.0   ;;  %vm1067_vm1 = vmmov (!%p398_p2), 0  }
   0x7   : > { %1021 = vmatpush3.bf16.msra.mxu0 (!%p398_p2), %v1051_v0  ;;  %572 = vperm.xlu0 (!%p398_p2), %1049, %v566_v1   ;;  %v1054_v8 = vld [vmem:[%s1261_s9] sm:$0xff] (!%p398_p2)   ;;  %v597_v13 = vshrl.u32 (!%p398_p2), %v596_v12, 7  ;;  %vm612_vm2 = vcmask (!%p398_p2), 1046528   ;;  %vm632_vm3 = vcmask (!%p398_p2), 1045504   ;;  %vm652_vm4 = vcmask (!%p398_p2), 1043456  }
   0x8   : > { %1050 = vset.pattern.permute.xlu1 (!%p398_p2), %v1065_v2  ;;  %v1055_v9 = vld [vmem:[%s1264_s12] sm:$0xff] (!%p398_p2)   ;;  %1026 = vmatprep.subr.bf16.mxu1 (!%p398_p2), %v1066_v10  ;;  %vm672_vm5 = vcmask (!%p398_p2), 1042432   ;;  %vm692_vm6 = vcmask (!%p398_p2), 1041408   ;;  %vm906_vm7 = vcmask (!%p398_p2), 257024  }
   0x9   : > { %582 = vperm.xlu1 (!%p398_p2), %1050, %v568_v3   ;;  %1032 = vmatprep.subr.bf16.mxu0 (!%p398_p2), %v1066_v10  ;;  %v992_v14 = vld [vmem:[%s1256_s4] ss:$0 sm:$0xff] (!%p398_p2)  ;;  %v644_v15 = vsub.s32 (!%p398_p2), 3, %v597_v13  ;;  %v664_v16 = vsub.s32 (!%p398_p2), 4, %v597_v13  ;;  %v604_v21 = vsub.s32 (!%p398_p2), 1, %v597_v13  ;;  %v624_v22 = vsub.s32 (!%p398_p2), 2, %v597_v13 }
   0xa   : > { %1027 = vmatpush3.bf16.msra.mxu1 (!%p398_p2), %v1054_v8  ;;  %1028 = vmatprep.mubr.msk.bf16.mxu1 (!%p398_p2), %vm1067_vm1, %v1066_v10  ;;  %v993_v18 = vld [vmem:[%s1257_s5] ss:$0 sm:$0xff] (!%p398_p2)  ;;  %v598_v25 = vsub.s32 (!%p398_p2), 0, %v597_v13  ;;  %v684_v26 = vsub.s32 (!%p398_p2), 5, %v597_v13  ;;  %v704_v29 = vsub.s32 (!%p398_p2), 6, %v597_v13  ;;  %v712_v30 = vsub.s32 (!%p398_p2), 7, %v597_v13 }
   0xb   : > { %577 = vperm.xlu0 (!%p398_p2), %1049, %v567_v4   ;;  %v594_v19 = vld [vmem:[%s1258_s6] sm:$0xff] (!%p398_p2) }
   0xc   : > { %v645_v33 = vrot.slane (!%p398_p2), %v594_v19, %v644_v15  ;;  %v665_v34 = vrot.slane (!%p398_p2), %v594_v19, %v664_v16  ;;  %v605_v39 = vrot.slane (!%p398_p2), %v594_v19, %v604_v21  ;;  %v625_v40 = vrot.slane (!%p398_p2), %v594_v19, %v624_v22 }
   0xd   : > { %s1267_s26 = smov (!%p446_p3, %s976_s26), 1  ;;  %587 = vperm.xlu1 %1050, %v569_v5   ;;  %v599_v43 = vrot.slane %v594_v19, %v598_v25  ;;  %v685_v44 = vrot.slane %v594_v19, %v684_v26  ;;  %v1191_v47 = vrot.slane %v594_v19, %v704_v29  ;;  %v1193_v48 = vrot.slane %v594_v19, %v712_v30 }
   0xe   : > { %s1008_s16 = sshll.u32 %s1267_s26, 3  ;;  %s1009_s17 = sshll.u32 %s1267_s26, 4 }
   0xf   : > { %s455_s22 = scalar_lea.vmem %s1253_s1, %s1009_s17  ;;  %s450_s29 = scalar_lea.vmem %s1252_s0, %s1008_s16 }
  0x10   : > { %v1052_v6 = vld [vmem:[%s455_s22] sm:$0xff]   ;;  %v1053_v7 = vld [vmem:[%s455_s22 + $0x8] sm:$0x1f]   ;;  %s460_s22 = scalar_lea.vmem %s1265_s13, %s1008_s16 }
  0x11   : > { %1022 = vmatprep.mubr.msk.bf16.mxu0 %vm484_vm0, %v1052_v6  ;;  %v1056_v11 = vld [vmem:[%s450_s29] sm:$0xff]  }
  0x12   : > { %1023 = vmatmul.mubr.msk.bf16.vlgmr.msra.gmra.mrb[0].mxu0 %vm484_vm0, %v1053_v7 }
  0x13   : > { %1033 = vmatpush3.bf16.msra.mxu0 %v1055_v9  ;;  %1034 = vmatprep.mubr.msk.bf16.mxu0 %vm1067_vm1, %v1066_v10 }
  0x1a   : > { %1035 = vmatmul.mubr.msk.bf16.vlgmr.msra.gmra.mrb[4].mxu0 %vm484_vm0, %v1056_v11 }
  0x86   : > { %v573_v32 = vpop.permute.xlu0 %572 }
  0x88   : > { %v583_v20 = vpop.permute.xlu1 %582 }
  0x8a   : > { %v578_v54 = vpop.permute.xlu0 %577 }
  0x8c   : > { %v588_v49 = vpop.permute.xlu1 %587 }
  0xe5   : > { %v1024_v17 = vpop.f32.mrb[0].mxu0 }
  0xe6   : > { %v549_v23 = vmul.f32 %v1024_v17, %v992_v14  ;;  %v525_v24 = vpop.f32.mrb[1].mxu0 }
  0xe7   : > { %v547_v27 = vmul.f32 %v992_v14, %v525_v24  ;;  %v1025_v28 = vpop.f32.mrb[2].mxu0 }
  0xe8   : > { %v560_v31 = vadd.f32 %v993_v18, %v549_v23  ;;  %v550_v35 = vmul.f32 %v1025_v28, %v992_v14  ;;  %v528_v36 = vpop.f32.mrb[3].mxu0 }
  0xe9   : > { %v558_v37 = vadd.f32 %v993_v18, %v547_v27  ;;  %v548_v38 = vmul.f32 %v992_v14, %v528_v36 }
  0xea   : > { %v561_v41 = vadd.f32 %v993_v18, %v550_v35  ;;  %v564_v42 = vmax.f32 %v560_v31, 0.0 }
  0xeb   : > { %v562_v45 = vmax.f32 %v558_v37, 0.0  ;;  %v559_v46 = vadd.f32 %v993_v18, %v548_v38  ;;  %v994_v38 = vld [vmem:[%s1258_s6 + $0x8] ss:$0 sm:$0xff] }
  0xec   : > { %v1195_v50 = vmul.f32 %v583_v20, %v564_v42  ;;  %v565_v51 = vmax.f32 %v561_v41, 0.0 }
  0xed   : > { %v590_v52 = vmul.f32 %v573_v32, %v562_v45  ;;  %v563_v53 = vmax.f32 %v559_v46, 0.0 }
  0xee   : > { %v1197_v55 = vmul.f32 %v588_v49, %v565_v51  ;;  %v608_v56 = vmul.f32 %v605_v39, %v1195_v50  ;;  %v628_v57 = vmul.f32 %v625_v40, %v1195_v50  ;;  %v648_v58 = vmul.f32 %v645_v33, %v1195_v50 }
  0xef   : > { %v646_v59 = vmul.f32 %v645_v33, %v590_v52  ;;  %v666_v60 = vmul.f32 %v665_v34, %v590_v52  ;;  %v591_v61 = vmul.f32 %v578_v54, %v563_v53  ;;  %v600_v62 = vmul.f32 %v599_v43, %v590_v52 }
  0xf0   : > { %v606_v63 = vmul.f32 %v605_v39, %v590_v52  ;;  %v616_v0 = vrot.slane %v608_v56, 1  ;;  %v626_v1 = vmul.f32 %v625_v40, %v590_v52  ;;  %v636_v2 = vrot.slane %v628_v57, 2 }
  0xf1   : > { %v653_v3 = vrot.slane %v646_v59, 4  ;;  %v673_v4 = vrot.slane %v666_v60, 5  ;;  %v601_v5 = vmul.f32 %v599_v43, %v591_v61  ;;  %v607_v6 = vmul.f32 %v605_v39, %v591_v61 }
  0xf2   : > { %v613_v7 = vrot.slane %v606_v63, 1  ;;  %v627_v8 = vmul.f32 %v625_v40, %v591_v61  ;;  %v633_v9 = vrot.slane %v626_v1, 2  ;;  %v647_v10 = vmul.f32 %v645_v33, %v591_v61 }
  0xf3   : > { %v614_v11 = vrot.slane %v607_v6, 1  ;;  %v656_v12 = vrot.slane %v648_v58, 4  ;;  %v667_v13 = vmul.f32 %v665_v34, %v591_v61  ;;  %v668_v14 = vmul.f32 %v665_v34, %v1195_v50  ;;  %v995_v6 = vld [vmem:[%s1259_s7] ss:$0 sm:$0xff] }
  0xf4   : > { %v634_v15 = vrot.slane %v627_v8, 2  ;;  %v654_v16 = vrot.slane %v647_v10, 4  ;;  %v686_v17 = vmul.f32 %v685_v44, %v590_v52  ;;  %v687_v18 = vmul.f32 %v685_v44, %v591_v61 }
  0xf5   : > { %v615_v19 = vsel %vm612_vm2, %v613_v7, %v614_v11  ;;  %v617_v20 = vsel %vm612_vm2, %v614_v11, %v616_v0  ;;  %v674_v21 = vrot.slane %v667_v13, 5  ;;  %v676_v22 = vrot.slane %v668_v14, 5  ;;  %v891_v13 = vpop.f32.mrb[4].mxu0 }
  0xf6   : > { %v620_v23 = vadd.f32 %v615_v19, %v600_v62  ;;  %v621_v24 = vadd.f32 %v617_v20, %v601_v5  ;;  %v635_v25 = vsel %vm632_vm3, %v633_v9, %v634_v15  ;;  %v637_v26 = vsel %vm632_vm3, %v634_v15, %v636_v2  ;;  %v1036_v14 = vpop.f32.mrb[5].mxu0  ;;  %v1000_v19 = vld [vmem:[%s1263_s11] ss:$0 sm:$0xff] }
  0xf7   : > { %v655_v27 = vsel %vm652_vm4, %v653_v3, %v654_v16  ;;  %v657_v28 = vsel %vm652_vm4, %v654_v16, %v656_v12  ;;  %v675_v29 = vsel %vm672_vm5, %v673_v4, %v674_v21  ;;  %v677_v30 = vsel %vm672_vm5, %v674_v21, %v676_v22  ;;  %v894_v15 = vpop.f32.mrb[6].mxu0 }
  0xf8   : > { %v640_v31 = vadd.f32 %v635_v25, %v620_v23  ;;  %v641_v32 = vadd.f32 %v637_v26, %v621_v24  ;;  %v688_v33 = vmul.f32 %v685_v44, %v1195_v50  ;;  %v693_v34 = vrot.slane %v686_v17, 6  ;;  %v1037_v16 = vpop.f32.mrb[7].mxu0  ;;  %v999_v17 = vld [vmem:[%s1262_s10] ss:$0 sm:$0xff] }
  0xf9   : > { %v694_v35 = vrot.slane %v687_v18, 6  ;;  %v706_v36 = vmul.f32 %v1191_v47, %v591_v61  ;;  %v714_v37 = vmul.f32 %v1193_v48, %v591_v61  ;;  %v715_v42 = vmul.f32 %v1193_v48, %v1195_v50 }
  0xfa   : > { %v660_v39 = vadd.f32 %v655_v27, %v640_v31  ;;  %v661_v40 = vadd.f32 %v657_v28, %v641_v32  ;;  %v696_v41 = vrot.slane %v688_v33, 6  ;;  %v716_v44 = vmul.f32 %v1193_v48, %v1197_v55 }
  0xfb   : > { %v695_v43 = vsel %vm692_vm6, %v693_v34, %v694_v35  ;;  %v720_v45 = vrot.slane %v714_v37, 1  ;;  %v733_v46 = vmul.f32 %v994_v38, %v591_v61  ;;  %v721_v53 = vrot.slane %v715_v42, 1 }
  0xfc   : > { %v680_v49 = vadd.f32 %v675_v29, %v660_v39  ;;  %v681_v51 = vadd.f32 %v677_v30, %v661_v40  ;;  %v697_v52 = vsel %vm692_vm6, %v694_v35, %v696_v41  ;;  %v723_v54 = vrot.slane %v716_v44, 1 }
  0xfd   : > { %v734_v56 = vmul.f32 %v994_v38, %v1195_v50  ;;  %v735_v57 = vmul.f32 %v994_v38, %v1197_v55  ;;  %v739_v58 = vrot.slane %v733_v46, 2  ;;  %v707_v62 = vmul.f32 %v1191_v47, %v1195_v50  ;;  %v996_v50 = vld [vmem:[%s1260_s8] ss:$0 sm:$0xff] }
  0xfe   : > { %v700_v59 = vadd.f32 %v695_v43, %v680_v49  ;;  %v701_v60 = vadd.f32 %v697_v52, %v681_v51  ;;  %v722_v48 = vsel %vm612_vm2, %v720_v45, %v721_v53  ;;  %v724_v61 = vsel %vm612_vm2, %v721_v53, %v723_v54 }
  0xff   : > { %v740_v63 = vrot.slane %v734_v56, 2  ;;  %v742_v0 = vrot.slane %v735_v57, 2 }
 0x100   : > { %v708_v1 = vadd.f32 %v706_v36, %v700_v59  ;;  %v709_v2 = vadd.f32 %v707_v62, %v701_v60 }
 0x101   : > { %v741_v3 = vsel %vm632_vm3, %v739_v58, %v740_v63  ;;  %v743_v4 = vsel %vm632_vm3, %v740_v63, %v742_v0 }
 0x102   : > { %v727_v5 = vadd.f32 %v722_v48, %v708_v1  ;;  %v728_v55 = vadd.f32 %v724_v61, %v709_v2 }
 0x104   : > { %v746_v7 = vadd.f32 %v741_v3, %v727_v5  ;;  %v747_v47 = vadd.f32 %v743_v4, %v728_v55 }
 0x106   : > { %v756_v8 = vmul.f32 %v995_v6, %v747_v47  ;;  %v755_v9 = vmul.f32 %v995_v6, %v746_v7 }
 0x108   : > { %v764_v10 = vadd.f32 %v996_v50, %v755_v9  ;;  %v765_v11 = vadd.f32 %v996_v50, %v756_v8 }
 0x10a   : > { %v766_v12 = vpack.c.bf16 %v765_v11, %v764_v10 }
 0x10c   : > { %1029 = vmatmul.mubr.msk.bf16.vlgmr.msra.gmra.mrb[0].mxu1 %vm484_vm0, %v766_v12 }
 0x1df   : > { %v812_v18 = vpop.f32.mrb[0].mxu1 }
 0x1e0   : > { %v826_v20 = vmul.f32 %v999_v17, %v812_v18  ;;  %v1030_v21 = vpop.f32.mrb[1].mxu1 }
 0x1e1   : > { %v815_v22 = vpop.f32.mrb[2].mxu1 }
 0x1e2   : > { %v835_v23 = vadd.f32 %v1000_v19, %v826_v20  ;;  %v827_v24 = vmul.f32 %v999_v17, %v815_v22  ;;  %v1031_v25 = vpop.f32.mrb[3].mxu1 }
 0x1e4   : > { %v836_v26 = vadd.f32 %v1000_v19, %v827_v24  ;;  %v837_v27 = vmax.f32 %v835_v23, 0.0 }
 0x1e6   : > { %v892_v28 = vadd.f32 %v891_v13, %v837_v27  ;;  %v838_v29 = vmax.f32 %v836_v26, 0.0 }
 0x1e8   : > { %v1011_v30 = vpack.c.bf16 %v892_v28, %v892_v28  ;;  %v895_v31 = vadd.f32 %v894_v15, %v838_v29 }
 0x1ea   : > { %907 = vst.msk [vmem:[%s460_s22] sm:$0xf] %vm906_vm7, %v1011_v30  ;;  %v1012_v32 = vpack.c.bf16 %v895_v31, %v895_v31 }
 0x1ec   : > { %908 = vst.msk [vmem:[%s460_s22 + $0x4] sm:$0xf] %vm906_vm7, %v1012_v32 }
 0x1ed PF: > { %s23_s25 = sadd.s32 1, %s1063_s25  }
 0x1ee   : > { %p20_p4 = scmp.ge.s32.totalorder %s23_s25, 4  }
 0x1f0   :  { %22 = sbr.rel (!%p20_p4) target bundleno = 1 (0x1), region = 105 }

// kernel: _lambda_.16
= control target key start
LH: loop header
LB: loop body
LE: loop exit
PB: predicated region body
PF: predicated region fallthrough
CT: control target
= control target key end

     0   :  { %s1141_s25 = smov 0   ;;  %s1230_s0 = inlined_call_operand.vmem [shape: bf16[2,9,32], index: 0, kind: input, shape index: {}]   ;;  %s1231_s1 = inlined_call_operand.vmem [shape: bf16[2,17,32], index: 1, kind: input, shape index: {}]   ;;  %s1232_s2 = inlined_call_operand.vmem [shape: f32[17,1], index: 2, kind: input, shape index: {}]   ;;  %s1233_s3 = inlined_call_operand.vmem [shape: bf16[32,32], index: 3, kind: input, shape index: {}]   ;;  %s1234_s4 = inlined_call_operand.vmem [shape: f32[1,32], index: 4, kind: input, shape index: {}]   ;;  %s1235_s5 = inlined_call_operand.vmem [shape: f32[1,32], index: 5, kind: input, shape index: {}]   ;;  %s1236_s6 = inlined_call_operand.vmem [shape: f32[9,32], index: 6, kind: input, shape index: {}]   ;;  %s1237_s7 = inlined_call_operand.vmem [shape: f32[1,32], index: 7, kind: input, shape index: {}]   ;;  %s1238_s8 = inlined_call_operand.vmem [shape: f32[1,32], index: 8, kind: input, shape index: {}]   ;;  %s1239_s9 = inlined_call_operand.vmem [shape: bf16[32,64], index: 9, kind: input, shape index: {}]   ;;  %s1240_s10 = inlined_call_operand.vmem [shape: f32[1,64], index: 10, kind: input, shape index: {}]   ;;  %s1241_s11 = inlined_call_operand.vmem [shape: f32[1,64], index: 11, kind: input, shape index: {}]   ;;  %s1242_s12 = inlined_call_operand.vmem [shape: bf16[32,64], index: 12, kind: input, shape index: {}]   ;;  %s1243_s13 = inlined_call_operand.vmem [shape: bf16[2,9,64], index: 13, kind: output, shape index: {}]  }
   0x1 LB: > { %s965_s26 = sadd.s32 4294967295, %s1066_s25   ;;  %p969_p0 = scmp.ge.s32.totalorder %s1066_s25, 1  ;;  %s1066_s25 = sphi %s1141_s25, %s23_s25  }
   0x2   : > { %p397_p1 = scmp.lt.s32.totalorder %s1066_s25, 3 }
   0x4   : > { %p398_p2 = pnand %p969_p0, %p397_p1 }
   0x5   : > { %v1051_v0 = vld [vmem:[%s1233_s3] sm:$0xff] (!%p398_p2)   ;;  %p446_p3 = scmp.lt.s32.totalorder (!%p398_p2), %s965_s26, 1  ;;  %v1052_v1 = vld [vmem:[%s1233_s3 + $0x8] sm:$0xff] (!%p398_p2)   ;;  %v569_v3 = vld [vmem:[%s1232_s2 + $0x10] sm:$0x1] (!%p398_p2)  ;;  %v1068_v4 = vmov (!%p398_p2), 0   ;;  %v590_v14 = vlaneseq (!%p398_p2) }
   0x6   : > { %401 = sbr.rel (%p398_p2) target bundleno = 495 (0x1ef), region = 72  ;;  %1013 = vmatprep.subr.bf16.mxu0 (!%p398_p2), %v1051_v0  ;;  %v567_v2 = vld [vmem:[%s1232_s2] sm:$0xff] (!%p398_p2)  ;;  %1049 = vset.pattern.permute.xlu0 (!%p398_p2), %v1068_v4  ;;  %v568_v5 = vld [vmem:[%s1232_s2 + $0x8] sm:$0xff] (!%p398_p2)  ;;  %vm489_vm0 = vcmask (!%p398_p2), 261120   ;;  %v1069_v10 = vmov (!%p398_p2), 0.0   ;;  %vm1070_vm1 = vmmov (!%p398_p2), 0  }
   0x7   : > { %1014 = vmatpush3.bf16.msra.mxu0 (!%p398_p2), %v1051_v0  ;;  %572 = vperm.xlu0 (!%p398_p2), %1049, %v567_v2   ;;  %v1055_v8 = vld [vmem:[%s1239_s9] sm:$0xff] (!%p398_p2)   ;;  %v1057_v11 = vld [vmem:[%s1239_s9 + $0x8] sm:$0xff] (!%p398_p2)   ;;  %v591_v15 = vshrl.u32 (!%p398_p2), %v590_v14, 7  ;;  %vm604_vm2 = vcmask (!%p398_p2), 1046528   ;;  %vm620_vm3 = vcmask (!%p398_p2), 1045504   ;;  %vm636_vm4 = vcmask (!%p398_p2), 1044480  }
   0x8   : > { %1015 = vmatprep.subr.bf16.mxu0 (!%p398_p2), %v1052_v1  ;;  %1050 = vset.pattern.permute.xlu1 (!%p398_p2), %v1068_v4  ;;  %v1056_v9 = vld [vmem:[%s1242_s12] sm:$0xff] (!%p398_p2)   ;;  %v1058_v12 = vld [vmem:[%s1242_s12 + $0x8] sm:$0xff] (!%p398_p2)   ;;  %vm652_vm5 = vcmask (!%p398_p2), 1043456   ;;  %vm668_vm6 = vcmask (!%p398_p2), 1042432   ;;  %vm684_vm7 = vcmask (!%p398_p2), 1041408   ;;  %vm700_vm8 = vcmask (!%p398_p2), 1040384  }
   0x9   : > { %582 = vperm.xlu1 (!%p398_p2), %1050, %v569_v3   ;;  %1021 = vmatprep.subr.bf16.mxu1 (!%p398_p2), %v1069_v10  ;;  %v981_v16 = vld [vmem:[%s1234_s4] ss:$0 sm:$0xff] (!%p398_p2)  ;;  %v592_v20 = vsub.s32 (!%p398_p2), 0, %v591_v15  ;;  %v598_v21 = vsub.s32 (!%p398_p2), 1, %v591_v15  ;;  %v614_v22 = vsub.s32 (!%p398_p2), 2, %v591_v15  ;;  %v630_v26 = vsub.s32 (!%p398_p2), 3, %v591_v15 }
   0xa   : > { %1022 = vmatpush3.bf16.msra.mxu1 (!%p398_p2), %v1055_v8  ;;  %1025 = vmatprep.mubr.msk.bf16.mxu1 (!%p398_p2), %vm1070_vm1, %v1069_v10  ;;  %v982_v18 = vld [vmem:[%s1235_s5] ss:$0 sm:$0xff] (!%p398_p2)  ;;  %v646_v27 = vsub.s32 (!%p398_p2), 4, %v591_v15  ;;  %v662_v30 = vsub.s32 (!%p398_p2), 5, %v591_v15  ;;  %v678_v31 = vsub.s32 (!%p398_p2), 6, %v591_v15  ;;  %v694_v32 = vsub.s32 (!%p398_p2), 7, %v591_v15 }
   0xb   : > { %1016 = vmatpush3.bf16.msra.mxu0 (!%p398_p2), %v1052_v1  ;;  %577 = vperm.xlu0 (!%p398_p2), %1049, %v568_v5   ;;  %v588_v25 = vld [vmem:[%s1236_s6] sm:$0xff] (!%p398_p2)  ;;  %vm892_vm9 = vcmask (!%p398_p2), 516096   ;;  %vm893_vm10 = vsmask.f32 (!%p398_p2), 256  ;;  %vm890_vm11 = vcmask (!%p398_p2), 519168  }
   0xc   : > { %1029 = vmatprep.subr.bf16.mxu0 (!%p398_p2), %v1069_v10  ;;  %1023 = vmatprep.subr.bf16.mxu1 (!%p398_p2), %v1069_v10  ;;  %v593_v36 = vrot.slane (!%p398_p2), %v588_v25, %v592_v20  ;;  %v599_v37 = vrot.slane (!%p398_p2), %v588_v25, %v598_v21  ;;  %v615_v38 = vrot.slane (!%p398_p2), %v588_v25, %v614_v22  ;;  %vm894_vm12 = vmand (!%p398_p2), %vm892_vm9, %vm893_vm10 }
   0xd   : > { %s1245_s26 = smov (!%p446_p3, %s965_s26), 1  ;;  %v631_v41 = vrot.slane %v588_v25, %v630_v26  ;;  %v647_v42 = vrot.slane %v588_v25, %v646_v27  ;;  %v663_v43 = vrot.slane %v588_v25, %v662_v30  ;;  %v679_v44 = vrot.slane %v588_v25, %v678_v31 }
   0xe   : > { %s999_s20 = sshll.u32 %s1245_s26, 3  ;;  %s1037_s21 = smul.u32 12, %s1245_s26  ;;  %1024 = vmatpush3.bf16.msra.mxu1 %v1057_v11  ;;  %v695_v45 = vrot.slane %v588_v25, %v694_v32 }
   0xf   : > { %s450_s24 = scalar_lea.vmem %s1230_s0, %s999_s20 }
  0x10   : > { %s455_s29 = scalar_lea.vmem %s1231_s1, %s1037_s21  ;;  %v1059_v13 = vld [vmem:[%s450_s24] sm:$0x1f]   ;;  %s460_s24 = scalar_lea.vmem %s1243_s13, %s999_s20 }
  0x11   : > { %v1053_v6 = vld [vmem:[%s455_s29] sm:$0xff]   ;;  %v1054_v7 = vld [vmem:[%s455_s29 + $0x8] ss:$0 sps:$4 sm:$0x11]  }
  0x12   : > { %1017 = vmatprep.mubr.msk.bf16.mxu0 %vm489_vm0, %v1053_v6 }
  0x13   : > { %1018 = vmatmul.mubr.msk.bf16.vlgmr.msra.gmra.mrb[0].mxu0 %vm489_vm0, %v1054_v7 }
  0x14   : > { %1030 = vmatpush3.bf16.msra.mxu0 %v1056_v9  ;;  %1033 = vmatprep.mubr.msk.bf16.mxu0 %vm1070_vm1, %v1069_v10 }
  0x15   : > { %1031 = vmatprep.subr.bf16.mxu0 %v1069_v10 }
  0x18   : > { %1032 = vmatpush3.bf16.msra.mxu0 %v1058_v12 }
  0x1b   : > { %1034 = vmatmul.mubr.msk.bf16.vlgmr.msra.gmra.mrb[4].mxu0 %vm489_vm0, %v1059_v13 }
  0x86   : > { %v573_v28 = vpop.permute.xlu0 %572 }
  0x88   : > { %v583_v27 = vpop.permute.xlu1 %582 }
  0x8a   : > { %v578_v49 = vpop.permute.xlu0 %577 }
  0xe6   : > { %v1019_v17 = vpop.f32.mrb[0].mxu0 }
  0xe7   : > { %v530_v19 = vpop.f32.mrb[1].mxu0  ;;  %v553_v35 = vmul.f32 %v1019_v17, %v981_v16 }
  0xe8   : > { %v551_v23 = vmul.f32 %v981_v16, %v530_v19  ;;  %v1020_v24 = vpop.f32.mrb[2].mxu0 }
  0xe9   : > { %v533_v29 = vpop.f32.mrb[3].mxu0  ;;  %v563_v48 = vadd.f32 %v982_v18, %v553_v35 }
  0xea   : > { %v561_v33 = vadd.f32 %v982_v18, %v551_v23  ;;  %v552_v34 = vmul.f32 %v981_v16, %v533_v29 }
  0xeb   : > { %v566_v24 = vmax.f32 %v563_v48, 0.0 }
  0xec   : > { %v564_v39 = vmax.f32 %v561_v33, 0.0  ;;  %v562_v40 = vadd.f32 %v982_v18, %v552_v34 }
  0xed   : > { %v587_v34 = vmul.f32 %v583_v27, %v566_v24 }
  0xee   : > { %v585_v46 = vmul.f32 %v573_v28, %v564_v39  ;;  %v565_v47 = vmax.f32 %v562_v40, 0.0 }
  0xf0   : > { %v586_v50 = vmul.f32 %v578_v49, %v565_v47  ;;  %v594_v51 = vmul.f32 %v593_v36, %v585_v46  ;;  %v600_v52 = vmul.f32 %v599_v37, %v585_v46  ;;  %v616_v53 = vmul.f32 %v615_v38, %v585_v46 }
  0xf1   : > { %v632_v54 = vmul.f32 %v631_v41, %v585_v46  ;;  %v648_v55 = vmul.f32 %v647_v42, %v585_v46  ;;  %v664_v56 = vmul.f32 %v663_v43, %v585_v46  ;;  %v680_v57 = vmul.f32 %v679_v44, %v585_v46 }
  0xf2   : > { %v595_v58 = vmul.f32 %v593_v36, %v586_v50  ;;  %v601_v59 = vmul.f32 %v599_v37, %v586_v50  ;;  %v605_v60 = vrot.slane %v600_v52, 1  ;;  %v617_v61 = vmul.f32 %v615_v38, %v586_v50  ;;  %v983_v36 = vld [vmem:[%s1236_s6 + $0x8] ss:$0 sm:$0xff] }
  0xf3   : > { %v621_v62 = vrot.slane %v616_v53, 2  ;;  %v633_v63 = vmul.f32 %v631_v41, %v586_v50  ;;  %v637_v0 = vrot.slane %v632_v54, 3  ;;  %v649_v1 = vmul.f32 %v647_v42, %v586_v50  ;;  %v984_v42 = vld [vmem:[%s1237_s7] ss:$0 sm:$0xff]  ;;  %v875_v54 = vpop.f32.mrb[4].mxu0 }
  0xf4   : > { %v606_v2 = vrot.slane %v601_v59, 1  ;;  %v622_v3 = vrot.slane %v617_v61, 2  ;;  %v653_v4 = vrot.slane %v648_v55, 4  ;;  %v665_v5 = vmul.f32 %v663_v43, %v586_v50  ;;  %v1035_v55 = vpop.f32.mrb[5].mxu0  ;;  %v990_v59 = vld [vmem:[%s1241_s11] ss:$0 sm:$0xff] }
  0xf5   : > { %v638_v6 = vrot.slane %v633_v63, 3  ;;  %v654_v7 = vrot.slane %v649_v1, 4  ;;  %v669_v8 = vrot.slane %v664_v56, 5  ;;  %v681_v9 = vmul.f32 %v679_v44, %v586_v50  ;;  %v878_v56 = vpop.f32.mrb[6].mxu0 }
  0xf6   : > { %v607_v10 = vsel %vm604_vm2, %v605_v60, %v606_v2  ;;  %v611_v11 = vadd.f32 %v606_v2, %v595_v58  ;;  %v623_v12 = vsel %vm620_vm3, %v621_v62, %v622_v3  ;;  %v670_v13 = vrot.slane %v665_v5, 5 }
  0xf7   : > { %v610_v14 = vadd.f32 %v607_v10, %v594_v51  ;;  %v639_v15 = vsel %vm636_vm4, %v637_v0, %v638_v6  ;;  %v655_v16 = vsel %vm652_vm5, %v653_v4, %v654_v7  ;;  %v685_v17 = vrot.slane %v680_v57, 6  ;;  %v1036_v57 = vpop.f32.mrb[7].mxu0 }
  0xf8   : > { %v627_v18 = vadd.f32 %v622_v3, %v611_v11  ;;  %v671_v19 = vsel %vm668_vm6, %v669_v8, %v670_v13  ;;  %v686_v20 = vrot.slane %v681_v9, 6  ;;  %v696_v21 = vmul.f32 %v695_v45, %v585_v46  ;;  %v985_v46 = vld [vmem:[%s1238_s8] ss:$0 sm:$0xff]  ;;  %v895_v8 = vld [vmem:[%s460_s24 + $0x4] sm:$0x1] }
  0xf9   : > { %v626_v22 = vadd.f32 %v623_v12, %v610_v14  ;;  %v697_v23 = vmul.f32 %v695_v45, %v586_v50  ;;  %v713_v41 = vmul.f32 %v983_v36, %v587_v34  ;;  %v712_v44 = vmul.f32 %v983_v36, %v586_v50  ;;  %v989_v50 = vld [vmem:[%s1240_s10] ss:$0 sm:$0xff] }
  0xfa   : > { %v643_v25 = vadd.f32 %v638_v6, %v627_v18  ;;  %v687_v26 = vsel %vm684_vm7, %v685_v17, %v686_v20  ;;  %v701_v29 = vrot.slane %v696_v21, 7 }
  0xfb   : > { %v642_v28 = vadd.f32 %v639_v15, %v626_v22  ;;  %v702_v30 = vrot.slane %v697_v23, 7 }
  0xfc   : > { %v659_v31 = vadd.f32 %v654_v7, %v643_v25 }
  0xfd   : > { %v658_v32 = vadd.f32 %v655_v16, %v642_v28  ;;  %v703_v33 = vsel %vm700_vm8, %v701_v29, %v702_v30 }
  0xfe   : > { %v675_v35 = vadd.f32 %v670_v13, %v659_v31 }
  0xff   : > { %v674_v37 = vadd.f32 %v671_v19, %v658_v32 }
 0x100   : > { %v691_v38 = vadd.f32 %v686_v20, %v675_v35 }
 0x101   : > { %v690_v39 = vadd.f32 %v687_v26, %v674_v37 }
 0x102   : > { %v707_v40 = vadd.f32 %v702_v30, %v691_v38 }
 0x103   : > { %v706_v43 = vadd.f32 %v703_v33, %v690_v39 }
 0x104   : > { %v715_v45 = vadd.f32 %v713_v41, %v707_v40 }
 0x105   : > { %v714_v47 = vadd.f32 %v712_v44, %v706_v43 }
 0x106   : > { %v724_v48 = vmul.f32 %v984_v42, %v715_v45 }
 0x107   : > { %v723_v49 = vmul.f32 %v984_v42, %v714_v47 }
 0x108   : > { %v733_v51 = vadd.f32 %v985_v46, %v724_v48 }
 0x109   : > { %v732_v52 = vadd.f32 %v985_v46, %v723_v49 }
 0x10b   : > { %v734_v53 = vpack.c.bf16 %v733_v51, %v732_v52 }
 0x10d   : > { %1026 = vmatmul.mubr.msk.bf16.vlgmr.msra.gmra.mrb[0].mxu1 %vm489_vm0, %v734_v53 }
 0x1e0   : > { %v788_v58 = vpop.f32.mrb[0].mxu1 }
 0x1e1   : > { %v802_v60 = vmul.f32 %v989_v50, %v788_v58  ;;  %v1027_v61 = vpop.f32.mrb[1].mxu1 }
 0x1e2   : > { %v791_v62 = vpop.f32.mrb[2].mxu1 }
 0x1e3   : > { %v811_v63 = vadd.f32 %v990_v59, %v802_v60  ;;  %v803_v0 = vmul.f32 %v989_v50, %v791_v62  ;;  %v1028_v1 = vpop.f32.mrb[3].mxu1 }
 0x1e5   : > { %v812_v2 = vadd.f32 %v990_v59, %v803_v0  ;;  %v813_v3 = vmax.f32 %v811_v63, 0.0 }
 0x1e7   : > { %v876_v4 = vadd.f32 %v875_v54, %v813_v3  ;;  %v814_v5 = vmax.f32 %v812_v2, 0.0 }
 0x1e9   : > { %v1001_v6 = vpack.c.bf16 %v876_v4, %v876_v4  ;;  %v879_v7 = vadd.f32 %v878_v56, %v814_v5 }
 0x1eb   : > { %891 = vst.msk [vmem:[%s460_s24] sm:$0xf] %vm890_vm11, %v1001_v6  ;;  %v1002_v9 = vpack.c.bf16 %v879_v7, %v879_v7 }
 0x1ed   : > { %v896_v10 = vsel %vm894_vm12, %v1002_v9, %v895_v8 }
 0x1ee   : > { %897 = vst [vmem:[%s460_s24 + $0x4] sm:$0x1] %v896_v10 }
 0x1ef PF: > { %s23_s25 = sadd.s32 1, %s1066_s25  }
 0x1f0   : > { %p20_p4 = scmp.ge.s32.totalorder %s23_s25, 4  }
 0x1f2   :  { %22 = sbr.rel (!%p20_p4) target bundleno = 1 (0x1), region = 105 }

// kernel: _lambda_.15
= control target key start
LH: loop header
LB: loop body
LE: loop exit
PB: predicated region body
PF: predicated region fallthrough
CT: control target
= control target key end

     0   :  { %s1771_s0 = inlined_call_operand.vmem [shape: bf16[2,7,32], index: 0, kind: input, shape index: {}]   ;;  %s1772_s1 = inlined_call_operand.vmem [shape: bf16[2,7,32], index: 1, kind: input, shape index: {}]   ;;  %s1773_s2 = inlined_call_operand.vmem [shape: bf16[2,7,32], index: 2, kind: input, shape index: {}]   ;;  %s1774_s3 = inlined_call_operand.vmem [shape: bf16[2,7,32], index: 3, kind: input, shape index: {}]   ;;  %s1775_s4 = inlined_call_operand.vmem [shape: f32[7,1], index: 4, kind: input, shape index: {}]   ;;  %s1776_s5 = inlined_call_operand.vmem [shape: f32[9,32], index: 5, kind: input, shape index: {}]   ;;  %s1777_s6 = inlined_call_operand.vmem [shape: f32[1,32], index: 6, kind: input, shape index: {}]   ;;  %s1778_s7 = inlined_call_operand.vmem [shape: f32[1,32], index: 7, kind: input, shape index: {}]   ;;  %s1779_s8 = inlined_call_operand.vmem [shape: bf16[32,64], index: 8, kind: input, shape index: {}]   ;;  %s1780_s9 = inlined_call_operand.vmem [shape: f32[1,64], index: 9, kind: input, shape index: {}]   ;;  %s1781_s10 = inlined_call_operand.vmem [shape: f32[1,64], index: 10, kind: input, shape index: {}]   ;;  %s1782_s11 = inlined_call_operand.vmem [shape: bf16[32,32], index: 11, kind: input, shape index: {}]   ;;  %s1783_s12 = inlined_call_operand.vmem [shape: f32[1,32], index: 12, kind: input, shape index: {}]   ;;  %s1784_s13 = inlined_call_operand.vmem [shape: f32[1,32], index: 13, kind: input, shape index: {}]   ;;  %s1785_s14 = inlined_call_operand.vmem [shape: f32[9,32], index: 14, kind: input, shape index: {}]   ;;  %s1786_s15 = inlined_call_operand.vmem [shape: f32[1,32], index: 15, kind: input, shape index: {}]   ;;  %s1787_s16 = inlined_call_operand.vmem [shape: f32[1,32], index: 16, kind: input, shape index: {}]   ;;  %s1788_s17 = inlined_call_operand.vmem [shape: bf16[32,64], index: 17, kind: input, shape index: {}]   ;;  %s1789_s18 = inlined_call_operand.vmem [shape: f32[1,64], index: 18, kind: input, shape index: {}]   ;;  %s1790_s19 = inlined_call_operand.vmem [shape: f32[1,64], index: 19, kind: input, shape index: {}]   ;;  %s1791_s20 = inlined_call_operand.vmem [shape: bf16[2,4,64], index: 20, kind: output, shape index: {}]  }
   0x1   :  { %1793 = sst [smem:[#allocation3_spill]] %s1771_s0 }
   0x2   :  { %1794 = sst [smem:[#allocation4_spill]] %s1772_s1  ;;  %s1583_s1 = smov 0  }
   0x3   :  { %1795 = sst [smem:[#allocation5_spill]] %s1773_s2 }
   0x4   :  { %1796 = sst [smem:[#allocation6_spill]] %s1774_s3 }
   0x5   :  { %1797 = sst [smem:[#allocation7_spill]] %s1775_s4 }
   0x6   :  { %1798 = sst [smem:[#allocation8_spill]] %s1779_s8 }
   0x7   :  { %1799 = sst [smem:[#allocation9_spill]] %s1781_s10 }
   0x8   :  { %1800 = sst [smem:[#allocation10_spill]] %s1782_s11 }
   0x9   :  { %1801 = sst [smem:[#allocation11_spill]] %s1789_s18 }
   0xa   :  { %1802 = sst [smem:[#allocation12_spill]] %s1790_s19 }
   0xb   :  { %1803 = sst [smem:[#allocation13_spill]] %s1791_s20 }
   0xc LB: > { %1804 = sst [smem:[#allocation2_spill]] %s1473_s1  ;;  %s1347_s22 = sadd.s32 4294967295, %s1473_s1   ;;  %s1473_s1 = sphi %s1583_s1, %s30_s1  }
   0xd   : > { %p1351_p0 = scmp.ge.s32.totalorder %s1473_s1, 1  ;;  %p588_p1 = scmp.lt.s32.totalorder %s1473_s1, 3 }
   0xf   : > { %p589_p2 = pnand %p1351_p0, %p588_p1 }
  0x10   : > { %s1805_s8 = sld [smem:[#allocation8_spill]] (!%p589_p2)  ;;  %v687_v1 = vlaneseq (!%p589_p2)  ;;  %v1475_v2 = vmov (!%p589_p2), 0.0   ;;  %s1806_s11 = sld [smem:[#allocation10_spill]] (!%p589_p2)  ;;  %vm1476_vm0 = vmmov (!%p589_p2), 0   ;;  %v685_v6 = vld [vmem:[%s1776_s5] sm:$0xff] (!%p589_p2)  ;;  %vm797_vm1 = vcmask (!%p589_p2), 261120  }
  0x11   : > { %592 = sbr.rel (%p589_p2) target bundleno = 542 (0x21e), region = 100  ;;  %1401 = vmatprep.subr.bf16.mxu0 (!%p589_p2), %v1475_v2  ;;  %1409 = vmatprep.subr.bf16.mxu1 (!%p589_p2), %v1475_v2  ;;  %p656_p3 = scmp.lt.s32.totalorder (!%p589_p2), %s1347_s22, 1  ;;  %v1477_v29 = vmov (!%p589_p2), 0   ;;  %v1357_v47 = vld [vmem:[%s1776_s5 + $0x8] ss:$0 sm:$0xff] (!%p589_p2)  ;;  %vm1256_vm2 = vcmask (!%p589_p2), 517120  }
  0x12   : > { %1405 = vmatprep.mubr.msk.bf16.mxu0 (!%p589_p2), %vm1476_vm0, %v1475_v2  ;;  %v1607_v5 = vshrl.u32 (!%p589_p2), %v687_v1, 7  ;;  %1413 = vmatprep.mubr.msk.bf16.mxu1 (!%p589_p2), %vm1476_vm0, %v1475_v2  ;;  %s1807_s23 = sld [smem:[#allocation3_spill]] (!%p589_p2)  ;;  %s1808_s3 = sld [smem:[#allocation4_spill]] (!%p589_p2)  ;;  %v1358_v59 = vld [vmem:[%s1777_s6] ss:$0 sm:$0xff] (!%p589_p2) }
  0x13   : > { %s1810_s19 = sld [smem:[#allocation5_spill]] (!%p589_p2)  ;;  %s1811_s18 = sld [smem:[#allocation6_spill]] (!%p589_p2)  ;;  %1460 = vset.pattern.permute.xlu0 (!%p589_p2), %v1477_v29  ;;  %v1359_v61 = vld [vmem:[%s1778_s7] ss:$0 sm:$0xff] (!%p589_p2) }
  0x14   : > { %v689_v7 = vsub.s32 (!%p589_p2), 0, %v1607_v5  ;;  %v694_v8 = vsub.s32 (!%p589_p2), 1, %v1607_v5  ;;  %v703_v9 = vsub.s32 (!%p589_p2), 2, %v1607_v5  ;;  %v712_v10 = vsub.s32 (!%p589_p2), 3, %v1607_v5  ;;  %v1465_v1 = vld [vmem:[%s1788_s17] sm:$0xff] (!%p589_p2)   ;;  %s1812_s1 = sld [smem:[#allocation9_spill]] (!%p589_p2) }
  0x15   : > { %v721_v11 = vsub.s32 (!%p589_p2), 4, %v1607_v5  ;;  %v730_v12 = vsub.s32 (!%p589_p2), 5, %v1607_v5  ;;  %v739_v24 = vsub.s32 (!%p589_p2), 6, %v1607_v5  ;;  %v748_v31 = vsub.s32 (!%p589_p2), 7, %v1607_v5  ;;  %v1374_v5 = vld [vmem:[%s1786_s15] ss:$0 sm:$0xff] (!%p589_p2) }
  0x16   : > { %v1461_v0 = vld [vmem:[%s1805_s8] sm:$0xff] (!%p589_p2)   ;;  %v1462_v3 = vld [vmem:[%s1805_s8 + $0x8] sm:$0xff] (!%p589_p2)   ;;  %s1809_s8 = sld [smem:[#allocation7_spill]] (!%p589_p2)  ;;  %v690_v17 = vrot.slane (!%p589_p2), %v685_v6, %v689_v7  ;;  %v695_v18 = vrot.slane (!%p589_p2), %v685_v6, %v694_v8  ;;  %v704_v19 = vrot.slane (!%p589_p2), %v685_v6, %v703_v9  ;;  %v713_v20 = vrot.slane (!%p589_p2), %v685_v6, %v712_v10  ;;  %s1813_s21 = sld [smem:[#allocation11_spill]] (!%p589_p2) }
  0x17   : > { %1402 = vmatpush3.bf16.msra.mxu0 (!%p589_p2), %v1461_v0  ;;  %v1602_v4 = vld [vmem:[%s1806_s11] sm:$0xff] (!%p589_p2)   ;;  %v1628_v13 = vld [vmem:[%s1806_s11 + $0x8] sm:$0xff] (!%p589_p2)   ;;  %v722_v28 = vrot.slane (!%p589_p2), %v685_v6, %v721_v11  ;;  %v731_v30 = vrot.slane (!%p589_p2), %v685_v6, %v730_v12  ;;  %v740_v39 = vrot.slane (!%p589_p2), %v685_v6, %v739_v24  ;;  %v749_v43 = vrot.slane (!%p589_p2), %v685_v6, %v748_v31  ;;  %s1814_s2 = sld [smem:[#allocation12_spill]] (!%p589_p2)  ;;  %s1815_s27 = sld [smem:[#allocation13_spill]] (!%p589_p2) }
  0x18   : > { %1403 = vmatprep.subr.bf16.mxu0 %v1475_v2  ;;  %1410 = vmatpush3.bf16.msra.mxu1 %v1602_v4  ;;  %s1818_s22 = smov (!%p656_p3, %s1347_s22), 1 }
  0x19   : > { %1411 = vmatprep.subr.bf16.mxu1 %v1475_v2  ;;  %s1352_s4 = sshll.u32 %s1818_s22, 2  ;;  %s1356_s25 = sshll.u32 %s1818_s22, 1 }
  0x1a   : > { %s659_s24 = scalar_lea.vmem %s1807_s23, %s1352_s4  ;;  %s663_s26 = scalar_lea.vmem %s1808_s3, %s1352_s4 }
  0x1b   : > { %1404 = vmatpush3.bf16.msra.mxu0 %v1462_v3  ;;  %s667_s29 = scalar_lea.vmem %s1810_s19, %s1352_s4  ;;  %s671_s10 = scalar_lea.vmem %s1811_s18, %s1352_s4  ;;  %v677_v15 = vld [vmem:[%s659_s24] sm:$0xf]  ;;  %v1466_v3 = vld [vmem:[%s1788_s17 + $0x8] sm:$0xff]  }
  0x1c   : > { %1417 = vmatprep.subr.bf16.mxu0 %v1475_v2  ;;  %v858_v14 = vld [vmem:[%s1809_s8] sm:$0x7f]  ;;  %1412 = vmatpush3.bf16.msra.mxu1 %v1628_v13  ;;  %v681_v25 = vunpack.c.l.bf16 %v677_v15 }
  0x1d   : > { %v1646_v16 = vld [vmem:[%s663_s26] sm:$0xf]  ;;  %1425 = vmatprep.subr.bf16.mxu1 %v1475_v2  ;;  %937 = vperm.xlu0 %1460, %v858_v14   ;;  %s675_s28 = scalar_lea.vmem %s1815_s27, %s1356_s25 }
  0x1e   : > { %v679_v21 = vld [vmem:[%s667_s29] sm:$0xf]  ;;  %v682_v23 = vunpack.c.l.bf16 %v1646_v16  ;;  %v723_v38 = vmul.f32 %v722_v28, %v681_v25 }
  0x1f   : > { %v1657_v22 = vld [vmem:[%s671_s10] sm:$0xf]  ;;  %v683_v26 = vunpack.c.l.bf16 %v679_v21  ;;  %1414 = vmatmul.mubr.msk.bf16.vlgmr.msra.gmra.mrb[0].mxu1 %vm797_vm1, %v677_v15 }
  0x20   : > { %v684_v27 = vunpack.c.l.bf16 %v1657_v22  ;;  %v714_v35 = vmul.f32 %v713_v20, %v682_v23  ;;  %1426 = vmatpush3.bf16.msra.mxu1 %v1602_v4  ;;  %1429 = vmatprep.mubr.msk.bf16.mxu1 %vm1476_vm0, %v1475_v2  ;;  %v732_v42 = vmul.f32 %v731_v30, %v682_v23  ;;  %v725_v45 = vrot.slane %v723_v38, 3 }
  0x21   : > { %v696_v33 = vmul.f32 %v695_v18, %v683_v26  ;;  %1427 = vmatprep.subr.bf16.mxu1 %v1475_v2  ;;  %v750_v50 = vmul.f32 %v749_v43, %v683_v26 }
  0x22   : > { %v691_v32 = vmul.f32 %v690_v17, %v684_v27  ;;  %v705_v34 = vmul.f32 %v704_v19, %v684_v27  ;;  %v716_v41 = vrot.slane %v714_v35, 2  ;;  %v741_v46 = vmul.f32 %v740_v39, %v684_v27 }
  0x23   : > { %v698_v36 = vrot.slane %v696_v33, 1  ;;  %v734_v49 = vrot.slane %v732_v42, 3  ;;  %v759_v53 = vmul.f32 %v1357_v47, %v684_v27  ;;  %v752_v55 = vrot.slane %v750_v50, 3 }
  0x24   : > { %v707_v37 = vrot.slane %v705_v34, 1  ;;  %1428 = vmatpush3.bf16.msra.mxu1 %v1628_v13  ;;  %v743_v52 = vrot.slane %v741_v46, 2 }
  0x25   : > { %v700_v40 = vadd.f32 %v698_v36, %v691_v32  ;;  %1441 = vmatprep.subr.bf16.mxu1 %v1475_v2  ;;  %v761_v57 = vrot.slane %v759_v53, 3  ;;  %v1082_v36 = vld [vmem:[%s1785_s14] sm:$0xff] }
  0x26   : > { %v1110_v50 = vrot.slane %v1082_v36, %v712_v10  ;;  %v1087_v53 = vrot.slane %v1082_v36, %v689_v7  ;;  %v1137_v7 = vrot.slane %v1082_v36, %v739_v24 }
  0x27   : > { %v709_v44 = vadd.f32 %v707_v37, %v700_v40  ;;  %1430 = vmatmul.mubr.msk.bf16.vlgmr.msra.gmra.mrb[4].mxu1 %vm797_vm1, %v679_v21  ;;  %v1092_v40 = vrot.slane %v1082_v36, %v694_v8  ;;  %v1101_v8 = vrot.slane %v1082_v36, %v703_v9 }
  0x28   : > { %1445 = vmatprep.mubr.msk.bf16.mxu1 %vm1476_vm0, %v1475_v2  ;;  %1442 = vmatpush3.bf16.msra.mxu1 %v1465_v1  ;;  %v1146_v1 = vrot.slane %v1082_v36, %v748_v31 }
  0x29   : > { %v718_v48 = vadd.f32 %v716_v41, %v709_v44  ;;  %1443 = vmatprep.subr.bf16.mxu1 %v1475_v2 }
  0x2b   : > { %v727_v51 = vadd.f32 %v725_v45, %v718_v48 }
  0x2c   : > { %1444 = vmatpush3.bf16.msra.mxu1 %v1466_v3 }
  0x2d   : > { %v736_v54 = vadd.f32 %v734_v49, %v727_v51 }
  0x2f   : > { %v745_v56 = vadd.f32 %v743_v52, %v736_v54 }
  0x31   : > { %v754_v58 = vadd.f32 %v752_v55, %v745_v56  ;;  %v1119_v56 = vrot.slane %v1082_v36, %v721_v11 }
  0x33   : > { %v763_v60 = vadd.f32 %v761_v57, %v754_v58 }
  0x35   : > { %v771_v62 = vmul.f32 %v1358_v59, %v763_v60  ;;  %v1128_v59 = vrot.slane %v1082_v36, %v730_v12  ;;  %v1373_v12 = vld [vmem:[%s1785_s14 + $0x8] ss:$0 sm:$0xff] }
  0x37   : > { %v779_v63 = vadd.f32 %v1359_v61, %v771_v62 }
  0x39   : > { %v780_v0 = vpack.c.bf16 %v779_v63, %v779_v63 }
  0x3b   : > { %1406 = vmatmul.mubr.msk.bf16.vlgmr.msra.gmra.mrb[0].mxu0 %vm797_vm1, %v780_v0 }
  0x3c   : > { %1418 = vmatpush3.bf16.msra.mxu0 %v1602_v4  ;;  %1421 = vmatprep.mubr.msk.bf16.mxu0 %vm1476_vm0, %v1475_v2 }
  0x3d   : > { %1419 = vmatprep.subr.bf16.mxu0 %v1475_v2 }
  0x40   : > { %1420 = vmatpush3.bf16.msra.mxu0 %v1628_v13 }
  0x41   : > { %1433 = vmatprep.subr.bf16.mxu0 %v1475_v2 }
  0x43   : > { %1422 = vmatmul.mubr.msk.bf16.vlgmr.msra.gmra.mrb[4].mxu0 %vm797_vm1, %v1646_v16 }
  0x44   : > { %1434 = vmatpush3.bf16.msra.mxu0 %v1602_v4  ;;  %1437 = vmatprep.mubr.msk.bf16.mxu0 %vm1476_vm0, %v1475_v2 }
  0x45   : > { %1435 = vmatprep.subr.bf16.mxu0 %v1475_v2  ;;  %v1369_v2 = vld [vmem:[%s1784_s13] ss:$0 sm:$0xff] }
  0x48   : > { %1436 = vmatpush3.bf16.msra.mxu0 %v1628_v13 }
  0x4b   : > { %1438 = vmatmul.mubr.msk.bf16.vlgmr.msra.gmra.mrb[8].mxu0 %vm797_vm1, %v1657_v22  ;;  %v1368_v22 = vld [vmem:[%s1783_s12] ss:$0 sm:$0xff] }
  0x9c   : > { %v938_v37 = vpop.permute.xlu0 %937 }
  0xf2   : > { %v912_v4 = vpop.f32.mrb[0].mxu1 }
  0xf3   : > { %v1415_v6 = vpop.f32.mrb[1].mxu1  ;;  %v925_v32 = vmul.f32 %v1368_v22, %v912_v4 }
  0xf4   : > { %v915_v14 = vpop.f32.mrb[2].mxu1 }
  0xf5   : > { %v1416_v15 = vpop.f32.mrb[3].mxu1  ;;  %v933_v38 = vadd.f32 %v1369_v2, %v925_v32 }
  0xf7   : > { %v934_v46 = vmax.f32 %v933_v38, 0.0 }
  0xf9   : > { %v940_v54 = vmul.f32 %v938_v37, %v934_v46 }
  0xfa   : > { %v1025_v13 = vpop.f32.mrb[4].mxu1 }
  0xfb   : > { %v1431_v16 = vpop.f32.mrb[5].mxu1  ;;  %v1031_v25 = vmul.f32 %v1368_v22, %v1025_v13  ;;  %v1120_v61 = vmul.f32 %v1119_v56, %v940_v54 }
  0xfc   : > { %v1028_v17 = vpop.f32.mrb[6].mxu1 }
  0xfd   : > { %v1432_v18 = vpop.f32.mrb[7].mxu1  ;;  %v1032_v26 = vadd.f32 %v1369_v2, %v1031_v25  ;;  %v1122_v11 = vrot.slane %v1120_v61, 3 }
  0xff   : > { %v1033_v34 = vmax.f32 %v1032_v26, 0.0 }
 0x101   : > { %v1034_v39 = vmul.f32 %v1033_v34, %v938_v37 }
 0x103   : > { %v1093_v47 = vmul.f32 %v1092_v40, %v1034_v39  ;;  %v1147_v15 = vmul.f32 %v1146_v1, %v1034_v39 }
 0x105   : > { %v1095_v55 = vrot.slane %v1093_v47, 1  ;;  %v1149_v24 = vrot.slane %v1147_v15, 3 }
 0x10e   : > { %v1714_v19 = vpop.f32.mrb[0].mxu0 }
 0x10f   : > { %v1407_v20 = vpop.f32.mrb[1].mxu0 }
 0x110   : > { %v838_v21 = vpop.f32.mrb[2].mxu0 }
 0x111   : > { %v1408_v23 = vpop.f32.mrb[3].mxu0 }
 0x112   : > { %v1375_v23 = vld [vmem:[%s1787_s16] ss:$0 sm:$0xff] }
 0x116   : > { %v978_v27 = vpop.f32.mrb[4].mxu0 }
 0x117   : > { %v984_v28 = vmul.f32 %v1368_v22, %v978_v27  ;;  %v1423_v29 = vpop.f32.mrb[5].mxu0  ;;  %v1363_v27 = vld [vmem:[%s1780_s9] ss:$0 sm:$0xff] }
 0x118   : > { %v981_v30 = vpop.f32.mrb[6].mxu0  ;;  %v1364_v29 = vld [vmem:[%s1812_s1] ss:$0 sm:$0xff] }
 0x119   : > { %v1424_v33 = vpop.f32.mrb[7].mxu0  ;;  %v985_v35 = vadd.f32 %v1369_v2, %v984_v28  ;;  %v848_v28 = vmul.f32 %v1363_v27, %v1714_v19  ;;  %v1379_v30 = vld [vmem:[%s1813_s21] ss:$0 sm:$0xff] }
 0x11a   : > { %v1380_v33 = vld [vmem:[%s1814_s2] ss:$0 sm:$0xff] }
 0x11b   : > { %v986_v42 = vmax.f32 %v985_v35, 0.0  ;;  %v856_v34 = vadd.f32 %v1364_v29, %v848_v28 }
 0x11d   : > { %v987_v51 = vmul.f32 %v986_v42, %v938_v37  ;;  %v857_v19 = vmax.f32 %v856_v34, 0.0 }
 0x11e   : > { %v1072_v41 = vpop.f32.mrb[8].mxu0 }
 0x11f   : > { %v1078_v43 = vmul.f32 %v1368_v22, %v1072_v41  ;;  %v1439_v44 = vpop.f32.mrb[9].mxu0  ;;  %v1111_v58 = vmul.f32 %v1110_v50, %v987_v51  ;;  %v1129_v9 = vmul.f32 %v1128_v59, %v987_v51 }
 0x120   : > { %v1075_v45 = vpop.f32.mrb[10].mxu0 }
 0x121   : > { %v1079_v48 = vadd.f32 %v1369_v2, %v1078_v43  ;;  %v1440_v49 = vpop.f32.mrb[11].mxu0  ;;  %v1113_v0 = vrot.slane %v1111_v58, 2  ;;  %v1131_v14 = vrot.slane %v1129_v9, 3 }
 0x123   : > { %v1080_v52 = vmax.f32 %v1079_v48, 0.0 }
 0x125   : > { %v1081_v57 = vmul.f32 %v1080_v52, %v938_v37 }
 0x127   : > { %v1088_v60 = vmul.f32 %v1087_v53, %v1081_v57  ;;  %v1102_v10 = vmul.f32 %v1101_v8, %v1081_v57  ;;  %v1138_v6 = vmul.f32 %v1137_v7, %v1081_v57  ;;  %v1156_v18 = vmul.f32 %v1373_v12, %v1081_v57 }
 0x129   : > { %v1097_v62 = vadd.f32 %v1095_v55, %v1088_v60  ;;  %v1104_v63 = vrot.slane %v1102_v10, 1  ;;  %v1140_v17 = vrot.slane %v1138_v6, 2  ;;  %v1158_v22 = vrot.slane %v1156_v18, 3 }
 0x12b   : > { %v1106_v3 = vadd.f32 %v1104_v63, %v1097_v62 }
 0x12d   : > { %v1115_v4 = vadd.f32 %v1113_v0, %v1106_v3 }
 0x12f   : > { %v1124_v13 = vadd.f32 %v1122_v11, %v1115_v4 }
 0x131   : > { %v1133_v16 = vadd.f32 %v1131_v14, %v1124_v13 }
 0x133   : > { %v1142_v20 = vadd.f32 %v1140_v17, %v1133_v16 }
 0x135   : > { %v1151_v21 = vadd.f32 %v1149_v24, %v1142_v20 }
 0x137   : > { %v1160_v31 = vadd.f32 %v1158_v22, %v1151_v21 }
 0x139   : > { %v1168_v25 = vmul.f32 %v1374_v5, %v1160_v31 }
 0x13b   : > { %v1176_v2 = vadd.f32 %v1375_v23, %v1168_v25 }
 0x13d   : > { %v1177_v26 = vpack.c.bf16 %v1176_v2, %v1176_v2 }
 0x13f   : > { %1446 = vmatmul.mubr.msk.bf16.vlgmr.msra.gmra.mrb[8].mxu1 %vm797_vm1, %v1177_v26 }
 0x212   : > { %v1231_v32 = vpop.f32.mrb[8].mxu1 }
 0x213   : > { %v1244_v35 = vmul.f32 %v1379_v30, %v1231_v32  ;;  %v1447_v36 = vpop.f32.mrb[9].mxu1 }
 0x214   : > { %v1234_v37 = vpop.f32.mrb[10].mxu1 }
 0x215   : > { %v1252_v38 = vadd.f32 %v1380_v33, %v1244_v35  ;;  %v1448_v39 = vpop.f32.mrb[11].mxu1 }
 0x217   : > { %v1253_v40 = vmax.f32 %v1252_v38, 0.0 }
 0x219   : > { %v1254_v41 = vadd.f32 %v1253_v40, %v857_v19 }
 0x21b   : > { %v1255_v42 = vpack.c.bf16 %v1254_v41, %v1254_v41 }
 0x21d   : > { %1257 = vst.msk [vmem:[%s675_s28] sm:$0x3] %vm1256_vm2, %v1255_v42 }
 0x21e PF: > { %s1816_s29 = sld [smem:[#allocation2_spill]] }
 0x224   : > { %s30_s1 = sadd.s32 1, %s1816_s29  }
 0x225   : > { %p27_p4 = scmp.ge.s32.totalorder %s30_s1, 4  }
 0x227   :  { %29 = sbr.rel (!%p27_p4) target bundleno = 12 (0xc), region = 139 }

// kernel: _lambda_.17
= control target key start
LH: loop header
LB: loop body
LE: loop exit
PB: predicated region body
PF: predicated region fallthrough
CT: control target
= control target key end

     0   :  { %v590_v1 = vmov 0.0   ;;  %vm591_vm0 = vmmov 0   ;;  %vm58_vm1 = vcmask 523264   ;;  %s768_s0 = inlined_call_operand.vmem [shape: bf16[2,1,64], index: 0, kind: input, shape index: {}]   ;;  %s769_s1 = inlined_call_operand.vmem [shape: bf16[64,128], index: 1, kind: input, shape index: {}]   ;;  %s770_s2 = inlined_call_operand.vmem [shape: f32[1,128], index: 2, kind: input, shape index: {}]   ;;  %s771_s3 = inlined_call_operand.vmem [shape: f32[1,128], index: 3, kind: input, shape index: {}]   ;;  %s772_s4 = inlined_call_operand.vmem [shape: bf16[128,10], index: 4, kind: input, shape index: {}]   ;;  %s773_s5 = inlined_call_operand.vmem [shape: f32[1,10], index: 5, kind: input, shape index: {}]   ;;  %s774_s6 = inlined_call_operand.hbm [shape: f32[2,10], index: 6, kind: output, shape index: {}]  }
   0x1   :  { %v542_v0 = vld [vmem:[%s769_s1] sm:$0xff]   ;;  %475 = vmatprep.subr.bf16.mxu1 %v590_v1  ;;  %507 = vmatprep.subr.bf16.mxu0 %v590_v1  ;;  %v544_v3 = vld [vmem:[%s769_s1 + $0x8] sm:$0xff]   ;;  %v546_v5 = vld [vmem:[%s769_s1 + $0x10] sm:$0xff]  }
   0x2   :  { %v543_v2 = vld [vmem:[%s769_s1] sm:$0xff]   ;;  %476 = vmatpush3.bf16.msra.mxu1 %v542_v0  ;;  %483 = vmatprep.mubr.msk.bf16.mxu1 %vm591_vm0, %v590_v1  ;;  %v545_v4 = vld [vmem:[%s769_s1 + $0x8] sm:$0xff]   ;;  %v547_v6 = vld [vmem:[%s769_s1 + $0x10] sm:$0xff]  }
   0x3   :  { %508 = vmatpush3.bf16.msra.mxu0 %v543_v2  ;;  %477 = vmatprep.subr.bf16.mxu1 %v590_v1  ;;  %v548_v7 = vld [vmem:[%s769_s1 + $0x18] sm:$0xff]   ;;  %v25_v9 = vld [vmem:[%s768_s0] sm:$0x1]  ;;  %v433_v10 = vld [vmem:[%s768_s0 + $0x1] sm:$0x1] }
   0x4   :  { %509 = vmatprep.subr.bf16.mxu0 %v590_v1  ;;  %515 = vmatprep.mubr.msk.bf16.mxu0 %vm591_vm0, %v590_v1  ;;  %v549_v8 = vld [vmem:[%s769_s1 + $0x18] sm:$0xff]   ;;  %v550_v11 = vld [vmem:[%s772_s4] sm:$0xff]   ;;  %v552_v13 = vld [vmem:[%s772_s4 + $0x8] sm:$0xff]  }
   0x5   :  { %v551_v12 = vld [vmem:[%s772_s4] sm:$0xff]   ;;  %v553_v14 = vld [vmem:[%s772_s4 + $0x8] sm:$0xff]   ;;  %v554_v15 = vld [vmem:[%s772_s4 + $0x10] sm:$0xff]  }
   0x6   :  { %478 = vmatpush3.bf16.msra.mxu1 %v544_v3  ;;  %v555_v16 = vld [vmem:[%s772_s4 + $0x10] sm:$0xff]  }
   0x7   :  { %510 = vmatpush3.bf16.msra.mxu0 %v545_v4  ;;  %479 = vmatprep.subr.bf16.mxu1 %v590_v1 }
   0x8   :  { %511 = vmatprep.subr.bf16.mxu0 %v590_v1 }
   0xa   :  { %480 = vmatpush3.bf16.msra.mxu1 %v546_v5 }
   0xb   :  { %512 = vmatpush3.bf16.msra.mxu0 %v547_v6  ;;  %481 = vmatprep.subr.bf16.mxu1 %v590_v1 }
   0xc   :  { %513 = vmatprep.subr.bf16.mxu0 %v590_v1 }
   0xe   :  { %482 = vmatpush3.bf16.msra.mxu1 %v548_v7 }
   0xf   :  { %514 = vmatpush3.bf16.msra.mxu0 %v549_v8  ;;  %487 = vmatprep.subr.bf16.mxu1 %v590_v1 }
  0x10   :  { %519 = vmatprep.subr.bf16.mxu0 %v590_v1 }
  0x11   :  { %484 = vmatmul.mubr.msk.bf16.vlgmr.msra.gmra.mrb[0].mxu1 %vm58_vm1, %v25_v9 }
  0x12   :  { %516 = vmatmul.mubr.msk.bf16.vlgmr.msra.gmra.mrb[0].mxu0 %vm58_vm1, %v433_v10  ;;  %488 = vmatpush3.bf16.msra.mxu1 %v550_v11 }
  0x13   :  { %520 = vmatpush3.bf16.msra.mxu0 %v551_v12  ;;  %489 = vmatprep.subr.bf16.mxu1 %v590_v1 }
  0x14   :  { %521 = vmatprep.subr.bf16.mxu0 %v590_v1  ;;  %503 = vmatprep.mubr.msk.bf16.mxu1 %vm591_vm0, %v590_v1 }
  0x15   :  { %535 = vmatprep.mubr.msk.bf16.mxu0 %vm591_vm0, %v590_v1 }
  0x16   :  { %490 = vmatpush3.bf16.msra.mxu1 %v552_v13 }
  0x17   :  { %522 = vmatpush3.bf16.msra.mxu0 %v553_v14  ;;  %491 = vmatprep.subr.bf16.mxu1 %v590_v1 }
  0x18   :  { %11 = vsyncpa [#allocation3], 0  ;;  %523 = vmatprep.subr.bf16.mxu0 %v590_v1  ;;  %v556_v17 = vld [vmem:[%s772_s4 + $0x18] sm:$0xff]   ;;  %v558_v19 = vld [vmem:[%s772_s4 + $0x20] sm:$0xff]   ;;  %s592_s30 = smov [#allocation2]   ;;  %vm214_vm2 = vcmask 73728  }
  0x19   :  { %v557_v18 = vld [vmem:[%s772_s4 + $0x18] sm:$0xff]   ;;  %v559_v20 = vld [vmem:[%s772_s4 + $0x20] sm:$0xff]   ;;  %v560_v21 = vld [vmem:[%s772_s4 + $0x28] sm:$0xff]   ;;  %s412_s7 = sshll.u32 %s592_s30, 4  ;;  %s413_s7 = int_to_ptr.vmem [resolvable:$true] %s412_s7 }
  0x1a   :  { %492 = vmatpush3.bf16.msra.mxu1 %v554_v15  ;;  %v561_v22 = vld [vmem:[%s772_s4 + $0x28] sm:$0xff]   ;;  %v562_v23 = vld [vmem:[%s772_s4 + $0x30] sm:$0xff]   ;;  %v564_v25 = vld [vmem:[%s772_s4 + $0x38] sm:$0xff]   ;;  %s566_s8 = scalar_lea.vmem %s413_s7, 32  ;;  %p571_p1 = scmp.lt.s32.totalorder %s413_s7, %s413_s7 }
  0x1b   :  { %524 = vmatpush3.bf16.msra.mxu0 %v555_v16  ;;  %493 = vmatprep.subr.bf16.mxu1 %v590_v1  ;;  %v563_v24 = vld [vmem:[%s772_s4 + $0x30] sm:$0xff]   ;;  %v565_v26 = vld [vmem:[%s772_s4 + $0x38] sm:$0xff]   ;;  %v102_v27 = vld [vmem:[%s770_s2] sm:$0x1]  ;;  %p567_p0 = scmp.ne.s32.totalorder %s413_s7, %s566_s8  ;;  %p572_p2 = scmp.lt.s32.totalorder %s566_s8, %s566_s8 }
  0x1c   :  { %525 = vmatprep.subr.bf16.mxu0 %v590_v1  ;;  %v293_v28 = vld [vmem:[%s770_s2] sm:$0x1] }
  0x1d   :  { %v104_v30 = vld [vmem:[%s771_s3] sm:$0x1]  ;;  %p573_p3 = por %p572_p2, %p571_p1 }
  0x1e   :  { %494 = vmatpush3.bf16.msra.mxu1 %v556_v17  ;;  %v295_v33 = vld [vmem:[%s771_s3] sm:$0x1] }
  0x1f   :  { %526 = vmatpush3.bf16.msra.mxu0 %v557_v18  ;;  %495 = vmatprep.subr.bf16.mxu1 %v590_v1  ;;  %v125_v47 = vld [vmem:[%s773_s5] sm:$0x1]  ;;  %p574_p4 = pnand %p573_p3, %p567_p0 }
  0x20   :  { %527 = vmatprep.subr.bf16.mxu0 %v590_v1  ;;  %v316_v48 = vld [vmem:[%s773_s5] sm:$0x1] }
  0x22   :  { %496 = vmatpush3.bf16.msra.mxu1 %v558_v19 }
  0x23   :  { %528 = vmatpush3.bf16.msra.mxu0 %v559_v20  ;;  %497 = vmatprep.subr.bf16.mxu1 %v590_v1 }
  0x24   :  { %529 = vmatprep.subr.bf16.mxu0 %v590_v1 }
  0x26   :  { %498 = vmatpush3.bf16.msra.mxu1 %v560_v21 }
  0x27   :  { %530 = vmatpush3.bf16.msra.mxu0 %v561_v22  ;;  %499 = vmatprep.subr.bf16.mxu1 %v590_v1 }
  0x28   :  { %531 = vmatprep.subr.bf16.mxu0 %v590_v1 }
  0x2a   :  { %500 = vmatpush3.bf16.msra.mxu1 %v562_v23 }
  0x2b   :  { %532 = vmatpush3.bf16.msra.mxu0 %v563_v24  ;;  %501 = vmatprep.subr.bf16.mxu1 %v590_v1 }
  0x2c   :  { %533 = vmatprep.subr.bf16.mxu0 %v590_v1 }
  0x2e   :  { %502 = vmatpush3.bf16.msra.mxu1 %v564_v25 }
  0x2f   :  { %534 = vmatpush3.bf16.msra.mxu0 %v565_v26 }
  0xe4   :  { %v96_v29 = vpop.f32.mrb[0].mxu1 }
  0xe5   :  { %v103_v31 = vmul.f32 %v102_v27, %v96_v29  ;;  %v287_v32 = vpop.f32.mrb[0].mxu0  ;;  %v485_v34 = vpop.f32.mrb[1].mxu1 }
  0xe6   :  { %v294_v35 = vmul.f32 %v293_v28, %v287_v32  ;;  %v517_v36 = vpop.f32.mrb[1].mxu0  ;;  %v99_v37 = vpop.f32.mrb[2].mxu1 }
  0xe7   :  { %v105_v38 = vadd.f32 %v104_v30, %v103_v31  ;;  %v290_v39 = vpop.f32.mrb[2].mxu0  ;;  %v486_v40 = vpop.f32.mrb[3].mxu1 }
  0xe8   :  { %v296_v41 = vadd.f32 %v295_v33, %v294_v35  ;;  %v518_v42 = vpop.f32.mrb[3].mxu0 }
  0xe9   :  { %v106_v43 = vmax.f32 %v105_v38, 0.0 }
  0xea   :  { %v297_v44 = vmax.f32 %v296_v41, 0.0 }
  0xeb   :  { %v108_v45 = vpack.c.bf16 %v106_v43, %v106_v43 }
  0xec   :  { %v299_v46 = vpack.c.bf16 %v297_v44, %v297_v44 }
  0xed   :  { %504 = vmatmul.mubr.bf16.vlgmr.msra.gmra.mrb[4].mxu1 %v108_v45 }
  0xee   :  { %536 = vmatmul.mubr.bf16.vlgmr.msra.gmra.mrb[4].mxu0 %v299_v46 }
 0x1c0   :  { %v208_v49 = vpop.f32.mrb[4].mxu1 }
 0x1c1   :  { %v209_v50 = vadd.f32 %v208_v49, %v125_v47  ;;  %v399_v51 = vpop.f32.mrb[4].mxu0  ;;  %v505_v52 = vpop.f32.mrb[5].mxu1 }
 0x1c2   :  { %v400_v53 = vadd.f32 %v399_v51, %v316_v48  ;;  %v537_v54 = vpop.f32.mrb[5].mxu0  ;;  %v211_v55 = vpop.f32.mrb[6].mxu1 }
 0x1c3   :  { %215 = vst.msk [vmem:[#allocation2] sm:$0x1] %vm214_vm2, %v209_v50  ;;  %v402_v56 = vpop.f32.mrb[6].mxu0  ;;  %v506_v57 = vpop.f32.mrb[7].mxu1 }
 0x1c4   :  { %405 = vst.msk [vmem:[#allocation2 + $0x1] sm:$0x1] %vm214_vm2, %v400_v53  ;;  %v538_v58 = vpop.f32.mrb[7].mxu0 }
 0x1c5   :  { %577 = shalt.err (!%p574_p4)
}
 0x1c6   :  { %s578_s10 = scalar_lea.hbm %s774_s6, 32 }
 0x1c7   :  { %p579_p5 = scmp.ne.s32.totalorder %s774_s6, %s578_s10  ;;  %p582_p6 = scmp.lt.u32.totalorder %s578_s10, %s774_s6 }
 0x1c9   :  { %p584_p7 = pnand %p582_p6, %p579_p5 }
 0x1cb   :  { %587 = shalt.err (!%p584_p7)
}
 0x1cc   :  { %415 = dma.vmem_to_hbm [thread:$0]  %s413_s7, 32, %s774_s6, [#allocation3]  }
 0x1cd   :  { %588 = dma.done.wait [#allocation3], 32  }
 0x1ce   :  { %589 = vsyncadd [#allocation3], 4294967264 }
 0x1cf   :  { %419 = vsyncpa [#allocation3], 1 }

</bundles_post_ra>
